<compile_context>
chip_gen: v7x
topology: tpu7x:2x2x1
jax: 0.10.0
libtpu: 0.0.40
codegen_flags: <defaults>
</compile_context>

<pallas_src>
import functools

import numpy as np

import jax
import jax.numpy as jnp
from jax.experimental import pallas as pl
from jax.experimental.pallas import tpu as pltpu


# ---------------------------------------------------------------------------
# Pallas kernels
# ---------------------------------------------------------------------------
def conv_block_kernel(x_ref, m_ref, wa_ref, ba_ref, wb_ref, bb_ref, o_ref,
                      pa_scr, pb_scr, z_scr, *, H, W):
    """One full conv block for one image, entirely in VMEM.

    x_ref:  (1, H*W, Cin) f32   activation, rows in (h, w) order, channels minor.
    m_ref:  (9, H*W, 1)  f32    0/1 boundary masks per 3x3 tap.
    wa_ref: (9, Cin, Ca) bf16   BN-folded conv_a weights (tap-major).
    ba_ref: (1, Ca)      f32    BN-folded conv_a bias.
    wb_ref: (9, Ca, Cb)  bf16   BN-folded conv_b weights.
    bb_ref: (1, Cb)      f32    BN-folded conv_b bias.
    o_ref:  (1, H*W//4, Cb) f32 pooled output, rows in (h, w) order.
    pa_scr/pb_scr: zero-padded (H*W + 2*(W+1), C) staging buffers for the shifted-tap reads.
    z_scr:  (H*W, Cb) staging buffer for the pooling strided loads.
    """
    P = H * W
    H2, W2 = H // 2, W // 2
    pad = W + 1                      # max |row shift| of a 3x3 tap in (h, w)-flattened order
    ca = wa_ref.shape[2]
    cb = wb_ref.shape[2]

    # Zero the padded staging buffers (keeps halo rows finite/zero), then place the image.
    pa_scr[...] = jnp.zeros(pa_scr.shape, pa_scr.dtype)
    pb_scr[...] = jnp.zeros(pb_scr.shape, pb_scr.dtype)
    pa_scr[pad:pad + P, :] = x_ref[0]

    def conv3x3_relu(src_ref, w_ref, b_ref, cout):
        # 3x3 conv as 9 shifted row-windows of the padded (P, C) buffer, each a small MXU matmul.
        acc = jnp.zeros((P, cout), jnp.float32)
        for k in range(9):
            dy, dx = k // 3 - 1, k % 3 - 1
            off = dy * W + dx
            win = src_ref[pad + off:pad + off + P, :]          # (P, cin) f32
            if dy != 0 or dx != 0:
                win = win * m_ref[k]                           # zero out-of-image taps
            acc = acc + jnp.dot(win.astype(jnp.bfloat16), w_ref[k],
                                preferred_element_type=jnp.float32)
        return jnp.maximum(acc + b_ref[...], 0.0)              # bias + ReLU (f32)

    y = conv3x3_relu(pa_scr, wa_ref, ba_ref, ca)               # (P, Ca) -- stays in VMEM
    pb_scr[pad:pad + P, :] = y
    z_scr[...] = conv3x3_relu(pb_scr, wb_ref, bb_ref, cb)      # (P, Cb)

    # Fused 2x2 / stride-2 max-pool.
    # Horizontal: pair (w, w+1) via two stride-2 row loads -> rows ordered (h, w//2).
    zw = jnp.maximum(z_scr[pl.ds(0, P // 2, stride=2), :],
                     z_scr[pl.ds(1, P // 2, stride=2), :])     # (P/2, Cb)
    # Vertical: pair image rows (2*hp, 2*hp+1); each pair is two contiguous W//2-row chunks.
    for hp in range(H2):
        top = zw[(2 * hp) * W2:(2 * hp + 1) * W2, :]
        bot = zw[(2 * hp + 1) * W2:(2 * hp + 2) * W2, :]
        o_ref[0, hp * W2:(hp + 1) * W2, :] = jnp.maximum(top, bot)


def mlp_kernel(x_ref, w1_ref, b1_ref, w2_ref, b2_ref, w3_ref, b3_ref, o_ref):
    """fc1 -> ReLU -> (dropout = identity) -> fc2 -> ReLU -> fc3, all weights VMEM-resident."""
    x = x_ref[...].astype(jnp.bfloat16)
    h = jnp.dot(x, w1_ref[...], preferred_element_type=jnp.float32) + b1_ref[...]
    h = jnp.maximum(h, 0.0)
    # TODO(synk): nn.Dropout(p=0.5) is identity in inference mode (no RNG mask applied).
    h = jnp.dot(h.astype(jnp.bfloat16), w2_ref[...],
                preferred_element_type=jnp.float32) + b2_ref[...]
    h = jnp.maximum(h, 0.0)
    y = jnp.dot(h.astype(jnp.bfloat16), w3_ref[...],
                preferred_element_type=jnp.float32) + b3_ref[...]
    o_ref[...] = y.astype(o_ref.dtype)


# ---------------------------------------------------------------------------
# Pallas wrappers
# ---------------------------------------------------------------------------
def conv_block(x, masks, wa, ba, wb, bb, *, H, W):
    n, P, cin = x.shape
    ca = wa.shape[2]
    cb = wb.shape[2]
    pad = W + 1
    kernel = functools.partial(conv_block_kernel, H=H, W=W)
    return pl.pallas_call(
        kernel,
        out_shape=jax.ShapeDtypeStruct((n, P // 4, cb), jnp.float32),
        grid=(n,),
        in_specs=[
            pl.BlockSpec((1, P, cin), lambda i: (i, 0, 0)),
            pl.BlockSpec((9, P, 1), lambda i: (0, 0, 0)),
            pl.BlockSpec((9, cin, ca), lambda i: (0, 0, 0)),
            pl.BlockSpec((1, ca), lambda i: (0, 0)),
            pl.BlockSpec((9, ca, cb), lambda i: (0, 0, 0)),
            pl.BlockSpec((1, cb), lambda i: (0, 0)),
        ],
        out_specs=pl.BlockSpec((1, P // 4, cb), lambda i: (i, 0, 0)),
        scratch_shapes=[
            pltpu.VMEM((P + 2 * pad, cin), jnp.float32),
            pltpu.VMEM((P + 2 * pad, ca), jnp.float32),
            pltpu.VMEM((P, cb), jnp.float32),
        ],
        compiler_params=pltpu.CompilerParams(
            dimension_semantics=("parallel",)),
        cost_estimate=pl.CostEstimate(
            flops=2 * n * P * 9 * (cin * ca + ca * cb),
            transcendentals=0,
            bytes_accessed=(x.size * 4 + masks.size * 4 + wa.size * 2 + wb.size * 2
                            + ba.size * 4 + bb.size * 4 + n * (P // 4) * cb * 4)),
    )(x, masks, wa, ba, wb, bb)


def mlp(x, w1, b1, w2, b2, w3, b3):
    n, din = x.shape
    d1, d2, dout = w1.shape[1], w2.shape[1], w3.shape[1]
    return pl.pallas_call(
        mlp_kernel,
        out_shape=jax.ShapeDtypeStruct((n, dout), jnp.float32),
        grid=(1,),
        in_specs=[
            pl.BlockSpec((n, din), lambda i: (0, 0)),
            pl.BlockSpec((din, d1), lambda i: (0, 0)),
            pl.BlockSpec((1, d1), lambda i: (0, 0)),
            pl.BlockSpec((d1, d2), lambda i: (0, 0)),
            pl.BlockSpec((1, d2), lambda i: (0, 0)),
            pl.BlockSpec((d2, dout), lambda i: (0, 0)),
            pl.BlockSpec((1, dout), lambda i: (0, 0)),
        ],
        out_specs=pl.BlockSpec((n, dout), lambda i: (0, 0)),
        cost_estimate=pl.CostEstimate(
            flops=2 * n * (din * d1 + d1 * d2 + d2 * dout),
            transcendentals=0,
            bytes_accessed=(x.size * 4 + w1.size * 2 + w2.size * 2 + w3.size * 2
                            + (d1 + d2 + dout) * 4 + n * dout * 4)),
    )(x, w1, b1, w2, b2, w3, b3)


# ---------------------------------------------------------------------------
# Parameter / constant construction (BN folded into conv weights; all deterministic)
# ---------------------------------------------------------------------------
def build_conv_masks(H, W):
    """(9, H*W, 1) f32 0/1 masks: mask[k, h*W+w] == 1 iff tap (dy,dx)=k is inside the image."""
    m = np.zeros((9, H * W, 1), np.float32)
    for k in range(9):
        dy, dx = k // 3 - 1, k % 3 - 1
        for h in range(H):
            for w in range(W):
                if 0 <= h + dy < H and 0 <= w + dx < W:
                    m[k, h * W + w, 0] = 1.0
    return jnp.asarray(m)


def init_conv_bn(key, cin, cout):
    k1, k2, k3, k4, k5, k6 = jax.random.split(key, 6)
    w = 0.1 * jax.random.normal(k1, (cout, cin, 3, 3), jnp.float32)   # torch OIHW
    b = 0.1 * jax.random.normal(k2, (cout,), jnp.float32)
    gamma = 1.0 + 0.1 * jax.random.normal(k3, (cout,), jnp.float32)
    beta = 0.1 * jax.random.normal(k4, (cout,), jnp.float32)
    run_mean = 0.1 * jax.random.normal(k5, (cout,), jnp.float32)
    run_var = 1.0 + 0.1 * jax.random.uniform(k6, (cout,), jnp.float32)
    # eval-mode BatchNorm folded into the convolution
    scale = gamma / jnp.sqrt(run_var + 1e-5)
    w_f = w * scale[:, None, None, None]
    b_f = (b - run_mean) * scale + beta
    # (Cout, Cin, kh, kw) -> (kh, kw, Cin, Cout) -> (9, Cin, Cout), tap index k = 3*kh + kw
    wpack = w_f.transpose(2, 3, 1, 0).reshape(9, cin, cout).astype(jnp.bfloat16)
    return wpack, b_f.reshape(1, cout)


def init_linear(key, din, dout):
    k1, k2 = jax.random.split(key, 2)
    w = 0.1 * jax.random.normal(k1, (dout, din), jnp.float32)   # torch (out, in)
    b = 0.1 * jax.random.normal(k2, (dout,), jnp.float32)
    return w.T, b.reshape(1, dout)                              # (in, out), (1, out)


def init_params(key, input_ch, hidden_units, output_shape, hw):
    keys = jax.random.split(key, 9)
    blocks = []
    cin = input_ch
    res = hw
    for i, cout in enumerate(hidden_units):
        wa, ba = init_conv_bn(keys[2 * i], cin, cout)
        wb, bb = init_conv_bn(keys[2 * i + 1], cout, cout)
        masks = build_conv_masks(res, res)
        blocks.append((masks, wa, ba, wb, bb))
        cin = cout
        res //= 2

    feat_hw = hw // (2 ** len(hidden_units))
    p3 = feat_hw * feat_hw
    c3 = hidden_units[-1]
    feat_dim = c3 * p3                                          # LazyLinear in_features

    w1, b1 = init_linear(keys[6], feat_dim, 128)
    # Our features are flattened (h, w, c); torch Flatten uses (c, h, w).  Fold the
    # permutation into the fc1 weight rows so no activation transpose is needed.
    j = jnp.arange(feat_dim)
    perm = (j % c3) * p3 + (j // c3)
    w1 = w1[perm, :]
    w2, b2 = init_linear(keys[7], 128, 64)
    w3, b3 = init_linear(keys[8], 64, output_shape)
    fc = (w1.astype(jnp.bfloat16), b1,
          w2.astype(jnp.bfloat16), b2,
          w3.astype(jnp.bfloat16), b3)
    return {"blocks": blocks, "fc": fc}


# ---------------------------------------------------------------------------
# Forward pass (matches Cnn_v1.forward, inference mode)
# ---------------------------------------------------------------------------
def forward(x_nchw, params):
    n, c, h, w = x_nchw.shape
    # NCHW -> (N, H*W, C): rows in (h, w) order, channels minor (done once at entry).
    x = jnp.transpose(x_nchw, (0, 2, 3, 1)).reshape(n, h * w, c)
    for (masks, wa, ba, wb, bb) in params["blocks"]:
        x = conv_block(x, masks, wa, ba, wb, bb, H=h, W=w)
        h //= 2
        w //= 2
    feat = x.reshape(n, -1)          # (h, w, c) flatten; fc1 rows already permuted to torch order
    return mlp(feat, *params["fc"])


if __name__ == "__main__":
    key = jax.random.PRNGKey(0)
    k_x, k_p = jax.random.split(key)

    N, C_IN, H, W = 2, 4, 16, 16
    HIDDEN = [8, 16, 32]
    NUM_CLASSES = 10

    x = jax.random.normal(k_x, (N, C_IN, H, W), jnp.float32)   # PyTorch NCHW input
    params = init_params(k_p, C_IN, HIDDEN, NUM_CLASSES, H)

    logits = jax.jit(forward)(x, params)
    logits = jax.block_until_ready(logits)
    assert logits.shape == (N, NUM_CLASSES), logits.shape
    print("KERNEL_OK")
</pallas_src>

<mosaic_0001>
module attributes {stable_mosaic.version = 11 : i64} {
  func.func @conv_block_kernel(%arg0: i32, %arg1: memref<1x256x4xf32, #tpu.memory_space<vmem>>, %arg2: memref<9x256x1xf32, #tpu.memory_space<vmem>>, %arg3: memref<9x4x8xbf16, #tpu.memory_space<vmem>>, %arg4: memref<1x8xf32, #tpu.memory_space<vmem>>, %arg5: memref<9x8x8xbf16, #tpu.memory_space<vmem>>, %arg6: memref<1x8xf32, #tpu.memory_space<vmem>>, %arg7: memref<1x64x8xf32, #tpu.memory_space<vmem>>, %arg8: memref<290x4xf32, #tpu.memory_space<vmem>>, %arg9: memref<290x8xf32, #tpu.memory_space<vmem>>, %arg10: memref<256x8xf32, #tpu.memory_space<vmem>>) attributes {dimension_semantics = [#tpu.dimension_semantics<parallel>], iteration_bounds = array<i64: 2>, scalar_prefetch = 0 : i64, scratch_operands = 3 : i64, tpu.core_type = #tpu.core_type<tc>, window_params = [{transform_indices = @transform_0, window_bounds = array<i64: 1, 256, 4>}, {pipeline_mode = #tpu.pipeline_mode<synchronous>, transform_indices = @transform_1, window_bounds = array<i64: 9, 256, 1>}, {pipeline_mode = #tpu.pipeline_mode<synchronous>, transform_indices = @transform_2, window_bounds = array<i64: 9, 4, 8>}, {pipeline_mode = #tpu.pipeline_mode<synchronous>, transform_indices = @transform_3, window_bounds = array<i64: 1, 8>}, {pipeline_mode = #tpu.pipeline_mode<synchronous>, transform_indices = @transform_4, window_bounds = array<i64: 9, 8, 8>}, {pipeline_mode = #tpu.pipeline_mode<synchronous>, transform_indices = @transform_5, window_bounds = array<i64: 1, 8>}, {transform_indices = @transform_6, window_bounds = array<i64: 1, 64, 8>}]} {
    %cst = arith.constant 0.000000e+00 : f32
    %0 = vector.broadcast %cst : f32 to vector<290x4xf32>
    %c0 = arith.constant 0 : index
    %c0_0 = arith.constant 0 : index
    %1 = vector.load %arg8[%c0, %c0_0] : memref<290x4xf32, #tpu.memory_space<vmem>>, vector<290x4xf32>
    tpu.vector_store %arg8[%c0, %c0_0], %0 {strides = array<i32>} : memref<290x4xf32, #tpu.memory_space<vmem>>, vector<290x4xf32>,
    %cst_1 = arith.constant 0.000000e+00 : f32
    %2 = vector.broadcast %cst_1 : f32 to vector<290x8xf32>
    %c0_2 = arith.constant 0 : index
    %c0_3 = arith.constant 0 : index
    %3 = vector.load %arg9[%c0_2, %c0_3] : memref<290x8xf32, #tpu.memory_space<vmem>>, vector<290x8xf32>
    tpu.vector_store %arg9[%c0_2, %c0_3], %2 {strides = array<i32>} : memref<290x8xf32, #tpu.memory_space<vmem>>, vector<290x8xf32>,
    %c0_4 = arith.constant 0 : index
    %c0_5 = arith.constant 0 : index
    %c0_6 = arith.constant 0 : index
    %4 = vector.load %arg1[%c0_4, %c0_5, %c0_6] : memref<1x256x4xf32, #tpu.memory_space<vmem>>, vector<1x256x4xf32>
    %5 = vector.shape_cast %4 : vector<1x256x4xf32> to vector<256x4xf32>
    %c17 = arith.constant 17 : index
    %c0_7 = arith.constant 0 : index
    %6 = vector.load %arg8[%c17, %c0_7] : memref<290x4xf32, #tpu.memory_space<vmem>>, vector<256x4xf32>
    tpu.vector_store %arg8[%c17, %c0_7], %5 {strides = array<i32>} : memref<290x4xf32, #tpu.memory_space<vmem>>, vector<256x4xf32>,
    %cst_8 = arith.constant 0.000000e+00 : f32
    %7 = vector.broadcast %cst_8 : f32 to vector<256x8xf32>
    %c0_9 = arith.constant 0 : index
    %c0_10 = arith.constant 0 : index
    %8 = vector.load %arg8[%c0_9, %c0_10] : memref<290x4xf32, #tpu.memory_space<vmem>>, vector<256x4xf32>
    %c0_11 = arith.constant 0 : index
    %c0_12 = arith.constant 0 : index
    %c0_13 = arith.constant 0 : index
    %9 = vector.load %arg2[%c0_11, %c0_12, %c0_13] : memref<9x256x1xf32, #tpu.memory_space<vmem>>, vector<1x256x1xf32>
    %10 = vector.shape_cast %9 : vector<1x256x1xf32> to vector<256x1xf32>
    %11 = vector.broadcast %10 : vector<256x1xf32> to vector<256x4xf32>
    %12 = arith.mulf %8, %11 : vector<256x4xf32>
    %13 = arith.truncf %12 : vector<256x4xf32> to vector<256x4xbf16>
    %c0_14 = arith.constant 0 : index
    %c0_15 = arith.constant 0 : index
    %c0_16 = arith.constant 0 : index
    %14 = vector.load %arg3[%c0_14, %c0_15, %c0_16] : memref<9x4x8xbf16, #tpu.memory_space<vmem>>, vector<1x4x8xbf16>
    %15 = vector.shape_cast %14 : vector<1x4x8xbf16> to vector<4x8xbf16>
    %cst_17 = arith.constant dense<0.000000e+00> : vector<256x8xf32>
    %16 = tpu.matmul %13, %15, %cst_17 {dimension_numbers = #tpu.dot_dimension_numbers<[1], [0], [0], [1], [0, 0, 1, 1], [], []>} : vector<256x4xbf16>, vector<4x8xbf16>, vector<256x8xf32> -> vector<256x8xf32>
    %17 = arith.addf %7, %16 : vector<256x8xf32>
    %c1 = arith.constant 1 : index
    %c0_18 = arith.constant 0 : index
    %18 = vector.load %arg8[%c1, %c0_18] : memref<290x4xf32, #tpu.memory_space<vmem>>, vector<256x4xf32>
    %c1_19 = arith.constant 1 : index
    %c0_20 = arith.constant 0 : index
    %c0_21 = arith.constant 0 : index
    %19 = vector.load %arg2[%c1_19, %c0_20, %c0_21] : memref<9x256x1xf32, #tpu.memory_space<vmem>>, vector<1x256x1xf32>
    %20 = vector.shape_cast %19 : vector<1x256x1xf32> to vector<256x1xf32>
    %21 = vector.broadcast %20 : vector<256x1xf32> to vector<256x4xf32>
    %22 = arith.mulf %18, %21 : vector<256x4xf32>
    %23 = arith.truncf %22 : vector<256x4xf32> to vector<256x4xbf16>
    %c1_22 = arith.constant 1 : index
    %c0_23 = arith.constant 0 : index
    %c0_24 = arith.constant 0 : index
    %24 = vector.load %arg3[%c1_22, %c0_23, %c0_24] : memref<9x4x8xbf16, #tpu.memory_space<vmem>>, vector<1x4x8xbf16>
    %25 = vector.shape_cast %24 : vector<1x4x8xbf16> to vector<4x8xbf16>
    %cst_25 = arith.constant dense<0.000000e+00> : vector<256x8xf32>
    %26 = tpu.matmul %23, %25, %cst_25 {dimension_numbers = #tpu.dot_dimension_numbers<[1], [0], [0], [1], [0, 0, 1, 1], [], []>} : vector<256x4xbf16>, vector<4x8xbf16>, vector<256x8xf32> -> vector<256x8xf32>
    %27 = arith.addf %17, %26 : vector<256x8xf32>
    %c2 = arith.constant 2 : index
    %c0_26 = arith.constant 0 : index
    %28 = vector.load %arg8[%c2, %c0_26] : memref<290x4xf32, #tpu.memory_space<vmem>>, vector<256x4xf32>
    %c2_27 = arith.constant 2 : index
    %c0_28 = arith.constant 0 : index
    %c0_29 = arith.constant 0 : index
    %29 = vector.load %arg2[%c2_27, %c0_28, %c0_29] : memref<9x256x1xf32, #tpu.memory_space<vmem>>, vector<1x256x1xf32>
    %30 = vector.shape_cast %29 : vector<1x256x1xf32> to vector<256x1xf32>
    %31 = vector.broadcast %30 : vector<256x1xf32> to vector<256x4xf32>
    %32 = arith.mulf %28, %31 : vector<256x4xf32>
    %33 = arith.truncf %32 : vector<256x4xf32> to vector<256x4xbf16>
    %c2_30 = arith.constant 2 : index
    %c0_31 = arith.constant 0 : index
    %c0_32 = arith.constant 0 : index
    %34 = vector.load %arg3[%c2_30, %c0_31, %c0_32] : memref<9x4x8xbf16, #tpu.memory_space<vmem>>, vector<1x4x8xbf16>
    %35 = vector.shape_cast %34 : vector<1x4x8xbf16> to vector<4x8xbf16>
    %cst_33 = arith.constant dense<0.000000e+00> : vector<256x8xf32>
    %36 = tpu.matmul %33, %35, %cst_33 {dimension_numbers = #tpu.dot_dimension_numbers<[1], [0], [0], [1], [0, 0, 1, 1], [], []>} : vector<256x4xbf16>, vector<4x8xbf16>, vector<256x8xf32> -> vector<256x8xf32>
    %37 = arith.addf %27, %36 : vector<256x8xf32>
    %c16 = arith.constant 16 : index
    %c0_34 = arith.constant 0 : index
    %38 = vector.load %arg8[%c16, %c0_34] : memref<290x4xf32, #tpu.memory_space<vmem>>, vector<256x4xf32>
    %c3 = arith.constant 3 : index
    %c0_35 = arith.constant 0 : index
    %c0_36 = arith.constant 0 : index
    %39 = vector.load %arg2[%c3, %c0_35, %c0_36] : memref<9x256x1xf32, #tpu.memory_space<vmem>>, vector<1x256x1xf32>
    %40 = vector.shape_cast %39 : vector<1x256x1xf32> to vector<256x1xf32>
    %41 = vector.broadcast %40 : vector<256x1xf32> to vector<256x4xf32>
    %42 = arith.mulf %38, %41 : vector<256x4xf32>
    %43 = arith.truncf %42 : vector<256x4xf32> to vector<256x4xbf16>
    %c3_37 = arith.constant 3 : index
    %c0_38 = arith.constant 0 : index
    %c0_39 = arith.constant 0 : index
    %44 = vector.load %arg3[%c3_37, %c0_38, %c0_39] : memref<9x4x8xbf16, #tpu.memory_space<vmem>>, vector<1x4x8xbf16>
    %45 = vector.shape_cast %44 : vector<1x4x8xbf16> to vector<4x8xbf16>
    %cst_40 = arith.constant dense<0.000000e+00> : vector<256x8xf32>
    %46 = tpu.matmul %43, %45, %cst_40 {dimension_numbers = #tpu.dot_dimension_numbers<[1], [0], [0], [1], [0, 0, 1, 1], [], []>} : vector<256x4xbf16>, vector<4x8xbf16>, vector<256x8xf32> -> vector<256x8xf32>
    %47 = arith.addf %37, %46 : vector<256x8xf32>
    %c17_41 = arith.constant 17 : index
    %c0_42 = arith.constant 0 : index
    %48 = vector.load %arg8[%c17_41, %c0_42] : memref<290x4xf32, #tpu.memory_space<vmem>>, vector<256x4xf32>
    %49 = arith.truncf %48 : vector<256x4xf32> to vector<256x4xbf16>
    %c4 = arith.constant 4 : index
    %c0_43 = arith.constant 0 : index
    %c0_44 = arith.constant 0 : index
    %50 = vector.load %arg3[%c4, %c0_43, %c0_44] : memref<9x4x8xbf16, #tpu.memory_space<vmem>>, vector<1x4x8xbf16>
    %51 = vector.shape_cast %50 : vector<1x4x8xbf16> to vector<4x8xbf16>
    %cst_45 = arith.constant dense<0.000000e+00> : vector<256x8xf32>
    %52 = tpu.matmul %49, %51, %cst_45 {dimension_numbers = #tpu.dot_dimension_numbers<[1], [0], [0], [1], [0, 0, 1, 1], [], []>} : vector<256x4xbf16>, vector<4x8xbf16>, vector<256x8xf32> -> vector<256x8xf32>
    %53 = arith.addf %47, %52 : vector<256x8xf32>
    %c18 = arith.constant 18 : index
    %c0_46 = arith.constant 0 : index
    %54 = vector.load %arg8[%c18, %c0_46] : memref<290x4xf32, #tpu.memory_space<vmem>>, vector<256x4xf32>
    %c5 = arith.constant 5 : index
    %c0_47 = arith.constant 0 : index
    %c0_48 = arith.constant 0 : index
    %55 = vector.load %arg2[%c5, %c0_47, %c0_48] : memref<9x256x1xf32, #tpu.memory_space<vmem>>, vector<1x256x1xf32>
    %56 = vector.shape_cast %55 : vector<1x256x1xf32> to vector<256x1xf32>
    %57 = vector.broadcast %56 : vector<256x1xf32> to vector<256x4xf32>
    %58 = arith.mulf %54, %57 : vector<256x4xf32>
    %59 = arith.truncf %58 : vector<256x4xf32> to vector<256x4xbf16>
    %c5_49 = arith.constant 5 : index
    %c0_50 = arith.constant 0 : index
    %c0_51 = arith.constant 0 : index
    %60 = vector.load %arg3[%c5_49, %c0_50, %c0_51] : memref<9x4x8xbf16, #tpu.memory_space<vmem>>, vector<1x4x8xbf16>
    %61 = vector.shape_cast %60 : vector<1x4x8xbf16> to vector<4x8xbf16>
    %cst_52 = arith.constant dense<0.000000e+00> : vector<256x8xf32>
    %62 = tpu.matmul %59, %61, %cst_52 {dimension_numbers = #tpu.dot_dimension_numbers<[1], [0], [0], [1], [0, 0, 1, 1], [], []>} : vector<256x4xbf16>, vector<4x8xbf16>, vector<256x8xf32> -> vector<256x8xf32>
    %63 = arith.addf %53, %62 : vector<256x8xf32>
    %c32 = arith.constant 32 : index
    %c0_53 = arith.constant 0 : index
    %64 = vector.load %arg8[%c32, %c0_53] : memref<290x4xf32, #tpu.memory_space<vmem>>, vector<256x4xf32>
    %c6 = arith.constant 6 : index
    %c0_54 = arith.constant 0 : index
    %c0_55 = arith.constant 0 : index
    %65 = vector.load %arg2[%c6, %c0_54, %c0_55] : memref<9x256x1xf32, #tpu.memory_space<vmem>>, vector<1x256x1xf32>
    %66 = vector.shape_cast %65 : vector<1x256x1xf32> to vector<256x1xf32>
    %67 = vector.broadcast %66 : vector<256x1xf32> to vector<256x4xf32>
    %68 = arith.mulf %64, %67 : vector<256x4xf32>
    %69 = arith.truncf %68 : vector<256x4xf32> to vector<256x4xbf16>
    %c6_56 = arith.constant 6 : index
    %c0_57 = arith.constant 0 : index
    %c0_58 = arith.constant 0 : index
    %70 = vector.load %arg3[%c6_56, %c0_57, %c0_58] : memref<9x4x8xbf16, #tpu.memory_space<vmem>>, vector<1x4x8xbf16>
    %71 = vector.shape_cast %70 : vector<1x4x8xbf16> to vector<4x8xbf16>
    %cst_59 = arith.constant dense<0.000000e+00> : vector<256x8xf32>
    %72 = tpu.matmul %69, %71, %cst_59 {dimension_numbers = #tpu.dot_dimension_numbers<[1], [0], [0], [1], [0, 0, 1, 1], [], []>} : vector<256x4xbf16>, vector<4x8xbf16>, vector<256x8xf32> -> vector<256x8xf32>
    %73 = arith.addf %63, %72 : vector<256x8xf32>
    %c33 = arith.constant 33 : index
    %c0_60 = arith.constant 0 : index
    %74 = vector.load %arg8[%c33, %c0_60] : memref<290x4xf32, #tpu.memory_space<vmem>>, vector<256x4xf32>
    %c7 = arith.constant 7 : index
    %c0_61 = arith.constant 0 : index
    %c0_62 = arith.constant 0 : index
    %75 = vector.load %arg2[%c7, %c0_61, %c0_62] : memref<9x256x1xf32, #tpu.memory_space<vmem>>, vector<1x256x1xf32>
    %76 = vector.shape_cast %75 : vector<1x256x1xf32> to vector<256x1xf32>
    %77 = vector.broadcast %76 : vector<256x1xf32> to vector<256x4xf32>
    %78 = arith.mulf %74, %77 : vector<256x4xf32>
    %79 = arith.truncf %78 : vector<256x4xf32> to vector<256x4xbf16>
    %c7_63 = arith.constant 7 : index
    %c0_64 = arith.constant 0 : index
    %c0_65 = arith.constant 0 : index
    %80 = vector.load %arg3[%c7_63, %c0_64, %c0_65] : memref<9x4x8xbf16, #tpu.memory_space<vmem>>, vector<1x4x8xbf16>
    %81 = vector.shape_cast %80 : vector<1x4x8xbf16> to vector<4x8xbf16>
    %cst_66 = arith.constant dense<0.000000e+00> : vector<256x8xf32>
    %82 = tpu.matmul %79, %81, %cst_66 {dimension_numbers = #tpu.dot_dimension_numbers<[1], [0], [0], [1], [0, 0, 1, 1], [], []>} : vector<256x4xbf16>, vector<4x8xbf16>, vector<256x8xf32> -> vector<256x8xf32>
    %83 = arith.addf %73, %82 : vector<256x8xf32>
    %c34 = arith.constant 34 : index
    %c0_67 = arith.constant 0 : index
    %84 = vector.load %arg8[%c34, %c0_67] : memref<290x4xf32, #tpu.memory_space<vmem>>, vector<256x4xf32>
    %c8 = arith.constant 8 : index
    %c0_68 = arith.constant 0 : index
    %c0_69 = arith.constant 0 : index
    %85 = vector.load %arg2[%c8, %c0_68, %c0_69] : memref<9x256x1xf32, #tpu.memory_space<vmem>>, vector<1x256x1xf32>
    %86 = vector.shape_cast %85 : vector<1x256x1xf32> to vector<256x1xf32>
    %87 = vector.broadcast %86 : vector<256x1xf32> to vector<256x4xf32>
    %88 = arith.mulf %84, %87 : vector<256x4xf32>
    %89 = arith.truncf %88 : vector<256x4xf32> to vector<256x4xbf16>
    %c8_70 = arith.constant 8 : index
    %c0_71 = arith.constant 0 : index
    %c0_72 = arith.constant 0 : index
    %90 = vector.load %arg3[%c8_70, %c0_71, %c0_72] : memref<9x4x8xbf16, #tpu.memory_space<vmem>>, vector<1x4x8xbf16>
    %91 = vector.shape_cast %90 : vector<1x4x8xbf16> to vector<4x8xbf16>
    %cst_73 = arith.constant dense<0.000000e+00> : vector<256x8xf32>
    %92 = tpu.matmul %89, %91, %cst_73 {dimension_numbers = #tpu.dot_dimension_numbers<[1], [0], [0], [1], [0, 0, 1, 1], [], []>} : vector<256x4xbf16>, vector<4x8xbf16>, vector<256x8xf32> -> vector<256x8xf32>
    %93 = arith.addf %83, %92 : vector<256x8xf32>
    %c0_74 = arith.constant 0 : index
    %c0_75 = arith.constant 0 : index
    %94 = vector.load %arg4[%c0_74, %c0_75] : memref<1x8xf32, #tpu.memory_space<vmem>>, vector<1x8xf32>
    %95 = vector.broadcast %94 : vector<1x8xf32> to vector<256x8xf32>
    %96 = arith.addf %93, %95 : vector<256x8xf32>
    %cst_76 = arith.constant 0.000000e+00 : f32
    %97 = vector.broadcast %cst_76 : f32 to vector<256x8xf32>
    %98 = arith.maximumf %96, %97 : vector<256x8xf32>
    %c17_77 = arith.constant 17 : index
    %c0_78 = arith.constant 0 : index
    %99 = vector.load %arg9[%c17_77, %c0_78] : memref<290x8xf32, #tpu.memory_space<vmem>>, vector<256x8xf32>
    tpu.vector_store %arg9[%c17_77, %c0_78], %98 {strides = array<i32>} : memref<290x8xf32, #tpu.memory_space<vmem>>, vector<256x8xf32>,
    %cst_79 = arith.constant 0.000000e+00 : f32
    %100 = vector.broadcast %cst_79 : f32 to vector<256x8xf32>
    %c0_80 = arith.constant 0 : index
    %c0_81 = arith.constant 0 : index
    %101 = vector.load %arg9[%c0_80, %c0_81] : memref<290x8xf32, #tpu.memory_space<vmem>>, vector<256x8xf32>
    %c0_82 = arith.constant 0 : index
    %c0_83 = arith.constant 0 : index
    %c0_84 = arith.constant 0 : index
    %102 = vector.load %arg2[%c0_82, %c0_83, %c0_84] : memref<9x256x1xf32, #tpu.memory_space<vmem>>, vector<1x256x1xf32>
    %103 = vector.shape_cast %102 : vector<1x256x1xf32> to vector<256x1xf32>
    %104 = vector.broadcast %103 : vector<256x1xf32> to vector<256x8xf32>
    %105 = arith.mulf %101, %104 : vector<256x8xf32>
    %106 = arith.truncf %105 : vector<256x8xf32> to vector<256x8xbf16>
    %c0_85 = arith.constant 0 : index
    %c0_86 = arith.constant 0 : index
    %c0_87 = arith.constant 0 : index
    %107 = vector.load %arg5[%c0_85, %c0_86, %c0_87] : memref<9x8x8xbf16, #tpu.memory_space<vmem>>, vector<1x8x8xbf16>
    %108 = vector.shape_cast %107 : vector<1x8x8xbf16> to vector<8x8xbf16>
    %cst_88 = arith.constant dense<0.000000e+00> : vector<256x8xf32>
    %109 = tpu.matmul %106, %108, %cst_88 {dimension_numbers = #tpu.dot_dimension_numbers<[1], [0], [0], [1], [0, 0, 1, 1], [], []>} : vector<256x8xbf16>, vector<8x8xbf16>, vector<256x8xf32> -> vector<256x8xf32>
    %110 = arith.addf %100, %109 : vector<256x8xf32>
    %c1_89 = arith.constant 1 : index
    %c0_90 = arith.constant 0 : index
    %111 = vector.load %arg9[%c1_89, %c0_90] : memref<290x8xf32, #tpu.memory_space<vmem>>, vector<256x8xf32>
    %c1_91 = arith.constant 1 : index
    %c0_92 = arith.constant 0 : index
    %c0_93 = arith.constant 0 : index
    %112 = vector.load %arg2[%c1_91, %c0_92, %c0_93] : memref<9x256x1xf32, #tpu.memory_space<vmem>>, vector<1x256x1xf32>
    %113 = vector.shape_cast %112 : vector<1x256x1xf32> to vector<256x1xf32>
    %114 = vector.broadcast %113 : vector<256x1xf32> to vector<256x8xf32>
    %115 = arith.mulf %111, %114 : vector<256x8xf32>
    %116 = arith.truncf %115 : vector<256x8xf32> to vector<256x8xbf16>
    %c1_94 = arith.constant 1 : index
    %c0_95 = arith.constant 0 : index
    %c0_96 = arith.constant 0 : index
    %117 = vector.load %arg5[%c1_94, %c0_95, %c0_96] : memref<9x8x8xbf16, #tpu.memory_space<vmem>>, vector<1x8x8xbf16>
    %118 = vector.shape_cast %117 : vector<1x8x8xbf16> to vector<8x8xbf16>
    %cst_97 = arith.constant dense<0.000000e+00> : vector<256x8xf32>
    %119 = tpu.matmul %116, %118, %cst_97 {dimension_numbers = #tpu.dot_dimension_numbers<[1], [0], [0], [1], [0, 0, 1, 1], [], []>} : vector<256x8xbf16>, vector<8x8xbf16>, vector<256x8xf32> -> vector<256x8xf32>
    %120 = arith.addf %110, %119 : vector<256x8xf32>
    %c2_98 = arith.constant 2 : index
    %c0_99 = arith.constant 0 : index
    %121 = vector.load %arg9[%c2_98, %c0_99] : memref<290x8xf32, #tpu.memory_space<vmem>>, vector<256x8xf32>
    %c2_100 = arith.constant 2 : index
    %c0_101 = arith.constant 0 : index
    %c0_102 = arith.constant 0 : index
    %122 = vector.load %arg2[%c2_100, %c0_101, %c0_102] : memref<9x256x1xf32, #tpu.memory_space<vmem>>, vector<1x256x1xf32>
    %123 = vector.shape_cast %122 : vector<1x256x1xf32> to vector<256x1xf32>
    %124 = vector.broadcast %123 : vector<256x1xf32> to vector<256x8xf32>
    %125 = arith.mulf %121, %124 : vector<256x8xf32>
    %126 = arith.truncf %125 : vector<256x8xf32> to vector<256x8xbf16>
    %c2_103 = arith.constant 2 : index
    %c0_104 = arith.constant 0 : index
    %c0_105 = arith.constant 0 : index
    %127 = vector.load %arg5[%c2_103, %c0_104, %c0_105] : memref<9x8x8xbf16, #tpu.memory_space<vmem>>, vector<1x8x8xbf16>
    %128 = vector.shape_cast %127 : vector<1x8x8xbf16> to vector<8x8xbf16>
    %cst_106 = arith.constant dense<0.000000e+00> : vector<256x8xf32>
    %129 = tpu.matmul %126, %128, %cst_106 {dimension_numbers = #tpu.dot_dimension_numbers<[1], [0], [0], [1], [0, 0, 1, 1], [], []>} : vector<256x8xbf16>, vector<8x8xbf16>, vector<256x8xf32> -> vector<256x8xf32>
    %130 = arith.addf %120, %129 : vector<256x8xf32>
    %c16_107 = arith.constant 16 : index
    %c0_108 = arith.constant 0 : index
    %131 = vector.load %arg9[%c16_107, %c0_108] : memref<290x8xf32, #tpu.memory_space<vmem>>, vector<256x8xf32>
    %c3_109 = arith.constant 3 : index
    %c0_110 = arith.constant 0 : index
    %c0_111 = arith.constant 0 : index
    %132 = vector.load %arg2[%c3_109, %c0_110, %c0_111] : memref<9x256x1xf32, #tpu.memory_space<vmem>>, vector<1x256x1xf32>
    %133 = vector.shape_cast %132 : vector<1x256x1xf32> to vector<256x1xf32>
    %134 = vector.broadcast %133 : vector<256x1xf32> to vector<256x8xf32>
    %135 = arith.mulf %131, %134 : vector<256x8xf32>
    %136 = arith.truncf %135 : vector<256x8xf32> to vector<256x8xbf16>
    %c3_112 = arith.constant 3 : index
    %c0_113 = arith.constant 0 : index
    %c0_114 = arith.constant 0 : index
    %137 = vector.load %arg5[%c3_112, %c0_113, %c0_114] : memref<9x8x8xbf16, #tpu.memory_space<vmem>>, vector<1x8x8xbf16>
    %138 = vector.shape_cast %137 : vector<1x8x8xbf16> to vector<8x8xbf16>
    %cst_115 = arith.constant dense<0.000000e+00> : vector<256x8xf32>
    %139 = tpu.matmul %136, %138, %cst_115 {dimension_numbers = #tpu.dot_dimension_numbers<[1], [0], [0], [1], [0, 0, 1, 1], [], []>} : vector<256x8xbf16>, vector<8x8xbf16>, vector<256x8xf32> -> vector<256x8xf32>
    %140 = arith.addf %130, %139 : vector<256x8xf32>
    %c17_116 = arith.constant 17 : index
    %c0_117 = arith.constant 0 : index
    %141 = vector.load %arg9[%c17_116, %c0_117] : memref<290x8xf32, #tpu.memory_space<vmem>>, vector<256x8xf32>
    %142 = arith.truncf %141 : vector<256x8xf32> to vector<256x8xbf16>
    %c4_118 = arith.constant 4 : index
    %c0_119 = arith.constant 0 : index
    %c0_120 = arith.constant 0 : index
    %143 = vector.load %arg5[%c4_118, %c0_119, %c0_120] : memref<9x8x8xbf16, #tpu.memory_space<vmem>>, vector<1x8x8xbf16>
    %144 = vector.shape_cast %143 : vector<1x8x8xbf16> to vector<8x8xbf16>
    %cst_121 = arith.constant dense<0.000000e+00> : vector<256x8xf32>
    %145 = tpu.matmul %142, %144, %cst_121 {dimension_numbers = #tpu.dot_dimension_numbers<[1], [0], [0], [1], [0, 0, 1, 1], [], []>} : vector<256x8xbf16>, vector<8x8xbf16>, vector<256x8xf32> -> vector<256x8xf32>
    %146 = arith.addf %140, %145 : vector<256x8xf32>
    %c18_122 = arith.constant 18 : index
    %c0_123 = arith.constant 0 : index
    %147 = vector.load %arg9[%c18_122, %c0_123] : memref<290x8xf32, #tpu.memory_space<vmem>>, vector<256x8xf32>
    %c5_124 = arith.constant 5 : index
    %c0_125 = arith.constant 0 : index
    %c0_126 = arith.constant 0 : index
    %148 = vector.load %arg2[%c5_124, %c0_125, %c0_126] : memref<9x256x1xf32, #tpu.memory_space<vmem>>, vector<1x256x1xf32>
    %149 = vector.shape_cast %148 : vector<1x256x1xf32> to vector<256x1xf32>
    %150 = vector.broadcast %149 : vector<256x1xf32> to vector<256x8xf32>
    %151 = arith.mulf %147, %150 : vector<256x8xf32>
    %152 = arith.truncf %151 : vector<256x8xf32> to vector<256x8xbf16>
    %c5_127 = arith.constant 5 : index
    %c0_128 = arith.constant 0 : index
    %c0_129 = arith.constant 0 : index
    %153 = vector.load %arg5[%c5_127, %c0_128, %c0_129] : memref<9x8x8xbf16, #tpu.memory_space<vmem>>, vector<1x8x8xbf16>
    %154 = vector.shape_cast %153 : vector<1x8x8xbf16> to vector<8x8xbf16>
    %cst_130 = arith.constant dense<0.000000e+00> : vector<256x8xf32>
    %155 = tpu.matmul %152, %154, %cst_130 {dimension_numbers = #tpu.dot_dimension_numbers<[1], [0], [0], [1], [0, 0, 1, 1], [], []>} : vector<256x8xbf16>, vector<8x8xbf16>, vector<256x8xf32> -> vector<256x8xf32>
    %156 = arith.addf %146, %155 : vector<256x8xf32>
    %c32_131 = arith.constant 32 : index
    %c0_132 = arith.constant 0 : index
    %157 = vector.load %arg9[%c32_131, %c0_132] : memref<290x8xf32, #tpu.memory_space<vmem>>, vector<256x8xf32>
    %c6_133 = arith.constant 6 : index
    %c0_134 = arith.constant 0 : index
    %c0_135 = arith.constant 0 : index
    %158 = vector.load %arg2[%c6_133, %c0_134, %c0_135] : memref<9x256x1xf32, #tpu.memory_space<vmem>>, vector<1x256x1xf32>
    %159 = vector.shape_cast %158 : vector<1x256x1xf32> to vector<256x1xf32>
    %160 = vector.broadcast %159 : vector<256x1xf32> to vector<256x8xf32>
    %161 = arith.mulf %157, %160 : vector<256x8xf32>
    %162 = arith.truncf %161 : vector<256x8xf32> to vector<256x8xbf16>
    %c6_136 = arith.constant 6 : index
    %c0_137 = arith.constant 0 : index
    %c0_138 = arith.constant 0 : index
    %163 = vector.load %arg5[%c6_136, %c0_137, %c0_138] : memref<9x8x8xbf16, #tpu.memory_space<vmem>>, vector<1x8x8xbf16>
    %164 = vector.shape_cast %163 : vector<1x8x8xbf16> to vector<8x8xbf16>
    %cst_139 = arith.constant dense<0.000000e+00> : vector<256x8xf32>
    %165 = tpu.matmul %162, %164, %cst_139 {dimension_numbers = #tpu.dot_dimension_numbers<[1], [0], [0], [1], [0, 0, 1, 1], [], []>} : vector<256x8xbf16>, vector<8x8xbf16>, vector<256x8xf32> -> vector<256x8xf32>
    %166 = arith.addf %156, %165 : vector<256x8xf32>
    %c33_140 = arith.constant 33 : index
    %c0_141 = arith.constant 0 : index
    %167 = vector.load %arg9[%c33_140, %c0_141] : memref<290x8xf32, #tpu.memory_space<vmem>>, vector<256x8xf32>
    %c7_142 = arith.constant 7 : index
    %c0_143 = arith.constant 0 : index
    %c0_144 = arith.constant 0 : index
    %168 = vector.load %arg2[%c7_142, %c0_143, %c0_144] : memref<9x256x1xf32, #tpu.memory_space<vmem>>, vector<1x256x1xf32>
    %169 = vector.shape_cast %168 : vector<1x256x1xf32> to vector<256x1xf32>
    %170 = vector.broadcast %169 : vector<256x1xf32> to vector<256x8xf32>
    %171 = arith.mulf %167, %170 : vector<256x8xf32>
    %172 = arith.truncf %171 : vector<256x8xf32> to vector<256x8xbf16>
    %c7_145 = arith.constant 7 : index
    %c0_146 = arith.constant 0 : index
    %c0_147 = arith.constant 0 : index
    %173 = vector.load %arg5[%c7_145, %c0_146, %c0_147] : memref<9x8x8xbf16, #tpu.memory_space<vmem>>, vector<1x8x8xbf16>
    %174 = vector.shape_cast %173 : vector<1x8x8xbf16> to vector<8x8xbf16>
    %cst_148 = arith.constant dense<0.000000e+00> : vector<256x8xf32>
    %175 = tpu.matmul %172, %174, %cst_148 {dimension_numbers = #tpu.dot_dimension_numbers<[1], [0], [0], [1], [0, 0, 1, 1], [], []>} : vector<256x8xbf16>, vector<8x8xbf16>, vector<256x8xf32> -> vector<256x8xf32>
    %176 = arith.addf %166, %175 : vector<256x8xf32>
    %c34_149 = arith.constant 34 : index
    %c0_150 = arith.constant 0 : index
    %177 = vector.load %arg9[%c34_149, %c0_150] : memref<290x8xf32, #tpu.memory_space<vmem>>, vector<256x8xf32>
    %c8_151 = arith.constant 8 : index
    %c0_152 = arith.constant 0 : index
    %c0_153 = arith.constant 0 : index
    %178 = vector.load %arg2[%c8_151, %c0_152, %c0_153] : memref<9x256x1xf32, #tpu.memory_space<vmem>>, vector<1x256x1xf32>
    %179 = vector.shape_cast %178 : vector<1x256x1xf32> to vector<256x1xf32>
    %180 = vector.broadcast %179 : vector<256x1xf32> to vector<256x8xf32>
    %181 = arith.mulf %177, %180 : vector<256x8xf32>
    %182 = arith.truncf %181 : vector<256x8xf32> to vector<256x8xbf16>
    %c8_154 = arith.constant 8 : index
    %c0_155 = arith.constant 0 : index
    %c0_156 = arith.constant 0 : index
    %183 = vector.load %arg5[%c8_154, %c0_155, %c0_156] : memref<9x8x8xbf16, #tpu.memory_space<vmem>>, vector<1x8x8xbf16>
    %184 = vector.shape_cast %183 : vector<1x8x8xbf16> to vector<8x8xbf16>
    %cst_157 = arith.constant dense<0.000000e+00> : vector<256x8xf32>
    %185 = tpu.matmul %182, %184, %cst_157 {dimension_numbers = #tpu.dot_dimension_numbers<[1], [0], [0], [1], [0, 0, 1, 1], [], []>} : vector<256x8xbf16>, vector<8x8xbf16>, vector<256x8xf32> -> vector<256x8xf32>
    %186 = arith.addf %176, %185 : vector<256x8xf32>
    %c0_158 = arith.constant 0 : index
    %c0_159 = arith.constant 0 : index
    %187 = vector.load %arg6[%c0_158, %c0_159] : memref<1x8xf32, #tpu.memory_space<vmem>>, vector<1x8xf32>
    %188 = vector.broadcast %187 : vector<1x8xf32> to vector<256x8xf32>
    %189 = arith.addf %186, %188 : vector<256x8xf32>
    %cst_160 = arith.constant 0.000000e+00 : f32
    %190 = vector.broadcast %cst_160 : f32 to vector<256x8xf32>
    %191 = arith.maximumf %189, %190 : vector<256x8xf32>
    %c0_161 = arith.constant 0 : index
    %c0_162 = arith.constant 0 : index
    %192 = vector.load %arg10[%c0_161, %c0_162] : memref<256x8xf32, #tpu.memory_space<vmem>>, vector<256x8xf32>
    tpu.vector_store %arg10[%c0_161, %c0_162], %191 {strides = array<i32>} : memref<256x8xf32, #tpu.memory_space<vmem>>, vector<256x8xf32>,
    %c0_163 = arith.constant 0 : index
    %c0_164 = arith.constant 0 : index
    %193 = tpu.strided_load %arg10[%c0_163, %c0_164] {strides = array<i32: 2, 1>} : memref<256x8xf32, #tpu.memory_space<vmem>>, vector<128x8xf32>
    %c1_165 = arith.constant 1 : index
    %c0_166 = arith.constant 0 : index
    %194 = tpu.strided_load %arg10[%c1_165, %c0_166] {strides = array<i32: 2, 1>} : memref<256x8xf32, #tpu.memory_space<vmem>>, vector<128x8xf32>
    %195 = arith.maximumf %193, %194 : vector<128x8xf32>
    %196 = vector.extract_strided_slice %195 {offsets = [0, 0], sizes = [8, 8], strides = [1, 1]} : vector<128x8xf32> to vector<8x8xf32>
    %197 = vector.extract_strided_slice %195 {offsets = [8, 0], sizes = [8, 8], strides = [1, 1]} : vector<128x8xf32> to vector<8x8xf32>
    %198 = arith.maximumf %196, %197 : vector<8x8xf32>
    %c0_167 = arith.constant 0 : index
    %c0_168 = arith.constant 0 : index
    %c0_169 = arith.constant 0 : index
    %199 = vector.load %arg7[%c0_167, %c0_168, %c0_169] : memref<1x64x8xf32, #tpu.memory_space<vmem>>, vector<1x8x8xf32>
    %200 = vector.shape_cast %199 : vector<1x8x8xf32> to vector<8x8xf32>
    %201 = vector.shape_cast %198 : vector<8x8xf32> to vector<1x8x8xf32>
    tpu.vector_store %arg7[%c0_167, %c0_168, %c0_169], %201 {strides = array<i32>} : memref<1x64x8xf32, #tpu.memory_space<vmem>>, vector<1x8x8xf32>,
    %202 = vector.extract_strided_slice %195 {offsets = [16, 0], sizes = [8, 8], strides = [1, 1]} : vector<128x8xf32> to vector<8x8xf32>
    %203 = vector.extract_strided_slice %195 {offsets = [24, 0], sizes = [8, 8], strides = [1, 1]} : vector<128x8xf32> to vector<8x8xf32>
    %204 = arith.maximumf %202, %203 : vector<8x8xf32>
    %c0_170 = arith.constant 0 : index
    %c8_171 = arith.constant 8 : index
    %c0_172 = arith.constant 0 : index
    %205 = vector.load %arg7[%c0_170, %c8_171, %c0_172] : memref<1x64x8xf32, #tpu.memory_space<vmem>>, vector<1x8x8xf32>
    %206 = vector.shape_cast %205 : vector<1x8x8xf32> to vector<8x8xf32>
    %207 = vector.shape_cast %204 : vector<8x8xf32> to vector<1x8x8xf32>
    tpu.vector_store %arg7[%c0_170, %c8_171, %c0_172], %207 {strides = array<i32>} : memref<1x64x8xf32, #tpu.memory_space<vmem>>, vector<1x8x8xf32>,
    %208 = vector.extract_strided_slice %195 {offsets = [32, 0], sizes = [8, 8], strides = [1, 1]} : vector<128x8xf32> to vector<8x8xf32>
    %209 = vector.extract_strided_slice %195 {offsets = [40, 0], sizes = [8, 8], strides = [1, 1]} : vector<128x8xf32> to vector<8x8xf32>
    %210 = arith.maximumf %208, %209 : vector<8x8xf32>
    %c0_173 = arith.constant 0 : index
    %c16_174 = arith.constant 16 : index
    %c0_175 = arith.constant 0 : index
    %211 = vector.load %arg7[%c0_173, %c16_174, %c0_175] : memref<1x64x8xf32, #tpu.memory_space<vmem>>, vector<1x8x8xf32>
    %212 = vector.shape_cast %211 : vector<1x8x8xf32> to vector<8x8xf32>
    %213 = vector.shape_cast %210 : vector<8x8xf32> to vector<1x8x8xf32>
    tpu.vector_store %arg7[%c0_173, %c16_174, %c0_175], %213 {strides = array<i32>} : memref<1x64x8xf32, #tpu.memory_space<vmem>>, vector<1x8x8xf32>,
    %214 = vector.extract_strided_slice %195 {offsets = [48, 0], sizes = [8, 8], strides = [1, 1]} : vector<128x8xf32> to vector<8x8xf32>
    %215 = vector.extract_strided_slice %195 {offsets = [56, 0], sizes = [8, 8], strides = [1, 1]} : vector<128x8xf32> to vector<8x8xf32>
    %216 = arith.maximumf %214, %215 : vector<8x8xf32>
    %c0_176 = arith.constant 0 : index
    %c24 = arith.constant 24 : index
    %c0_177 = arith.constant 0 : index
    %217 = vector.load %arg7[%c0_176, %c24, %c0_177] : memref<1x64x8xf32, #tpu.memory_space<vmem>>, vector<1x8x8xf32>
    %218 = vector.shape_cast %217 : vector<1x8x8xf32> to vector<8x8xf32>
    %219 = vector.shape_cast %216 : vector<8x8xf32> to vector<1x8x8xf32>
    tpu.vector_store %arg7[%c0_176, %c24, %c0_177], %219 {strides = array<i32>} : memref<1x64x8xf32, #tpu.memory_space<vmem>>, vector<1x8x8xf32>,
    %220 = vector.extract_strided_slice %195 {offsets = [64, 0], sizes = [8, 8], strides = [1, 1]} : vector<128x8xf32> to vector<8x8xf32>
    %221 = vector.extract_strided_slice %195 {offsets = [72, 0], sizes = [8, 8], strides = [1, 1]} : vector<128x8xf32> to vector<8x8xf32>
    %222 = arith.maximumf %220, %221 : vector<8x8xf32>
    %c0_178 = arith.constant 0 : index
    %c32_179 = arith.constant 32 : index
    %c0_180 = arith.constant 0 : index
    %223 = vector.load %arg7[%c0_178, %c32_179, %c0_180] : memref<1x64x8xf32, #tpu.memory_space<vmem>>, vector<1x8x8xf32>
    %224 = vector.shape_cast %223 : vector<1x8x8xf32> to vector<8x8xf32>
    %225 = vector.shape_cast %222 : vector<8x8xf32> to vector<1x8x8xf32>
    tpu.vector_store %arg7[%c0_178, %c32_179, %c0_180], %225 {strides = array<i32>} : memref<1x64x8xf32, #tpu.memory_space<vmem>>, vector<1x8x8xf32>,
    %226 = vector.extract_strided_slice %195 {offsets = [80, 0], sizes = [8, 8], strides = [1, 1]} : vector<128x8xf32> to vector<8x8xf32>
    %227 = vector.extract_strided_slice %195 {offsets = [88, 0], sizes = [8, 8], strides = [1, 1]} : vector<128x8xf32> to vector<8x8xf32>
    %228 = arith.maximumf %226, %227 : vector<8x8xf32>
    %c0_181 = arith.constant 0 : index
    %c40 = arith.constant 40 : index
    %c0_182 = arith.constant 0 : index
    %229 = vector.load %arg7[%c0_181, %c40, %c0_182] : memref<1x64x8xf32, #tpu.memory_space<vmem>>, vector<1x8x8xf32>
    %230 = vector.shape_cast %229 : vector<1x8x8xf32> to vector<8x8xf32>
    %231 = vector.shape_cast %228 : vector<8x8xf32> to vector<1x8x8xf32>
    tpu.vector_store %arg7[%c0_181, %c40, %c0_182], %231 {strides = array<i32>} : memref<1x64x8xf32, #tpu.memory_space<vmem>>, vector<1x8x8xf32>,
    %232 = vector.extract_strided_slice %195 {offsets = [96, 0], sizes = [8, 8], strides = [1, 1]} : vector<128x8xf32> to vector<8x8xf32>
    %233 = vector.extract_strided_slice %195 {offsets = [104, 0], sizes = [8, 8], strides = [1, 1]} : vector<128x8xf32> to vector<8x8xf32>
    %234 = arith.maximumf %232, %233 : vector<8x8xf32>
    %c0_183 = arith.constant 0 : index
    %c48 = arith.constant 48 : index
    %c0_184 = arith.constant 0 : index
    %235 = vector.load %arg7[%c0_183, %c48, %c0_184] : memref<1x64x8xf32, #tpu.memory_space<vmem>>, vector<1x8x8xf32>
    %236 = vector.shape_cast %235 : vector<1x8x8xf32> to vector<8x8xf32>
    %237 = vector.shape_cast %234 : vector<8x8xf32> to vector<1x8x8xf32>
    tpu.vector_store %arg7[%c0_183, %c48, %c0_184], %237 {strides = array<i32>} : memref<1x64x8xf32, #tpu.memory_space<vmem>>, vector<1x8x8xf32>,
    %238 = vector.extract_strided_slice %195 {offsets = [112, 0], sizes = [8, 8], strides = [1, 1]} : vector<128x8xf32> to vector<8x8xf32>
    %239 = vector.extract_strided_slice %195 {offsets = [120, 0], sizes = [8, 8], strides = [1, 1]} : vector<128x8xf32> to vector<8x8xf32>
    %240 = arith.maximumf %238, %239 : vector<8x8xf32>
    %c0_185 = arith.constant 0 : index
    %c56 = arith.constant 56 : index
    %c0_186 = arith.constant 0 : index
    %241 = vector.load %arg7[%c0_185, %c56, %c0_186] : memref<1x64x8xf32, #tpu.memory_space<vmem>>, vector<1x8x8xf32>
    %242 = vector.shape_cast %241 : vector<1x8x8xf32> to vector<8x8xf32>
    %243 = vector.shape_cast %240 : vector<8x8xf32> to vector<1x8x8xf32>
    tpu.vector_store %arg7[%c0_185, %c56, %c0_186], %243 {strides = array<i32>} : memref<1x64x8xf32, #tpu.memory_space<vmem>>, vector<1x8x8xf32>,
    return
  }
  func.func @transform_0(%arg0: i32) -> (i32, i32, i32) {
    %c0_i32 = arith.constant 0 : i32
    %c0_i32_0 = arith.constant 0 : i32
    %c0_i32_1 = arith.constant 0 : i32
    return %arg0, %c0_i32, %c0_i32_0 : i32, i32, i32
  }
  func.func @transform_1(%arg0: i32) -> (i32, i32, i32) {
    %c0_i32 = arith.constant 0 : i32
    %c0_i32_0 = arith.constant 0 : i32
    %c0_i32_1 = arith.constant 0 : i32
    %c0_i32_2 = arith.constant 0 : i32
    return %c0_i32, %c0_i32_0, %c0_i32_1 : i32, i32, i32
  }
  func.func @transform_2(%arg0: i32) -> (i32, i32, i32) {
    %c0_i32 = arith.constant 0 : i32
    %c0_i32_0 = arith.constant 0 : i32
    %c0_i32_1 = arith.constant 0 : i32
    %c0_i32_2 = arith.constant 0 : i32
    return %c0_i32, %c0_i32_0, %c0_i32_1 : i32, i32, i32
  }
  func.func @transform_3(%arg0: i32) -> (i32, i32) {
    %c0_i32 = arith.constant 0 : i32
    %c0_i32_0 = arith.constant 0 : i32
    %c0_i32_1 = arith.constant 0 : i32
    return %c0_i32, %c0_i32_0 : i32, i32
  }
  func.func @transform_4(%arg0: i32) -> (i32, i32, i32) {
    %c0_i32 = arith.constant 0 : i32
    %c0_i32_0 = arith.constant 0 : i32
    %c0_i32_1 = arith.constant 0 : i32
    %c0_i32_2 = arith.constant 0 : i32
    return %c0_i32, %c0_i32_0, %c0_i32_1 : i32, i32, i32
  }
  func.func @transform_5(%arg0: i32) -> (i32, i32) {
    %c0_i32 = arith.constant 0 : i32
    %c0_i32_0 = arith.constant 0 : i32
    %c0_i32_1 = arith.constant 0 : i32
    return %c0_i32, %c0_i32_0 : i32, i32
  }
  func.func @transform_6(%arg0: i32) -> (i32, i32, i32) {
    %c0_i32 = arith.constant 0 : i32
    %c0_i32_0 = arith.constant 0 : i32
    %c0_i32_1 = arith.constant 0 : i32
    return %arg0, %c0_i32, %c0_i32_0 : i32, i32, i32
  }
}

module attributes {stable_mosaic.version = 11 : i64} {
  func.func @conv_block_kernel(%arg0: i32, %arg1: memref<1x64x8xf32, #tpu.memory_space<vmem>>, %arg2: memref<9x64x1xf32, #tpu.memory_space<vmem>>, %arg3: memref<9x8x16xbf16, #tpu.memory_space<vmem>>, %arg4: memref<1x16xf32, #tpu.memory_space<vmem>>, %arg5: memref<9x16x16xbf16, #tpu.memory_space<vmem>>, %arg6: memref<1x16xf32, #tpu.memory_space<vmem>>, %arg7: memref<1x16x16xf32, #tpu.memory_space<vmem>>, %arg8: memref<82x8xf32, #tpu.memory_space<vmem>>, %arg9: memref<82x16xf32, #tpu.memory_space<vmem>>, %arg10: memref<64x16xf32, #tpu.memory_space<vmem>>) attributes {dimension_semantics = [#tpu.dimension_semantics<parallel>], iteration_bounds = array<i64: 2>, scalar_prefetch = 0 : i64, scratch_operands = 3 : i64, tpu.core_type = #tpu.core_type<tc>, window_params = [{transform_indices = @transform_0, window_bounds = array<i64: 1, 64, 8>}, {pipeline_mode = #tpu.pipeline_mode<synchronous>, transform_indices = @transform_1, window_bounds = array<i64: 9, 64, 1>}, {pipeline_mode = #tpu.pipeline_mode<synchronous>, transform_indices = @transform_2, window_bounds = array<i64: 9, 8, 16>}, {pipeline_mode = #tpu.pipeline_mode<synchronous>, transform_indices = @transform_3, window_bounds = array<i64: 1, 16>}, {pipeline_mode = #tpu.pipeline_mode<synchronous>, transform_indices = @transform_4, window_bounds = array<i64: 9, 16, 16>}, {pipeline_mode = #tpu.pipeline_mode<synchronous>, transform_indices = @transform_5, window_bounds = array<i64: 1, 16>}, {transform_indices = @transform_6, window_bounds = array<i64: 1, 16, 16>}]} {
    %cst = arith.constant 0.000000e+00 : f32
    %0 = vector.broadcast %cst : f32 to vector<82x8xf32>
    %c0 = arith.constant 0 : index
    %c0_0 = arith.constant 0 : index
    %1 = vector.load %arg8[%c0, %c0_0] : memref<82x8xf32, #tpu.memory_space<vmem>>, vector<82x8xf32>
    tpu.vector_store %arg8[%c0, %c0_0], %0 {strides = array<i32>} : memref<82x8xf32, #tpu.memory_space<vmem>>, vector<82x8xf32>,
    %cst_1 = arith.constant 0.000000e+00 : f32
    %2 = vector.broadcast %cst_1 : f32 to vector<82x16xf32>
    %c0_2 = arith.constant 0 : index
    %c0_3 = arith.constant 0 : index
    %3 = vector.load %arg9[%c0_2, %c0_3] : memref<82x16xf32, #tpu.memory_space<vmem>>, vector<82x16xf32>
    tpu.vector_store %arg9[%c0_2, %c0_3], %2 {strides = array<i32>} : memref<82x16xf32, #tpu.memory_space<vmem>>, vector<82x16xf32>,
    %c0_4 = arith.constant 0 : index
    %c0_5 = arith.constant 0 : index
    %c0_6 = arith.constant 0 : index
    %4 = vector.load %arg1[%c0_4, %c0_5, %c0_6] : memref<1x64x8xf32, #tpu.memory_space<vmem>>, vector<1x64x8xf32>
    %5 = vector.shape_cast %4 : vector<1x64x8xf32> to vector<64x8xf32>
    %c9 = arith.constant 9 : index
    %c0_7 = arith.constant 0 : index
    %6 = vector.load %arg8[%c9, %c0_7] : memref<82x8xf32, #tpu.memory_space<vmem>>, vector<64x8xf32>
    tpu.vector_store %arg8[%c9, %c0_7], %5 {strides = array<i32>} : memref<82x8xf32, #tpu.memory_space<vmem>>, vector<64x8xf32>,
    %cst_8 = arith.constant 0.000000e+00 : f32
    %7 = vector.broadcast %cst_8 : f32 to vector<64x16xf32>
    %c0_9 = arith.constant 0 : index
    %c0_10 = arith.constant 0 : index
    %8 = vector.load %arg8[%c0_9, %c0_10] : memref<82x8xf32, #tpu.memory_space<vmem>>, vector<64x8xf32>
    %c0_11 = arith.constant 0 : index
    %c0_12 = arith.constant 0 : index
    %c0_13 = arith.constant 0 : index
    %9 = vector.load %arg2[%c0_11, %c0_12, %c0_13] : memref<9x64x1xf32, #tpu.memory_space<vmem>>, vector<1x64x1xf32>
    %10 = vector.shape_cast %9 : vector<1x64x1xf32> to vector<64x1xf32>
    %11 = vector.broadcast %10 : vector<64x1xf32> to vector<64x8xf32>
    %12 = arith.mulf %8, %11 : vector<64x8xf32>
    %13 = arith.truncf %12 : vector<64x8xf32> to vector<64x8xbf16>
    %c0_14 = arith.constant 0 : index
    %c0_15 = arith.constant 0 : index
    %c0_16 = arith.constant 0 : index
    %14 = vector.load %arg3[%c0_14, %c0_15, %c0_16] : memref<9x8x16xbf16, #tpu.memory_space<vmem>>, vector<1x8x16xbf16>
    %15 = vector.shape_cast %14 : vector<1x8x16xbf16> to vector<8x16xbf16>
    %cst_17 = arith.constant dense<0.000000e+00> : vector<64x16xf32>
    %16 = tpu.matmul %13, %15, %cst_17 {dimension_numbers = #tpu.dot_dimension_numbers<[1], [0], [0], [1], [0, 0, 1, 1], [], []>} : vector<64x8xbf16>, vector<8x16xbf16>, vector<64x16xf32> -> vector<64x16xf32>
    %17 = arith.addf %7, %16 : vector<64x16xf32>
    %c1 = arith.constant 1 : index
    %c0_18 = arith.constant 0 : index
    %18 = vector.load %arg8[%c1, %c0_18] : memref<82x8xf32, #tpu.memory_space<vmem>>, vector<64x8xf32>
    %c1_19 = arith.constant 1 : index
    %c0_20 = arith.constant 0 : index
    %c0_21 = arith.constant 0 : index
    %19 = vector.load %arg2[%c1_19, %c0_20, %c0_21] : memref<9x64x1xf32, #tpu.memory_space<vmem>>, vector<1x64x1xf32>
    %20 = vector.shape_cast %19 : vector<1x64x1xf32> to vector<64x1xf32>
    %21 = vector.broadcast %20 : vector<64x1xf32> to vector<64x8xf32>
    %22 = arith.mulf %18, %21 : vector<64x8xf32>
    %23 = arith.truncf %22 : vector<64x8xf32> to vector<64x8xbf16>
    %c1_22 = arith.constant 1 : index
    %c0_23 = arith.constant 0 : index
    %c0_24 = arith.constant 0 : index
    %24 = vector.load %arg3[%c1_22, %c0_23, %c0_24] : memref<9x8x16xbf16, #tpu.memory_space<vmem>>, vector<1x8x16xbf16>
    %25 = vector.shape_cast %24 : vector<1x8x16xbf16> to vector<8x16xbf16>
    %cst_25 = arith.constant dense<0.000000e+00> : vector<64x16xf32>
    %26 = tpu.matmul %23, %25, %cst_25 {dimension_numbers = #tpu.dot_dimension_numbers<[1], [0], [0], [1], [0, 0, 1, 1], [], []>} : vector<64x8xbf16>, vector<8x16xbf16>, vector<64x16xf32> -> vector<64x16xf32>
    %27 = arith.addf %17, %26 : vector<64x16xf32>
    %c2 = arith.constant 2 : index
    %c0_26 = arith.constant 0 : index
    %28 = vector.load %arg8[%c2, %c0_26] : memref<82x8xf32, #tpu.memory_space<vmem>>, vector<64x8xf32>
    %c2_27 = arith.constant 2 : index
    %c0_28 = arith.constant 0 : index
    %c0_29 = arith.constant 0 : index
    %29 = vector.load %arg2[%c2_27, %c0_28, %c0_29] : memref<9x64x1xf32, #tpu.memory_space<vmem>>, vector<1x64x1xf32>
    %30 = vector.shape_cast %29 : vector<1x64x1xf32> to vector<64x1xf32>
    %31 = vector.broadcast %30 : vector<64x1xf32> to vector<64x8xf32>
    %32 = arith.mulf %28, %31 : vector<64x8xf32>
    %33 = arith.truncf %32 : vector<64x8xf32> to vector<64x8xbf16>
    %c2_30 = arith.constant 2 : index
    %c0_31 = arith.constant 0 : index
    %c0_32 = arith.constant 0 : index
    %34 = vector.load %arg3[%c2_30, %c0_31, %c0_32] : memref<9x8x16xbf16, #tpu.memory_space<vmem>>, vector<1x8x16xbf16>
    %35 = vector.shape_cast %34 : vector<1x8x16xbf16> to vector<8x16xbf16>
    %cst_33 = arith.constant dense<0.000000e+00> : vector<64x16xf32>
    %36 = tpu.matmul %33, %35, %cst_33 {dimension_numbers = #tpu.dot_dimension_numbers<[1], [0], [0], [1], [0, 0, 1, 1], [], []>} : vector<64x8xbf16>, vector<8x16xbf16>, vector<64x16xf32> -> vector<64x16xf32>
    %37 = arith.addf %27, %36 : vector<64x16xf32>
    %c8 = arith.constant 8 : index
    %c0_34 = arith.constant 0 : index
    %38 = vector.load %arg8[%c8, %c0_34] : memref<82x8xf32, #tpu.memory_space<vmem>>, vector<64x8xf32>
    %c3 = arith.constant 3 : index
    %c0_35 = arith.constant 0 : index
    %c0_36 = arith.constant 0 : index
    %39 = vector.load %arg2[%c3, %c0_35, %c0_36] : memref<9x64x1xf32, #tpu.memory_space<vmem>>, vector<1x64x1xf32>
    %40 = vector.shape_cast %39 : vector<1x64x1xf32> to vector<64x1xf32>
    %41 = vector.broadcast %40 : vector<64x1xf32> to vector<64x8xf32>
    %42 = arith.mulf %38, %41 : vector<64x8xf32>
    %43 = arith.truncf %42 : vector<64x8xf32> to vector<64x8xbf16>
    %c3_37 = arith.constant 3 : index
    %c0_38 = arith.constant 0 : index
    %c0_39 = arith.constant 0 : index
    %44 = vector.load %arg3[%c3_37, %c0_38, %c0_39] : memref<9x8x16xbf16, #tpu.memory_space<vmem>>, vector<1x8x16xbf16>
    %45 = vector.shape_cast %44 : vector<1x8x16xbf16> to vector<8x16xbf16>
    %cst_40 = arith.constant dense<0.000000e+00> : vector<64x16xf32>
    %46 = tpu.matmul %43, %45, %cst_40 {dimension_numbers = #tpu.dot_dimension_numbers<[1], [0], [0], [1], [0, 0, 1, 1], [], []>} : vector<64x8xbf16>, vector<8x16xbf16>, vector<64x16xf32> -> vector<64x16xf32>
    %47 = arith.addf %37, %46 : vector<64x16xf32>
    %c9_41 = arith.constant 9 : index
    %c0_42 = arith.constant 0 : index
    %48 = vector.load %arg8[%c9_41, %c0_42] : memref<82x8xf32, #tpu.memory_space<vmem>>, vector<64x8xf32>
    %49 = arith.truncf %48 : vector<64x8xf32> to vector<64x8xbf16>
    %c4 = arith.constant 4 : index
    %c0_43 = arith.constant 0 : index
    %c0_44 = arith.constant 0 : index
    %50 = vector.load %arg3[%c4, %c0_43, %c0_44] : memref<9x8x16xbf16, #tpu.memory_space<vmem>>, vector<1x8x16xbf16>
    %51 = vector.shape_cast %50 : vector<1x8x16xbf16> to vector<8x16xbf16>
    %cst_45 = arith.constant dense<0.000000e+00> : vector<64x16xf32>
    %52 = tpu.matmul %49, %51, %cst_45 {dimension_numbers = #tpu.dot_dimension_numbers<[1], [0], [0], [1], [0, 0, 1, 1], [], []>} : vector<64x8xbf16>, vector<8x16xbf16>, vector<64x16xf32> -> vector<64x16xf32>
    %53 = arith.addf %47, %52 : vector<64x16xf32>
    %c10 = arith.constant 10 : index
    %c0_46 = arith.constant 0 : index
    %54 = vector.load %arg8[%c10, %c0_46] : memref<82x8xf32, #tpu.memory_space<vmem>>, vector<64x8xf32>
    %c5 = arith.constant 5 : index
    %c0_47 = arith.constant 0 : index
    %c0_48 = arith.constant 0 : index
    %55 = vector.load %arg2[%c5, %c0_47, %c0_48] : memref<9x64x1xf32, #tpu.memory_space<vmem>>, vector<1x64x1xf32>
    %56 = vector.shape_cast %55 : vector<1x64x1xf32> to vector<64x1xf32>
    %57 = vector.broadcast %56 : vector<64x1xf32> to vector<64x8xf32>
    %58 = arith.mulf %54, %57 : vector<64x8xf32>
    %59 = arith.truncf %58 : vector<64x8xf32> to vector<64x8xbf16>
    %c5_49 = arith.constant 5 : index
    %c0_50 = arith.constant 0 : index
    %c0_51 = arith.constant 0 : index
    %60 = vector.load %arg3[%c5_49, %c0_50, %c0_51] : memref<9x8x16xbf16, #tpu.memory_space<vmem>>, vector<1x8x16xbf16>
    %61 = vector.shape_cast %60 : vector<1x8x16xbf16> to vector<8x16xbf16>
    %cst_52 = arith.constant dense<0.000000e+00> : vector<64x16xf32>
    %62 = tpu.matmul %59, %61, %cst_52 {dimension_numbers = #tpu.dot_dimension_numbers<[1], [0], [0], [1], [0, 0, 1, 1], [], []>} : vector<64x8xbf16>, vector<8x16xbf16>, vector<64x16xf32> -> vector<64x16xf32>
    %63 = arith.addf %53, %62 : vector<64x16xf32>
    %c16 = arith.constant 16 : index
    %c0_53 = arith.constant 0 : index
    %64 = vector.load %arg8[%c16, %c0_53] : memref<82x8xf32, #tpu.memory_space<vmem>>, vector<64x8xf32>
    %c6 = arith.constant 6 : index
    %c0_54 = arith.constant 0 : index
    %c0_55 = arith.constant 0 : index
    %65 = vector.load %arg2[%c6, %c0_54, %c0_55] : memref<9x64x1xf32, #tpu.memory_space<vmem>>, vector<1x64x1xf32>
    %66 = vector.shape_cast %65 : vector<1x64x1xf32> to vector<64x1xf32>
    %67 = vector.broadcast %66 : vector<64x1xf32> to vector<64x8xf32>
    %68 = arith.mulf %64, %67 : vector<64x8xf32>
    %69 = arith.truncf %68 : vector<64x8xf32> to vector<64x8xbf16>
    %c6_56 = arith.constant 6 : index
    %c0_57 = arith.constant 0 : index
    %c0_58 = arith.constant 0 : index
    %70 = vector.load %arg3[%c6_56, %c0_57, %c0_58] : memref<9x8x16xbf16, #tpu.memory_space<vmem>>, vector<1x8x16xbf16>
    %71 = vector.shape_cast %70 : vector<1x8x16xbf16> to vector<8x16xbf16>
    %cst_59 = arith.constant dense<0.000000e+00> : vector<64x16xf32>
    %72 = tpu.matmul %69, %71, %cst_59 {dimension_numbers = #tpu.dot_dimension_numbers<[1], [0], [0], [1], [0, 0, 1, 1], [], []>} : vector<64x8xbf16>, vector<8x16xbf16>, vector<64x16xf32> -> vector<64x16xf32>
    %73 = arith.addf %63, %72 : vector<64x16xf32>
    %c17 = arith.constant 17 : index
    %c0_60 = arith.constant 0 : index
    %74 = vector.load %arg8[%c17, %c0_60] : memref<82x8xf32, #tpu.memory_space<vmem>>, vector<64x8xf32>
    %c7 = arith.constant 7 : index
    %c0_61 = arith.constant 0 : index
    %c0_62 = arith.constant 0 : index
    %75 = vector.load %arg2[%c7, %c0_61, %c0_62] : memref<9x64x1xf32, #tpu.memory_space<vmem>>, vector<1x64x1xf32>
    %76 = vector.shape_cast %75 : vector<1x64x1xf32> to vector<64x1xf32>
    %77 = vector.broadcast %76 : vector<64x1xf32> to vector<64x8xf32>
    %78 = arith.mulf %74, %77 : vector<64x8xf32>
    %79 = arith.truncf %78 : vector<64x8xf32> to vector<64x8xbf16>
    %c7_63 = arith.constant 7 : index
    %c0_64 = arith.constant 0 : index
    %c0_65 = arith.constant 0 : index
    %80 = vector.load %arg3[%c7_63, %c0_64, %c0_65] : memref<9x8x16xbf16, #tpu.memory_space<vmem>>, vector<1x8x16xbf16>
    %81 = vector.shape_cast %80 : vector<1x8x16xbf16> to vector<8x16xbf16>
    %cst_66 = arith.constant dense<0.000000e+00> : vector<64x16xf32>
    %82 = tpu.matmul %79, %81, %cst_66 {dimension_numbers = #tpu.dot_dimension_numbers<[1], [0], [0], [1], [0, 0, 1, 1], [], []>} : vector<64x8xbf16>, vector<8x16xbf16>, vector<64x16xf32> -> vector<64x16xf32>
    %83 = arith.addf %73, %82 : vector<64x16xf32>
    %c18 = arith.constant 18 : index
    %c0_67 = arith.constant 0 : index
    %84 = vector.load %arg8[%c18, %c0_67] : memref<82x8xf32, #tpu.memory_space<vmem>>, vector<64x8xf32>
    %c8_68 = arith.constant 8 : index
    %c0_69 = arith.constant 0 : index
    %c0_70 = arith.constant 0 : index
    %85 = vector.load %arg2[%c8_68, %c0_69, %c0_70] : memref<9x64x1xf32, #tpu.memory_space<vmem>>, vector<1x64x1xf32>
    %86 = vector.shape_cast %85 : vector<1x64x1xf32> to vector<64x1xf32>
    %87 = vector.broadcast %86 : vector<64x1xf32> to vector<64x8xf32>
    %88 = arith.mulf %84, %87 : vector<64x8xf32>
    %89 = arith.truncf %88 : vector<64x8xf32> to vector<64x8xbf16>
    %c8_71 = arith.constant 8 : index
    %c0_72 = arith.constant 0 : index
    %c0_73 = arith.constant 0 : index
    %90 = vector.load %arg3[%c8_71, %c0_72, %c0_73] : memref<9x8x16xbf16, #tpu.memory_space<vmem>>, vector<1x8x16xbf16>
    %91 = vector.shape_cast %90 : vector<1x8x16xbf16> to vector<8x16xbf16>
    %cst_74 = arith.constant dense<0.000000e+00> : vector<64x16xf32>
    %92 = tpu.matmul %89, %91, %cst_74 {dimension_numbers = #tpu.dot_dimension_numbers<[1], [0], [0], [1], [0, 0, 1, 1], [], []>} : vector<64x8xbf16>, vector<8x16xbf16>, vector<64x16xf32> -> vector<64x16xf32>
    %93 = arith.addf %83, %92 : vector<64x16xf32>
    %c0_75 = arith.constant 0 : index
    %c0_76 = arith.constant 0 : index
    %94 = vector.load %arg4[%c0_75, %c0_76] : memref<1x16xf32, #tpu.memory_space<vmem>>, vector<1x16xf32>
    %95 = vector.broadcast %94 : vector<1x16xf32> to vector<64x16xf32>
    %96 = arith.addf %93, %95 : vector<64x16xf32>
    %cst_77 = arith.constant 0.000000e+00 : f32
    %97 = vector.broadcast %cst_77 : f32 to vector<64x16xf32>
    %98 = arith.maximumf %96, %97 : vector<64x16xf32>
    %c9_78 = arith.constant 9 : index
    %c0_79 = arith.constant 0 : index
    %99 = vector.load %arg9[%c9_78, %c0_79] : memref<82x16xf32, #tpu.memory_space<vmem>>, vector<64x16xf32>
    tpu.vector_store %arg9[%c9_78, %c0_79], %98 {strides = array<i32>} : memref<82x16xf32, #tpu.memory_space<vmem>>, vector<64x16xf32>,
    %cst_80 = arith.constant 0.000000e+00 : f32
    %100 = vector.broadcast %cst_80 : f32 to vector<64x16xf32>
    %c0_81 = arith.constant 0 : index
    %c0_82 = arith.constant 0 : index
    %101 = vector.load %arg9[%c0_81, %c0_82] : memref<82x16xf32, #tpu.memory_space<vmem>>, vector<64x16xf32>
    %c0_83 = arith.constant 0 : index
    %c0_84 = arith.constant 0 : index
    %c0_85 = arith.constant 0 : index
    %102 = vector.load %arg2[%c0_83, %c0_84, %c0_85] : memref<9x64x1xf32, #tpu.memory_space<vmem>>, vector<1x64x1xf32>
    %103 = vector.shape_cast %102 : vector<1x64x1xf32> to vector<64x1xf32>
    %104 = vector.broadcast %103 : vector<64x1xf32> to vector<64x16xf32>
    %105 = arith.mulf %101, %104 : vector<64x16xf32>
    %106 = arith.truncf %105 : vector<64x16xf32> to vector<64x16xbf16>
    %c0_86 = arith.constant 0 : index
    %c0_87 = arith.constant 0 : index
    %c0_88 = arith.constant 0 : index
    %107 = vector.load %arg5[%c0_86, %c0_87, %c0_88] : memref<9x16x16xbf16, #tpu.memory_space<vmem>>, vector<1x16x16xbf16>
    %108 = vector.shape_cast %107 : vector<1x16x16xbf16> to vector<16x16xbf16>
    %cst_89 = arith.constant dense<0.000000e+00> : vector<64x16xf32>
    %109 = tpu.matmul %106, %108, %cst_89 {dimension_numbers = #tpu.dot_dimension_numbers<[1], [0], [0], [1], [0, 0, 1, 1], [], []>} : vector<64x16xbf16>, vector<16x16xbf16>, vector<64x16xf32> -> vector<64x16xf32>
    %110 = arith.addf %100, %109 : vector<64x16xf32>
    %c1_90 = arith.constant 1 : index
    %c0_91 = arith.constant 0 : index
    %111 = vector.load %arg9[%c1_90, %c0_91] : memref<82x16xf32, #tpu.memory_space<vmem>>, vector<64x16xf32>
    %c1_92 = arith.constant 1 : index
    %c0_93 = arith.constant 0 : index
    %c0_94 = arith.constant 0 : index
    %112 = vector.load %arg2[%c1_92, %c0_93, %c0_94] : memref<9x64x1xf32, #tpu.memory_space<vmem>>, vector<1x64x1xf32>
    %113 = vector.shape_cast %112 : vector<1x64x1xf32> to vector<64x1xf32>
    %114 = vector.broadcast %113 : vector<64x1xf32> to vector<64x16xf32>
    %115 = arith.mulf %111, %114 : vector<64x16xf32>
    %116 = arith.truncf %115 : vector<64x16xf32> to vector<64x16xbf16>
    %c1_95 = arith.constant 1 : index
    %c0_96 = arith.constant 0 : index
    %c0_97 = arith.constant 0 : index
    %117 = vector.load %arg5[%c1_95, %c0_96, %c0_97] : memref<9x16x16xbf16, #tpu.memory_space<vmem>>, vector<1x16x16xbf16>
    %118 = vector.shape_cast %117 : vector<1x16x16xbf16> to vector<16x16xbf16>
    %cst_98 = arith.constant dense<0.000000e+00> : vector<64x16xf32>
    %119 = tpu.matmul %116, %118, %cst_98 {dimension_numbers = #tpu.dot_dimension_numbers<[1], [0], [0], [1], [0, 0, 1, 1], [], []>} : vector<64x16xbf16>, vector<16x16xbf16>, vector<64x16xf32> -> vector<64x16xf32>
    %120 = arith.addf %110, %119 : vector<64x16xf32>
    %c2_99 = arith.constant 2 : index
    %c0_100 = arith.constant 0 : index
    %121 = vector.load %arg9[%c2_99, %c0_100] : memref<82x16xf32, #tpu.memory_space<vmem>>, vector<64x16xf32>
    %c2_101 = arith.constant 2 : index
    %c0_102 = arith.constant 0 : index
    %c0_103 = arith.constant 0 : index
    %122 = vector.load %arg2[%c2_101, %c0_102, %c0_103] : memref<9x64x1xf32, #tpu.memory_space<vmem>>, vector<1x64x1xf32>
    %123 = vector.shape_cast %122 : vector<1x64x1xf32> to vector<64x1xf32>
    %124 = vector.broadcast %123 : vector<64x1xf32> to vector<64x16xf32>
    %125 = arith.mulf %121, %124 : vector<64x16xf32>
    %126 = arith.truncf %125 : vector<64x16xf32> to vector<64x16xbf16>
    %c2_104 = arith.constant 2 : index
    %c0_105 = arith.constant 0 : index
    %c0_106 = arith.constant 0 : index
    %127 = vector.load %arg5[%c2_104, %c0_105, %c0_106] : memref<9x16x16xbf16, #tpu.memory_space<vmem>>, vector<1x16x16xbf16>
    %128 = vector.shape_cast %127 : vector<1x16x16xbf16> to vector<16x16xbf16>
    %cst_107 = arith.constant dense<0.000000e+00> : vector<64x16xf32>
    %129 = tpu.matmul %126, %128, %cst_107 {dimension_numbers = #tpu.dot_dimension_numbers<[1], [0], [0], [1], [0, 0, 1, 1], [], []>} : vector<64x16xbf16>, vector<16x16xbf16>, vector<64x16xf32> -> vector<64x16xf32>
    %130 = arith.addf %120, %129 : vector<64x16xf32>
    %c8_108 = arith.constant 8 : index
    %c0_109 = arith.constant 0 : index
    %131 = vector.load %arg9[%c8_108, %c0_109] : memref<82x16xf32, #tpu.memory_space<vmem>>, vector<64x16xf32>
    %c3_110 = arith.constant 3 : index
    %c0_111 = arith.constant 0 : index
    %c0_112 = arith.constant 0 : index
    %132 = vector.load %arg2[%c3_110, %c0_111, %c0_112] : memref<9x64x1xf32, #tpu.memory_space<vmem>>, vector<1x64x1xf32>
    %133 = vector.shape_cast %132 : vector<1x64x1xf32> to vector<64x1xf32>
    %134 = vector.broadcast %133 : vector<64x1xf32> to vector<64x16xf32>
    %135 = arith.mulf %131, %134 : vector<64x16xf32>
    %136 = arith.truncf %135 : vector<64x16xf32> to vector<64x16xbf16>
    %c3_113 = arith.constant 3 : index
    %c0_114 = arith.constant 0 : index
    %c0_115 = arith.constant 0 : index
    %137 = vector.load %arg5[%c3_113, %c0_114, %c0_115] : memref<9x16x16xbf16, #tpu.memory_space<vmem>>, vector<1x16x16xbf16>
    %138 = vector.shape_cast %137 : vector<1x16x16xbf16> to vector<16x16xbf16>
    %cst_116 = arith.constant dense<0.000000e+00> : vector<64x16xf32>
    %139 = tpu.matmul %136, %138, %cst_116 {dimension_numbers = #tpu.dot_dimension_numbers<[1], [0], [0], [1], [0, 0, 1, 1], [], []>} : vector<64x16xbf16>, vector<16x16xbf16>, vector<64x16xf32> -> vector<64x16xf32>
    %140 = arith.addf %130, %139 : vector<64x16xf32>
    %c9_117 = arith.constant 9 : index
    %c0_118 = arith.constant 0 : index
    %141 = vector.load %arg9[%c9_117, %c0_118] : memref<82x16xf32, #tpu.memory_space<vmem>>, vector<64x16xf32>
    %142 = arith.truncf %141 : vector<64x16xf32> to vector<64x16xbf16>
    %c4_119 = arith.constant 4 : index
    %c0_120 = arith.constant 0 : index
    %c0_121 = arith.constant 0 : index
    %143 = vector.load %arg5[%c4_119, %c0_120, %c0_121] : memref<9x16x16xbf16, #tpu.memory_space<vmem>>, vector<1x16x16xbf16>
    %144 = vector.shape_cast %143 : vector<1x16x16xbf16> to vector<16x16xbf16>
    %cst_122 = arith.constant dense<0.000000e+00> : vector<64x16xf32>
    %145 = tpu.matmul %142, %144, %cst_122 {dimension_numbers = #tpu.dot_dimension_numbers<[1], [0], [0], [1], [0, 0, 1, 1], [], []>} : vector<64x16xbf16>, vector<16x16xbf16>, vector<64x16xf32> -> vector<64x16xf32>
    %146 = arith.addf %140, %145 : vector<64x16xf32>
    %c10_123 = arith.constant 10 : index
    %c0_124 = arith.constant 0 : index
    %147 = vector.load %arg9[%c10_123, %c0_124] : memref<82x16xf32, #tpu.memory_space<vmem>>, vector<64x16xf32>
    %c5_125 = arith.constant 5 : index
    %c0_126 = arith.constant 0 : index
    %c0_127 = arith.constant 0 : index
    %148 = vector.load %arg2[%c5_125, %c0_126, %c0_127] : memref<9x64x1xf32, #tpu.memory_space<vmem>>, vector<1x64x1xf32>
    %149 = vector.shape_cast %148 : vector<1x64x1xf32> to vector<64x1xf32>
    %150 = vector.broadcast %149 : vector<64x1xf32> to vector<64x16xf32>
    %151 = arith.mulf %147, %150 : vector<64x16xf32>
    %152 = arith.truncf %151 : vector<64x16xf32> to vector<64x16xbf16>
    %c5_128 = arith.constant 5 : index
    %c0_129 = arith.constant 0 : index
    %c0_130 = arith.constant 0 : index
    %153 = vector.load %arg5[%c5_128, %c0_129, %c0_130] : memref<9x16x16xbf16, #tpu.memory_space<vmem>>, vector<1x16x16xbf16>
    %154 = vector.shape_cast %153 : vector<1x16x16xbf16> to vector<16x16xbf16>
    %cst_131 = arith.constant dense<0.000000e+00> : vector<64x16xf32>
    %155 = tpu.matmul %152, %154, %cst_131 {dimension_numbers = #tpu.dot_dimension_numbers<[1], [0], [0], [1], [0, 0, 1, 1], [], []>} : vector<64x16xbf16>, vector<16x16xbf16>, vector<64x16xf32> -> vector<64x16xf32>
    %156 = arith.addf %146, %155 : vector<64x16xf32>
    %c16_132 = arith.constant 16 : index
    %c0_133 = arith.constant 0 : index
    %157 = vector.load %arg9[%c16_132, %c0_133] : memref<82x16xf32, #tpu.memory_space<vmem>>, vector<64x16xf32>
    %c6_134 = arith.constant 6 : index
    %c0_135 = arith.constant 0 : index
    %c0_136 = arith.constant 0 : index
    %158 = vector.load %arg2[%c6_134, %c0_135, %c0_136] : memref<9x64x1xf32, #tpu.memory_space<vmem>>, vector<1x64x1xf32>
    %159 = vector.shape_cast %158 : vector<1x64x1xf32> to vector<64x1xf32>
    %160 = vector.broadcast %159 : vector<64x1xf32> to vector<64x16xf32>
    %161 = arith.mulf %157, %160 : vector<64x16xf32>
    %162 = arith.truncf %161 : vector<64x16xf32> to vector<64x16xbf16>
    %c6_137 = arith.constant 6 : index
    %c0_138 = arith.constant 0 : index
    %c0_139 = arith.constant 0 : index
    %163 = vector.load %arg5[%c6_137, %c0_138, %c0_139] : memref<9x16x16xbf16, #tpu.memory_space<vmem>>, vector<1x16x16xbf16>
    %164 = vector.shape_cast %163 : vector<1x16x16xbf16> to vector<16x16xbf16>
    %cst_140 = arith.constant dense<0.000000e+00> : vector<64x16xf32>
    %165 = tpu.matmul %162, %164, %cst_140 {dimension_numbers = #tpu.dot_dimension_numbers<[1], [0], [0], [1], [0, 0, 1, 1], [], []>} : vector<64x16xbf16>, vector<16x16xbf16>, vector<64x16xf32> -> vector<64x16xf32>
    %166 = arith.addf %156, %165 : vector<64x16xf32>
    %c17_141 = arith.constant 17 : index
    %c0_142 = arith.constant 0 : index
    %167 = vector.load %arg9[%c17_141, %c0_142] : memref<82x16xf32, #tpu.memory_space<vmem>>, vector<64x16xf32>
    %c7_143 = arith.constant 7 : index
    %c0_144 = arith.constant 0 : index
    %c0_145 = arith.constant 0 : index
    %168 = vector.load %arg2[%c7_143, %c0_144, %c0_145] : memref<9x64x1xf32, #tpu.memory_space<vmem>>, vector<1x64x1xf32>
    %169 = vector.shape_cast %168 : vector<1x64x1xf32> to vector<64x1xf32>
    %170 = vector.broadcast %169 : vector<64x1xf32> to vector<64x16xf32>
    %171 = arith.mulf %167, %170 : vector<64x16xf32>
    %172 = arith.truncf %171 : vector<64x16xf32> to vector<64x16xbf16>
    %c7_146 = arith.constant 7 : index
    %c0_147 = arith.constant 0 : index
    %c0_148 = arith.constant 0 : index
    %173 = vector.load %arg5[%c7_146, %c0_147, %c0_148] : memref<9x16x16xbf16, #tpu.memory_space<vmem>>, vector<1x16x16xbf16>
    %174 = vector.shape_cast %173 : vector<1x16x16xbf16> to vector<16x16xbf16>
    %cst_149 = arith.constant dense<0.000000e+00> : vector<64x16xf32>
    %175 = tpu.matmul %172, %174, %cst_149 {dimension_numbers = #tpu.dot_dimension_numbers<[1], [0], [0], [1], [0, 0, 1, 1], [], []>} : vector<64x16xbf16>, vector<16x16xbf16>, vector<64x16xf32> -> vector<64x16xf32>
    %176 = arith.addf %166, %175 : vector<64x16xf32>
    %c18_150 = arith.constant 18 : index
    %c0_151 = arith.constant 0 : index
    %177 = vector.load %arg9[%c18_150, %c0_151] : memref<82x16xf32, #tpu.memory_space<vmem>>, vector<64x16xf32>
    %c8_152 = arith.constant 8 : index
    %c0_153 = arith.constant 0 : index
    %c0_154 = arith.constant 0 : index
    %178 = vector.load %arg2[%c8_152, %c0_153, %c0_154] : memref<9x64x1xf32, #tpu.memory_space<vmem>>, vector<1x64x1xf32>
    %179 = vector.shape_cast %178 : vector<1x64x1xf32> to vector<64x1xf32>
    %180 = vector.broadcast %179 : vector<64x1xf32> to vector<64x16xf32>
    %181 = arith.mulf %177, %180 : vector<64x16xf32>
    %182 = arith.truncf %181 : vector<64x16xf32> to vector<64x16xbf16>
    %c8_155 = arith.constant 8 : index
    %c0_156 = arith.constant 0 : index
    %c0_157 = arith.constant 0 : index
    %183 = vector.load %arg5[%c8_155, %c0_156, %c0_157] : memref<9x16x16xbf16, #tpu.memory_space<vmem>>, vector<1x16x16xbf16>
    %184 = vector.shape_cast %183 : vector<1x16x16xbf16> to vector<16x16xbf16>
    %cst_158 = arith.constant dense<0.000000e+00> : vector<64x16xf32>
    %185 = tpu.matmul %182, %184, %cst_158 {dimension_numbers = #tpu.dot_dimension_numbers<[1], [0], [0], [1], [0, 0, 1, 1], [], []>} : vector<64x16xbf16>, vector<16x16xbf16>, vector<64x16xf32> -> vector<64x16xf32>
    %186 = arith.addf %176, %185 : vector<64x16xf32>
    %c0_159 = arith.constant 0 : index
    %c0_160 = arith.constant 0 : index
    %187 = vector.load %arg6[%c0_159, %c0_160] : memref<1x16xf32, #tpu.memory_space<vmem>>, vector<1x16xf32>
    %188 = vector.broadcast %187 : vector<1x16xf32> to vector<64x16xf32>
    %189 = arith.addf %186, %188 : vector<64x16xf32>
    %cst_161 = arith.constant 0.000000e+00 : f32
    %190 = vector.broadcast %cst_161 : f32 to vector<64x16xf32>
    %191 = arith.maximumf %189, %190 : vector<64x16xf32>
    %c0_162 = arith.constant 0 : index
    %c0_163 = arith.constant 0 : index
    %192 = vector.load %arg10[%c0_162, %c0_163] : memref<64x16xf32, #tpu.memory_space<vmem>>, vector<64x16xf32>
    tpu.vector_store %arg10[%c0_162, %c0_163], %191 {strides = array<i32>} : memref<64x16xf32, #tpu.memory_space<vmem>>, vector<64x16xf32>,
    %c0_164 = arith.constant 0 : index
    %c0_165 = arith.constant 0 : index
    %193 = tpu.strided_load %arg10[%c0_164, %c0_165] {strides = array<i32: 2, 1>} : memref<64x16xf32, #tpu.memory_space<vmem>>, vector<32x16xf32>
    %c1_166 = arith.constant 1 : index
    %c0_167 = arith.constant 0 : index
    %194 = tpu.strided_load %arg10[%c1_166, %c0_167] {strides = array<i32: 2, 1>} : memref<64x16xf32, #tpu.memory_space<vmem>>, vector<32x16xf32>
    %195 = arith.maximumf %193, %194 : vector<32x16xf32>
    %196 = vector.extract_strided_slice %195 {offsets = [0, 0], sizes = [4, 16], strides = [1, 1]} : vector<32x16xf32> to vector<4x16xf32>
    %197 = vector.extract_strided_slice %195 {offsets = [4, 0], sizes = [4, 16], strides = [1, 1]} : vector<32x16xf32> to vector<4x16xf32>
    %198 = arith.maximumf %196, %197 : vector<4x16xf32>
    %c0_168 = arith.constant 0 : index
    %c0_169 = arith.constant 0 : index
    %c0_170 = arith.constant 0 : index
    %199 = vector.load %arg7[%c0_168, %c0_169, %c0_170] : memref<1x16x16xf32, #tpu.memory_space<vmem>>, vector<1x4x16xf32>
    %200 = vector.shape_cast %199 : vector<1x4x16xf32> to vector<4x16xf32>
    %201 = vector.shape_cast %198 : vector<4x16xf32> to vector<1x4x16xf32>
    tpu.vector_store %arg7[%c0_168, %c0_169, %c0_170], %201 {strides = array<i32>} : memref<1x16x16xf32, #tpu.memory_space<vmem>>, vector<1x4x16xf32>,
    %202 = vector.extract_strided_slice %195 {offsets = [8, 0], sizes = [4, 16], strides = [1, 1]} : vector<32x16xf32> to vector<4x16xf32>
    %203 = vector.extract_strided_slice %195 {offsets = [12, 0], sizes = [4, 16], strides = [1, 1]} : vector<32x16xf32> to vector<4x16xf32>
    %204 = arith.maximumf %202, %203 : vector<4x16xf32>
    %c0_171 = arith.constant 0 : index
    %c4_172 = arith.constant 4 : index
    %c0_173 = arith.constant 0 : index
    %205 = vector.load %arg7[%c0_171, %c4_172, %c0_173] : memref<1x16x16xf32, #tpu.memory_space<vmem>>, vector<1x4x16xf32>
    %206 = vector.shape_cast %205 : vector<1x4x16xf32> to vector<4x16xf32>
    %207 = vector.shape_cast %204 : vector<4x16xf32> to vector<1x4x16xf32>
    tpu.vector_store %arg7[%c0_171, %c4_172, %c0_173], %207 {strides = array<i32>} : memref<1x16x16xf32, #tpu.memory_space<vmem>>, vector<1x4x16xf32>,
    %208 = vector.extract_strided_slice %195 {offsets = [16, 0], sizes = [4, 16], strides = [1, 1]} : vector<32x16xf32> to vector<4x16xf32>
    %209 = vector.extract_strided_slice %195 {offsets = [20, 0], sizes = [4, 16], strides = [1, 1]} : vector<32x16xf32> to vector<4x16xf32>
    %210 = arith.maximumf %208, %209 : vector<4x16xf32>
    %c0_174 = arith.constant 0 : index
    %c8_175 = arith.constant 8 : index
    %c0_176 = arith.constant 0 : index
    %211 = vector.load %arg7[%c0_174, %c8_175, %c0_176] : memref<1x16x16xf32, #tpu.memory_space<vmem>>, vector<1x4x16xf32>
    %212 = vector.shape_cast %211 : vector<1x4x16xf32> to vector<4x16xf32>
    %213 = vector.shape_cast %210 : vector<4x16xf32> to vector<1x4x16xf32>
    tpu.vector_store %arg7[%c0_174, %c8_175, %c0_176], %213 {strides = array<i32>} : memref<1x16x16xf32, #tpu.memory_space<vmem>>, vector<1x4x16xf32>,
    %214 = vector.extract_strided_slice %195 {offsets = [24, 0], sizes = [4, 16], strides = [1, 1]} : vector<32x16xf32> to vector<4x16xf32>
    %215 = vector.extract_strided_slice %195 {offsets = [28, 0], sizes = [4, 16], strides = [1, 1]} : vector<32x16xf32> to vector<4x16xf32>
    %216 = arith.maximumf %214, %215 : vector<4x16xf32>
    %c0_177 = arith.constant 0 : index
    %c12 = arith.constant 12 : index
    %c0_178 = arith.constant 0 : index
    %217 = vector.load %arg7[%c0_177, %c12, %c0_178] : memref<1x16x16xf32, #tpu.memory_space<vmem>>, vector<1x4x16xf32>
    %218 = vector.shape_cast %217 : vector<1x4x16xf32> to vector<4x16xf32>
    %219 = vector.shape_cast %216 : vector<4x16xf32> to vector<1x4x16xf32>
    tpu.vector_store %arg7[%c0_177, %c12, %c0_178], %219 {strides = array<i32>} : memref<1x16x16xf32, #tpu.memory_space<vmem>>, vector<1x4x16xf32>,
    return
  }
  func.func @transform_0(%arg0: i32) -> (i32, i32, i32) {
    %c0_i32 = arith.constant 0 : i32
    %c0_i32_0 = arith.constant 0 : i32
    %c0_i32_1 = arith.constant 0 : i32
    return %arg0, %c0_i32, %c0_i32_0 : i32, i32, i32
  }
  func.func @transform_1(%arg0: i32) -> (i32, i32, i32) {
    %c0_i32 = arith.constant 0 : i32
    %c0_i32_0 = arith.constant 0 : i32
    %c0_i32_1 = arith.constant 0 : i32
    %c0_i32_2 = arith.constant 0 : i32
    return %c0_i32, %c0_i32_0, %c0_i32_1 : i32, i32, i32
  }
  func.func @transform_2(%arg0: i32) -> (i32, i32, i32) {
    %c0_i32 = arith.constant 0 : i32
    %c0_i32_0 = arith.constant 0 : i32
    %c0_i32_1 = arith.constant 0 : i32
    %c0_i32_2 = arith.constant 0 : i32
    return %c0_i32, %c0_i32_0, %c0_i32_1 : i32, i32, i32
  }
  func.func @transform_3(%arg0: i32) -> (i32, i32) {
    %c0_i32 = arith.constant 0 : i32
    %c0_i32_0 = arith.constant 0 : i32
    %c0_i32_1 = arith.constant 0 : i32
    return %c0_i32, %c0_i32_0 : i32, i32
  }
  func.func @transform_4(%arg0: i32) -> (i32, i32, i32) {
    %c0_i32 = arith.constant 0 : i32
    %c0_i32_0 = arith.constant 0 : i32
    %c0_i32_1 = arith.constant 0 : i32
    %c0_i32_2 = arith.constant 0 : i32
    return %c0_i32, %c0_i32_0, %c0_i32_1 : i32, i32, i32
  }
  func.func @transform_5(%arg0: i32) -> (i32, i32) {
    %c0_i32 = arith.constant 0 : i32
    %c0_i32_0 = arith.constant 0 : i32
    %c0_i32_1 = arith.constant 0 : i32
    return %c0_i32, %c0_i32_0 : i32, i32
  }
  func.func @transform_6(%arg0: i32) -> (i32, i32, i32) {
    %c0_i32 = arith.constant 0 : i32
    %c0_i32_0 = arith.constant 0 : i32
    %c0_i32_1 = arith.constant 0 : i32
    return %arg0, %c0_i32, %c0_i32_0 : i32, i32, i32
  }
}

module attributes {stable_mosaic.version = 11 : i64} {
  func.func @conv_block_kernel(%arg0: i32, %arg1: memref<1x16x16xf32, #tpu.memory_space<vmem>>, %arg2: memref<9x16x1xf32, #tpu.memory_space<vmem>>, %arg3: memref<9x16x32xbf16, #tpu.memory_space<vmem>>, %arg4: memref<1x32xf32, #tpu.memory_space<vmem>>, %arg5: memref<9x32x32xbf16, #tpu.memory_space<vmem>>, %arg6: memref<1x32xf32, #tpu.memory_space<vmem>>, %arg7: memref<1x4x32xf32, #tpu.memory_space<vmem>>, %arg8: memref<26x16xf32, #tpu.memory_space<vmem>>, %arg9: memref<26x32xf32, #tpu.memory_space<vmem>>, %arg10: memref<16x32xf32, #tpu.memory_space<vmem>>) attributes {dimension_semantics = [#tpu.dimension_semantics<parallel>], iteration_bounds = array<i64: 2>, scalar_prefetch = 0 : i64, scratch_operands = 3 : i64, tpu.core_type = #tpu.core_type<tc>, window_params = [{transform_indices = @transform_0, window_bounds = array<i64: 1, 16, 16>}, {pipeline_mode = #tpu.pipeline_mode<synchronous>, transform_indices = @transform_1, window_bounds = array<i64: 9, 16, 1>}, {pipeline_mode = #tpu.pipeline_mode<synchronous>, transform_indices = @transform_2, window_bounds = array<i64: 9, 16, 32>}, {pipeline_mode = #tpu.pipeline_mode<synchronous>, transform_indices = @transform_3, window_bounds = array<i64: 1, 32>}, {pipeline_mode = #tpu.pipeline_mode<synchronous>, transform_indices = @transform_4, window_bounds = array<i64: 9, 32, 32>}, {pipeline_mode = #tpu.pipeline_mode<synchronous>, transform_indices = @transform_5, window_bounds = array<i64: 1, 32>}, {transform_indices = @transform_6, window_bounds = array<i64: 1, 4, 32>}]} {
    %cst = arith.constant 0.000000e+00 : f32
    %0 = vector.broadcast %cst : f32 to vector<26x16xf32>
    %c0 = arith.constant 0 : index
    %c0_0 = arith.constant 0 : index
    %1 = vector.load %arg8[%c0, %c0_0] : memref<26x16xf32, #tpu.memory_space<vmem>>, vector<26x16xf32>
    tpu.vector_store %arg8[%c0, %c0_0], %0 {strides = array<i32>} : memref<26x16xf32, #tpu.memory_space<vmem>>, vector<26x16xf32>,
    %cst_1 = arith.constant 0.000000e+00 : f32
    %2 = vector.broadcast %cst_1 : f32 to vector<26x32xf32>
    %c0_2 = arith.constant 0 : index
    %c0_3 = arith.constant 0 : index
    %3 = vector.load %arg9[%c0_2, %c0_3] : memref<26x32xf32, #tpu.memory_space<vmem>>, vector<26x32xf32>
    tpu.vector_store %arg9[%c0_2, %c0_3], %2 {strides = array<i32>} : memref<26x32xf32, #tpu.memory_space<vmem>>, vector<26x32xf32>,
    %c0_4 = arith.constant 0 : index
    %c0_5 = arith.constant 0 : index
    %c0_6 = arith.constant 0 : index
    %4 = vector.load %arg1[%c0_4, %c0_5, %c0_6] : memref<1x16x16xf32, #tpu.memory_space<vmem>>, vector<1x16x16xf32>
    %5 = vector.shape_cast %4 : vector<1x16x16xf32> to vector<16x16xf32>
    %c5 = arith.constant 5 : index
    %c0_7 = arith.constant 0 : index
    %6 = vector.load %arg8[%c5, %c0_7] : memref<26x16xf32, #tpu.memory_space<vmem>>, vector<16x16xf32>
    tpu.vector_store %arg8[%c5, %c0_7], %5 {strides = array<i32>} : memref<26x16xf32, #tpu.memory_space<vmem>>, vector<16x16xf32>,
    %cst_8 = arith.constant 0.000000e+00 : f32
    %7 = vector.broadcast %cst_8 : f32 to vector<16x32xf32>
    %c0_9 = arith.constant 0 : index
    %c0_10 = arith.constant 0 : index
    %8 = vector.load %arg8[%c0_9, %c0_10] : memref<26x16xf32, #tpu.memory_space<vmem>>, vector<16x16xf32>
    %c0_11 = arith.constant 0 : index
    %c0_12 = arith.constant 0 : index
    %c0_13 = arith.constant 0 : index
    %9 = vector.load %arg2[%c0_11, %c0_12, %c0_13] : memref<9x16x1xf32, #tpu.memory_space<vmem>>, vector<1x16x1xf32>
    %10 = vector.shape_cast %9 : vector<1x16x1xf32> to vector<16x1xf32>
    %11 = vector.broadcast %10 : vector<16x1xf32> to vector<16x16xf32>
    %12 = arith.mulf %8, %11 : vector<16x16xf32>
    %13 = arith.truncf %12 : vector<16x16xf32> to vector<16x16xbf16>
    %c0_14 = arith.constant 0 : index
    %c0_15 = arith.constant 0 : index
    %c0_16 = arith.constant 0 : index
    %14 = vector.load %arg3[%c0_14, %c0_15, %c0_16] : memref<9x16x32xbf16, #tpu.memory_space<vmem>>, vector<1x16x32xbf16>
    %15 = vector.shape_cast %14 : vector<1x16x32xbf16> to vector<16x32xbf16>
    %cst_17 = arith.constant dense<0.000000e+00> : vector<16x32xf32>
    %16 = tpu.matmul %13, %15, %cst_17 {dimension_numbers = #tpu.dot_dimension_numbers<[1], [0], [0], [1], [0, 0, 1, 1], [], []>} : vector<16x16xbf16>, vector<16x32xbf16>, vector<16x32xf32> -> vector<16x32xf32>
    %17 = arith.addf %7, %16 : vector<16x32xf32>
    %c1 = arith.constant 1 : index
    %c0_18 = arith.constant 0 : index
    %18 = vector.load %arg8[%c1, %c0_18] : memref<26x16xf32, #tpu.memory_space<vmem>>, vector<16x16xf32>
    %c1_19 = arith.constant 1 : index
    %c0_20 = arith.constant 0 : index
    %c0_21 = arith.constant 0 : index
    %19 = vector.load %arg2[%c1_19, %c0_20, %c0_21] : memref<9x16x1xf32, #tpu.memory_space<vmem>>, vector<1x16x1xf32>
    %20 = vector.shape_cast %19 : vector<1x16x1xf32> to vector<16x1xf32>
    %21 = vector.broadcast %20 : vector<16x1xf32> to vector<16x16xf32>
    %22 = arith.mulf %18, %21 : vector<16x16xf32>
    %23 = arith.truncf %22 : vector<16x16xf32> to vector<16x16xbf16>
    %c1_22 = arith.constant 1 : index
    %c0_23 = arith.constant 0 : index
    %c0_24 = arith.constant 0 : index
    %24 = vector.load %arg3[%c1_22, %c0_23, %c0_24] : memref<9x16x32xbf16, #tpu.memory_space<vmem>>, vector<1x16x32xbf16>
    %25 = vector.shape_cast %24 : vector<1x16x32xbf16> to vector<16x32xbf16>
    %cst_25 = arith.constant dense<0.000000e+00> : vector<16x32xf32>
    %26 = tpu.matmul %23, %25, %cst_25 {dimension_numbers = #tpu.dot_dimension_numbers<[1], [0], [0], [1], [0, 0, 1, 1], [], []>} : vector<16x16xbf16>, vector<16x32xbf16>, vector<16x32xf32> -> vector<16x32xf32>
    %27 = arith.addf %17, %26 : vector<16x32xf32>
    %c2 = arith.constant 2 : index
    %c0_26 = arith.constant 0 : index
    %28 = vector.load %arg8[%c2, %c0_26] : memref<26x16xf32, #tpu.memory_space<vmem>>, vector<16x16xf32>
    %c2_27 = arith.constant 2 : index
    %c0_28 = arith.constant 0 : index
    %c0_29 = arith.constant 0 : index
    %29 = vector.load %arg2[%c2_27, %c0_28, %c0_29] : memref<9x16x1xf32, #tpu.memory_space<vmem>>, vector<1x16x1xf32>
    %30 = vector.shape_cast %29 : vector<1x16x1xf32> to vector<16x1xf32>
    %31 = vector.broadcast %30 : vector<16x1xf32> to vector<16x16xf32>
    %32 = arith.mulf %28, %31 : vector<16x16xf32>
    %33 = arith.truncf %32 : vector<16x16xf32> to vector<16x16xbf16>
    %c2_30 = arith.constant 2 : index
    %c0_31 = arith.constant 0 : index
    %c0_32 = arith.constant 0 : index
    %34 = vector.load %arg3[%c2_30, %c0_31, %c0_32] : memref<9x16x32xbf16, #tpu.memory_space<vmem>>, vector<1x16x32xbf16>
    %35 = vector.shape_cast %34 : vector<1x16x32xbf16> to vector<16x32xbf16>
    %cst_33 = arith.constant dense<0.000000e+00> : vector<16x32xf32>
    %36 = tpu.matmul %33, %35, %cst_33 {dimension_numbers = #tpu.dot_dimension_numbers<[1], [0], [0], [1], [0, 0, 1, 1], [], []>} : vector<16x16xbf16>, vector<16x32xbf16>, vector<16x32xf32> -> vector<16x32xf32>
    %37 = arith.addf %27, %36 : vector<16x32xf32>
    %c4 = arith.constant 4 : index
    %c0_34 = arith.constant 0 : index
    %38 = vector.load %arg8[%c4, %c0_34] : memref<26x16xf32, #tpu.memory_space<vmem>>, vector<16x16xf32>
    %c3 = arith.constant 3 : index
    %c0_35 = arith.constant 0 : index
    %c0_36 = arith.constant 0 : index
    %39 = vector.load %arg2[%c3, %c0_35, %c0_36] : memref<9x16x1xf32, #tpu.memory_space<vmem>>, vector<1x16x1xf32>
    %40 = vector.shape_cast %39 : vector<1x16x1xf32> to vector<16x1xf32>
    %41 = vector.broadcast %40 : vector<16x1xf32> to vector<16x16xf32>
    %42 = arith.mulf %38, %41 : vector<16x16xf32>
    %43 = arith.truncf %42 : vector<16x16xf32> to vector<16x16xbf16>
    %c3_37 = arith.constant 3 : index
    %c0_38 = arith.constant 0 : index
    %c0_39 = arith.constant 0 : index
    %44 = vector.load %arg3[%c3_37, %c0_38, %c0_39] : memref<9x16x32xbf16, #tpu.memory_space<vmem>>, vector<1x16x32xbf16>
    %45 = vector.shape_cast %44 : vector<1x16x32xbf16> to vector<16x32xbf16>
    %cst_40 = arith.constant dense<0.000000e+00> : vector<16x32xf32>
    %46 = tpu.matmul %43, %45, %cst_40 {dimension_numbers = #tpu.dot_dimension_numbers<[1], [0], [0], [1], [0, 0, 1, 1], [], []>} : vector<16x16xbf16>, vector<16x32xbf16>, vector<16x32xf32> -> vector<16x32xf32>
    %47 = arith.addf %37, %46 : vector<16x32xf32>
    %c5_41 = arith.constant 5 : index
    %c0_42 = arith.constant 0 : index
    %48 = vector.load %arg8[%c5_41, %c0_42] : memref<26x16xf32, #tpu.memory_space<vmem>>, vector<16x16xf32>
    %49 = arith.truncf %48 : vector<16x16xf32> to vector<16x16xbf16>
    %c4_43 = arith.constant 4 : index
    %c0_44 = arith.constant 0 : index
    %c0_45 = arith.constant 0 : index
    %50 = vector.load %arg3[%c4_43, %c0_44, %c0_45] : memref<9x16x32xbf16, #tpu.memory_space<vmem>>, vector<1x16x32xbf16>
    %51 = vector.shape_cast %50 : vector<1x16x32xbf16> to vector<16x32xbf16>
    %cst_46 = arith.constant dense<0.000000e+00> : vector<16x32xf32>
    %52 = tpu.matmul %49, %51, %cst_46 {dimension_numbers = #tpu.dot_dimension_numbers<[1], [0], [0], [1], [0, 0, 1, 1], [], []>} : vector<16x16xbf16>, vector<16x32xbf16>, vector<16x32xf32> -> vector<16x32xf32>
    %53 = arith.addf %47, %52 : vector<16x32xf32>
    %c6 = arith.constant 6 : index
    %c0_47 = arith.constant 0 : index
    %54 = vector.load %arg8[%c6, %c0_47] : memref<26x16xf32, #tpu.memory_space<vmem>>, vector<16x16xf32>
    %c5_48 = arith.constant 5 : index
    %c0_49 = arith.constant 0 : index
    %c0_50 = arith.constant 0 : index
    %55 = vector.load %arg2[%c5_48, %c0_49, %c0_50] : memref<9x16x1xf32, #tpu.memory_space<vmem>>, vector<1x16x1xf32>
    %56 = vector.shape_cast %55 : vector<1x16x1xf32> to vector<16x1xf32>
    %57 = vector.broadcast %56 : vector<16x1xf32> to vector<16x16xf32>
    %58 = arith.mulf %54, %57 : vector<16x16xf32>
    %59 = arith.truncf %58 : vector<16x16xf32> to vector<16x16xbf16>
    %c5_51 = arith.constant 5 : index
    %c0_52 = arith.constant 0 : index
    %c0_53 = arith.constant 0 : index
    %60 = vector.load %arg3[%c5_51, %c0_52, %c0_53] : memref<9x16x32xbf16, #tpu.memory_space<vmem>>, vector<1x16x32xbf16>
    %61 = vector.shape_cast %60 : vector<1x16x32xbf16> to vector<16x32xbf16>
    %cst_54 = arith.constant dense<0.000000e+00> : vector<16x32xf32>
    %62 = tpu.matmul %59, %61, %cst_54 {dimension_numbers = #tpu.dot_dimension_numbers<[1], [0], [0], [1], [0, 0, 1, 1], [], []>} : vector<16x16xbf16>, vector<16x32xbf16>, vector<16x32xf32> -> vector<16x32xf32>
    %63 = arith.addf %53, %62 : vector<16x32xf32>
    %c8 = arith.constant 8 : index
    %c0_55 = arith.constant 0 : index
    %64 = vector.load %arg8[%c8, %c0_55] : memref<26x16xf32, #tpu.memory_space<vmem>>, vector<16x16xf32>
    %c6_56 = arith.constant 6 : index
    %c0_57 = arith.constant 0 : index
    %c0_58 = arith.constant 0 : index
    %65 = vector.load %arg2[%c6_56, %c0_57, %c0_58] : memref<9x16x1xf32, #tpu.memory_space<vmem>>, vector<1x16x1xf32>
    %66 = vector.shape_cast %65 : vector<1x16x1xf32> to vector<16x1xf32>
    %67 = vector.broadcast %66 : vector<16x1xf32> to vector<16x16xf32>
    %68 = arith.mulf %64, %67 : vector<16x16xf32>
    %69 = arith.truncf %68 : vector<16x16xf32> to vector<16x16xbf16>
    %c6_59 = arith.constant 6 : index
    %c0_60 = arith.constant 0 : index
    %c0_61 = arith.constant 0 : index
    %70 = vector.load %arg3[%c6_59, %c0_60, %c0_61] : memref<9x16x32xbf16, #tpu.memory_space<vmem>>, vector<1x16x32xbf16>
    %71 = vector.shape_cast %70 : vector<1x16x32xbf16> to vector<16x32xbf16>
    %cst_62 = arith.constant dense<0.000000e+00> : vector<16x32xf32>
    %72 = tpu.matmul %69, %71, %cst_62 {dimension_numbers = #tpu.dot_dimension_numbers<[1], [0], [0], [1], [0, 0, 1, 1], [], []>} : vector<16x16xbf16>, vector<16x32xbf16>, vector<16x32xf32> -> vector<16x32xf32>
    %73 = arith.addf %63, %72 : vector<16x32xf32>
    %c9 = arith.constant 9 : index
    %c0_63 = arith.constant 0 : index
    %74 = vector.load %arg8[%c9, %c0_63] : memref<26x16xf32, #tpu.memory_space<vmem>>, vector<16x16xf32>
    %c7 = arith.constant 7 : index
    %c0_64 = arith.constant 0 : index
    %c0_65 = arith.constant 0 : index
    %75 = vector.load %arg2[%c7, %c0_64, %c0_65] : memref<9x16x1xf32, #tpu.memory_space<vmem>>, vector<1x16x1xf32>
    %76 = vector.shape_cast %75 : vector<1x16x1xf32> to vector<16x1xf32>
    %77 = vector.broadcast %76 : vector<16x1xf32> to vector<16x16xf32>
    %78 = arith.mulf %74, %77 : vector<16x16xf32>
    %79 = arith.truncf %78 : vector<16x16xf32> to vector<16x16xbf16>
    %c7_66 = arith.constant 7 : index
    %c0_67 = arith.constant 0 : index
    %c0_68 = arith.constant 0 : index
    %80 = vector.load %arg3[%c7_66, %c0_67, %c0_68] : memref<9x16x32xbf16, #tpu.memory_space<vmem>>, vector<1x16x32xbf16>
    %81 = vector.shape_cast %80 : vector<1x16x32xbf16> to vector<16x32xbf16>
    %cst_69 = arith.constant dense<0.000000e+00> : vector<16x32xf32>
    %82 = tpu.matmul %79, %81, %cst_69 {dimension_numbers = #tpu.dot_dimension_numbers<[1], [0], [0], [1], [0, 0, 1, 1], [], []>} : vector<16x16xbf16>, vector<16x32xbf16>, vector<16x32xf32> -> vector<16x32xf32>
    %83 = arith.addf %73, %82 : vector<16x32xf32>
    %c10 = arith.constant 10 : index
    %c0_70 = arith.constant 0 : index
    %84 = vector.load %arg8[%c10, %c0_70] : memref<26x16xf32, #tpu.memory_space<vmem>>, vector<16x16xf32>
    %c8_71 = arith.constant 8 : index
    %c0_72 = arith.constant 0 : index
    %c0_73 = arith.constant 0 : index
    %85 = vector.load %arg2[%c8_71, %c0_72, %c0_73] : memref<9x16x1xf32, #tpu.memory_space<vmem>>, vector<1x16x1xf32>
    %86 = vector.shape_cast %85 : vector<1x16x1xf32> to vector<16x1xf32>
    %87 = vector.broadcast %86 : vector<16x1xf32> to vector<16x16xf32>
    %88 = arith.mulf %84, %87 : vector<16x16xf32>
    %89 = arith.truncf %88 : vector<16x16xf32> to vector<16x16xbf16>
    %c8_74 = arith.constant 8 : index
    %c0_75 = arith.constant 0 : index
    %c0_76 = arith.constant 0 : index
    %90 = vector.load %arg3[%c8_74, %c0_75, %c0_76] : memref<9x16x32xbf16, #tpu.memory_space<vmem>>, vector<1x16x32xbf16>
    %91 = vector.shape_cast %90 : vector<1x16x32xbf16> to vector<16x32xbf16>
    %cst_77 = arith.constant dense<0.000000e+00> : vector<16x32xf32>
    %92 = tpu.matmul %89, %91, %cst_77 {dimension_numbers = #tpu.dot_dimension_numbers<[1], [0], [0], [1], [0, 0, 1, 1], [], []>} : vector<16x16xbf16>, vector<16x32xbf16>, vector<16x32xf32> -> vector<16x32xf32>
    %93 = arith.addf %83, %92 : vector<16x32xf32>
    %c0_78 = arith.constant 0 : index
    %c0_79 = arith.constant 0 : index
    %94 = vector.load %arg4[%c0_78, %c0_79] : memref<1x32xf32, #tpu.memory_space<vmem>>, vector<1x32xf32>
    %95 = vector.broadcast %94 : vector<1x32xf32> to vector<16x32xf32>
    %96 = arith.addf %93, %95 : vector<16x32xf32>
    %cst_80 = arith.constant 0.000000e+00 : f32
    %97 = vector.broadcast %cst_80 : f32 to vector<16x32xf32>
    %98 = arith.maximumf %96, %97 : vector<16x32xf32>
    %c5_81 = arith.constant 5 : index
    %c0_82 = arith.constant 0 : index
    %99 = vector.load %arg9[%c5_81, %c0_82] : memref<26x32xf32, #tpu.memory_space<vmem>>, vector<16x32xf32>
    tpu.vector_store %arg9[%c5_81, %c0_82], %98 {strides = array<i32>} : memref<26x32xf32, #tpu.memory_space<vmem>>, vector<16x32xf32>,
    %cst_83 = arith.constant 0.000000e+00 : f32
    %100 = vector.broadcast %cst_83 : f32 to vector<16x32xf32>
    %c0_84 = arith.constant 0 : index
    %c0_85 = arith.constant 0 : index
    %101 = vector.load %arg9[%c0_84, %c0_85] : memref<26x32xf32, #tpu.memory_space<vmem>>, vector<16x32xf32>
    %c0_86 = arith.constant 0 : index
    %c0_87 = arith.constant 0 : index
    %c0_88 = arith.constant 0 : index
    %102 = vector.load %arg2[%c0_86, %c0_87, %c0_88] : memref<9x16x1xf32, #tpu.memory_space<vmem>>, vector<1x16x1xf32>
    %103 = vector.shape_cast %102 : vector<1x16x1xf32> to vector<16x1xf32>
    %104 = vector.broadcast %103 : vector<16x1xf32> to vector<16x32xf32>
    %105 = arith.mulf %101, %104 : vector<16x32xf32>
    %106 = arith.truncf %105 : vector<16x32xf32> to vector<16x32xbf16>
    %c0_89 = arith.constant 0 : index
    %c0_90 = arith.constant 0 : index
    %c0_91 = arith.constant 0 : index
    %107 = vector.load %arg5[%c0_89, %c0_90, %c0_91] : memref<9x32x32xbf16, #tpu.memory_space<vmem>>, vector<1x32x32xbf16>
    %108 = vector.shape_cast %107 : vector<1x32x32xbf16> to vector<32x32xbf16>
    %cst_92 = arith.constant dense<0.000000e+00> : vector<16x32xf32>
    %109 = tpu.matmul %106, %108, %cst_92 {dimension_numbers = #tpu.dot_dimension_numbers<[1], [0], [0], [1], [0, 0, 1, 1], [], []>} : vector<16x32xbf16>, vector<32x32xbf16>, vector<16x32xf32> -> vector<16x32xf32>
    %110 = arith.addf %100, %109 : vector<16x32xf32>
    %c1_93 = arith.constant 1 : index
    %c0_94 = arith.constant 0 : index
    %111 = vector.load %arg9[%c1_93, %c0_94] : memref<26x32xf32, #tpu.memory_space<vmem>>, vector<16x32xf32>
    %c1_95 = arith.constant 1 : index
    %c0_96 = arith.constant 0 : index
    %c0_97 = arith.constant 0 : index
    %112 = vector.load %arg2[%c1_95, %c0_96, %c0_97] : memref<9x16x1xf32, #tpu.memory_space<vmem>>, vector<1x16x1xf32>
    %113 = vector.shape_cast %112 : vector<1x16x1xf32> to vector<16x1xf32>
    %114 = vector.broadcast %113 : vector<16x1xf32> to vector<16x32xf32>
    %115 = arith.mulf %111, %114 : vector<16x32xf32>
    %116 = arith.truncf %115 : vector<16x32xf32> to vector<16x32xbf16>
    %c1_98 = arith.constant 1 : index
    %c0_99 = arith.constant 0 : index
    %c0_100 = arith.constant 0 : index
    %117 = vector.load %arg5[%c1_98, %c0_99, %c0_100] : memref<9x32x32xbf16, #tpu.memory_space<vmem>>, vector<1x32x32xbf16>
    %118 = vector.shape_cast %117 : vector<1x32x32xbf16> to vector<32x32xbf16>
    %cst_101 = arith.constant dense<0.000000e+00> : vector<16x32xf32>
    %119 = tpu.matmul %116, %118, %cst_101 {dimension_numbers = #tpu.dot_dimension_numbers<[1], [0], [0], [1], [0, 0, 1, 1], [], []>} : vector<16x32xbf16>, vector<32x32xbf16>, vector<16x32xf32> -> vector<16x32xf32>
    %120 = arith.addf %110, %119 : vector<16x32xf32>
    %c2_102 = arith.constant 2 : index
    %c0_103 = arith.constant 0 : index
    %121 = vector.load %arg9[%c2_102, %c0_103] : memref<26x32xf32, #tpu.memory_space<vmem>>, vector<16x32xf32>
    %c2_104 = arith.constant 2 : index
    %c0_105 = arith.constant 0 : index
    %c0_106 = arith.constant 0 : index
    %122 = vector.load %arg2[%c2_104, %c0_105, %c0_106] : memref<9x16x1xf32, #tpu.memory_space<vmem>>, vector<1x16x1xf32>
    %123 = vector.shape_cast %122 : vector<1x16x1xf32> to vector<16x1xf32>
    %124 = vector.broadcast %123 : vector<16x1xf32> to vector<16x32xf32>
    %125 = arith.mulf %121, %124 : vector<16x32xf32>
    %126 = arith.truncf %125 : vector<16x32xf32> to vector<16x32xbf16>
    %c2_107 = arith.constant 2 : index
    %c0_108 = arith.constant 0 : index
    %c0_109 = arith.constant 0 : index
    %127 = vector.load %arg5[%c2_107, %c0_108, %c0_109] : memref<9x32x32xbf16, #tpu.memory_space<vmem>>, vector<1x32x32xbf16>
    %128 = vector.shape_cast %127 : vector<1x32x32xbf16> to vector<32x32xbf16>
    %cst_110 = arith.constant dense<0.000000e+00> : vector<16x32xf32>
    %129 = tpu.matmul %126, %128, %cst_110 {dimension_numbers = #tpu.dot_dimension_numbers<[1], [0], [0], [1], [0, 0, 1, 1], [], []>} : vector<16x32xbf16>, vector<32x32xbf16>, vector<16x32xf32> -> vector<16x32xf32>
    %130 = arith.addf %120, %129 : vector<16x32xf32>
    %c4_111 = arith.constant 4 : index
    %c0_112 = arith.constant 0 : index
    %131 = vector.load %arg9[%c4_111, %c0_112] : memref<26x32xf32, #tpu.memory_space<vmem>>, vector<16x32xf32>
    %c3_113 = arith.constant 3 : index
    %c0_114 = arith.constant 0 : index
    %c0_115 = arith.constant 0 : index
    %132 = vector.load %arg2[%c3_113, %c0_114, %c0_115] : memref<9x16x1xf32, #tpu.memory_space<vmem>>, vector<1x16x1xf32>
    %133 = vector.shape_cast %132 : vector<1x16x1xf32> to vector<16x1xf32>
    %134 = vector.broadcast %133 : vector<16x1xf32> to vector<16x32xf32>
    %135 = arith.mulf %131, %134 : vector<16x32xf32>
    %136 = arith.truncf %135 : vector<16x32xf32> to vector<16x32xbf16>
    %c3_116 = arith.constant 3 : index
    %c0_117 = arith.constant 0 : index
    %c0_118 = arith.constant 0 : index
    %137 = vector.load %arg5[%c3_116, %c0_117, %c0_118] : memref<9x32x32xbf16, #tpu.memory_space<vmem>>, vector<1x32x32xbf16>
    %138 = vector.shape_cast %137 : vector<1x32x32xbf16> to vector<32x32xbf16>
    %cst_119 = arith.constant dense<0.000000e+00> : vector<16x32xf32>
    %139 = tpu.matmul %136, %138, %cst_119 {dimension_numbers = #tpu.dot_dimension_numbers<[1], [0], [0], [1], [0, 0, 1, 1], [], []>} : vector<16x32xbf16>, vector<32x32xbf16>, vector<16x32xf32> -> vector<16x32xf32>
    %140 = arith.addf %130, %139 : vector<16x32xf32>
    %c5_120 = arith.constant 5 : index
    %c0_121 = arith.constant 0 : index
    %141 = vector.load %arg9[%c5_120, %c0_121] : memref<26x32xf32, #tpu.memory_space<vmem>>, vector<16x32xf32>
    %142 = arith.truncf %141 : vector<16x32xf32> to vector<16x32xbf16>
    %c4_122 = arith.constant 4 : index
    %c0_123 = arith.constant 0 : index
    %c0_124 = arith.constant 0 : index
    %143 = vector.load %arg5[%c4_122, %c0_123, %c0_124] : memref<9x32x32xbf16, #tpu.memory_space<vmem>>, vector<1x32x32xbf16>
    %144 = vector.shape_cast %143 : vector<1x32x32xbf16> to vector<32x32xbf16>
    %cst_125 = arith.constant dense<0.000000e+00> : vector<16x32xf32>
    %145 = tpu.matmul %142, %144, %cst_125 {dimension_numbers = #tpu.dot_dimension_numbers<[1], [0], [0], [1], [0, 0, 1, 1], [], []>} : vector<16x32xbf16>, vector<32x32xbf16>, vector<16x32xf32> -> vector<16x32xf32>
    %146 = arith.addf %140, %145 : vector<16x32xf32>
    %c6_126 = arith.constant 6 : index
    %c0_127 = arith.constant 0 : index
    %147 = vector.load %arg9[%c6_126, %c0_127] : memref<26x32xf32, #tpu.memory_space<vmem>>, vector<16x32xf32>
    %c5_128 = arith.constant 5 : index
    %c0_129 = arith.constant 0 : index
    %c0_130 = arith.constant 0 : index
    %148 = vector.load %arg2[%c5_128, %c0_129, %c0_130] : memref<9x16x1xf32, #tpu.memory_space<vmem>>, vector<1x16x1xf32>
    %149 = vector.shape_cast %148 : vector<1x16x1xf32> to vector<16x1xf32>
    %150 = vector.broadcast %149 : vector<16x1xf32> to vector<16x32xf32>
    %151 = arith.mulf %147, %150 : vector<16x32xf32>
    %152 = arith.truncf %151 : vector<16x32xf32> to vector<16x32xbf16>
    %c5_131 = arith.constant 5 : index
    %c0_132 = arith.constant 0 : index
    %c0_133 = arith.constant 0 : index
    %153 = vector.load %arg5[%c5_131, %c0_132, %c0_133] : memref<9x32x32xbf16, #tpu.memory_space<vmem>>, vector<1x32x32xbf16>
    %154 = vector.shape_cast %153 : vector<1x32x32xbf16> to vector<32x32xbf16>
    %cst_134 = arith.constant dense<0.000000e+00> : vector<16x32xf32>
    %155 = tpu.matmul %152, %154, %cst_134 {dimension_numbers = #tpu.dot_dimension_numbers<[1], [0], [0], [1], [0, 0, 1, 1], [], []>} : vector<16x32xbf16>, vector<32x32xbf16>, vector<16x32xf32> -> vector<16x32xf32>
    %156 = arith.addf %146, %155 : vector<16x32xf32>
    %c8_135 = arith.constant 8 : index
    %c0_136 = arith.constant 0 : index
    %157 = vector.load %arg9[%c8_135, %c0_136] : memref<26x32xf32, #tpu.memory_space<vmem>>, vector<16x32xf32>
    %c6_137 = arith.constant 6 : index
    %c0_138 = arith.constant 0 : index
    %c0_139 = arith.constant 0 : index
    %158 = vector.load %arg2[%c6_137, %c0_138, %c0_139] : memref<9x16x1xf32, #tpu.memory_space<vmem>>, vector<1x16x1xf32>
    %159 = vector.shape_cast %158 : vector<1x16x1xf32> to vector<16x1xf32>
    %160 = vector.broadcast %159 : vector<16x1xf32> to vector<16x32xf32>
    %161 = arith.mulf %157, %160 : vector<16x32xf32>
    %162 = arith.truncf %161 : vector<16x32xf32> to vector<16x32xbf16>
    %c6_140 = arith.constant 6 : index
    %c0_141 = arith.constant 0 : index
    %c0_142 = arith.constant 0 : index
    %163 = vector.load %arg5[%c6_140, %c0_141, %c0_142] : memref<9x32x32xbf16, #tpu.memory_space<vmem>>, vector<1x32x32xbf16>
    %164 = vector.shape_cast %163 : vector<1x32x32xbf16> to vector<32x32xbf16>
    %cst_143 = arith.constant dense<0.000000e+00> : vector<16x32xf32>
    %165 = tpu.matmul %162, %164, %cst_143 {dimension_numbers = #tpu.dot_dimension_numbers<[1], [0], [0], [1], [0, 0, 1, 1], [], []>} : vector<16x32xbf16>, vector<32x32xbf16>, vector<16x32xf32> -> vector<16x32xf32>
    %166 = arith.addf %156, %165 : vector<16x32xf32>
    %c9_144 = arith.constant 9 : index
    %c0_145 = arith.constant 0 : index
    %167 = vector.load %arg9[%c9_144, %c0_145] : memref<26x32xf32, #tpu.memory_space<vmem>>, vector<16x32xf32>
    %c7_146 = arith.constant 7 : index
    %c0_147 = arith.constant 0 : index
    %c0_148 = arith.constant 0 : index
    %168 = vector.load %arg2[%c7_146, %c0_147, %c0_148] : memref<9x16x1xf32, #tpu.memory_space<vmem>>, vector<1x16x1xf32>
    %169 = vector.shape_cast %168 : vector<1x16x1xf32> to vector<16x1xf32>
    %170 = vector.broadcast %169 : vector<16x1xf32> to vector<16x32xf32>
    %171 = arith.mulf %167, %170 : vector<16x32xf32>
    %172 = arith.truncf %171 : vector<16x32xf32> to vector<16x32xbf16>
    %c7_149 = arith.constant 7 : index
    %c0_150 = arith.constant 0 : index
    %c0_151 = arith.constant 0 : index
    %173 = vector.load %arg5[%c7_149, %c0_150, %c0_151] : memref<9x32x32xbf16, #tpu.memory_space<vmem>>, vector<1x32x32xbf16>
    %174 = vector.shape_cast %173 : vector<1x32x32xbf16> to vector<32x32xbf16>
    %cst_152 = arith.constant dense<0.000000e+00> : vector<16x32xf32>
    %175 = tpu.matmul %172, %174, %cst_152 {dimension_numbers = #tpu.dot_dimension_numbers<[1], [0], [0], [1], [0, 0, 1, 1], [], []>} : vector<16x32xbf16>, vector<32x32xbf16>, vector<16x32xf32> -> vector<16x32xf32>
    %176 = arith.addf %166, %175 : vector<16x32xf32>
    %c10_153 = arith.constant 10 : index
    %c0_154 = arith.constant 0 : index
    %177 = vector.load %arg9[%c10_153, %c0_154] : memref<26x32xf32, #tpu.memory_space<vmem>>, vector<16x32xf32>
    %c8_155 = arith.constant 8 : index
    %c0_156 = arith.constant 0 : index
    %c0_157 = arith.constant 0 : index
    %178 = vector.load %arg2[%c8_155, %c0_156, %c0_157] : memref<9x16x1xf32, #tpu.memory_space<vmem>>, vector<1x16x1xf32>
    %179 = vector.shape_cast %178 : vector<1x16x1xf32> to vector<16x1xf32>
    %180 = vector.broadcast %179 : vector<16x1xf32> to vector<16x32xf32>
    %181 = arith.mulf %177, %180 : vector<16x32xf32>
    %182 = arith.truncf %181 : vector<16x32xf32> to vector<16x32xbf16>
    %c8_158 = arith.constant 8 : index
    %c0_159 = arith.constant 0 : index
    %c0_160 = arith.constant 0 : index
    %183 = vector.load %arg5[%c8_158, %c0_159, %c0_160] : memref<9x32x32xbf16, #tpu.memory_space<vmem>>, vector<1x32x32xbf16>
    %184 = vector.shape_cast %183 : vector<1x32x32xbf16> to vector<32x32xbf16>
    %cst_161 = arith.constant dense<0.000000e+00> : vector<16x32xf32>
    %185 = tpu.matmul %182, %184, %cst_161 {dimension_numbers = #tpu.dot_dimension_numbers<[1], [0], [0], [1], [0, 0, 1, 1], [], []>} : vector<16x32xbf16>, vector<32x32xbf16>, vector<16x32xf32> -> vector<16x32xf32>
    %186 = arith.addf %176, %185 : vector<16x32xf32>
    %c0_162 = arith.constant 0 : index
    %c0_163 = arith.constant 0 : index
    %187 = vector.load %arg6[%c0_162, %c0_163] : memref<1x32xf32, #tpu.memory_space<vmem>>, vector<1x32xf32>
    %188 = vector.broadcast %187 : vector<1x32xf32> to vector<16x32xf32>
    %189 = arith.addf %186, %188 : vector<16x32xf32>
    %cst_164 = arith.constant 0.000000e+00 : f32
    %190 = vector.broadcast %cst_164 : f32 to vector<16x32xf32>
    %191 = arith.maximumf %189, %190 : vector<16x32xf32>
    %c0_165 = arith.constant 0 : index
    %c0_166 = arith.constant 0 : index
    %192 = vector.load %arg10[%c0_165, %c0_166] : memref<16x32xf32, #tpu.memory_space<vmem>>, vector<16x32xf32>
    tpu.vector_store %arg10[%c0_165, %c0_166], %191 {strides = array<i32>} : memref<16x32xf32, #tpu.memory_space<vmem>>, vector<16x32xf32>,
    %c0_167 = arith.constant 0 : index
    %c0_168 = arith.constant 0 : index
    %193 = tpu.strided_load %arg10[%c0_167, %c0_168] {strides = array<i32: 2, 1>} : memref<16x32xf32, #tpu.memory_space<vmem>>, vector<8x32xf32>
    %c1_169 = arith.constant 1 : index
    %c0_170 = arith.constant 0 : index
    %194 = tpu.strided_load %arg10[%c1_169, %c0_170] {strides = array<i32: 2, 1>} : memref<16x32xf32, #tpu.memory_space<vmem>>, vector<8x32xf32>
    %195 = arith.maximumf %193, %194 : vector<8x32xf32>
    %196 = vector.extract_strided_slice %195 {offsets = [0, 0], sizes = [2, 32], strides = [1, 1]} : vector<8x32xf32> to vector<2x32xf32>
    %197 = vector.extract_strided_slice %195 {offsets = [2, 0], sizes = [2, 32], strides = [1, 1]} : vector<8x32xf32> to vector<2x32xf32>
    %198 = arith.maximumf %196, %197 : vector<2x32xf32>
    %c0_171 = arith.constant 0 : index
    %c0_172 = arith.constant 0 : index
    %c0_173 = arith.constant 0 : index
    %199 = vector.load %arg7[%c0_171, %c0_172, %c0_173] : memref<1x4x32xf32, #tpu.memory_space<vmem>>, vector<1x2x32xf32>
    %200 = vector.shape_cast %199 : vector<1x2x32xf32> to vector<2x32xf32>
    %201 = vector.shape_cast %198 : vector<2x32xf32> to vector<1x2x32xf32>
    tpu.vector_store %arg7[%c0_171, %c0_172, %c0_173], %201 {strides = array<i32>} : memref<1x4x32xf32, #tpu.memory_space<vmem>>, vector<1x2x32xf32>,
    %202 = vector.extract_strided_slice %195 {offsets = [4, 0], sizes = [2, 32], strides = [1, 1]} : vector<8x32xf32> to vector<2x32xf32>
    %203 = vector.extract_strided_slice %195 {offsets = [6, 0], sizes = [2, 32], strides = [1, 1]} : vector<8x32xf32> to vector<2x32xf32>
    %204 = arith.maximumf %202, %203 : vector<2x32xf32>
    %c0_174 = arith.constant 0 : index
    %c2_175 = arith.constant 2 : index
    %c0_176 = arith.constant 0 : index
    %205 = vector.load %arg7[%c0_174, %c2_175, %c0_176] : memref<1x4x32xf32, #tpu.memory_space<vmem>>, vector<1x2x32xf32>
    %206 = vector.shape_cast %205 : vector<1x2x32xf32> to vector<2x32xf32>
    %207 = vector.shape_cast %204 : vector<2x32xf32> to vector<1x2x32xf32>
    tpu.vector_store %arg7[%c0_174, %c2_175, %c0_176], %207 {strides = array<i32>} : memref<1x4x32xf32, #tpu.memory_space<vmem>>, vector<1x2x32xf32>,
    return
  }
  func.func @transform_0(%arg0: i32) -> (i32, i32, i32) {
    %c0_i32 = arith.constant 0 : i32
    %c0_i32_0 = arith.constant 0 : i32
    %c0_i32_1 = arith.constant 0 : i32
    return %arg0, %c0_i32, %c0_i32_0 : i32, i32, i32
  }
  func.func @transform_1(%arg0: i32) -> (i32, i32, i32) {
    %c0_i32 = arith.constant 0 : i32
    %c0_i32_0 = arith.constant 0 : i32
    %c0_i32_1 = arith.constant 0 : i32
    %c0_i32_2 = arith.constant 0 : i32
    return %c0_i32, %c0_i32_0, %c0_i32_1 : i32, i32, i32
  }
  func.func @transform_2(%arg0: i32) -> (i32, i32, i32) {
    %c0_i32 = arith.constant 0 : i32
    %c0_i32_0 = arith.constant 0 : i32
    %c0_i32_1 = arith.constant 0 : i32
    %c0_i32_2 = arith.constant 0 : i32
    return %c0_i32, %c0_i32_0, %c0_i32_1 : i32, i32, i32
  }
  func.func @transform_3(%arg0: i32) -> (i32, i32) {
    %c0_i32 = arith.constant 0 : i32
    %c0_i32_0 = arith.constant 0 : i32
    %c0_i32_1 = arith.constant 0 : i32
    return %c0_i32, %c0_i32_0 : i32, i32
  }
  func.func @transform_4(%arg0: i32) -> (i32, i32, i32) {
    %c0_i32 = arith.constant 0 : i32
    %c0_i32_0 = arith.constant 0 : i32
    %c0_i32_1 = arith.constant 0 : i32
    %c0_i32_2 = arith.constant 0 : i32
    return %c0_i32, %c0_i32_0, %c0_i32_1 : i32, i32, i32
  }
  func.func @transform_5(%arg0: i32) -> (i32, i32) {
    %c0_i32 = arith.constant 0 : i32
    %c0_i32_0 = arith.constant 0 : i32
    %c0_i32_1 = arith.constant 0 : i32
    return %c0_i32, %c0_i32_0 : i32, i32
  }
  func.func @transform_6(%arg0: i32) -> (i32, i32, i32) {
    %c0_i32 = arith.constant 0 : i32
    %c0_i32_0 = arith.constant 0 : i32
    %c0_i32_1 = arith.constant 0 : i32
    return %arg0, %c0_i32, %c0_i32_0 : i32, i32, i32
  }
}

module attributes {stable_mosaic.version = 11 : i64} {
  func.func @mlp_kernel(%arg0: i32, %arg1: memref<2x128xf32, #tpu.memory_space<vmem>>, %arg2: memref<128x128xbf16, #tpu.memory_space<vmem>>, %arg3: memref<1x128xf32, #tpu.memory_space<vmem>>, %arg4: memref<128x64xbf16, #tpu.memory_space<vmem>>, %arg5: memref<1x64xf32, #tpu.memory_space<vmem>>, %arg6: memref<64x10xbf16, #tpu.memory_space<vmem>>, %arg7: memref<1x10xf32, #tpu.memory_space<vmem>>, %arg8: memref<2x10xf32, #tpu.memory_space<vmem>>) attributes {dimension_semantics = [#tpu.dimension_semantics<arbitrary>], iteration_bounds = array<i64: 1>, scalar_prefetch = 0 : i64, scratch_operands = 0 : i64, tpu.core_type = #tpu.core_type<tc>, window_params = [{pipeline_mode = #tpu.pipeline_mode<synchronous>, transform_indices = @transform_0, window_bounds = array<i64: 2, 128>}, {pipeline_mode = #tpu.pipeline_mode<synchronous>, transform_indices = @transform_1, window_bounds = array<i64: 128, 128>}, {pipeline_mode = #tpu.pipeline_mode<synchronous>, transform_indices = @transform_2, window_bounds = array<i64: 1, 128>}, {pipeline_mode = #tpu.pipeline_mode<synchronous>, transform_indices = @transform_3, window_bounds = array<i64: 128, 64>}, {pipeline_mode = #tpu.pipeline_mode<synchronous>, transform_indices = @transform_4, window_bounds = array<i64: 1, 64>}, {pipeline_mode = #tpu.pipeline_mode<synchronous>, transform_indices = @transform_5, window_bounds = array<i64: 64, 10>}, {pipeline_mode = #tpu.pipeline_mode<synchronous>, transform_indices = @transform_6, window_bounds = array<i64: 1, 10>}, {pipeline_mode = #tpu.pipeline_mode<synchronous>, transform_indices = @transform_7, window_bounds = array<i64: 2, 10>}]} {
    %c0 = arith.constant 0 : index
    %c0_0 = arith.constant 0 : index
    %0 = vector.load %arg1[%c0, %c0_0] : memref<2x128xf32, #tpu.memory_space<vmem>>, vector<2x128xf32>
    %1 = arith.truncf %0 : vector<2x128xf32> to vector<2x128xbf16>
    %c0_1 = arith.constant 0 : index
    %c0_2 = arith.constant 0 : index
    %2 = vector.load %arg2[%c0_1, %c0_2] : memref<128x128xbf16, #tpu.memory_space<vmem>>, vector<128x128xbf16>
    %cst = arith.constant dense<0.000000e+00> : vector<2x128xf32>
    %3 = tpu.matmul %1, %2, %cst {dimension_numbers = #tpu.dot_dimension_numbers<[1], [0], [0], [1], [0, 0, 1, 1], [], []>} : vector<2x128xbf16>, vector<128x128xbf16>, vector<2x128xf32> -> vector<2x128xf32>
    %c0_3 = arith.constant 0 : index
    %c0_4 = arith.constant 0 : index
    %4 = vector.load %arg3[%c0_3, %c0_4] : memref<1x128xf32, #tpu.memory_space<vmem>>, vector<1x128xf32>
    %5 = vector.broadcast %4 : vector<1x128xf32> to vector<2x128xf32>
    %6 = arith.addf %3, %5 : vector<2x128xf32>
    %cst_5 = arith.constant 0.000000e+00 : f32
    %7 = vector.broadcast %cst_5 : f32 to vector<2x128xf32>
    %8 = arith.maximumf %6, %7 : vector<2x128xf32>
    %9 = arith.truncf %8 : vector<2x128xf32> to vector<2x128xbf16>
    %c0_6 = arith.constant 0 : index
    %c0_7 = arith.constant 0 : index
    %10 = vector.load %arg4[%c0_6, %c0_7] : memref<128x64xbf16, #tpu.memory_space<vmem>>, vector<128x64xbf16>
    %cst_8 = arith.constant dense<0.000000e+00> : vector<2x64xf32>
    %11 = tpu.matmul %9, %10, %cst_8 {dimension_numbers = #tpu.dot_dimension_numbers<[1], [0], [0], [1], [0, 0, 1, 1], [], []>} : vector<2x128xbf16>, vector<128x64xbf16>, vector<2x64xf32> -> vector<2x64xf32>
    %c0_9 = arith.constant 0 : index
    %c0_10 = arith.constant 0 : index
    %12 = vector.load %arg5[%c0_9, %c0_10] : memref<1x64xf32, #tpu.memory_space<vmem>>, vector<1x64xf32>
    %13 = vector.broadcast %12 : vector<1x64xf32> to vector<2x64xf32>
    %14 = arith.addf %11, %13 : vector<2x64xf32>
    %cst_11 = arith.constant 0.000000e+00 : f32
    %15 = vector.broadcast %cst_11 : f32 to vector<2x64xf32>
    %16 = arith.maximumf %14, %15 : vector<2x64xf32>
    %17 = arith.truncf %16 : vector<2x64xf32> to vector<2x64xbf16>
    %c0_12 = arith.constant 0 : index
    %c0_13 = arith.constant 0 : index
    %18 = vector.load %arg6[%c0_12, %c0_13] : memref<64x10xbf16, #tpu.memory_space<vmem>>, vector<64x10xbf16>
    %cst_14 = arith.constant dense<0.000000e+00> : vector<2x10xf32>
    %19 = tpu.matmul %17, %18, %cst_14 {dimension_numbers = #tpu.dot_dimension_numbers<[1], [0], [0], [1], [0, 0, 1, 1], [], []>} : vector<2x64xbf16>, vector<64x10xbf16>, vector<2x10xf32> -> vector<2x10xf32>
    %c0_15 = arith.constant 0 : index
    %c0_16 = arith.constant 0 : index
    %20 = vector.load %arg7[%c0_15, %c0_16] : memref<1x10xf32, #tpu.memory_space<vmem>>, vector<1x10xf32>
    %21 = vector.broadcast %20 : vector<1x10xf32> to vector<2x10xf32>
    %22 = arith.addf %19, %21 : vector<2x10xf32>
    %c0_17 = arith.constant 0 : index
    %c0_18 = arith.constant 0 : index
    %23 = vector.load %arg8[%c0_17, %c0_18] : memref<2x10xf32, #tpu.memory_space<vmem>>, vector<2x10xf32>
    tpu.vector_store %arg8[%c0_17, %c0_18], %22 {strides = array<i32>} : memref<2x10xf32, #tpu.memory_space<vmem>>, vector<2x10xf32>,
    return
  }
  func.func @transform_0(%arg0: i32) -> (i32, i32) {
    %c0_i32 = arith.constant 0 : i32
    %c0_i32_0 = arith.constant 0 : i32
    %c0_i32_1 = arith.constant 0 : i32
    return %c0_i32, %c0_i32_0 : i32, i32
  }
  func.func @transform_1(%arg0: i32) -> (i32, i32) {
    %c0_i32 = arith.constant 0 : i32
    %c0_i32_0 = arith.constant 0 : i32
    %c0_i32_1 = arith.constant 0 : i32
    return %c0_i32, %c0_i32_0 : i32, i32
  }
  func.func @transform_2(%arg0: i32) -> (i32, i32) {
    %c0_i32 = arith.constant 0 : i32
    %c0_i32_0 = arith.constant 0 : i32
    %c0_i32_1 = arith.constant 0 : i32
    return %c0_i32, %c0_i32_0 : i32, i32
  }
  func.func @transform_3(%arg0: i32) -> (i32, i32) {
    %c0_i32 = arith.constant 0 : i32
    %c0_i32_0 = arith.constant 0 : i32
    %c0_i32_1 = arith.constant 0 : i32
    return %c0_i32, %c0_i32_0 : i32, i32
  }
  func.func @transform_4(%arg0: i32) -> (i32, i32) {
    %c0_i32 = arith.constant 0 : i32
    %c0_i32_0 = arith.constant 0 : i32
    %c0_i32_1 = arith.constant 0 : i32
    return %c0_i32, %c0_i32_0 : i32, i32
  }
  func.func @transform_5(%arg0: i32) -> (i32, i32) {
    %c0_i32 = arith.constant 0 : i32
    %c0_i32_0 = arith.constant 0 : i32
    %c0_i32_1 = arith.constant 0 : i32
    return %c0_i32, %c0_i32_0 : i32, i32
  }
  func.func @transform_6(%arg0: i32) -> (i32, i32) {
    %c0_i32 = arith.constant 0 : i32
    %c0_i32_0 = arith.constant 0 : i32
    %c0_i32_1 = arith.constant 0 : i32
    return %c0_i32, %c0_i32_0 : i32, i32
  }
  func.func @transform_7(%arg0: i32) -> (i32, i32) {
    %c0_i32 = arith.constant 0 : i32
    %c0_i32_0 = arith.constant 0 : i32
    %c0_i32_1 = arith.constant 0 : i32
    return %c0_i32, %c0_i32_0 : i32, i32
  }
}

</mosaic_0001>

<bundles_post_ra>
// kernel: forward.7
= control target key start
LH: loop header
LB: loop body
LE: loop exit
PB: predicated region body
PF: predicated region fallthrough
CT: control target
= control target key end

     0   :  { %v501_v1 = vmov 0.0   ;;  %vm502_vm0 = vmmov 0   ;;  %s654_s0 = inlined_call_operand.vmem [shape: f32[2,128], index: 0, kind: input, shape index: {}]   ;;  %s655_s1 = inlined_call_operand.vmem [shape: bf16[128,128], index: 1, kind: input, shape index: {}]   ;;  %s656_s2 = inlined_call_operand.vmem [shape: f32[1,128], index: 2, kind: input, shape index: {}]   ;;  %s657_s3 = inlined_call_operand.vmem [shape: bf16[128,64], index: 3, kind: input, shape index: {}]   ;;  %s658_s4 = inlined_call_operand.vmem [shape: f32[1,64], index: 4, kind: input, shape index: {}]   ;;  %s659_s5 = inlined_call_operand.vmem [shape: bf16[64,10], index: 5, kind: input, shape index: {}]   ;;  %s660_s6 = inlined_call_operand.vmem [shape: f32[1,10], index: 6, kind: input, shape index: {}]   ;;  %s661_s7 = inlined_call_operand.hbm [shape: f32[2,10], index: 7, kind: output, shape index: {}]  }
   0x1   :  { %v457_v0 = vld [vmem:[%s655_s1] sm:$0xff]   ;;  %402 = vmatprep.subr.bf16.mxu0 %v501_v1  ;;  %422 = vmatprep.subr.bf16.mxu1 %v501_v1  ;;  %v458_v2 = vld [vmem:[%s655_s1 + $0x8] sm:$0xff]   ;;  %v459_v3 = vld [vmem:[%s655_s1 + $0x10] sm:$0xff]  }
   0x2   :  { %403 = vmatpush3.bf16.msra.mxu0 %v457_v0  ;;  %418 = vmatprep.mubr.msk.bf16.mxu0 %vm502_vm0, %v501_v1  ;;  %v465_v4 = vld [vmem:[%s657_s3] sm:$0xff]   ;;  %v460_v5 = vld [vmem:[%s655_s1 + $0x18] sm:$0xff]   ;;  %v466_v6 = vld [vmem:[%s657_s3 + $0x8] sm:$0xff]  }
   0x3   :  { %404 = vmatprep.subr.bf16.mxu0 %v501_v1  ;;  %438 = vmatprep.mubr.msk.bf16.mxu1 %vm502_vm0, %v501_v1  ;;  %v461_v7 = vld [vmem:[%s655_s1 + $0x20] sm:$0xff]   ;;  %v467_v8 = vld [vmem:[%s657_s3 + $0x10] sm:$0xff]   ;;  %v462_v9 = vld [vmem:[%s655_s1 + $0x28] sm:$0xff]  }
   0x4   :  { %423 = vmatpush3.bf16.msra.mxu1 %v465_v4 }
   0x5   :  { %424 = vmatprep.subr.bf16.mxu1 %v501_v1 }
   0x6   :  { %405 = vmatpush3.bf16.msra.mxu0 %v458_v2 }
   0x7   :  { %406 = vmatprep.subr.bf16.mxu0 %v501_v1 }
   0x8   :  { %425 = vmatpush3.bf16.msra.mxu1 %v466_v6 }
   0x9   :  { %426 = vmatprep.subr.bf16.mxu1 %v501_v1 }
   0xa   :  { %407 = vmatpush3.bf16.msra.mxu0 %v459_v3 }
   0xb   :  { %408 = vmatprep.subr.bf16.mxu0 %v501_v1 }
   0xe   :  { %409 = vmatpush3.bf16.msra.mxu0 %v460_v5 }
   0xf   :  { %410 = vmatprep.subr.bf16.mxu0 %v501_v1 }
  0x12   :  { %411 = vmatpush3.bf16.msra.mxu0 %v461_v7 }
  0x13   :  { %12 = vsyncpa [#allocation3], 0  ;;  %412 = vmatprep.subr.bf16.mxu0 %v501_v1  ;;  %427 = vmatpush3.bf16.msra.mxu1 %v467_v8  ;;  %v468_v10 = vld [vmem:[%s657_s3 + $0x18] sm:$0xff]   ;;  %v463_v11 = vld [vmem:[%s655_s1 + $0x30] sm:$0xff]   ;;  %vm295_vm1 = vcmask 523264   ;;  %s503_s22 = smov [#allocation2]  }
  0x14   :  { %428 = vmatprep.subr.bf16.mxu1 %v501_v1  ;;  %v469_v12 = vld [vmem:[%s657_s3 + $0x20] sm:$0xff]   ;;  %v464_v13 = vld [vmem:[%s655_s1 + $0x38] sm:$0xff]   ;;  %v470_v15 = vld [vmem:[%s657_s3 + $0x28] sm:$0xff]   ;;  %vm339_vm2 = vcmask 74752  }
  0x15   :  { %v28_v14 = vld [vmem:[%s654_s0] sm:$0x3]  ;;  %v471_v17 = vld [vmem:[%s657_s3 + $0x30] sm:$0xff]   ;;  %v472_v18 = vld [vmem:[%s657_s3 + $0x38] sm:$0xff]  }
  0x16   :  { %413 = vmatpush3.bf16.msra.mxu0 %v462_v9  ;;  %v29_v16 = vpack.c.bf16 %v28_v14, %v28_v14  ;;  %v473_v19 = vld [vmem:[%s659_s5] sm:$0xff]   ;;  %v474_v20 = vld [vmem:[%s659_s5 + $0x8] sm:$0xff]   ;;  %v475_v29 = vld [vmem:[%s659_s5 + $0x10] sm:$0xff]  }
  0x17   :  { %414 = vmatprep.subr.bf16.mxu0 %v501_v1  ;;  %429 = vmatpush3.bf16.msra.mxu1 %v468_v10  ;;  %v355_v21 = vld [vmem:[%s656_s2] ss:$0 sm:$0xff]  ;;  %v476_v30 = vld [vmem:[%s659_s5 + $0x18] sm:$0xff]   ;;  %s347_s5 = sshll.u32 %s503_s22, 4  ;;  %s348_s5 = int_to_ptr.vmem [resolvable:$true] %s347_s5 }
  0x18   :  { %430 = vmatprep.subr.bf16.mxu1 %v501_v1  ;;  %v364_v31 = vld [vmem:[%s658_s4] ss:$0 sm:$0xff]  ;;  %s477_s4 = scalar_lea.vmem %s348_s5, 32  ;;  %p482_p1 = scmp.lt.s32.totalorder %s348_s5, %s348_s5 }
  0x19   :  { %v373_v39 = vld [vmem:[%s660_s6] ss:$0 sm:$0xff]  ;;  %p478_p0 = scmp.ne.s32.totalorder %s348_s5, %s477_s4  ;;  %p483_p2 = scmp.lt.s32.totalorder %s477_s4, %s477_s4 }
  0x1a   :  { %415 = vmatpush3.bf16.msra.mxu0 %v463_v11 }
  0x1b   :  { %416 = vmatprep.subr.bf16.mxu0 %v501_v1  ;;  %431 = vmatpush3.bf16.msra.mxu1 %v469_v12  ;;  %p484_p3 = por %p483_p2, %p482_p1 }
  0x1c   :  { %432 = vmatprep.subr.bf16.mxu1 %v501_v1 }
  0x1d   :  { %p485_p4 = pnand %p484_p3, %p478_p0 }
  0x1e   :  { %417 = vmatpush3.bf16.msra.mxu0 %v464_v13 }
  0x1f   :  { %433 = vmatpush3.bf16.msra.mxu1 %v470_v15  ;;  %442 = vmatprep.subr.bf16.mxu0 %v501_v1 }
  0x20   :  { %434 = vmatprep.subr.bf16.mxu1 %v501_v1 }
  0x21   :  { %419 = vmatmul.mubr.bf16.vlgmr.msra.gmra.mrb[0].mxu0 %v29_v16 }
  0x22   :  { %450 = vmatprep.mubr.msk.bf16.mxu0 %vm502_vm0, %v501_v1  ;;  %443 = vmatpush3.bf16.msra.mxu0 %v473_v19 }
  0x23   :  { %435 = vmatpush3.bf16.msra.mxu1 %v471_v17  ;;  %444 = vmatprep.subr.bf16.mxu0 %v501_v1 }
  0x24   :  { %436 = vmatprep.subr.bf16.mxu1 %v501_v1 }
  0x26   :  { %445 = vmatpush3.bf16.msra.mxu0 %v474_v20 }
  0x27   :  { %437 = vmatpush3.bf16.msra.mxu1 %v472_v18  ;;  %446 = vmatprep.subr.bf16.mxu0 %v501_v1 }
  0x2a   :  { %447 = vmatpush3.bf16.msra.mxu0 %v475_v29 }
  0x2b   :  { %448 = vmatprep.subr.bf16.mxu0 %v501_v1 }
  0x2e   :  { %449 = vmatpush3.bf16.msra.mxu0 %v476_v30 }
  0xf4   :  { %v135_v22 = vpop.f32.mrb[0].mxu0 }
  0xf5   :  { %v136_v23 = vadd.f32 %v355_v21, %v135_v22  ;;  %v420_v24 = vpop.f32.mrb[1].mxu0 }
  0xf6   :  { %v138_v25 = vpop.f32.mrb[2].mxu0 }
  0xf7   :  { %v141_v26 = vmax.f32 %v136_v23, 0.0  ;;  %v421_v27 = vpop.f32.mrb[3].mxu0 }
  0xf9   :  { %v142_v28 = vpack.c.bf16 %v141_v26, %v141_v26 }
  0xfb   :  { %439 = vmatmul.mubr.bf16.vlgmr.msra.gmra.mrb[0].mxu1 %v142_v28 }
 0x1ce   :  { %v248_v32 = vpop.f32.mrb[0].mxu1 }
 0x1cf   :  { %v249_v33 = vadd.f32 %v364_v31, %v248_v32  ;;  %v440_v34 = vpop.f32.mrb[1].mxu1 }
 0x1d0   :  { %v251_v35 = vpop.f32.mrb[2].mxu1 }
 0x1d1   :  { %v254_v36 = vmax.f32 %v249_v33, 0.0  ;;  %v441_v37 = vpop.f32.mrb[3].mxu1 }
 0x1d3   :  { %v255_v38 = vpack.c.bf16 %v254_v36, %v254_v36 }
 0x1d5   :  { %451 = vmatmul.mubr.msk.bf16.vlgmr.msra.gmra.mrb[4].mxu0 %vm295_vm1, %v255_v38 }
 0x2a8   :  { %v333_v40 = vpop.f32.mrb[4].mxu0 }
 0x2a9   :  { %v334_v41 = vadd.f32 %v373_v39, %v333_v40  ;;  %v452_v42 = vpop.f32.mrb[5].mxu0 }
 0x2aa   :  { %v336_v43 = vpop.f32.mrb[6].mxu0 }
 0x2ab   :  { %v453_v44 = vpop.f32.mrb[7].mxu0  ;;  %340 = vst.msk [vmem:[#allocation2] sm:$0x3] %vm339_vm2, %v334_v41 }
 0x2ac   :  { %488 = shalt.err (!%p485_p4)
}
 0x2ad   :  { %s489_s6 = scalar_lea.hbm %s661_s7, 32 }
 0x2ae   :  { %p490_p5 = scmp.ne.s32.totalorder %s661_s7, %s489_s6  ;;  %p493_p6 = scmp.lt.u32.totalorder %s489_s6, %s661_s7 }
 0x2b0   :  { %p495_p7 = pnand %p493_p6, %p490_p5 }
 0x2b2   :  { %498 = shalt.err (!%p495_p7)
}
 0x2b3   :  { %350 = dma.vmem_to_hbm [thread:$0]  %s348_s5, 32, %s661_s7, [#allocation3]  }
 0x2b4   :  { %499 = dma.done.wait [#allocation3], 32  }
 0x2b5   :  { %500 = vsyncadd [#allocation3], 4294967264 }
 0x2b6   :  { %354 = vsyncpa [#allocation3], 1 }

// kernel: forward.6
= control target key start
LH: loop header
LB: loop body
LE: loop exit
PB: predicated region body
PF: predicated region fallthrough
CT: control target
= control target key end

     0   :  { %s2085_s21 = smov 0   ;;  %s2368_s0 = inlined_call_operand.vmem [shape: f32[2,16,16], index: 0, kind: input, shape index: {}]   ;;  %s2369_s1 = inlined_call_operand.vmem [shape: f32[9,16,1], index: 1, kind: input, shape index: {}]   ;;  %s2370_s2 = inlined_call_operand.vmem [shape: bf16[9,16,32], index: 2, kind: input, shape index: {}]   ;;  %s2371_s3 = inlined_call_operand.vmem [shape: f32[1,32], index: 3, kind: input, shape index: {}]   ;;  %s2372_s4 = inlined_call_operand.vmem [shape: bf16[9,32,32], index: 4, kind: input, shape index: {}]   ;;  %s2373_s5 = inlined_call_operand.vmem [shape: f32[1,32], index: 5, kind: input, shape index: {}]   ;;  %s2374_s6 = inlined_call_operand.vmem [shape: f32[2,4,32], index: 6, kind: output, shape index: {}]  }
   0x1 LB: > { %s1694_s22 = sadd.s32 4294967295, %s2045_s21   ;;  %p1698_p0 = scmp.ge.s32.totalorder %s2045_s21, 1  ;;  %s2045_s21 = sphi %s2085_s21, %s16_s21  }
   0x2   : > { %p212_p1 = scmp.lt.s32.totalorder %s2045_s21, 3 }
   0x4   : > { %p213_p2 = pnand %p1698_p0, %p212_p1 }
   0x5   : > { %v1702_v0 = vld [vmem:[%s2369_s1 + $0x10] sm:$0xff] (!%p213_p2)  ;;  %v269_v1 = vld [vmem:[%s2369_s1] sm:$0xff] (!%p213_p2)  ;;  %p241_p3 = scmp.lt.s32.totalorder (!%p213_p2), %s1694_s22, 1  ;;  %vm251_vm0 = vcmask (!%p213_p2), 130048   ;;  %v2047_v2 = vmov (!%p213_p2), 0   ;;  %v2048_v3 = vmov (!%p213_p2), 0.0  }
   0x6   : > { %216 = sbr.rel (%p213_p2) target bundleno = 675 (0x2a3), region = 44  ;;  %2011 = vset.pattern.permute.xlu1 (!%p213_p2), %v2047_v2  ;;  %2010 = vset.pattern.permute.xlu0 (!%p213_p2), %v2047_v2  ;;  %252 = vst.msk [vmem:[#allocation2] sm:$0xff] (!%p213_p2), %vm251_vm0, %v2048_v3  ;;  %253 = vst.msk [vmem:[#allocation2 + $0x8] sm:$0xff] (!%p213_p2), %vm251_vm0, %v2048_v3  ;;  %v1703_v4 = vld [vmem:[%s2369_s1 + $0x18] sm:$0xff] (!%p213_p2)  ;;  %v270_v5 = vld [vmem:[%s2369_s1 + $0x8] sm:$0xff] (!%p213_p2)  ;;  %vm2049_vm1 = vmmov (!%p213_p2), 0  }
   0x7   : > { %293 = vperm.xlu0 (!%p213_p2), %2010, %v1702_v0   ;;  %273 = vperm.xlu1 (!%p213_p2), %2011, %v269_v1   ;;  %254 = vst.msk [vmem:[#allocation2 + $0x10] sm:$0xff] (!%p213_p2), %vm251_vm0, %v2048_v3  ;;  %v1710_v6 = vld [vmem:[%s2369_s1 + $0x20] sm:$0xff] (!%p213_p2)  ;;  %v1711_v7 = vld [vmem:[%s2369_s1 + $0x28] sm:$0xff] (!%p213_p2)  ;;  %v1716_v12 = vld [vmem:[%s2369_s1 + $0x30] sm:$0xff] (!%p213_p2)  ;;  %vm255_vm2 = vcmask (!%p213_p2), 123904   ;;  %vm257_vm3 = vcmask (!%p213_p2), 261120  }
   0x8   : > { %1873 = vmatprep.subr.bf16.mxu0 (!%p213_p2), %v2048_v3  ;;  %1879 = vmatprep.subr.bf16.mxu1 (!%p213_p2), %v2048_v3  ;;  %v2012_v10 = vld [vmem:[%s2370_s2 + $0x8] sm:$0xff] (!%p213_p2)   ;;  %v2013_v11 = vld [vmem:[%s2370_s2] sm:$0xff] (!%p213_p2)   ;;  %v1717_v13 = vld [vmem:[%s2369_s1 + $0x38] sm:$0xff] (!%p213_p2)  ;;  %256 = vst.msk [vmem:[#allocation2 + $0x18] sm:$0x3] (!%p213_p2), %vm255_vm2, %v2048_v3  ;;  %vm261_vm4 = vcmask (!%p213_p2), 254976  }
   0x9   : > { %1874 = vmatpush3.bf16.msra.mxu0 (!%p213_p2), %v2012_v10  ;;  %1880 = vmatpush3.bf16.msra.mxu1 (!%p213_p2), %v2013_v11  ;;  %v1726_v14 = vld [vmem:[%s2369_s1 + $0x50] sm:$0xff] (!%p213_p2)  ;;  %v1727_v15 = vld [vmem:[%s2369_s1 + $0x58] sm:$0xff] (!%p213_p2)  ;;  %v1732_v16 = vld [vmem:[%s2369_s1 + $0x60] sm:$0xff] (!%p213_p2)  ;;  %258 = vst.msk [vmem:[#allocation3] sm:$0xff] (!%p213_p2), %vm257_vm3, %v2048_v3  ;;  %vm1639_vm5 = vcmask (!%p213_p2), 259076  }
   0xa   : > { %1875 = vmatprep.mubr.msk.bf16.mxu0 (!%p213_p2), %vm2049_vm1, %v2048_v3  ;;  %1881 = vmatprep.mubr.msk.bf16.mxu1 (!%p213_p2), %vm2049_vm1, %v2048_v3  ;;  %v1733_v17 = vld [vmem:[%s2369_s1 + $0x68] sm:$0xff] (!%p213_p2)  ;;  %v1738_v18 = vld [vmem:[%s2369_s1 + $0x70] sm:$0xff] (!%p213_p2)  ;;  %v1739_v19 = vld [vmem:[%s2369_s1 + $0x78] sm:$0xff] (!%p213_p2)  ;;  %259 = vst.msk [vmem:[#allocation3 + $0x8] sm:$0xff] (!%p213_p2), %vm257_vm3, %v2048_v3 }
   0xb   : > { %298 = vperm.xlu0 (!%p213_p2), %2010, %v1703_v4   ;;  %278 = vperm.xlu1 (!%p213_p2), %2011, %v270_v5   ;;  %v1744_v20 = vld [vmem:[%s2369_s1 + $0x80] sm:$0xff] (!%p213_p2)  ;;  %v1745_v21 = vld [vmem:[%s2369_s1 + $0x88] sm:$0xff] (!%p213_p2)  ;;  %v2014_v34 = vld [vmem:[%s2370_s2 + $0x10] sm:$0xff] (!%p213_p2)   ;;  %260 = vst.msk [vmem:[#allocation3 + $0x10] sm:$0xff] (!%p213_p2), %vm257_vm3, %v2048_v3 }
   0xc   : > { %1885 = vmatprep.subr.bf16.mxu0 (!%p213_p2), %v2048_v3  ;;  %1891 = vmatprep.subr.bf16.mxu1 (!%p213_p2), %v2048_v3  ;;  %v2015_v35 = vld [vmem:[%s2370_s2 + $0x18] sm:$0xff] (!%p213_p2)   ;;  %v2016_v50 = vld [vmem:[%s2370_s2 + $0x20] sm:$0xff] (!%p213_p2)   ;;  %v2017_v51 = vld [vmem:[%s2370_s2 + $0x28] sm:$0xff] (!%p213_p2)   ;;  %262 = vst.msk [vmem:[#allocation3 + $0x18] sm:$0x3] (!%p213_p2), %vm261_vm4, %v2048_v3 }
   0xd   : > { %s2376_s22 = smov (!%p241_p3, %s1694_s22), 1  ;;  %v2019_v2 = vld [vmem:[%s2370_s2 + $0x38] sm:$0xff]  }
   0xe   : > { %s1827_s7 = sshll.u32 %s2376_s22, 4  ;;  %s1701_s29 = sshll.u32 %s2376_s22, 2 }
   0xf   : > { %s245_s14 = scalar_lea.vmem %s2368_s0, %s1827_s7  ;;  %414 = vperm.xlu0 %2010, %v1710_v6   ;;  %419 = vperm.xlu1 %2011, %v1711_v7   ;;  %s249_s8 = scalar_lea.vmem %s2374_s6, %s1701_s29 }
  0x10   : > { %v263_v8 = vld [vmem:[%s245_s14] sm:$0xff]  ;;  %v264_v9 = vld [vmem:[%s245_s14 + $0x8] sm:$0xff] }
  0x11   : > { %265 = vst.msk [vmem:[#allocation2 + $0x5] sm:$0xff] %vm251_vm0, %v263_v8  ;;  %266 = vst.msk [vmem:[#allocation2 + $0xd] sm:$0xff] %vm251_vm0, %v264_v9 }
  0x13   : > { %487 = vperm.xlu0 %2010, %v1716_v12   ;;  %492 = vperm.xlu1 %2011, %v1717_v13  }
  0x17   : > { %618 = vperm.xlu0 %2010, %v1726_v14   ;;  %623 = vperm.xlu1 %2011, %v1727_v15  }
  0x18   : > { %v267_v24 = vld [vmem:[#allocation2] sm:$0xff]  ;;  %v2170_v26 = vld [vmem:[#allocation2 + $0x9] sm:$0xff]  ;;  %v758_v8 = vld [vmem:[#allocation2 + $0x11] sm:$0xff] }
  0x19   : > { %v286_v25 = vld [vmem:[#allocation2 + $0x1] sm:$0xff]  ;;  %v2182_v41 = vld [vmem:[#allocation2 + $0xa] sm:$0xff] }
  0x1a   : > { %v2172_v27 = vld [vmem:[#allocation2 + $0x8] sm:$0xff] }
  0x1b   : > { %691 = vperm.xlu0 %2010, %v1732_v16   ;;  %696 = vperm.xlu1 %2011, %v1733_v17   ;;  %v407_v39 = vld [vmem:[#allocation2 + $0x2] sm:$0xff]  ;;  %v481_v43 = vld [vmem:[#allocation2 + $0xc] sm:$0xff] }
  0x1c   : > { %v480_v42 = vld [vmem:[#allocation2 + $0x4] sm:$0xff]  ;;  %v612_v57 = vld [vmem:[#allocation2 + $0xe] sm:$0xff] }
  0x1d   : > { %v611_v55 = vld [vmem:[#allocation2 + $0x6] sm:$0xff] }
  0x1e   : > { %v553_v58 = vld [vmem:[#allocation2 + $0x5] sm:$0xff]  ;;  %v554_v59 = vld [vmem:[#allocation2 + $0xd] sm:$0xff] }
  0x1f   : > { %764 = vperm.xlu0 %2010, %v1738_v18   ;;  %769 = vperm.xlu1 %2011, %v1739_v19  }
  0x23   : > { %837 = vperm.xlu0 %2010, %v1744_v20   ;;  %842 = vperm.xlu1 %2011, %v1745_v21  }
  0x27   : > { %943 = vperm.xlu0 %2010, %v1702_v0   ;;  %948 = vperm.xlu1 %2011, %v1703_v4   ;;  %v555_v0 = vpack.c.bf16 %v554_v59, %v553_v58 }
  0x2b   : > { %922 = vperm.xlu0 %2010, %v269_v1   ;;  %927 = vperm.xlu1 %2011, %v270_v5   ;;  %v2018_v1 = vld [vmem:[%s2370_s2 + $0x30] sm:$0xff]  }
  0x2c   : > { %v685_v5 = vld [vmem:[#allocation2 + $0x10] sm:$0xff] }
  0x2f   : > { %1077 = vperm.xlu0 %2010, %v1710_v6   ;;  %1082 = vperm.xlu1 %2011, %v1711_v7  }
  0x33   : > { %1157 = vperm.xlu0 %2010, %v1716_v12   ;;  %1162 = vperm.xlu1 %2011, %v1717_v13   ;;  %v2020_v13 = vld [vmem:[%s2370_s2 + $0x40] sm:$0xff]  }
  0x37   : > { %1303 = vperm.xlu0 %2010, %v1726_v14   ;;  %1308 = vperm.xlu1 %2011, %v1727_v15  }
  0x3b   : > { %1383 = vperm.xlu0 %2010, %v1732_v16   ;;  %1388 = vperm.xlu1 %2011, %v1733_v17  }
  0x3f   : > { %1463 = vperm.xlu0 %2010, %v1738_v18   ;;  %1468 = vperm.xlu1 %2011, %v1739_v19   ;;  %v831_v18 = vld [vmem:[#allocation2 + $0x12] sm:$0xff] }
  0x43   : > { %1543 = vperm.xlu0 %2010, %v1744_v20   ;;  %1548 = vperm.xlu1 %2011, %v1745_v21  }
  0x86   : > { %v294_v22 = vpop.permute.xlu0 %293  ;;  %v274_v23 = vpop.permute.xlu1 %273 }
  0x87   : > { %v281_v28 = vmul.f32 %v274_v23, %v267_v24  ;;  %v301_v31 = vmul.f32 %v294_v22, %v286_v25  ;;  %v2021_v22 = vld [vmem:[%s2372_s4 + $0x10] sm:$0xff]   ;;  %v2022_v23 = vld [vmem:[%s2372_s4] sm:$0xff]   ;;  %v2023_v24 = vld [vmem:[%s2372_s4 + $0x18] sm:$0xff]  }
  0x88   : > { %v2024_v25 = vld [vmem:[%s2372_s4 + $0x8] sm:$0xff]  }
  0x8a   : > { %v299_v29 = vpop.permute.xlu0 %298  ;;  %v279_v30 = vpop.permute.xlu1 %278 }
  0x8b   : > { %v302_v32 = vmul.f32 %v299_v29, %v2170_v26  ;;  %v282_v33 = vmul.f32 %v279_v30, %v2172_v27 }
  0x8d   : > { %v303_v36 = vpack.c.bf16 %v302_v32, %v301_v31  ;;  %v283_v37 = vpack.c.bf16 %v282_v33, %v281_v28 }
  0x8e   : > { %v415_v38 = vpop.permute.xlu0 %414  ;;  %v420_v40 = vpop.permute.xlu1 %419 }
  0x8f   : > { %1876 = vmatmul.mubr.msk.bf16.vlgmr.msra.gmra.mrb[0].mxu0 %vm251_vm0, %v303_v36  ;;  %1882 = vmatmul.mubr.msk.bf16.vlgmr.msra.gmra.mrb[0].mxu1 %vm251_vm0, %v283_v37  ;;  %v422_v44 = vmul.f32 %v415_v38, %v407_v39  ;;  %v423_v45 = vmul.f32 %v420_v40, %v2182_v41 }
  0x90   : > { %1886 = vmatpush3.bf16.msra.mxu0 %v2014_v34  ;;  %1892 = vmatpush3.bf16.msra.mxu1 %v2015_v35 }
  0x91   : > { %1887 = vmatprep.mubr.msk.bf16.mxu0 %vm2049_vm1, %v2048_v3  ;;  %1893 = vmatprep.mubr.msk.bf16.mxu1 %vm2049_vm1, %v2048_v3  ;;  %v424_v52 = vpack.c.bf16 %v423_v45, %v422_v44 }
  0x92   : > { %v488_v46 = vpop.permute.xlu0 %487  ;;  %v493_v47 = vpop.permute.xlu1 %492  ;;  %1897 = vmatprep.subr.bf16.mxu0 %v2048_v3  ;;  %1903 = vmatprep.subr.bf16.mxu1 %v2048_v3 }
  0x93   : > { %v495_v48 = vmul.f32 %v488_v46, %v480_v42  ;;  %v496_v49 = vmul.f32 %v493_v47, %v481_v43 }
  0x95   : > { %v497_v53 = vpack.c.bf16 %v496_v49, %v495_v48 }
  0x96   : > { %v619_v54 = vpop.permute.xlu0 %618  ;;  %v624_v56 = vpop.permute.xlu1 %623 }
  0x97   : > { %1888 = vmatmul.mubr.msk.bf16.vlgmr.msra.gmra.mrb[4].mxu0 %vm251_vm0, %v424_v52  ;;  %1894 = vmatmul.mubr.msk.bf16.vlgmr.msra.gmra.mrb[4].mxu1 %vm251_vm0, %v497_v53  ;;  %v626_v60 = vmul.f32 %v619_v54, %v611_v55  ;;  %v627_v61 = vmul.f32 %v624_v56, %v612_v57 }
  0x98   : > { %1898 = vmatpush3.bf16.msra.mxu0 %v2016_v50  ;;  %1904 = vmatpush3.bf16.msra.mxu1 %v2017_v51 }
  0x99   : > { %1899 = vmatprep.mubr.msk.bf16.mxu0 %vm2049_vm1, %v2048_v3  ;;  %1905 = vmatprep.mubr.msk.bf16.mxu1 %vm2049_vm1, %v2048_v3  ;;  %v628_v4 = vpack.c.bf16 %v627_v61, %v626_v60 }
  0x9a   : > { %v692_v62 = vpop.permute.xlu0 %691  ;;  %v697_v63 = vpop.permute.xlu1 %696  ;;  %1909 = vmatprep.subr.bf16.mxu0 %v2048_v3  ;;  %1915 = vmatprep.subr.bf16.mxu1 %v2048_v3 }
  0x9b   : > { %v699_v9 = vmul.f32 %v692_v62, %v2172_v27  ;;  %v700_v10 = vmul.f32 %v697_v63, %v685_v5 }
  0x9d   : > { %v701_v14 = vpack.c.bf16 %v700_v10, %v699_v9  ;;  %v1750_v10 = vld [vmem:[%s2371_s3] ss:$0 sm:$0xff] }
  0x9e   : > { %v765_v6 = vpop.permute.xlu0 %764  ;;  %v770_v7 = vpop.permute.xlu1 %769 }
  0x9f   : > { %1900 = vmatmul.mubr.msk.bf16.vlgmr.msra.gmra.mrb[8].mxu0 %vm251_vm0, %v555_v0  ;;  %1906 = vmatmul.mubr.msk.bf16.vlgmr.msra.gmra.mrb[8].mxu1 %vm251_vm0, %v628_v4  ;;  %v772_v11 = vmul.f32 %v765_v6, %v2170_v26  ;;  %v773_v12 = vmul.f32 %v770_v7, %v758_v8 }
  0xa0   : > { %1910 = vmatpush3.bf16.msra.mxu0 %v2018_v1  ;;  %1916 = vmatpush3.bf16.msra.mxu1 %v2019_v2 }
  0xa1   : > { %1911 = vmatprep.mubr.msk.bf16.mxu0 %vm2049_vm1, %v2048_v3  ;;  %1917 = vmatprep.mubr.msk.bf16.mxu1 %vm2049_vm1, %v2048_v3  ;;  %v774_v15 = vpack.c.bf16 %v773_v12, %v772_v11 }
  0xa2   : > { %1921 = vmatprep.subr.bf16.mxu0 %v2048_v3  ;;  %1927 = vmatprep.subr.bf16.mxu1 %v2048_v3  ;;  %v838_v16 = vpop.permute.xlu0 %837  ;;  %v843_v17 = vpop.permute.xlu1 %842 }
  0xa3   : > { %v845_v19 = vmul.f32 %v838_v16, %v2182_v41  ;;  %v846_v20 = vmul.f32 %v843_v17, %v831_v18 }
  0xa5   : > { %v847_v21 = vpack.c.bf16 %v846_v20, %v845_v19 }
  0xa6   : > { %v944_v11 = vpop.permute.xlu0 %943 }
  0xa7   : > { %1912 = vmatmul.mubr.msk.bf16.vlgmr.msra.gmra.mrb[12].mxu0 %vm251_vm0, %v701_v14  ;;  %1918 = vmatmul.mubr.msk.bf16.vlgmr.msra.gmra.mrb[12].mxu1 %vm251_vm0, %v774_v15  ;;  %v949_v14 = vpop.permute.xlu1 %948 }
  0xa8   : > { %1922 = vmatpush3.bf16.msra.mxu0 %v2020_v13  ;;  %1923 = vmatprep.mubr.msk.bf16.mxu0 %vm2049_vm1, %v2048_v3 }
  0xa9   : > { %1935 = vmatprep.subr.bf16.mxu0 %v2048_v3  ;;  %1931 = vmatprep.mubr.msk.bf16.mxu1 %vm2049_vm1, %v2048_v3 }
  0xaa   : > { %1928 = vmatpush3.bf16.msra.mxu1 %v2021_v22  ;;  %v923_v22 = vpop.permute.xlu0 %922 }
  0xab   : > { %1929 = vmatprep.subr.bf16.mxu1 %v2048_v3 }
  0xae   : > { %1930 = vmatpush3.bf16.msra.mxu1 %v2023_v24  ;;  %v1078_v24 = vpop.permute.xlu0 %1077 }
  0xaf   : > { %1924 = vmatmul.mubr.msk.bf16.vlgmr.msra.gmra.mrb[16].mxu0 %vm251_vm0, %v847_v21  ;;  %1943 = vmatprep.subr.bf16.mxu1 %v2048_v3 }
  0xb0   : > { %1939 = vmatprep.mubr.msk.bf16.mxu0 %vm2049_vm1, %v2048_v3  ;;  %1936 = vmatpush3.bf16.msra.mxu0 %v2022_v23  ;;  %v928_v23 = vpop.permute.xlu1 %927 }
  0xb1   : > { %1937 = vmatprep.subr.bf16.mxu0 %v2048_v3 }
  0xb4   : > { %1938 = vmatpush3.bf16.msra.mxu0 %v2024_v25  ;;  %v1083_v25 = vpop.permute.xlu1 %1082 }
  0xb5   : > { %1951 = vmatprep.subr.bf16.mxu0 %v2048_v3 }
 0x162   : > { %v350_v26 = vpop.f32.mrb[0].mxu0  ;;  %v400_v27 = vpop.f32.mrb[0].mxu1 }
 0x163   : > { %v401_v28 = vadd.f32 %v400_v27, %v350_v26  ;;  %v1877_v29 = vpop.f32.mrb[1].mxu0  ;;  %v1883_v30 = vpop.f32.mrb[1].mxu1 }
 0x164   : > { %v353_v31 = vpop.f32.mrb[2].mxu0  ;;  %v403_v32 = vpop.f32.mrb[2].mxu1 }
 0x165   : > { %v404_v33 = vadd.f32 %v403_v32, %v353_v31  ;;  %v1878_v34 = vpop.f32.mrb[3].mxu0  ;;  %v1884_v35 = vpop.f32.mrb[3].mxu1 }
 0x166   : > { %v2025_v34 = vld [vmem:[%s2372_s4 + $0x20] sm:$0xff]   ;;  %v2026_v35 = vld [vmem:[%s2372_s4 + $0x30] sm:$0xff]  }
 0x16a   : > { %v471_v36 = vpop.f32.mrb[4].mxu0  ;;  %v544_v37 = vpop.f32.mrb[4].mxu1 }
 0x16b   : > { %v478_v38 = vadd.f32 %v471_v36, %v401_v28  ;;  %v1889_v39 = vpop.f32.mrb[5].mxu0  ;;  %v1895_v40 = vpop.f32.mrb[5].mxu1 }
 0x16c   : > { %v474_v41 = vpop.f32.mrb[6].mxu0  ;;  %v547_v42 = vpop.f32.mrb[6].mxu1 }
 0x16d   : > { %v551_v43 = vadd.f32 %v544_v37, %v478_v38  ;;  %v479_v44 = vadd.f32 %v474_v41, %v404_v33  ;;  %v1890_v45 = vpop.f32.mrb[7].mxu0  ;;  %v1896_v46 = vpop.f32.mrb[7].mxu1 }
 0x16e   : > { %v1158_v38 = vpop.permute.xlu0 %1157  ;;  %v1163_v39 = vpop.permute.xlu1 %1162 }
 0x16f   : > { %v552_v47 = vadd.f32 %v547_v42, %v479_v44  ;;  %v2027_v42 = vld [vmem:[%s2372_s4 + $0x28] sm:$0xff]  }
 0x172   : > { %v602_v48 = vpop.f32.mrb[8].mxu0  ;;  %v675_v49 = vpop.f32.mrb[8].mxu1 }
 0x173   : > { %v609_v50 = vadd.f32 %v602_v48, %v551_v43  ;;  %v1901_v51 = vpop.f32.mrb[9].mxu0  ;;  %v1907_v52 = vpop.f32.mrb[9].mxu1  ;;  %v2028_v43 = vld [vmem:[%s2372_s4 + $0x38] sm:$0xff]  }
 0x174   : > { %v605_v53 = vpop.f32.mrb[10].mxu0  ;;  %v678_v54 = vpop.f32.mrb[10].mxu1  ;;  %v2029_v52 = vld [vmem:[%s2372_s4 + $0x40] sm:$0xff]  }
 0x175   : > { %v682_v55 = vadd.f32 %v675_v49, %v609_v50  ;;  %v610_v56 = vadd.f32 %v605_v53, %v552_v47  ;;  %v1902_v57 = vpop.f32.mrb[11].mxu0  ;;  %v1908_v58 = vpop.f32.mrb[11].mxu1  ;;  %v2030_v53 = vld [vmem:[%s2372_s4 + $0x50] sm:$0xff]  }
 0x176   : > { %v1304_v50 = vpop.permute.xlu0 %1303  ;;  %v1309_v51 = vpop.permute.xlu1 %1308  ;;  %v2031_v58 = vld [vmem:[%s2372_s4 + $0x48] sm:$0xff]  }
 0x177   : > { %v683_v59 = vadd.f32 %v678_v54, %v610_v56 }
 0x17a   : > { %v748_v60 = vpop.f32.mrb[12].mxu0  ;;  %v821_v61 = vpop.f32.mrb[12].mxu1 }
 0x17b   : > { %v755_v62 = vadd.f32 %v748_v60, %v682_v55  ;;  %v1913_v63 = vpop.f32.mrb[13].mxu0  ;;  %v1919_v0 = vpop.f32.mrb[13].mxu1 }
 0x17c   : > { %v751_v1 = vpop.f32.mrb[14].mxu0  ;;  %v824_v2 = vpop.f32.mrb[14].mxu1 }
 0x17d   : > { %v828_v4 = vadd.f32 %v821_v61, %v755_v62  ;;  %v756_v5 = vadd.f32 %v751_v1, %v683_v59  ;;  %v1914_v6 = vpop.f32.mrb[15].mxu0  ;;  %v1920_v7 = vpop.f32.mrb[15].mxu1  ;;  %v2032_v59 = vld [vmem:[%s2372_s4 + $0x58] sm:$0xff]  }
 0x17e   : > { %v1384_v62 = vpop.permute.xlu0 %1383  ;;  %v1389_v63 = vpop.permute.xlu1 %1388 }
 0x17f   : > { %v829_v8 = vadd.f32 %v824_v2, %v756_v5  ;;  %v2033_v2 = vld [vmem:[%s2372_s4 + $0x60] sm:$0xff]  }
 0x182   : > { %v894_v9 = vpop.f32.mrb[16].mxu0 }
 0x183   : > { %v901_v12 = vadd.f32 %v894_v9, %v828_v4  ;;  %v1925_v13 = vpop.f32.mrb[17].mxu0  ;;  %v2034_v4 = vld [vmem:[%s2372_s4 + $0x70] sm:$0xff]   ;;  %v1464_v9 = vpop.permute.xlu0 %1463 }
 0x184   : > { %v897_v15 = vpop.f32.mrb[18].mxu0 }
 0x185   : > { %v910_v16 = vadd.f32 %v1750_v10, %v901_v12  ;;  %v902_v17 = vadd.f32 %v897_v15, %v829_v8  ;;  %v1926_v18 = vpop.f32.mrb[19].mxu0  ;;  %v2036_v12 = vld [vmem:[%s2372_s4 + $0x78] sm:$0xff]  }
 0x187   : > { %v912_v19 = vmax.f32 %v910_v16, 0.0  ;;  %v911_v20 = vadd.f32 %v1750_v10, %v902_v17  ;;  %v1469_v10 = vpop.permute.xlu1 %1468  ;;  %v2037_v17 = vld [vmem:[%s2372_s4 + $0x80] sm:$0xff]  }
 0x189   : > { %914 = vst.msk [vmem:[#allocation3 + $0x5] sm:$0xff] %vm257_vm3, %v912_v19  ;;  %v913_v21 = vmax.f32 %v911_v20, 0.0 }
 0x18b   : > { %915 = vst.msk [vmem:[#allocation3 + $0xd] sm:$0xff] %vm257_vm3, %v913_v21  ;;  %v1544_v21 = vpop.permute.xlu0 %1543 }
 0x190   : > { %v937_v26 = vld [vmem:[#allocation3 + $0x1] sm:$0xff] }
 0x191   : > { %v916_v27 = vld [vmem:[#allocation3] sm:$0xff]  ;;  %v951_v30 = vmul.f32 %v944_v11, %v937_v26  ;;  %v2035_v11 = vld [vmem:[%s2372_s4 + $0x68] sm:$0xff]  }
 0x192   : > { %v2266_v28 = vld [vmem:[#allocation3 + $0x9] sm:$0xff]  ;;  %v930_v32 = vmul.f32 %v923_v22, %v916_v27  ;;  %v1458_v8 = vld [vmem:[#allocation3 + $0x11] sm:$0xff]  ;;  %v1549_v22 = vpop.permute.xlu1 %1548 }
 0x193   : > { %v2268_v29 = vld [vmem:[#allocation3 + $0x8] sm:$0xff]  ;;  %v952_v31 = vmul.f32 %v949_v14, %v2266_v28  ;;  %v1378_v7 = vld [vmem:[#allocation3 + $0x10] sm:$0xff]  ;;  %v1471_v15 = vmul.f32 %v1464_v9, %v2266_v28  ;;  %v1472_v16 = vmul.f32 %v1469_v10, %v1458_v8  ;;  %v1824_v10 = vld [vmem:[%s2373_s5] ss:$0 sm:$0xff] }
 0x194   : > { %v931_v33 = vmul.f32 %v928_v23, %v2268_v29  ;;  %v2278_v40 = vld [vmem:[#allocation3 + $0xa] sm:$0xff]  ;;  %v1071_v44 = vld [vmem:[#allocation3 + $0x2] sm:$0xff]  ;;  %v1391_v13 = vmul.f32 %v1384_v62, %v2268_v29  ;;  %v1392_v14 = vmul.f32 %v1389_v63, %v1378_v7  ;;  %v1538_v20 = vld [vmem:[#allocation3 + $0x12] sm:$0xff] }
 0x195   : > { %v953_v36 = vpack.c.bf16 %v952_v31, %v951_v30  ;;  %v1152_v41 = vld [vmem:[#allocation3 + $0xc] sm:$0xff]  ;;  %v1151_v45 = vld [vmem:[#allocation3 + $0x4] sm:$0xff]  ;;  %v1086_v46 = vmul.f32 %v1083_v25, %v2278_v40  ;;  %v1085_v48 = vmul.f32 %v1078_v24, %v1071_v44  ;;  %v1473_v19 = vpack.c.bf16 %v1472_v16, %v1471_v15 }
 0x196   : > { %v932_v37 = vpack.c.bf16 %v931_v33, %v930_v32  ;;  %v1166_v47 = vmul.f32 %v1163_v39, %v1152_v41  ;;  %v1165_v49 = vmul.f32 %v1158_v38, %v1151_v45  ;;  %v1297_v56 = vld [vmem:[#allocation3 + $0x6] sm:$0xff]  ;;  %v1298_v57 = vld [vmem:[#allocation3 + $0xe] sm:$0xff]  ;;  %v1393_v18 = vpack.c.bf16 %v1392_v14, %v1391_v13 }
 0x197   : > { %1932 = vmatmul.mubr.msk.bf16.vlgmr.msra.gmra.mrb[16].mxu1 %vm257_vm3, %v953_v36  ;;  %v1087_v54 = vpack.c.bf16 %v1086_v46, %v1085_v48  ;;  %v1311_v60 = vmul.f32 %v1304_v50, %v1297_v56  ;;  %v1312_v61 = vmul.f32 %v1309_v51, %v1298_v57  ;;  %v1232_v0 = vld [vmem:[#allocation3 + $0xd] sm:$0xff]  ;;  %v1231_v1 = vld [vmem:[#allocation3 + $0x5] sm:$0xff]  ;;  %v1551_v24 = vmul.f32 %v1544_v21, %v2278_v40 }
 0x198   : > { %1940 = vmatmul.mubr.msk.bf16.vlgmr.msra.gmra.mrb[20].mxu0 %vm257_vm3, %v932_v37  ;;  %1944 = vmatpush3.bf16.msra.mxu1 %v2025_v34  ;;  %v1167_v55 = vpack.c.bf16 %v1166_v47, %v1165_v49  ;;  %v1233_v5 = vpack.c.bf16 %v1232_v0, %v1231_v1  ;;  %v2038_v23 = vld [vmem:[%s2372_s4 + $0x88] sm:$0xff]   ;;  %v1552_v25 = vmul.f32 %v1549_v22, %v1538_v20 }
 0x199   : > { %1952 = vmatpush3.bf16.msra.mxu0 %v2026_v35  ;;  %1945 = vmatprep.subr.bf16.mxu1 %v2048_v3  ;;  %v1313_v6 = vpack.c.bf16 %v1312_v61, %v1311_v60 }
 0x19a   : > { %1953 = vmatprep.subr.bf16.mxu0 %v2048_v3  ;;  %1947 = vmatprep.mubr.msk.bf16.mxu1 %vm2049_vm1, %v2048_v3  ;;  %v1553_v26 = vpack.c.bf16 %v1552_v25, %v1551_v24 }
 0x19b   : > { %1955 = vmatprep.mubr.msk.bf16.mxu0 %vm2049_vm1, %v2048_v3 }
 0x19c   : > { %1946 = vmatpush3.bf16.msra.mxu1 %v2027_v42 }
 0x19d   : > { %1954 = vmatpush3.bf16.msra.mxu0 %v2028_v43  ;;  %1959 = vmatprep.subr.bf16.mxu1 %v2048_v3 }
 0x19e   : > { %1967 = vmatprep.subr.bf16.mxu0 %v2048_v3 }
 0x19f   : > { %1948 = vmatmul.mubr.msk.bf16.vlgmr.msra.gmra.mrb[20].mxu1 %vm257_vm3, %v1087_v54 }
 0x1a0   : > { %1956 = vmatmul.mubr.msk.bf16.vlgmr.msra.gmra.mrb[24].mxu0 %vm257_vm3, %v1167_v55  ;;  %1960 = vmatpush3.bf16.msra.mxu1 %v2029_v52 }
 0x1a1   : > { %1968 = vmatpush3.bf16.msra.mxu0 %v2030_v53  ;;  %1961 = vmatprep.subr.bf16.mxu1 %v2048_v3 }
 0x1a2   : > { %1969 = vmatprep.subr.bf16.mxu0 %v2048_v3  ;;  %1963 = vmatprep.mubr.msk.bf16.mxu1 %vm2049_vm1, %v2048_v3 }
 0x1a3   : > { %1971 = vmatprep.mubr.msk.bf16.mxu0 %vm2049_vm1, %v2048_v3 }
 0x1a4   : > { %1962 = vmatpush3.bf16.msra.mxu1 %v2031_v58 }
 0x1a5   : > { %1970 = vmatpush3.bf16.msra.mxu0 %v2032_v59  ;;  %1975 = vmatprep.subr.bf16.mxu1 %v2048_v3 }
 0x1a6   : > { %1983 = vmatprep.subr.bf16.mxu0 %v2048_v3 }
 0x1a7   : > { %1964 = vmatmul.mubr.msk.bf16.vlgmr.msra.gmra.mrb[24].mxu1 %vm257_vm3, %v1233_v5 }
 0x1a8   : > { %1972 = vmatmul.mubr.msk.bf16.vlgmr.msra.gmra.mrb[28].mxu0 %vm257_vm3, %v1313_v6  ;;  %1976 = vmatpush3.bf16.msra.mxu1 %v2033_v2 }
 0x1a9   : > { %1984 = vmatpush3.bf16.msra.mxu0 %v2034_v4  ;;  %1977 = vmatprep.subr.bf16.mxu1 %v2048_v3 }
 0x1aa   : > { %1985 = vmatprep.subr.bf16.mxu0 %v2048_v3  ;;  %1979 = vmatprep.mubr.msk.bf16.mxu1 %vm2049_vm1, %v2048_v3 }
 0x1ab   : > { %1987 = vmatprep.mubr.msk.bf16.mxu0 %vm2049_vm1, %v2048_v3 }
 0x1ac   : > { %1978 = vmatpush3.bf16.msra.mxu1 %v2035_v11 }
 0x1ad   : > { %1986 = vmatpush3.bf16.msra.mxu0 %v2036_v12  ;;  %1991 = vmatprep.subr.bf16.mxu1 %v2048_v3 }
 0x1af   : > { %1980 = vmatmul.mubr.msk.bf16.vlgmr.msra.gmra.mrb[28].mxu1 %vm257_vm3, %v1393_v18 }
 0x1b0   : > { %1988 = vmatmul.mubr.msk.bf16.vlgmr.msra.gmra.mrb[32].mxu0 %vm257_vm3, %v1473_v19  ;;  %1992 = vmatpush3.bf16.msra.mxu1 %v2037_v17 }
 0x1b1   : > { %1995 = vmatprep.mubr.msk.bf16.mxu1 %vm2049_vm1, %v2048_v3  ;;  %1993 = vmatprep.subr.bf16.mxu1 %v2048_v3 }
 0x1b4   : > { %1994 = vmatpush3.bf16.msra.mxu1 %v2038_v23 }
 0x1b7   : > { %1996 = vmatmul.mubr.msk.bf16.vlgmr.msra.gmra.mrb[32].mxu1 %vm257_vm3, %v1553_v26 }
 0x26a   : > { %v1008_v27 = vpop.f32.mrb[16].mxu1 }
 0x26b   : > { %v1064_v28 = vpop.f32.mrb[20].mxu0  ;;  %v1933_v30 = vpop.f32.mrb[17].mxu1 }
 0x26c   : > { %v1065_v29 = vadd.f32 %v1064_v28, %v1008_v27  ;;  %v1941_v31 = vpop.f32.mrb[21].mxu0  ;;  %v1011_v32 = vpop.f32.mrb[18].mxu1 }
 0x26d   : > { %v1067_v33 = vpop.f32.mrb[22].mxu0  ;;  %v1934_v35 = vpop.f32.mrb[19].mxu1 }
 0x26e   : > { %v1068_v34 = vadd.f32 %v1067_v33, %v1011_v32  ;;  %v1942_v36 = vpop.f32.mrb[23].mxu0 }
 0x272   : > { %v1142_v37 = vpop.f32.mrb[20].mxu1 }
 0x273   : > { %v1222_v38 = vpop.f32.mrb[24].mxu0  ;;  %v1149_v3 = vadd.f32 %v1142_v37, %v1065_v29  ;;  %v1949_v39 = vpop.f32.mrb[21].mxu1 }
 0x274   : > { %v1957_v40 = vpop.f32.mrb[25].mxu0  ;;  %v1145_v41 = vpop.f32.mrb[22].mxu1 }
 0x275   : > { %v1225_v42 = vpop.f32.mrb[26].mxu0  ;;  %v1229_v43 = vadd.f32 %v1222_v38, %v1149_v3  ;;  %v1150_v44 = vadd.f32 %v1145_v41, %v1068_v34  ;;  %v1950_v45 = vpop.f32.mrb[23].mxu1 }
 0x276   : > { %v1958_v46 = vpop.f32.mrb[27].mxu0 }
 0x277   : > { %v1230_v47 = vadd.f32 %v1225_v42, %v1150_v44 }
 0x27a   : > { %v1288_v48 = vpop.f32.mrb[24].mxu1 }
 0x27b   : > { %v1368_v49 = vpop.f32.mrb[28].mxu0  ;;  %v1295_v50 = vadd.f32 %v1288_v48, %v1229_v43  ;;  %v1965_v51 = vpop.f32.mrb[25].mxu1 }
 0x27c   : > { %v1973_v52 = vpop.f32.mrb[29].mxu0  ;;  %v1291_v53 = vpop.f32.mrb[26].mxu1 }
 0x27d   : > { %v1371_v54 = vpop.f32.mrb[30].mxu0  ;;  %v1375_v55 = vadd.f32 %v1368_v49, %v1295_v50  ;;  %v1296_v56 = vadd.f32 %v1291_v53, %v1230_v47  ;;  %v1966_v57 = vpop.f32.mrb[27].mxu1 }
 0x27e   : > { %v1974_v58 = vpop.f32.mrb[31].mxu0 }
 0x27f   : > { %v1376_v59 = vadd.f32 %v1371_v54, %v1296_v56 }
 0x282   : > { %v1448_v60 = vpop.f32.mrb[28].mxu1 }
 0x283   : > { %v1528_v61 = vpop.f32.mrb[32].mxu0  ;;  %v1455_v62 = vadd.f32 %v1448_v60, %v1375_v55  ;;  %v1981_v63 = vpop.f32.mrb[29].mxu1 }
 0x284   : > { %v1989_v0 = vpop.f32.mrb[33].mxu0  ;;  %v1451_v1 = vpop.f32.mrb[30].mxu1 }
 0x285   : > { %v1531_v2 = vpop.f32.mrb[34].mxu0  ;;  %v1535_v4 = vadd.f32 %v1528_v61, %v1455_v62  ;;  %v1456_v5 = vadd.f32 %v1451_v1, %v1376_v59  ;;  %v1982_v6 = vpop.f32.mrb[31].mxu1 }
 0x286   : > { %v1990_v7 = vpop.f32.mrb[35].mxu0 }
 0x287   : > { %v1536_v8 = vadd.f32 %v1531_v2, %v1456_v5 }
 0x28a   : > { %v1608_v9 = vpop.f32.mrb[32].mxu1 }
 0x28b   : > { %v1615_v11 = vadd.f32 %v1608_v9, %v1535_v4  ;;  %v1997_v12 = vpop.f32.mrb[33].mxu1 }
 0x28c   : > { %v1611_v13 = vpop.f32.mrb[34].mxu1 }
 0x28d   : > { %v1624_v14 = vadd.f32 %v1824_v10, %v1615_v11  ;;  %v1616_v15 = vadd.f32 %v1611_v13, %v1536_v8  ;;  %v1998_v16 = vpop.f32.mrb[35].mxu1 }
 0x28f   : > { %v1626_v17 = vmax.f32 %v1624_v14, 0.0  ;;  %v1625_v18 = vadd.f32 %v1824_v10, %v1616_v15 }
 0x291   : > { %1628 = vst.msk [vmem:[#allocation4] sm:$0xff] %vm257_vm3, %v1626_v17  ;;  %v1627_v19 = vmax.f32 %v1625_v18, 0.0 }
 0x293   : > { %1629 = vst.msk [vmem:[#allocation4 + $0x8] sm:$0xff] %vm257_vm3, %v1627_v19 }
 0x29a   : > { %v1630_v20 = vld [vmem:[#allocation4] ss:$2 sm:$0xff]  ;;  %v1632_v21 = vld [vmem:[#allocation4 + $0x1] ss:$2 sm:$0xff] }
 0x29b   : > { %v1633_v22 = vmax.f32 %v1630_v20, %v1632_v21 }
 0x29d   : > { %v1635_v23 = vrot.slane %v1633_v22, 2 }
 0x29f   : > { %v1637_v24 = vmax.f32 %v1633_v22, %v1635_v23 }
 0x2a1   : > { %1638 = vst.msk [vmem:[%s249_s8] sm:$0x3] %vm261_vm4, %v1637_v24 }
 0x2a2   : > { %1640 = vst.msk [vmem:[%s249_s8 - $0x2] sm:$0x30] %vm1639_vm5, %v1637_v24 }
 0x2a3 PF: > { %s16_s21 = sadd.s32 1, %s2045_s21  }
 0x2a4   : > { %p13_p4 = scmp.ge.s32.totalorder %s16_s21, 4  }
 0x2a6   :  { %15 = sbr.rel (!%p13_p4) target bundleno = 1 (0x1), region = 98 }

// kernel: forward.5
= control target key start
LH: loop header
LB: loop body
LE: loop exit
PB: predicated region body
PF: predicated region fallthrough
CT: control target
= control target key end

     0   :  { %s3899_s21 = smov 0   ;;  %s5075_s0 = inlined_call_operand.vmem [shape: f32[2,64,8], index: 0, kind: input, shape index: {}]   ;;  %s5076_s1 = inlined_call_operand.vmem [shape: f32[9,64,1], index: 1, kind: input, shape index: {}]   ;;  %s5077_s2 = inlined_call_operand.vmem [shape: bf16[9,8,16], index: 2, kind: input, shape index: {}]   ;;  %s5078_s3 = inlined_call_operand.vmem [shape: f32[1,16], index: 3, kind: input, shape index: {}]   ;;  %s5079_s4 = inlined_call_operand.vmem [shape: bf16[9,16,16], index: 4, kind: input, shape index: {}]   ;;  %s5080_s5 = inlined_call_operand.vmem [shape: f32[1,16], index: 5, kind: input, shape index: {}]   ;;  %s5081_s6 = inlined_call_operand.vmem [shape: f32[2,16,16], index: 6, kind: output, shape index: {}]  }
   0x1 LB: > { %s3194_s22 = sadd.s32 4294967295, %s3860_s21   ;;  %p3198_p0 = scmp.ge.s32.totalorder %s3860_s21, 1  ;;  %s3860_s21 = sphi %s3899_s21, %s16_s21  }
   0x2   : > { %p212_p1 = scmp.lt.s32.totalorder %s3860_s21, 3 }
   0x4   : > { %p213_p2 = pnand %p3198_p0, %p212_p1 }
   0x6   : > { %216 = sbr.rel (%p213_p2) target bundleno = 882 (0x372), region = 44 }
   0xd   : > { %v3910_v0 = vld [vmem:[%s5076_s1 + $0x50] sm:$0xff]  ;;  %v3915_v1 = vld [vmem:[%s5076_s1 + $0x40] sm:$0xff]  ;;  %vm253_vm0 = vcmask 64512   ;;  %v3862_v2 = vmov 0   ;;  %v5082_v3 = vmov 0.0   ;;  %v3942_v4 = vld [vmem:[%s5076_s1 + $0x58] sm:$0xff] }
   0xe   : > { %3844 = vset.pattern.permute.xlu1 %v3862_v2  ;;  %3843 = vset.pattern.permute.xlu0 %v3862_v2  ;;  %256 = vst.msk [vmem:[#allocation2 + $0x10] sm:$0xff] %vm253_vm0, %v5082_v3  ;;  %257 = vst.msk [vmem:[#allocation2 + $0x18] sm:$0xff] %vm253_vm0, %v5082_v3  ;;  %v3947_v5 = vld [vmem:[%s5076_s1 + $0x48] sm:$0xff]  ;;  %v3959_v7 = vld [vmem:[%s5076_s1 + $0x60] sm:$0xff]  ;;  %p242_p3 = scmp.lt.s32.totalorder %s3194_s22, 1  ;;  %vm447_vm1 = vcmask 1043456  }
   0xf   : > { %393 = vperm.xlu1 %3844, %v3910_v0   ;;  %383 = vperm.xlu0 %3843, %v3915_v1   ;;  %254 = vst.msk [vmem:[#allocation2] sm:$0xff] %vm253_vm0, %v5082_v3  ;;  %255 = vst.msk [vmem:[#allocation2 + $0x8] sm:$0xff] %vm253_vm0, %v5082_v3  ;;  %v3954_v6 = vld [vmem:[%s5076_s1 + $0x68] sm:$0xff]  ;;  %v3968_v8 = vld [vmem:[%s5076_s1 + $0x78] sm:$0xff]  ;;  %vm264_vm2 = vcmask 58368   ;;  %vm266_vm3 = vcmask 130048  }
  0x10   : > { %258 = vst.msk [vmem:[#allocation2 + $0x20] sm:$0xff] %vm253_vm0, %v5082_v3  ;;  %259 = vst.msk [vmem:[#allocation2 + $0x28] sm:$0xff] %vm253_vm0, %v5082_v3  ;;  %v3973_v9 = vld [vmem:[%s5076_s1 + $0x70] sm:$0xff]  ;;  %s5182_s22 = smov (!%p242_p3, %s3194_s22), 1  ;;  %v3984_v10 = vld [vmem:[%s5076_s1 + $0x8] sm:$0xff]  ;;  %vm277_vm4 = vcmask 123904  }
  0x11   : > { %260 = vst.msk [vmem:[#allocation2 + $0x30] sm:$0xff] %vm253_vm0, %v5082_v3  ;;  %261 = vst.msk [vmem:[#allocation2 + $0x38] sm:$0xff] %vm253_vm0, %v5082_v3  ;;  %v3989_v11 = vld [vmem:[%s5076_s1] sm:$0xff]  ;;  %s3424_s19 = sshll.u32 %s5182_s22, 6  ;;  %v4002_v12 = vld [vmem:[%s5076_s1 + $0x18] sm:$0xff]  ;;  %s3425_s17 = sshll.u32 %s5182_s22, 4 }
  0x12   : > { %262 = vst.msk [vmem:[#allocation2 + $0x40] sm:$0xff] %vm253_vm0, %v5082_v3  ;;  %263 = vst.msk [vmem:[#allocation2 + $0x48] sm:$0xff] %vm253_vm0, %v5082_v3  ;;  %s3997_s24 = scalar_lea.vmem %s5075_s0, %s3424_s19  ;;  %v4007_v13 = vld [vmem:[%s5076_s1 + $0x10] sm:$0xff]  ;;  %v4012_v14 = vld [vmem:[%s5076_s1 + $0x28] sm:$0xff]  ;;  %s251_s20 = scalar_lea.vmem %s5081_s6, %s3425_s17  ;;  %vm3122_vm5 = vcmask 125952  }
  0x13   : > { %398 = vperm.xlu1 %3844, %v3942_v4   ;;  %388 = vperm.xlu0 %3843, %v3947_v5   ;;  %v4017_v15 = vld [vmem:[%s5076_s1 + $0x20] sm:$0xff]  ;;  %v280_v16 = vld [vmem:[%s3997_s24 + $0x8] sm:$0xff]  ;;  %v281_v17 = vld [vmem:[%s3997_s24 + $0x10] sm:$0xff]  ;;  %265 = vst.msk [vmem:[#allocation2 + $0x50] sm:$0x3] %vm264_vm2, %v5082_v3 }
  0x14   : > { %288 = vst.msk [vmem:[#allocation2 + $0x11] sm:$0xff] %vm253_vm0, %v280_v16  ;;  %v279_v18 = vld [vmem:[%s3997_s24] sm:$0xff]  ;;  %289 = vst.msk [vmem:[#allocation2 + $0x19] sm:$0xff] %vm253_vm0, %v281_v17  ;;  %v282_v22 = vld [vmem:[%s3997_s24 + $0x18] sm:$0xff] }
  0x15   : > { %v3211_v19 = vld [vmem:[%s5077_s2 + $0x4] sm:$0xf]  ;;  %287 = vst.msk [vmem:[#allocation2 + $0x9] sm:$0xff] %vm253_vm0, %v279_v18  ;;  %v4037_v23 = vld [vmem:[%s5077_s2] sm:$0xf]  ;;  %290 = vst.msk [vmem:[#allocation2 + $0x21] sm:$0xff] %vm253_vm0, %v282_v22 }
  0x16   : > { %3824 = vmatprep.subr.msk.bf16.mxu0 %vm447_vm1, %v3211_v19  ;;  %v449_v20 = vsel %vm447_vm1, %v3211_v19, 0  ;;  %v283_v21 = vld [vmem:[%s3997_s24 + $0x20] sm:$0xff]  ;;  %v285_v24 = vld [vmem:[%s3997_s24 + $0x30] sm:$0xff]  ;;  %v284_v25 = vld [vmem:[%s3997_s24 + $0x28] sm:$0xff] }
  0x17   : > { %408 = vperm.xlu1 %3844, %v3954_v6   ;;  %403 = vperm.xlu0 %3843, %v3959_v7   ;;  %291 = vst.msk [vmem:[#allocation2 + $0x29] sm:$0xff] %vm253_vm0, %v283_v21  ;;  %v4046_v26 = vld [vmem:[%s5076_s1 + $0x38] sm:$0xff]  ;;  %v4051_v27 = vld [vmem:[%s5076_s1 + $0x30] sm:$0xff]  ;;  %293 = vst.msk [vmem:[#allocation2 + $0x39] sm:$0xff] %vm253_vm0, %v285_v24 }
  0x18   : > { %3517 = vmatpush3.bf16.msra.mxu0 %v449_v20  ;;  %292 = vst.msk [vmem:[#allocation2 + $0x31] sm:$0xff] %vm253_vm0, %v284_v25  ;;  %v4064_v28 = vld [vmem:[%s5076_s1 + $0x88] sm:$0xff]  ;;  %v4069_v29 = vld [vmem:[%s5076_s1 + $0x80] sm:$0xff]  ;;  %v4076_v30 = vld [vmem:[%s5076_s1 + $0x98] sm:$0xff] }
  0x19   : > { %3825 = vmatprep.subr.msk.bf16.mxu0 %vm447_vm1, %v4037_v23  ;;  %v4081_v31 = vld [vmem:[%s5076_s1 + $0x90] sm:$0xff]  ;;  %v286_v32 = vld [vmem:[%s3997_s24 + $0x38] sm:$0xff]  ;;  %v4089_v33 = vld [vmem:[%s5076_s1 + $0xa8] sm:$0xff] }
  0x1a   : > { %v4094_v34 = vld [vmem:[%s5076_s1 + $0xa0] sm:$0xff]  ;;  %294 = vst.msk [vmem:[#allocation2 + $0x41] sm:$0xff] %vm253_vm0, %v286_v32  ;;  %v4102_v35 = vld [vmem:[%s5076_s1 + $0xb8] sm:$0xff]  ;;  %v4107_v36 = vld [vmem:[%s5076_s1 + $0xb0] sm:$0xff] }
  0x1b   : > { %418 = vperm.xlu1 %3844, %v3968_v8   ;;  %413 = vperm.xlu0 %3843, %v3973_v9   ;;  %v4114_v37 = vld [vmem:[%s5076_s1 + $0xc8] sm:$0xff]  ;;  %v4119_v38 = vld [vmem:[%s5076_s1 + $0xc0] sm:$0xff]  ;;  %v4126_v39 = vld [vmem:[%s5076_s1 + $0xd8] sm:$0xff] }
  0x1c   : > { %v4131_v40 = vld [vmem:[%s5076_s1 + $0xd0] sm:$0xff]  ;;  %v4138_v41 = vld [vmem:[%s5076_s1 + $0xe8] sm:$0xff]  ;;  %v4143_v42 = vld [vmem:[%s5076_s1 + $0xe0] sm:$0xff] }
  0x1d   : > { %v4150_v43 = vld [vmem:[%s5076_s1 + $0xf8] sm:$0xff]  ;;  %v4155_v44 = vld [vmem:[%s5076_s1 + $0xf0] sm:$0xff]  ;;  %v4162_v45 = vld [vmem:[%s5076_s1 + $0x148] sm:$0xff] }
  0x1e   : > { %v4167_v46 = vld [vmem:[%s5076_s1 + $0x140] sm:$0xff]  ;;  %v4174_v47 = vld [vmem:[%s5076_s1 + $0x158] sm:$0xff]  ;;  %v4179_v48 = vld [vmem:[%s5076_s1 + $0x150] sm:$0xff] }
  0x1f   : > { %318 = vperm.xlu1 %3844, %v3984_v10   ;;  %313 = vperm.xlu0 %3843, %v3989_v11   ;;  %v4186_v49 = vld [vmem:[%s5076_s1 + $0x168] sm:$0xff]  ;;  %v4191_v50 = vld [vmem:[%s5076_s1 + $0x160] sm:$0xff]  ;;  %v4198_v51 = vld [vmem:[%s5076_s1 + $0x178] sm:$0xff] }
  0x20   : > { %v4203_v52 = vld [vmem:[%s5076_s1 + $0x170] sm:$0xff]  ;;  %v4210_v53 = vld [vmem:[%s5076_s1 + $0x188] sm:$0xff]  ;;  %v4215_v54 = vld [vmem:[%s5076_s1 + $0x180] sm:$0xff] }
  0x21   : > { %v4222_v55 = vld [vmem:[%s5076_s1 + $0x198] sm:$0xff]  ;;  %v4227_v56 = vld [vmem:[%s5076_s1 + $0x190] sm:$0xff]  ;;  %v4234_v57 = vld [vmem:[%s5076_s1 + $0x1a8] sm:$0xff] }
  0x22   : > { %v4239_v58 = vld [vmem:[%s5076_s1 + $0x1a0] sm:$0xff]  ;;  %v4246_v59 = vld [vmem:[%s5076_s1 + $0x1b8] sm:$0xff]  ;;  %v4251_v60 = vld [vmem:[%s5076_s1 + $0x1b0] sm:$0xff] }
  0x23   : > { %328 = vperm.xlu1 %3844, %v4002_v12   ;;  %323 = vperm.xlu0 %3843, %v4007_v13   ;;  %5106 = vst [vmem:[#allocation5_spill] sm:$0xff] %v4251_v60  ;;  %v4258_v61 = vld [vmem:[%s5076_s1 + $0x1c8] sm:$0xff]  ;;  %v4263_v62 = vld [vmem:[%s5076_s1 + $0x1c0] sm:$0xff]  ;;  %v4270_v63 = vld [vmem:[%s5076_s1 + $0x1d8] sm:$0xff] }
  0x24   : > { %5107 = vst [vmem:[#allocation6_spill] sm:$0xff] %v4258_v61  ;;  %5108 = vst [vmem:[#allocation7_spill] sm:$0xff] %v4263_v62  ;;  %v4275_v2 = vld [vmem:[%s5076_s1 + $0x1d0] sm:$0xff]  ;;  %v4282_v16 = vld [vmem:[%s5076_s1 + $0x1e8] sm:$0xff] }
  0x25   : > { %5109 = vst [vmem:[#allocation8_spill] sm:$0xff] %v4270_v63  ;;  %5110 = vst [vmem:[#allocation9_spill] sm:$0xff] %v4275_v2  ;;  %v4287_v17 = vld [vmem:[%s5076_s1 + $0x1e0] sm:$0xff]  ;;  %v4295_v18 = vld [vmem:[%s5076_s1 + $0x1f8] sm:$0xff] }
  0x26   : > { %5111 = vst [vmem:[#allocation10_spill] sm:$0xff] %v4282_v16  ;;  %5112 = vst [vmem:[#allocation11_spill] sm:$0xff] %v4287_v17  ;;  %v4300_v19 = vld [vmem:[%s5076_s1 + $0x1f0] sm:$0xff]  ;;  %v4307_v20 = vld [vmem:[%s5076_s1 + $0x208] sm:$0xff] }
  0x27   : > { %338 = vperm.xlu1 %3844, %v4012_v14   ;;  %333 = vperm.xlu0 %3843, %v4017_v15   ;;  %5113 = vst [vmem:[#allocation12_spill] sm:$0xff] %v4295_v18  ;;  %5114 = vst [vmem:[#allocation13_spill] sm:$0xff] %v4300_v19  ;;  %v4312_v21 = vld [vmem:[%s5076_s1 + $0x200] sm:$0xff]  ;;  %v4319_v22 = vld [vmem:[%s5076_s1 + $0x218] sm:$0xff] }
  0x28   : > { %5115 = vst [vmem:[#allocation14_spill] sm:$0xff] %v4307_v20  ;;  %5116 = vst [vmem:[#allocation15_spill] sm:$0xff] %v4312_v21  ;;  %v4324_v24 = vld [vmem:[%s5076_s1 + $0x210] sm:$0xff]  ;;  %v4331_v25 = vld [vmem:[%s5076_s1 + $0x228] sm:$0xff] }
  0x29   : > { %5117 = vst [vmem:[#allocation16_spill] sm:$0xff] %v4319_v22  ;;  %5118 = vst [vmem:[#allocation17_spill] sm:$0xff] %v4324_v24  ;;  %v4336_v32 = vld [vmem:[%s5076_s1 + $0x220] sm:$0xff]  ;;  %v4343_v3 = vld [vmem:[%s5076_s1 + $0x238] sm:$0xff] }
  0x2a   : > { %5119 = vst [vmem:[#allocation18_spill] sm:$0xff] %v4331_v25  ;;  %5120 = vst [vmem:[#allocation19_spill] sm:$0xff] %v4336_v32 }
  0x2b   : > { %348 = vperm.xlu1 %3844, %v4046_v26   ;;  %343 = vperm.xlu0 %3843, %v4051_v27   ;;  %5121 = vst [vmem:[#allocation20_spill] sm:$0xff] %v4343_v3 }
  0x2f   : > { %620 = vperm.xlu1 %3844, %v4064_v28   ;;  %615 = vperm.xlu0 %3843, %v4069_v29  }
  0x33   : > { %630 = vperm.xlu1 %3844, %v4076_v30   ;;  %625 = vperm.xlu0 %3843, %v4081_v31  }
  0x37   : > { %640 = vperm.xlu1 %3844, %v4089_v33   ;;  %635 = vperm.xlu0 %3843, %v4094_v34  }
  0x3b   : > { %650 = vperm.xlu1 %3844, %v4102_v35   ;;  %645 = vperm.xlu0 %3843, %v4107_v36  }
  0x3f   : > { %779 = vperm.xlu1 %3844, %v4114_v37   ;;  %774 = vperm.xlu0 %3843, %v4119_v38  }
  0x43   : > { %789 = vperm.xlu1 %3844, %v4126_v39   ;;  %784 = vperm.xlu0 %3843, %v4131_v40  }
  0x47   : > { %799 = vperm.xlu1 %3844, %v4138_v41   ;;  %794 = vperm.xlu0 %3843, %v4143_v42  }
  0x4b   : > { %809 = vperm.xlu1 %3844, %v4150_v43   ;;  %804 = vperm.xlu0 %3843, %v4155_v44  }
  0x4f   : > { %1040 = vperm.xlu1 %3844, %v4162_v45   ;;  %1035 = vperm.xlu0 %3843, %v4167_v46  }
  0x53   : > { %1050 = vperm.xlu1 %3844, %v4174_v47   ;;  %1045 = vperm.xlu0 %3843, %v4179_v48  }
  0x57   : > { %1060 = vperm.xlu1 %3844, %v4186_v49   ;;  %1055 = vperm.xlu0 %3843, %v4191_v50  }
  0x5b   : > { %1070 = vperm.xlu1 %3844, %v4198_v51   ;;  %1065 = vperm.xlu0 %3843, %v4203_v52  }
  0x5f   : > { %1199 = vperm.xlu1 %3844, %v4210_v53   ;;  %1194 = vperm.xlu0 %3843, %v4215_v54  }
  0x63   : > { %1209 = vperm.xlu1 %3844, %v4222_v55   ;;  %1204 = vperm.xlu0 %3843, %v4227_v56  }
  0x67   : > { %1219 = vperm.xlu1 %3844, %v4234_v57   ;;  %1214 = vperm.xlu0 %3843, %v4239_v58  }
  0x6b   : > { %1229 = vperm.xlu1 %3844, %v4246_v59   ;;  %1224 = vperm.xlu0 %3843, %v4251_v60  }
  0x6f   : > { %1358 = vperm.xlu1 %3844, %v4258_v61   ;;  %1353 = vperm.xlu0 %3843, %v4263_v62  }
  0x73   : > { %1368 = vperm.xlu1 %3844, %v4270_v63   ;;  %1363 = vperm.xlu0 %3843, %v4275_v2  }
  0x77   : > { %1378 = vperm.xlu1 %3844, %v4282_v16   ;;  %1373 = vperm.xlu0 %3843, %v4287_v17  }
  0x7b   : > { %1388 = vperm.xlu1 %3844, %v4295_v18   ;;  %1383 = vperm.xlu0 %3843, %v4300_v19   ;;  %v4376_v19 = vld [vmem:[#allocation2 + $0x19] sm:$0xff]  ;;  %v4378_v18 = vld [vmem:[#allocation2 + $0x9] sm:$0xff] }
  0x7f   : > { %1517 = vperm.xlu1 %3844, %v4307_v20   ;;  %1512 = vperm.xlu0 %3843, %v4312_v21   ;;  %v4372_v21 = vld [vmem:[#allocation2 + $0x11] sm:$0xff]  ;;  %v364_v20 = vld [vmem:[#allocation2 + $0x1] sm:$0xff] }
  0x83   : > { %1527 = vperm.xlu1 %3844, %v4319_v22   ;;  %1522 = vperm.xlu0 %3843, %v4324_v24   ;;  %v4348_v24 = vld [vmem:[%s5076_s1 + $0x230] sm:$0xff]  ;;  %v5123_v22 = vmov 0.0  }
  0x84   : > { %5122 = vst [vmem:[#allocation21_spill] sm:$0xff] %v4348_v24  ;;  %267 = vst.msk [vmem:[#allocation3] sm:$0xff] %vm266_vm3, %v5123_v22 }
  0x85   : > { %268 = vst.msk [vmem:[#allocation3 + $0x8] sm:$0xff] %vm266_vm3, %v5123_v22  ;;  %269 = vst.msk [vmem:[#allocation3 + $0x10] sm:$0xff] %vm266_vm3, %v5123_v22 }
  0x86   : > { %270 = vst.msk [vmem:[#allocation3 + $0x18] sm:$0xff] %vm266_vm3, %v5123_v22  ;;  %271 = vst.msk [vmem:[#allocation3 + $0x20] sm:$0xff] %vm266_vm3, %v5123_v22 }
  0x87   : > { %1537 = vperm.xlu1 %3844, %v4331_v25   ;;  %1532 = vperm.xlu0 %3843, %v4336_v32   ;;  %272 = vst.msk [vmem:[#allocation3 + $0x28] sm:$0xff] %vm266_vm3, %v5123_v22  ;;  %273 = vst.msk [vmem:[#allocation3 + $0x30] sm:$0xff] %vm266_vm3, %v5123_v22 }
  0x88   : > { %274 = vst.msk [vmem:[#allocation3 + $0x38] sm:$0xff] %vm266_vm3, %v5123_v22  ;;  %275 = vst.msk [vmem:[#allocation3 + $0x40] sm:$0xff] %vm266_vm3, %v5123_v22 }
  0x89   : > { %276 = vst.msk [vmem:[#allocation3 + $0x48] sm:$0xff] %vm266_vm3, %v5123_v22 }
  0x8b   : > { %1547 = vperm.xlu1 %3844, %v4343_v3   ;;  %1542 = vperm.xlu0 %3843, %v4348_v24  }
  0x8e   : > { %v394_v32 = vpop.permute.xlu1 %393  ;;  %v384_v25 = vpop.permute.xlu0 %383 }
  0x8f   : > { %1776 = vperm.xlu1 %3844, %v3947_v5   ;;  %1771 = vperm.xlu0 %3843, %v3915_v1   ;;  %v423_v17 = vmul.f32 %v394_v32, %v4372_v21  ;;  %v421_v3 = vmul.f32 %v384_v25, %v364_v20  ;;  %v4385_v5 = vld [vmem:[#allocation2 + $0x29] sm:$0xff]  ;;  %v4387_v1 = vld [vmem:[#allocation2 + $0x21] sm:$0xff] }
  0x92   : > { %v399_v16 = vpop.permute.xlu1 %398  ;;  %v389_v22 = vpop.permute.xlu0 %388 }
  0x93   : > { %v424_v24 = vmul.f32 %v399_v16, %v4376_v19  ;;  %v422_v2 = vmul.f32 %v389_v22, %v4378_v18  ;;  %1786 = vperm.xlu1 %3844, %v3942_v4   ;;  %1781 = vperm.xlu0 %3843, %v3910_v0   ;;  %v529_v4 = vsel %vm447_vm1, %v4037_v23, 0  ;;  %v4396_v0 = vld [vmem:[#allocation2 + $0x39] sm:$0xff]  ;;  %v4398_v16 = vld [vmem:[#allocation2 + $0x31] sm:$0xff] }
  0x95   : > { %v430_v63 = vpack.c.bf16 %v424_v24, %v423_v17  ;;  %v429_v62 = vpack.c.bf16 %v422_v2, %v421_v3 }
  0x96   : > { %v409_v61 = vpop.permute.xlu1 %408  ;;  %v404_v60 = vpop.permute.xlu0 %403 }
  0x97   : > { %v426_v32 = vmul.f32 %v409_v61, %v4385_v5  ;;  %v425_v20 = vmul.f32 %v404_v60, %v4387_v1  ;;  %1796 = vperm.xlu1 %3844, %v3954_v6   ;;  %1791 = vperm.xlu0 %3843, %v3959_v7   ;;  %v3228_v60 = vld [vmem:[%s5077_s2 + $0x8] sm:$0xf] }
  0x98   : > { %3518 = vmatprep.mubr.msk.bf16.mxu0 %vm253_vm0, %v429_v62  ;;  %v4409_v62 = vld [vmem:[#allocation2 + $0x8] sm:$0xff] }
  0x99   : > { %v431_v3 = vpack.c.bf16 %v426_v32, %v425_v20  ;;  %3519 = vmatmul.mubr.msk.bf16.vlgmr.msra.gmra.mrb[0].mxu0 %vm253_vm0, %v430_v63  ;;  %v295_v63 = vld [vmem:[#allocation2] sm:$0xff] }
  0x9a   : > { %3527 = vmatpush3.bf16.msra.mxu0 %v529_v4  ;;  %v419_v6 = vpop.permute.xlu1 %418  ;;  %v414_v61 = vpop.permute.xlu0 %413 }
  0x9b   : > { %v428_v7 = vmul.f32 %v419_v6, %v4396_v0  ;;  %v427_v23 = vmul.f32 %v414_v61, %v4398_v16  ;;  %1806 = vperm.xlu1 %3844, %v3968_v8   ;;  %1801 = vperm.xlu0 %3843, %v3973_v9   ;;  %v4415_v8 = vld [vmem:[#allocation2 + $0x18] sm:$0xff]  ;;  %v4417_v9 = vld [vmem:[#allocation2 + $0x10] sm:$0xff] }
  0x9c   : > { %3522 = vmatprep.mubr.msk.bf16.mxu0 %vm253_vm0, %v431_v3  ;;  %3826 = vmatprep.subr.msk.bf16.mxu0 %vm447_vm1, %v3228_v60 }
  0x9d   : > { %v432_v2 = vpack.c.bf16 %v428_v7, %v427_v23 }
  0x9e   : > { %v319_v17 = vpop.permute.xlu1 %318  ;;  %v314_v22 = vpop.permute.xlu0 %313 }
  0x9f   : > { %v352_v24 = vmul.f32 %v319_v17, %v4409_v62  ;;  %v351_v25 = vmul.f32 %v314_v22, %v295_v63  ;;  %1706 = vperm.xlu1 %3844, %v3984_v10   ;;  %1701 = vperm.xlu0 %3843, %v3989_v11   ;;  %v4425_v10 = vld [vmem:[#allocation2 + $0x28] sm:$0xff]  ;;  %v4427_v11 = vld [vmem:[#allocation2 + $0x20] sm:$0xff]  ;;  %v4436_v17 = vld [vmem:[#allocation2 + $0x30] sm:$0xff] }
  0xa1   : > { %v359_v32 = vpack.c.bf16 %v352_v24, %v351_v25  ;;  %3523 = vmatmul.mubr.msk.bf16.gmra.mrb[4].mxu0 %vm253_vm0, %v432_v2  ;;  %v3241_v24 = vld [vmem:[%s5077_s2 + $0xc] sm:$0xf] }
  0xa2   : > { %v329_v20 = vpop.permute.xlu1 %328  ;;  %v324_v4 = vpop.permute.xlu0 %323 }
  0xa3   : > { %v354_v3 = vmul.f32 %v329_v20, %v4415_v8  ;;  %v353_v6 = vmul.f32 %v324_v4, %v4417_v9  ;;  %1716 = vperm.xlu1 %3844, %v4002_v12   ;;  %1711 = vperm.xlu0 %3843, %v4007_v13   ;;  %v680_v12 = vsel %vm447_vm1, %v3228_v60, 0  ;;  %v4434_v13 = vld [vmem:[#allocation2 + $0x38] sm:$0xff]  ;;  %v4447_v60 = vld [vmem:[#allocation2 + $0xa] sm:$0xff]  ;;  %v596_v20 = vld [vmem:[#allocation2 + $0x2] sm:$0xff] }
  0xa4   : > { %3528 = vmatprep.mubr.msk.bf16.mxu0 %vm253_vm0, %v359_v32 }
  0xa5   : > { %v360_v61 = vpack.c.bf16 %v354_v3, %v353_v6 }
  0xa6   : > { %v339_v7 = vpop.permute.xlu1 %338  ;;  %v334_v23 = vpop.permute.xlu0 %333 }
  0xa7   : > { %v356_v63 = vmul.f32 %v339_v7, %v4425_v10  ;;  %v355_v2 = vmul.f32 %v334_v23, %v4427_v11  ;;  %1726 = vperm.xlu1 %3844, %v4012_v14   ;;  %1721 = vperm.xlu0 %3843, %v4017_v15  }
  0xa9   : > { %v361_v22 = vpack.c.bf16 %v356_v63, %v355_v2  ;;  %3529 = vmatmul.mubr.msk.bf16.vlgmr.msra.gmra.mrb[0].mxu0 %vm253_vm0, %v360_v61 }
  0xaa   : > { %3537 = vmatpush3.bf16.msra.mxu0 %v680_v12  ;;  %v349_v25 = vpop.permute.xlu1 %348  ;;  %v344_v32 = vpop.permute.xlu0 %343 }
  0xab   : > { %v358_v14 = vmul.f32 %v349_v25, %v4434_v13  ;;  %v357_v15 = vmul.f32 %v344_v32, %v4436_v17  ;;  %1736 = vperm.xlu1 %3844, %v4046_v26   ;;  %1731 = vperm.xlu0 %3843, %v4051_v27   ;;  %v4453_v26 = vld [vmem:[#allocation2 + $0x1a] sm:$0xff]  ;;  %v4455_v27 = vld [vmem:[#allocation2 + $0x12] sm:$0xff] }
  0xac   : > { %3532 = vmatprep.mubr.msk.bf16.mxu0 %vm253_vm0, %v361_v22  ;;  %3827 = vmatprep.subr.msk.bf16.mxu0 %vm447_vm1, %v3241_v24 }
  0xad   : > { %v362_v4 = vpack.c.bf16 %v358_v14, %v357_v15 }
  0xae   : > { %v621_v3 = vpop.permute.xlu1 %620  ;;  %v616_v6 = vpop.permute.xlu0 %615 }
  0xaf   : > { %v654_v61 = vmul.f32 %v621_v3, %v4447_v60  ;;  %v653_v7 = vmul.f32 %v616_v6, %v596_v20  ;;  %2013 = vperm.xlu1 %3844, %v4064_v28   ;;  %2008 = vperm.xlu0 %3843, %v4069_v29   ;;  %v4463_v28 = vld [vmem:[#allocation2 + $0x2a] sm:$0xff]  ;;  %v4465_v29 = vld [vmem:[#allocation2 + $0x22] sm:$0xff] }
  0xb0   : > { %v3246_v6 = vld [vmem:[%s5077_s2 + $0x10] sm:$0xf] }
  0xb1   : > { %v661_v23 = vpack.c.bf16 %v654_v61, %v653_v7  ;;  %3533 = vmatmul.mubr.msk.bf16.gmra.mrb[4].mxu0 %vm253_vm0, %v362_v4  ;;  %v4474_v4 = vld [vmem:[#allocation2 + $0x32] sm:$0xff] }
  0xb2   : > { %v631_v63 = vpop.permute.xlu1 %630  ;;  %v626_v2 = vpop.permute.xlu0 %625 }
  0xb3   : > { %v656_v12 = vmul.f32 %v631_v63, %v4453_v26  ;;  %v655_v22 = vmul.f32 %v626_v2, %v4455_v27  ;;  %2023 = vperm.xlu1 %3844, %v4076_v30   ;;  %2018 = vperm.xlu0 %3843, %v4081_v31   ;;  %v839_v30 = vsel %vm447_vm1, %v3241_v24, 0  ;;  %v4472_v31 = vld [vmem:[#allocation2 + $0x3a] sm:$0xff] }
  0xb4   : > { %3538 = vmatprep.mubr.msk.bf16.mxu0 %vm253_vm0, %v661_v23 }
  0xb5   : > { %v662_v25 = vpack.c.bf16 %v656_v12, %v655_v22 }
  0xb6   : > { %v641_v32 = vpop.permute.xlu1 %640  ;;  %v636_v14 = vpop.permute.xlu0 %635 }
  0xb7   : > { %v658_v15 = vmul.f32 %v641_v32, %v4463_v28  ;;  %v657_v20 = vmul.f32 %v636_v14, %v4465_v29  ;;  %2033 = vperm.xlu1 %3844, %v4089_v33   ;;  %2028 = vperm.xlu0 %3843, %v4094_v34  }
  0xb9   : > { %v663_v3 = vpack.c.bf16 %v658_v15, %v657_v20  ;;  %3539 = vmatmul.mubr.msk.bf16.vlgmr.msra.gmra.mrb[0].mxu0 %vm253_vm0, %v662_v25  ;;  %v941_v20 = vsel %vm447_vm1, %v3246_v6, 0 }
  0xba   : > { %3547 = vmatpush3.bf16.msra.mxu0 %v839_v30  ;;  %v651_v61 = vpop.permute.xlu1 %650  ;;  %v646_v7 = vpop.permute.xlu0 %645  ;;  %v4501_v30 = vld [vmem:[#allocation2 + $0x40] sm:$0xff] }
  0xbb   : > { %v660_v33 = vmul.f32 %v651_v61, %v4472_v31  ;;  %v659_v34 = vmul.f32 %v646_v7, %v4474_v4  ;;  %2043 = vperm.xlu1 %3844, %v4102_v35   ;;  %2038 = vperm.xlu0 %3843, %v4107_v36  }
  0xbc   : > { %3542 = vmatprep.mubr.msk.bf16.mxu0 %vm253_vm0, %v663_v3  ;;  %3828 = vmatprep.subr.msk.bf16.mxu0 %vm447_vm1, %v3246_v6 }
  0xbd   : > { %v664_v24 = vpack.c.bf16 %v660_v33, %v659_v34  ;;  %v922_v34 = vpack.c.bf16 %v4372_v21, %v4378_v18 }
  0xbe   : > { %v780_v23 = vpop.permute.xlu1 %779  ;;  %v775_v63 = vpop.permute.xlu0 %774 }
  0xbf   : > { %v813_v2 = vmul.f32 %v780_v23, %v4417_v9  ;;  %v812_v12 = vmul.f32 %v775_v63, %v4409_v62  ;;  %2175 = vperm.xlu1 %3844, %v4114_v37   ;;  %2170 = vperm.xlu0 %3843, %v4119_v38  }
  0xc1   : > { %v820_v22 = vpack.c.bf16 %v813_v2, %v812_v12  ;;  %3543 = vmatmul.mubr.msk.bf16.gmra.mrb[4].mxu0 %vm253_vm0, %v664_v24  ;;  %v4533_v2 = vld [vmem:[#allocation2 + $0x41] sm:$0xff] }
  0xc2   : > { %v790_v35 = vpop.permute.xlu1 %789  ;;  %v785_v36 = vpop.permute.xlu0 %784  ;;  %v925_v12 = vpack.c.bf16 %v4533_v2, %v4396_v0 }
  0xc3   : > { %v815_v25 = vmul.f32 %v790_v35, %v4427_v11  ;;  %v814_v32 = vmul.f32 %v785_v36, %v4415_v8  ;;  %2185 = vperm.xlu1 %3844, %v4126_v39   ;;  %2180 = vperm.xlu0 %3843, %v4131_v40   ;;  %v3259_v40 = vld [vmem:[%s5077_s2 + $0x14] sm:$0xf] }
  0xc4   : > { %3548 = vmatprep.mubr.msk.bf16.mxu0 %vm253_vm0, %v820_v22 }
  0xc5   : > { %v821_v62 = vpack.c.bf16 %v815_v25, %v814_v32 }
  0xc6   : > { %v800_v14 = vpop.permute.xlu1 %799  ;;  %v795_v37 = vpop.permute.xlu0 %794 }
  0xc7   : > { %v817_v38 = vmul.f32 %v800_v14, %v4436_v17  ;;  %v816_v15 = vmul.f32 %v795_v37, %v4425_v10  ;;  %2195 = vperm.xlu1 %3844, %v4138_v41   ;;  %2190 = vperm.xlu0 %3843, %v4143_v42  }
  0xc9   : > { %v822_v39 = vpack.c.bf16 %v817_v38, %v816_v15  ;;  %3549 = vmatmul.mubr.msk.bf16.vlgmr.msra.gmra.mrb[0].mxu0 %vm253_vm0, %v821_v62 }
  0xca   : > { %3557 = vmatpush3.bf16.msra.mxu0 %v941_v20  ;;  %v810_v3 = vpop.permute.xlu1 %809  ;;  %v805_v61 = vpop.permute.xlu0 %804 }
  0xcb   : > { %v819_v7 = vmul.f32 %v810_v3, %v4501_v30  ;;  %v818_v41 = vmul.f32 %v805_v61, %v4434_v13  ;;  %2205 = vperm.xlu1 %3844, %v4150_v43   ;;  %2200 = vperm.xlu0 %3843, %v4155_v44   ;;  %v923_v44 = vpack.c.bf16 %v4387_v1, %v4376_v19  ;;  %v3285_v3 = vld [vmem:[%s5077_s2 + $0x1c] sm:$0xf]  ;;  %v5124_v61 = vld [vmem:[#allocation5_spill] sm:$0xff] }
  0xcc   : > { %3552 = vmatprep.mubr.msk.bf16.mxu0 %vm253_vm0, %v822_v39  ;;  %3829 = vmatprep.subr.msk.bf16.mxu0 %vm447_vm1, %v3259_v40 }
  0xcd   : > { %v823_v42 = vpack.c.bf16 %v819_v7, %v818_v41 }
  0xce   : > { %v1041_v6 = vpop.permute.xlu1 %1040  ;;  %v1036_v33 = vpop.permute.xlu0 %1035 }
  0xcf   : > { %2443 = vperm.xlu1 %3844, %v4162_v45   ;;  %2438 = vperm.xlu0 %3843, %v4167_v46   ;;  %v924_v45 = vpack.c.bf16 %v4398_v16, %v4385_v5  ;;  %v1100_v46 = vsel %vm447_vm1, %v3259_v40, 0 }
  0xd1   : > { %3553 = vmatmul.mubr.msk.bf16.gmra.mrb[4].mxu0 %vm253_vm0, %v823_v42 }
  0xd2   : > { %v1051_v24 = vpop.permute.xlu1 %1050  ;;  %v1046_v43 = vpop.permute.xlu0 %1045  ;;  %3558 = vmatprep.mubr.msk.bf16.mxu0 %vm253_vm0, %v922_v34 }
  0xd3   : > { %2453 = vperm.xlu1 %3844, %v4174_v47   ;;  %2448 = vperm.xlu0 %3843, %v4179_v48   ;;  %v3272_v47 = vld [vmem:[%s5077_s2 + $0x18] sm:$0xf]  ;;  %v1075_v14 = vmul.f32 %v1046_v43, %v4453_v26  ;;  %v5127_v43 = vld [vmem:[#allocation8_spill] sm:$0xff] }
  0xd6   : > { %v1061_v23 = vpop.permute.xlu1 %1060  ;;  %v1056_v63 = vpop.permute.xlu0 %1055 }
  0xd7   : > { %2463 = vperm.xlu1 %3844, %v4186_v49   ;;  %2458 = vperm.xlu0 %3843, %v4191_v50   ;;  %v1074_v49 = vmul.f32 %v1041_v6, %v4455_v27  ;;  %v1073_v50 = vmul.f32 %v1036_v33, %v4447_v60  ;;  %v1076_v60 = vmul.f32 %v1051_v24, %v4465_v29  ;;  %v5125_v6 = vld [vmem:[#allocation6_spill] sm:$0xff]  ;;  %v5126_v33 = vld [vmem:[#allocation7_spill] sm:$0xff] }
  0xd9   : > { %3559 = vmatmul.mubr.msk.bf16.vlgmr.msra.gmra.mrb[0].mxu0 %vm253_vm0, %v923_v44  ;;  %v1082_v20 = vpack.c.bf16 %v1076_v60, %v1075_v14  ;;  %v5129_v44 = vmov 0.0   ;;  %v5134_v60 = vld [vmem:[#allocation14_spill] sm:$0xff]  ;;  %v5136_v14 = vld [vmem:[#allocation16_spill] sm:$0xff] }
  0xda   : > { %3567 = vmatpush3.bf16.msra.mxu0 %v1100_v46  ;;  %v1071_v48 = vpop.permute.xlu1 %1070  ;;  %v1066_v18 = vpop.permute.xlu0 %1065  ;;  %3562 = vmatprep.mubr.msk.bf16.mxu0 %vm253_vm0, %v924_v45  ;;  %278 = vst.msk [vmem:[#allocation3 + $0x50] sm:$0x3] %vm277_vm4, %v5129_v44  ;;  %v1418_v45 = vsel %vm447_vm1, %v3285_v3, 0  ;;  %v1182_v46 = vld [vmem:[#allocation2 + $0x48] sm:$0xff] }
  0xdb   : > { %2473 = vperm.xlu1 %3844, %v4198_v51   ;;  %2468 = vperm.xlu0 %3843, %v4203_v52   ;;  %v1081_v51 = vpack.c.bf16 %v1074_v49, %v1073_v50 }
  0xdc   : > { %3830 = vmatprep.subr.msk.bf16.mxu0 %vm447_vm1, %v3272_v47 }
  0xde   : > { %v1200_v22 = vpop.permute.xlu1 %1199  ;;  %v1195_v35 = vpop.permute.xlu0 %1194 }
  0xdf   : > { %v1233_v36 = vmul.f32 %v1200_v22, %v4415_v8  ;;  %v1232_v25 = vmul.f32 %v1195_v35, %v4417_v9  ;;  %2605 = vperm.xlu1 %3844, %v4210_v53   ;;  %2600 = vperm.xlu0 %3843, %v4215_v54   ;;  %v1078_v53 = vmul.f32 %v1061_v23, %v4474_v4  ;;  %v5130_v23 = vld [vmem:[#allocation10_spill] sm:$0xff]  ;;  %v5133_v22 = vld [vmem:[#allocation13_spill] sm:$0xff] }
  0xe0   : > { %v1077_v54 = vmul.f32 %v1056_v63, %v4463_v28  ;;  %v5131_v63 = vld [vmem:[#allocation11_spill] sm:$0xff] }
  0xe1   : > { %v1240_v52 = vpack.c.bf16 %v1233_v36, %v1232_v25  ;;  %3563 = vmatmul.mubr.msk.bf16.gmra.mrb[4].mxu0 %vm253_vm0, %v925_v12  ;;  %v5132_v12 = vld [vmem:[#allocation12_spill] sm:$0xff] }
  0xe2   : > { %3568 = vmatprep.mubr.msk.bf16.mxu0 %vm253_vm0, %v1081_v51  ;;  %v1210_v32 = vpop.permute.xlu1 %1209  ;;  %v1205_v62 = vpop.permute.xlu0 %1204 }
  0xe3   : > { %v1235_v8 = vmul.f32 %v1210_v32, %v4425_v10  ;;  %v1234_v9 = vmul.f32 %v1205_v62, %v4427_v11  ;;  %2615 = vperm.xlu1 %3844, %v4222_v55   ;;  %2610 = vperm.xlu0 %3843, %v4227_v56   ;;  %v1259_v55 = vsel %vm447_vm1, %v3272_v47, 0  ;;  %v1083_v10 = vpack.c.bf16 %v1078_v53, %v1077_v54  ;;  %v4561_v56 = vld [vmem:[#allocation2 + $0x42] sm:$0xff] }
  0xe4   : > { %v5135_v32 = vld [vmem:[#allocation15_spill] sm:$0xff] }
  0xe5   : > { %v1241_v37 = vpack.c.bf16 %v1235_v8, %v1234_v9 }
  0xe6   : > { %v1220_v38 = vpop.permute.xlu1 %1219  ;;  %v1215_v15 = vpop.permute.xlu0 %1214 }
  0xe7   : > { %v1237_v39 = vmul.f32 %v1220_v38, %v4434_v13  ;;  %v1236_v40 = vmul.f32 %v1215_v15, %v4436_v17  ;;  %2625 = vperm.xlu1 %3844, %v4234_v57   ;;  %2620 = vperm.xlu0 %3843, %v4239_v58   ;;  %v1080_v57 = vmul.f32 %v1071_v48, %v4561_v56  ;;  %v5138_v38 = vld [vmem:[#allocation18_spill] sm:$0xff]  ;;  %v5139_v15 = vld [vmem:[#allocation19_spill] sm:$0xff] }
  0xe8   : > { %v1079_v58 = vmul.f32 %v1066_v18, %v4472_v31  ;;  %v3298_v18 = vld [vmem:[%s5077_s2 + $0x20] sm:$0xf] }
  0xe9   : > { %v1242_v11 = vpack.c.bf16 %v1237_v39, %v1236_v40  ;;  %3569 = vmatmul.mubr.msk.bf16.vlgmr.msra.gmra.mrb[0].mxu0 %vm253_vm0, %v1082_v20  ;;  %v1577_v20 = vsel %vm447_vm1, %v3298_v18, 0  ;;  %v1341_v39 = vld [vmem:[#allocation2 + $0x49] sm:$0xff] }
  0xea   : > { %3577 = vmatpush3.bf16.msra.mxu0 %v1259_v55  ;;  %3572 = vmatprep.mubr.msk.bf16.mxu0 %vm253_vm0, %v1083_v10  ;;  %v1230_v13 = vpop.permute.xlu1 %1229  ;;  %v1225_v17 = vpop.permute.xlu0 %1224  ;;  %v1084_v42 = vpack.c.bf16 %v1080_v57, %v1079_v58  ;;  %v5140_v55 = vld [vmem:[#allocation20_spill] sm:$0xff]  ;;  %v5141_v10 = vld [vmem:[#allocation21_spill] sm:$0xff] }
  0xeb   : > { %2635 = vperm.xlu1 %3844, %v4246_v59   ;;  %2630 = vperm.xlu0 %3843, %v5124_v61   ;;  %v5128_v59 = vld [vmem:[#allocation9_spill] sm:$0xff]  ;;  %v1239_v49 = vmul.f32 %v1230_v13, %v1182_v46  ;;  %v1238_v50 = vmul.f32 %v1225_v17, %v4501_v30 }
  0xec   : > { %3831 = vmatprep.subr.msk.bf16.mxu0 %vm447_vm1, %v3285_v3 }
  0xed   : > { %v1243_v25 = vpack.c.bf16 %v1239_v49, %v1238_v50  ;;  %v4656_v49 = vld [vmem:[%s5079_s4] sm:$0xff]  }
  0xee   : > { %v1359_v7 = vpop.permute.xlu1 %1358  ;;  %v1354_v41 = vpop.permute.xlu0 %1353 }
  0xef   : > { %2767 = vperm.xlu1 %3844, %v5125_v6   ;;  %2762 = vperm.xlu0 %3843, %v5126_v33   ;;  %v1392_v35 = vmul.f32 %v1359_v7, %v4376_v19  ;;  %v1391_v36 = vmul.f32 %v1354_v41, %v4372_v21  ;;  %v5137_v21 = vld [vmem:[#allocation17_spill] sm:$0xff] }
  0xf1   : > { %3573 = vmatmul.mubr.msk.bf16.gmra.mrb[4].mxu0 %vm253_vm0, %v1084_v42  ;;  %v1399_v62 = vpack.c.bf16 %v1392_v35, %v1391_v36 }
  0xf2   : > { %3578 = vmatprep.mubr.msk.bf16.mxu0 %vm253_vm0, %v1240_v52  ;;  %v1369_v34 = vpop.permute.xlu1 %1368  ;;  %v1364_v24 = vpop.permute.xlu0 %1363 }
  0xf3   : > { %2777 = vperm.xlu1 %3844, %v5127_v43   ;;  %2772 = vperm.xlu0 %3843, %v5128_v59   ;;  %v1394_v30 = vmul.f32 %v1369_v34, %v4385_v5  ;;  %v1393_v19 = vmul.f32 %v1364_v24, %v4387_v1 }
  0xf6   : > { %v1379_v47 = vpop.permute.xlu1 %1378  ;;  %v1374_v48 = vpop.permute.xlu0 %1373 }
  0xf7   : > { %2787 = vperm.xlu1 %3844, %v5130_v23   ;;  %2782 = vperm.xlu0 %3843, %v5131_v63   ;;  %v1396_v8 = vmul.f32 %v1379_v47, %v4396_v0  ;;  %v1395_v9 = vmul.f32 %v1374_v48, %v4398_v16  ;;  %v3845_v48 = vld [vmem:[%s5079_s4 + $0x8] sm:$0xff]  }
  0xf8   : > { %3606 = vmatprep.subr.bf16.mxu1 %v3845_v48 }
  0xf9   : > { %3579 = vmatmul.mubr.msk.bf16.vlgmr.msra.gmra.mrb[0].mxu0 %vm253_vm0, %v1241_v37  ;;  %v1400_v37 = vpack.c.bf16 %v1394_v30, %v1393_v19  ;;  %v1401_v5 = vpack.c.bf16 %v1396_v8, %v1395_v9  ;;  %3607 = vmatpush3.bf16.msra.mxu1 %v3845_v48 }
  0xfa   : > { %3587 = vmatpush3.bf16.msra.mxu0 %v1418_v45  ;;  %3582 = vmatprep.mubr.msk.bf16.mxu0 %vm253_vm0, %v1242_v11  ;;  %v1389_v51 = vpop.permute.xlu1 %1388  ;;  %v1384_v52 = vpop.permute.xlu0 %1383 }
  0xfb   : > { %2797 = vperm.xlu1 %3844, %v5132_v12   ;;  %2792 = vperm.xlu0 %3843, %v5133_v22   ;;  %v1398_v1 = vmul.f32 %v1389_v51, %v1341_v39  ;;  %v1397_v0 = vmul.f32 %v1384_v52, %v4533_v2 }
  0xfc   : > { %3832 = vmatprep.subr.msk.bf16.mxu0 %vm447_vm1, %v3298_v18  ;;  %3616 = vmatprep.subr.bf16.mxu1 %v4656_v49 }
  0xfd   : > { %v1402_v13 = vpack.c.bf16 %v1398_v1, %v1397_v0 }
  0xfe   : > { %v1518_v53 = vpop.permute.xlu1 %1517  ;;  %v1513_v54 = vpop.permute.xlu0 %1512 }
  0xff   : > { %2929 = vperm.xlu1 %3844, %v5134_v60   ;;  %2924 = vperm.xlu0 %3843, %v5135_v32   ;;  %v1551_v11 = vmul.f32 %v1518_v53, %v4453_v26  ;;  %v1550_v3 = vmul.f32 %v1513_v54, %v4455_v27  ;;  %v1500_v27 = vld [vmem:[#allocation2 + $0x4a] sm:$0xff] }
 0x101   : > { %3583 = vmatmul.mubr.msk.bf16.gmra.mrb[4].mxu0 %vm253_vm0, %v1243_v25  ;;  %v1558_v17 = vpack.c.bf16 %v1551_v11, %v1550_v3 }
 0x102   : > { %3588 = vmatprep.mubr.msk.bf16.mxu0 %vm253_vm0, %v1399_v62  ;;  %v1528_v16 = vpop.permute.xlu1 %1527  ;;  %v1523_v40 = vpop.permute.xlu0 %1522 }
 0x103   : > { %2939 = vperm.xlu1 %3844, %v5136_v14   ;;  %2934 = vperm.xlu0 %3843, %v5137_v21   ;;  %v1553_v2 = vmul.f32 %v1528_v16, %v4463_v28  ;;  %v1552_v61 = vmul.f32 %v1523_v40, %v4465_v29 }
 0x105   : > { %v1559_v42 = vpack.c.bf16 %v1553_v2, %v1552_v61 }
 0x106   : > { %v1538_v57 = vpop.permute.xlu1 %1537  ;;  %v1533_v58 = vpop.permute.xlu0 %1532 }
 0x107   : > { %2949 = vperm.xlu1 %3844, %v5138_v38   ;;  %2944 = vperm.xlu0 %3843, %v5139_v15   ;;  %v1555_v7 = vmul.f32 %v1538_v57, %v4472_v31  ;;  %v1554_v41 = vmul.f32 %v1533_v58, %v4474_v4  ;;  %v3303_v58 = vld [vmem:[%s5078_s3] ss:$0 sm:$0xff] }
 0x109   : > { %3589 = vmatmul.mubr.msk.bf16.vlgmr.msra.gmra.mrb[0].mxu0 %vm253_vm0, %v1400_v37  ;;  %v1560_v26 = vpack.c.bf16 %v1555_v7, %v1554_v41 }
 0x10a   : > { %3597 = vmatpush3.bf16.msra.mxu0 %v1577_v20  ;;  %3592 = vmatprep.mubr.msk.bf16.mxu0 %vm253_vm0, %v1401_v5  ;;  %v1548_v6 = vpop.permute.xlu1 %1547  ;;  %v1543_v33 = vpop.permute.xlu0 %1542 }
 0x10b   : > { %2959 = vperm.xlu1 %3844, %v5140_v55   ;;  %2954 = vperm.xlu0 %3843, %v5141_v10   ;;  %v1557_v34 = vmul.f32 %v1548_v6, %v1500_v27  ;;  %v1556_v24 = vmul.f32 %v1543_v33, %v4561_v56 }
 0x10d   : > { %v1561_v43 = vpack.c.bf16 %v1557_v34, %v1556_v24 }
 0x10e   : > { %v4624_v28 = vpop.permute.xlu0 %1771  ;;  %v4626_v29 = vpop.permute.xlu1 %1776 }
 0x111   : > { %3593 = vmatmul.mubr.msk.bf16.gmra.mrb[4].mxu0 %vm253_vm0, %v1402_v13 }
 0x112   : > { %3598 = vmatprep.mubr.msk.bf16.mxu0 %vm253_vm0, %v1558_v17  ;;  %v4628_v31 = vpop.permute.xlu0 %1781  ;;  %v4630_v4 = vpop.permute.xlu1 %1786 }
 0x116   : > { %v4632_v59 = vpop.permute.xlu0 %1791  ;;  %v4634_v44 = vpop.permute.xlu1 %1796 }
 0x119   : > { %3599 = vmatmul.mubr.msk.bf16.vlgmr.msra.gmra.mrb[0].mxu0 %vm253_vm0, %v1559_v42 }
 0x11a   : > { %3602 = vmatprep.mubr.msk.bf16.mxu0 %vm253_vm0, %v1560_v26  ;;  %v4636_v23 = vpop.permute.xlu0 %1801  ;;  %v4638_v63 = vpop.permute.xlu1 %1806 }
 0x11e   : > { %v4640_v56 = vpop.permute.xlu0 %1701  ;;  %v4642_v45 = vpop.permute.xlu1 %1706 }
 0x121   : > { %3603 = vmatmul.mubr.msk.bf16.gmra.mrb[4].mxu0 %vm253_vm0, %v1561_v43 }
 0x122   : > { %v4644_v46 = vpop.permute.xlu0 %1711  ;;  %v4646_v47 = vpop.permute.xlu1 %1716 }
 0x126   : > { %v4651_v18 = vpop.permute.xlu0 %1721  ;;  %v4658_v50 = vpop.permute.xlu1 %1726 }
 0x12a   : > { %v4661_v12 = vpop.permute.xlu0 %1731  ;;  %v4663_v22 = vpop.permute.xlu1 %1736 }
 0x12e   : > { %v4665_v35 = vpop.permute.xlu0 %2008  ;;  %v4667_v36 = vpop.permute.xlu1 %2013 }
 0x132   : > { %v4669_v25 = vpop.permute.xlu0 %2018  ;;  %v4671_v51 = vpop.permute.xlu1 %2023 }
 0x136   : > { %v4673_v52 = vpop.permute.xlu0 %2028  ;;  %v4675_v60 = vpop.permute.xlu1 %2033 }
 0x13a   : > { %v4677_v32 = vpop.permute.xlu0 %2038  ;;  %v4679_v62 = vpop.permute.xlu1 %2043 }
 0x13e   : > { %v4681_v30 = vpop.permute.xlu0 %2170  ;;  %v4683_v19 = vpop.permute.xlu1 %2175 }
 0x142   : > { %v4685_v14 = vpop.permute.xlu0 %2180  ;;  %v4687_v21 = vpop.permute.xlu1 %2185 }
 0x146   : > { %v4689_v8 = vpop.permute.xlu0 %2190  ;;  %v4691_v9 = vpop.permute.xlu1 %2195 }
 0x14a   : > { %v4693_v53 = vpop.permute.xlu0 %2200  ;;  %v4695_v54 = vpop.permute.xlu1 %2205 }
 0x14e   : > { %v4697_v37 = vpop.permute.xlu0 %2438  ;;  %v4699_v38 = vpop.permute.xlu1 %2443 }
 0x14f   : > { %5142 = vst [vmem:[#allocation5_spill] sm:$0xff] %v4699_v38 }
 0x152   : > { %v4701_v15 = vpop.permute.xlu0 %2448  ;;  %v4703_v20 = vpop.permute.xlu1 %2453 }
 0x153   : > { %5143 = vst [vmem:[#allocation6_spill] sm:$0xff] %v4701_v15  ;;  %5144 = vst [vmem:[#allocation7_spill] sm:$0xff] %v4703_v20 }
 0x156   : > { %v4705_v5 = vpop.permute.xlu0 %2458  ;;  %v4707_v39 = vpop.permute.xlu1 %2463 }
 0x157   : > { %5145 = vst [vmem:[#allocation8_spill] sm:$0xff] %v4705_v5  ;;  %5146 = vst [vmem:[#allocation9_spill] sm:$0xff] %v4707_v39 }
 0x15a   : > { %v4709_v1 = vpop.permute.xlu0 %2468  ;;  %v4711_v0 = vpop.permute.xlu1 %2473 }
 0x15b   : > { %5147 = vst [vmem:[#allocation10_spill] sm:$0xff] %v4709_v1  ;;  %5148 = vst [vmem:[#allocation11_spill] sm:$0xff] %v4711_v0 }
 0x15e   : > { %v4713_v16 = vpop.permute.xlu0 %2600  ;;  %v4715_v40 = vpop.permute.xlu1 %2605 }
 0x162   : > { %v4717_v55 = vpop.permute.xlu0 %2610  ;;  %v4719_v10 = vpop.permute.xlu1 %2615 }
 0x166   : > { %v4721_v11 = vpop.permute.xlu0 %2620  ;;  %v4723_v3 = vpop.permute.xlu1 %2625 }
 0x16a   : > { %v4725_v13 = vpop.permute.xlu0 %2630  ;;  %v4727_v17 = vpop.permute.xlu1 %2635 }
 0x16b   : > { %5149 = vst [vmem:[#allocation12_spill] sm:$0xff] %v4725_v13  ;;  %5150 = vst [vmem:[#allocation13_spill] sm:$0xff] %v4727_v17 }
 0x16e   : > { %v4729_v57 = vpop.permute.xlu0 %2762  ;;  %v4734_v2 = vpop.permute.xlu1 %2767 }
 0x172   : > { %v4736_v34 = vpop.permute.xlu0 %2772  ;;  %v4738_v48 = vpop.permute.xlu1 %2777 }
 0x176   : > { %v4746_v1 = vpop.permute.xlu1 %2787 }
 0x1ec   : > { %v3600_v61 = vpop.f32.mrb[0].mxu0 }
 0x1ed   : > { %v1661_v7 = vadd.f32 %v3600_v61, %v3303_v58  ;;  %v1613_v41 = vpop.f32.mrb[1].mxu0 }
 0x1ee   : > { %v1659_v42 = vadd.f32 %v3303_v58, %v1613_v41  ;;  %v3601_v26 = vpop.f32.mrb[2].mxu0 }
 0x1ef   : > { %v1669_v6 = vmax.f32 %v1661_v7, 0.0  ;;  %v1662_v27 = vadd.f32 %v3601_v26, %v3303_v58  ;;  %v1616_v33 = vpop.f32.mrb[3].mxu0  ;;  %v4744_v26 = vpop.permute.xlu0 %2782 }
 0x1f0   : > { %v1667_v24 = vmax.f32 %v1659_v42, 0.0  ;;  %v1660_v43 = vadd.f32 %v3303_v58, %v1616_v33  ;;  %v1753_v33 = vld [vmem:[#allocation3 + $0x1] sm:$0xff] }
 0x1f1   : > { %1677 = vst.msk [vmem:[#allocation3 + $0x19] sm:$0xff] %vm266_vm3, %v1669_v6  ;;  %v1670_v17 = vmax.f32 %v1662_v27, 0.0 }
 0x1f2   : > { %1675 = vst.msk [vmem:[#allocation3 + $0x9] sm:$0xff] %vm266_vm3, %v1667_v24  ;;  %v1668_v13 = vmax.f32 %v1660_v43, 0.0 }
 0x1f3   : > { %1678 = vst.msk [vmem:[#allocation3 + $0x21] sm:$0xff] %vm266_vm3, %v1670_v17 }
 0x1f4   : > { %1676 = vst.msk [vmem:[#allocation3 + $0x11] sm:$0xff] %vm266_vm3, %v1668_v13  ;;  %v3604_v61 = vpop.f32.mrb[4].mxu0 }
 0x1f5   : > { %v1665_v7 = vadd.f32 %v3604_v61, %v3303_v58  ;;  %v1629_v41 = vpop.f32.mrb[5].mxu0  ;;  %v1809_v61 = vmul.f32 %v4624_v28, %v1753_v33 }
 0x1f6   : > { %v1663_v0 = vadd.f32 %v3303_v58, %v1629_v41  ;;  %v3605_v42 = vpop.f32.mrb[6].mxu0 }
 0x1f7   : > { %v1673_v15 = vmax.f32 %v1665_v7, 0.0  ;;  %v1666_v6 = vadd.f32 %v3605_v42, %v3303_v58  ;;  %v1632_v27 = vpop.f32.mrb[7].mxu0  ;;  %v4773_v42 = vld [vmem:[%s5079_s4 + $0x10] sm:$0xff]  }
 0x1f8   : > { %v1671_v39 = vmax.f32 %v1663_v0, 0.0  ;;  %v1664_v24 = vadd.f32 %v3303_v58, %v1632_v27  ;;  %v4751_v13 = vld [vmem:[#allocation3 + $0x19] sm:$0xff]  ;;  %v4760_v0 = vpop.permute.xlu0 %2792 }
 0x1f9   : > { %1681 = vst.msk [vmem:[#allocation3 + $0x39] sm:$0xff] %vm266_vm3, %v1673_v15  ;;  %v1674_v17 = vmax.f32 %v1666_v6, 0.0  ;;  %v4749_v43 = vld [vmem:[#allocation3 + $0x9] sm:$0xff]  ;;  %5151 = vst [vmem:[#allocation14_spill] sm:$0xff] %v4760_v0  ;;  %v1812_v28 = vmul.f32 %v4630_v4, %v4751_v13  ;;  %v1683_v6 = vld [vmem:[#allocation3] sm:$0xff] }
 0x1fa   : > { %1679 = vst.msk [vmem:[#allocation3 + $0x29] sm:$0xff] %vm266_vm3, %v1671_v39  ;;  %v1672_v41 = vmax.f32 %v1664_v24, 0.0  ;;  %v1810_v5 = vmul.f32 %v4626_v29, %v4749_v43  ;;  %v4767_v39 = vpop.permute.xlu1 %2797  ;;  %v4775_v33 = vld [vmem:[#allocation3 + $0x21] sm:$0xff] }
 0x1fb   : > { %1682 = vst.msk [vmem:[#allocation3 + $0x41] sm:$0xff] %vm266_vm3, %v1674_v17  ;;  %v4758_v7 = vld [vmem:[#allocation3 + $0x11] sm:$0xff]  ;;  %5152 = vst [vmem:[#allocation15_spill] sm:$0xff] %v4767_v39  ;;  %v1813_v24 = vmul.f32 %v4632_v59, %v4775_v33 }
 0x1fc   : > { %1680 = vst.msk [vmem:[#allocation3 + $0x31] sm:$0xff] %vm266_vm3, %v1672_v41  ;;  %v1817_v15 = vpack.c.bf16 %v1810_v5, %v1809_v61  ;;  %v1811_v58 = vmul.f32 %v4628_v31, %v4758_v7  ;;  %v4778_v5 = vld [vmem:[#allocation3 + $0x8] sm:$0xff]  ;;  %v2925_v27 = vpop.permute.xlu0 %2924  ;;  %v4790_v61 = vld [vmem:[#allocation3 + $0x10] sm:$0xff]  ;;  %v4792_v41 = vld [vmem:[#allocation3 + $0x18] sm:$0xff] }
 0x1fd   : > { %v4805_v39 = vmul.f32 %v4713_v16, %v4790_v61  ;;  %v4809_v0 = vmul.f32 %v4715_v40, %v4792_v41  ;;  %v1741_v40 = vmul.f32 %v4644_v46, %v4790_v61 }
 0x1fe   : > { %3608 = vmatprep.mubr.msk.bf16.mxu1 %vm266_vm3, %v1817_v15  ;;  %v1818_v29 = vpack.c.bf16 %v1812_v28, %v1811_v58  ;;  %v2930_v15 = vpop.permute.xlu1 %2929  ;;  %v1740_v58 = vmul.f32 %v4642_v45, %v4778_v5 }
 0x1ff   : > { %5153 = vst [vmem:[#allocation16_spill] sm:$0xff] %v4805_v39  ;;  %5154 = vst [vmem:[#allocation17_spill] sm:$0xff] %v4809_v0 }
 0x200   : > { %3609 = vmatmul.mubr.msk.bf16.vlgmr.msra.gmra.mrb[0].mxu1 %vm266_vm3, %v1818_v29  ;;  %v4783_v4 = vld [vmem:[#allocation3 + $0x39] sm:$0xff] }
 0x201   : > { %3617 = vmatpush3.bf16.msra.mxu1 %v4656_v49  ;;  %v4781_v31 = vld [vmem:[#allocation3 + $0x29] sm:$0xff]  ;;  %v1816_v59 = vmul.f32 %v4638_v63, %v4783_v4 }
 0x202   : > { %v1814_v17 = vmul.f32 %v4634_v44, %v4781_v31  ;;  %3626 = vmatprep.subr.bf16.mxu1 %v4773_v42  ;;  %v1739_v44 = vmul.f32 %v4640_v56, %v1683_v6  ;;  %v2935_v56 = vpop.permute.xlu0 %2934  ;;  %v2940_v16 = vpop.permute.xlu1 %2939  ;;  %v1742_v6 = vmul.f32 %v4646_v47, %v4792_v41  ;;  %v4878_v0 = vld [vmem:[#allocation3 + $0x3a] sm:$0xff] }
 0x203   : > { %v4794_v49 = vld [vmem:[#allocation3 + $0x31] sm:$0xff] }
 0x204   : > { %v1819_v28 = vpack.c.bf16 %v1814_v17, %v1813_v24  ;;  %v1815_v29 = vmul.f32 %v4636_v23, %v4794_v49  ;;  %v4812_v24 = vld [vmem:[#allocation3 + $0x28] sm:$0xff]  ;;  %v1747_v17 = vpack.c.bf16 %v1740_v58, %v1739_v44  ;;  %v4814_v23 = vld [vmem:[#allocation3 + $0x20] sm:$0xff]  ;;  %v4816_v20 = vld [vmem:[#allocation3 + $0x30] sm:$0xff]  ;;  %v1748_v39 = vpack.c.bf16 %v1742_v6, %v1741_v40 }
 0x205   : > { %v4818_v63 = vld [vmem:[#allocation3 + $0x38] sm:$0xff]  ;;  %v1744_v58 = vmul.f32 %v4658_v50, %v4812_v24  ;;  %v4840_v46 = vmul.f32 %v4721_v11, %v4816_v20  ;;  %v1743_v50 = vmul.f32 %v4651_v18, %v4814_v23  ;;  %v4860_v11 = vld [vmem:[#allocation3 + $0x22] sm:$0xff]  ;;  %v4884_v18 = vmul.f32 %v4744_v26, %v4794_v49 }
 0x206   : > { %3612 = vmatprep.mubr.msk.bf16.mxu1 %vm266_vm3, %v1819_v28  ;;  %v1820_v45 = vpack.c.bf16 %v1816_v59, %v1815_v29  ;;  %v4832_v29 = vmul.f32 %v4717_v55, %v4814_v23  ;;  %v4836_v59 = vmul.f32 %v4719_v10, %v4812_v24  ;;  %v4844_v47 = vmul.f32 %v4723_v3, %v4818_v63  ;;  %v4848_v44 = vld [vmem:[#allocation3 + $0x12] sm:$0xff]  ;;  %v2950_v26 = vpop.permute.xlu1 %2949 }
 0x207   : > { %5155 = vst [vmem:[#allocation18_spill] sm:$0xff] %v4840_v46  ;;  %v4854_v55 = vmul.f32 %v4729_v57, %v4758_v7  ;;  %v4858_v10 = vmul.f32 %v4734_v2, %v4751_v13  ;;  %v4864_v3 = vld [vmem:[#allocation3 + $0x32] sm:$0xff]  ;;  %v4872_v57 = vmul.f32 %v4736_v34, %v4775_v33  ;;  %v4876_v2 = vmul.f32 %v4738_v48, %v4781_v31  ;;  %v2945_v34 = vpop.permute.xlu0 %2944  ;;  %v3848_v48 = vld [vmem:[%s5079_s4 + $0x18] sm:$0xff]  }
 0x208   : > { %3613 = vmatmul.mubr.msk.bf16.gmra.mrb[4].mxu1 %vm266_vm3, %v1820_v45  ;;  %v4850_v45 = vld [vmem:[#allocation3 + $0x1a] sm:$0xff]  ;;  %v4888_v28 = vmul.f32 %v4746_v1, %v4783_v4  ;;  %v1749_v46 = vpack.c.bf16 %v1744_v58, %v1743_v50  ;;  %v4896_v6 = vmul.f32 %v2925_v27, %v4848_v44  ;;  %v4910_v50 = vmul.f32 %v2945_v34, %v4864_v3  ;;  %v1991_v27 = vld [vmem:[#allocation3 + $0xa] sm:$0xff]  ;;  %v1990_v34 = vld [vmem:[#allocation3 + $0x2] sm:$0xff] }
 0x209   : > { %3618 = vmatprep.mubr.msk.bf16.mxu1 %vm266_vm3, %v1747_v17  ;;  %5156 = vst [vmem:[#allocation19_spill] sm:$0xff] %v4854_v55  ;;  %v4862_v17 = vld [vmem:[#allocation3 + $0x2a] sm:$0xff]  ;;  %v4899_v38 = vmul.f32 %v2930_v15, %v4850_v45  ;;  %v4904_v55 = vmul.f32 %v2935_v56, %v4860_v11  ;;  %v4916_v40 = vmul.f32 %v2950_v26, %v4878_v0 }
 0x20a   : > { %v4907_v58 = vmul.f32 %v2940_v16, %v4862_v17  ;;  %v1745_v16 = vmul.f32 %v4661_v12, %v4816_v20  ;;  %v2047_v26 = vmul.f32 %v4667_v36, %v1991_v27  ;;  %v2048_v12 = vmul.f32 %v4669_v25, %v4848_v44 }
 0x20b   : > { %v2051_v56 = vmul.f32 %v4675_v60, %v4862_v17  ;;  %v2050_v36 = vmul.f32 %v4673_v52, %v4860_v11  ;;  %v2052_v25 = vmul.f32 %v4677_v32, %v4864_v3  ;;  %v2209_v52 = vmul.f32 %v4683_v19, %v4790_v61 }
 0x20c   : > { %v2208_v60 = vmul.f32 %v4681_v30, %v4778_v5  ;;  %v2211_v32 = vmul.f32 %v4687_v21, %v4814_v23  ;;  %v2212_v19 = vmul.f32 %v4689_v8, %v4812_v24  ;;  %v3850_v30 = vld [vmem:[%s5079_s4 + $0x28] sm:$0xff]   ;;  %v2322_v8 = vpack.c.bf16 %v4758_v7, %v4749_v43  ;;  %v5157_v7 = vld [vmem:[#allocation5_spill] sm:$0xff] }
 0x20d   : > { %v2476_v43 = vmul.f32 %v4697_v37, %v1991_v27  ;;  %v2477_v24 = vmul.f32 %v5157_v7, %v4848_v44  ;;  %v5159_v23 = vld [vmem:[#allocation8_spill] sm:$0xff]  ;;  %v5161_v37 = vld [vmem:[#allocation6_spill] sm:$0xff] }
 0x20e   : > { %v2478_v27 = vmul.f32 %v5161_v37, %v4850_v45 }
 0x210   : > { %3619 = vmatmul.mubr.msk.bf16.vlgmr.msra.gmra.mrb[0].mxu1 %vm266_vm3, %v1748_v39  ;;  %v1746_v39 = vmul.f32 %v4663_v22, %v4818_v63  ;;  %v2049_v22 = vmul.f32 %v4671_v51, %v4850_v45  ;;  %v2053_v51 = vmul.f32 %v4679_v62, %v4878_v0  ;;  %v2213_v62 = vmul.f32 %v4691_v9, %v4816_v20  ;;  %v5164_v45 = vld [vmem:[#allocation17_spill] sm:$0xff] }
 0x211   : > { %3627 = vmatpush3.bf16.msra.mxu1 %v4773_v42  ;;  %3622 = vmatprep.mubr.msk.bf16.mxu1 %vm266_vm3, %v1749_v46  ;;  %v2046_v42 = vmul.f32 %v4665_v35, %v1990_v34  ;;  %v3849_v35 = vld [vmem:[%s5079_s4 + $0x20] sm:$0xff]   ;;  %v2323_v20 = vpack.c.bf16 %v4775_v33, %v4751_v13  ;;  %v2484_v33 = vpack.c.bf16 %v2477_v24, %v2476_v43 }
 0x212   : > { %3636 = vmatprep.subr.bf16.mxu1 %v3848_v48  ;;  %v1750_v1 = vpack.c.bf16 %v1746_v39, %v1745_v16  ;;  %v2055_v15 = vpack.c.bf16 %v2049_v22, %v2048_v12  ;;  %v2057_v16 = vpack.c.bf16 %v2053_v51, %v2052_v25  ;;  %v2218_v5 = vpack.c.bf16 %v2213_v62, %v2212_v19  ;;  %v5160_v39 = vld [vmem:[#allocation9_spill] sm:$0xff]  ;;  %v5165_v22 = vld [vmem:[#allocation16_spill] sm:$0xff]  ;;  %v5176_v19 = vld [vmem:[#allocation14_spill] sm:$0xff] }
 0x213   : > { %v2054_v46 = vpack.c.bf16 %v2047_v26, %v2046_v42  ;;  %v2481_v34 = vmul.f32 %v5160_v39, %v4864_v3  ;;  %v2427_v42 = vld [vmem:[#allocation3 + $0x42] sm:$0xff]  ;;  %v5167_v25 = vpack.c.bf16 %v4836_v59, %v4832_v29  ;;  %v5174_v29 = vpack.c.bf16 %v4876_v2, %v4872_v57  ;;  %v2955_v2 = vpop.permute.xlu0 %2954 }
 0x214   : > { %v2751_v59 = vld [vmem:[#allocation3 + $0x49] sm:$0xff]  ;;  %v5179_v57 = vpack.c.bf16 %v4907_v58, %v4904_v55 }
 0x218   : > { %3623 = vmatmul.mubr.msk.bf16.gmra.mrb[4].mxu1 %vm266_vm3, %v1750_v1  ;;  %v2056_v1 = vpack.c.bf16 %v2051_v56, %v2050_v36  ;;  %v2216_v56 = vpack.c.bf16 %v2209_v52, %v2208_v60  ;;  %v5166_v36 = vpack.c.bf16 %v5164_v45, %v5165_v22  ;;  %v5170_v52 = vld [vmem:[#allocation12_spill] sm:$0xff] }
 0x219   : > { %3628 = vmatprep.mubr.msk.bf16.mxu1 %vm266_vm3, %v2054_v46  ;;  %v5163_v46 = vld [vmem:[#allocation11_spill] sm:$0xff] }
 0x21a   : > { %v2483_v3 = vmul.f32 %v5163_v46, %v2427_v42 }
 0x220   : > { %3629 = vmatmul.mubr.msk.bf16.vlgmr.msra.gmra.mrb[0].mxu1 %vm266_vm3, %v2055_v15  ;;  %v2159_v15 = vld [vmem:[#allocation3 + $0x40] sm:$0xff] }
 0x221   : > { %3637 = vmatpush3.bf16.msra.mxu1 %v3848_v48  ;;  %3632 = vmatprep.mubr.msk.bf16.mxu1 %vm266_vm3, %v2056_v1  ;;  %v2210_v48 = vmul.f32 %v4685_v14, %v4792_v41  ;;  %v2214_v14 = vmul.f32 %v4693_v53, %v4818_v63  ;;  %v2215_v21 = vmul.f32 %v4695_v54, %v2159_v15  ;;  %v3851_v41 = vld [vmem:[%s5079_s4 + $0x30] sm:$0xff]   ;;  %v2321_v54 = vld [vmem:[#allocation3 + $0x41] sm:$0xff] }
 0x222   : > { %3646 = vmatprep.subr.bf16.mxu1 %v3849_v35  ;;  %v2324_v53 = vpack.c.bf16 %v4794_v49, %v4781_v31  ;;  %v2325_v13 = vpack.c.bf16 %v2321_v54, %v4783_v4  ;;  %v5158_v31 = vld [vmem:[#allocation7_spill] sm:$0xff]  ;;  %v2480_v63 = vmul.f32 %v5159_v23, %v4862_v17  ;;  %v3852_v4 = vld [vmem:[%s5079_s4 + $0x38] sm:$0xff]   ;;  %v2644_v60 = vmul.f32 %v5170_v52, %v2159_v15 }
 0x223   : > { %v2217_v61 = vpack.c.bf16 %v2211_v32, %v2210_v48  ;;  %v2219_v9 = vpack.c.bf16 %v2215_v21, %v2214_v14  ;;  %v2479_v49 = vmul.f32 %v5158_v31, %v4860_v11  ;;  %v5162_v11 = vld [vmem:[#allocation10_spill] sm:$0xff]  ;;  %v2589_v1 = vld [vmem:[#allocation3 + $0x48] sm:$0xff]  ;;  %v5180_v14 = vpack.c.bf16 %v4916_v40, %v4910_v50 }
 0x224   : > { %v2486_v26 = vpack.c.bf16 %v2481_v34, %v2480_v63  ;;  %v2482_v17 = vmul.f32 %v5162_v11, %v4878_v0  ;;  %v5168_v0 = vld [vmem:[#allocation18_spill] sm:$0xff]  ;;  %v5172_v32 = vld [vmem:[#allocation19_spill] sm:$0xff]  ;;  %v2968_v21 = vmul.f32 %v2955_v2, %v2427_v42 }
 0x225   : > { %v2485_v44 = vpack.c.bf16 %v2479_v49, %v2478_v27  ;;  %v5169_v51 = vpack.c.bf16 %v4844_v47, %v5168_v0  ;;  %v5173_v62 = vpack.c.bf16 %v4858_v10, %v5172_v32  ;;  %v5175_v47 = vpack.c.bf16 %v4888_v28, %v4884_v18  ;;  %v2960_v28 = vpop.permute.xlu1 %2959  ;;  %v2913_v18 = vld [vmem:[#allocation3 + $0x4a] sm:$0xff] }
 0x226   : > { %v2487_v12 = vpack.c.bf16 %v2483_v3, %v2482_v17  ;;  %v5178_v10 = vpack.c.bf16 %v4899_v38, %v4896_v6  ;;  %v3421_v38 = vld [vmem:[%s5080_s5] ss:$0 sm:$0xff] }
 0x228   : > { %3633 = vmatmul.mubr.msk.bf16.gmra.mrb[4].mxu1 %vm266_vm3, %v2057_v16  ;;  %v5171_v16 = vld [vmem:[#allocation13_spill] sm:$0xff] }
 0x229   : > { %3638 = vmatprep.mubr.msk.bf16.mxu1 %vm266_vm3, %v2216_v56  ;;  %v2645_v56 = vmul.f32 %v5171_v16, %v2589_v1 }
 0x22b   : > { %v2649_v48 = vpack.c.bf16 %v2645_v56, %v2644_v60 }
 0x230   : > { %3639 = vmatmul.mubr.msk.bf16.vlgmr.msra.gmra.mrb[0].mxu1 %vm266_vm3, %v2217_v61  ;;  %v2806_v61 = vmul.f32 %v5176_v19, %v2321_v54 }
 0x231   : > { %3647 = vmatpush3.bf16.msra.mxu1 %v3849_v35  ;;  %3642 = vmatprep.mubr.msk.bf16.mxu1 %vm266_vm3, %v2218_v5  ;;  %v3853_v35 = vld [vmem:[%s5079_s4 + $0x40] sm:$0xff]  }
 0x232   : > { %3656 = vmatprep.subr.bf16.mxu1 %v3850_v30 }
 0x238   : > { %3643 = vmatmul.mubr.msk.bf16.gmra.mrb[4].mxu1 %vm266_vm3, %v2219_v9  ;;  %v2969_v9 = vmul.f32 %v2960_v28, %v2913_v18 }
 0x239   : > { %3648 = vmatprep.mubr.msk.bf16.mxu1 %vm266_vm3, %v2322_v8 }
 0x23a   : > { %v2973_v8 = vpack.c.bf16 %v2969_v9, %v2968_v21 }
 0x240   : > { %3649 = vmatmul.mubr.msk.bf16.vlgmr.msra.gmra.mrb[0].mxu1 %vm266_vm3, %v2323_v20 }
 0x241   : > { %3657 = vmatpush3.bf16.msra.mxu1 %v3850_v30  ;;  %3652 = vmatprep.mubr.msk.bf16.mxu1 %vm266_vm3, %v2324_v53  ;;  %v5177_v30 = vld [vmem:[#allocation15_spill] sm:$0xff] }
 0x242   : > { %3666 = vmatprep.subr.bf16.mxu1 %v3851_v41  ;;  %v2807_v5 = vmul.f32 %v5177_v30, %v2751_v59 }
 0x244   : > { %v2811_v15 = vpack.c.bf16 %v2807_v5, %v2806_v61 }
 0x248   : > { %3653 = vmatmul.mubr.msk.bf16.gmra.mrb[4].mxu1 %vm266_vm3, %v2325_v13 }
 0x249   : > { %3658 = vmatprep.mubr.msk.bf16.mxu1 %vm266_vm3, %v2484_v33 }
 0x250   : > { %3659 = vmatmul.mubr.msk.bf16.vlgmr.msra.gmra.mrb[0].mxu1 %vm266_vm3, %v2485_v44 }
 0x251   : > { %3667 = vmatpush3.bf16.msra.mxu1 %v3851_v41  ;;  %3662 = vmatprep.mubr.msk.bf16.mxu1 %vm266_vm3, %v2486_v26 }
 0x252   : > { %3676 = vmatprep.subr.bf16.mxu1 %v3852_v4 }
 0x258   : > { %3663 = vmatmul.mubr.msk.bf16.gmra.mrb[4].mxu1 %vm266_vm3, %v2487_v12 }
 0x259   : > { %3668 = vmatprep.mubr.msk.bf16.mxu1 %vm266_vm3, %v5166_v36 }
 0x260   : > { %3669 = vmatmul.mubr.msk.bf16.vlgmr.msra.gmra.mrb[0].mxu1 %vm266_vm3, %v5167_v25 }
 0x261   : > { %3677 = vmatpush3.bf16.msra.mxu1 %v3852_v4  ;;  %3672 = vmatprep.mubr.msk.bf16.mxu1 %vm266_vm3, %v5169_v51 }
 0x262   : > { %3686 = vmatprep.subr.bf16.mxu1 %v3853_v35 }
 0x268   : > { %3673 = vmatmul.mubr.msk.bf16.gmra.mrb[4].mxu1 %vm266_vm3, %v2649_v48 }
 0x269   : > { %3678 = vmatprep.mubr.msk.bf16.mxu1 %vm266_vm3, %v5173_v62 }
 0x270   : > { %3679 = vmatmul.mubr.msk.bf16.vlgmr.msra.gmra.mrb[0].mxu1 %vm266_vm3, %v5174_v29 }
 0x271   : > { %3687 = vmatpush3.bf16.msra.mxu1 %v3853_v35  ;;  %3682 = vmatprep.mubr.msk.bf16.mxu1 %vm266_vm3, %v5175_v47 }
 0x278   : > { %3683 = vmatmul.mubr.msk.bf16.gmra.mrb[4].mxu1 %vm266_vm3, %v2811_v15 }
 0x279   : > { %3688 = vmatprep.mubr.msk.bf16.mxu1 %vm266_vm3, %v5178_v10 }
 0x280   : > { %3689 = vmatmul.mubr.msk.bf16.vlgmr.msra.gmra.mrb[0].mxu1 %vm266_vm3, %v5179_v57 }
 0x281   : > { %3692 = vmatprep.mubr.msk.bf16.mxu1 %vm266_vm3, %v5180_v14 }
 0x288   : > { %3693 = vmatmul.mubr.msk.bf16.gmra.mrb[4].mxu1 %vm266_vm3, %v2973_v8 }
 0x353   : > { %v3690_v55 = vpop.f32.mrb[0].mxu1 }
 0x354   : > { %v3077_v6 = vadd.f32 %v3690_v55, %v3421_v38  ;;  %v3029_v58 = vpop.f32.mrb[1].mxu1 }
 0x355   : > { %v3075_v20 = vadd.f32 %v3421_v38, %v3029_v58  ;;  %v3691_v41 = vpop.f32.mrb[2].mxu1 }
 0x356   : > { %v3085_v53 = vmax.f32 %v3077_v6, 0.0  ;;  %v3078_v54 = vadd.f32 %v3691_v41, %v3421_v38  ;;  %v3032_v43 = vpop.f32.mrb[3].mxu1 }
 0x357   : > { %v3083_v40 = vmax.f32 %v3075_v20, 0.0  ;;  %v3076_v50 = vadd.f32 %v3421_v38, %v3032_v43 }
 0x358   : > { %3093 = vst.msk [vmem:[#allocation4 + $0x10] sm:$0xff] %vm266_vm3, %v3085_v53  ;;  %v3086_v7 = vmax.f32 %v3078_v54, 0.0 }
 0x359   : > { %3091 = vst.msk [vmem:[#allocation4] sm:$0xff] %vm266_vm3, %v3083_v40  ;;  %v3084_v24 = vmax.f32 %v3076_v50, 0.0 }
 0x35a   : > { %3094 = vst.msk [vmem:[#allocation4 + $0x18] sm:$0xff] %vm266_vm3, %v3086_v7 }
 0x35b   : > { %3092 = vst.msk [vmem:[#allocation4 + $0x8] sm:$0xff] %vm266_vm3, %v3084_v24  ;;  %v3694_v13 = vpop.f32.mrb[4].mxu1 }
 0x35c   : > { %v3081_v33 = vadd.f32 %v3694_v13, %v3421_v38  ;;  %v3045_v31 = vpop.f32.mrb[5].mxu1 }
 0x35d   : > { %v3079_v49 = vadd.f32 %v3421_v38, %v3045_v31  ;;  %v3695_v23 = vpop.f32.mrb[6].mxu1 }
 0x35e   : > { %v3089_v63 = vmax.f32 %v3081_v33, 0.0  ;;  %v3082_v39 = vadd.f32 %v3695_v23, %v3421_v38  ;;  %v3048_v34 = vpop.f32.mrb[7].mxu1 }
 0x35f   : > { %v3087_v37 = vmax.f32 %v3079_v49, 0.0  ;;  %v3080_v27 = vadd.f32 %v3421_v38, %v3048_v34 }
 0x360   : > { %3097 = vst.msk [vmem:[#allocation4 + $0x30] sm:$0xff] %vm266_vm3, %v3089_v63  ;;  %v3090_v44 = vmax.f32 %v3082_v39, 0.0 }
 0x361   : > { %v3101_v4 = vld [vmem:[#allocation4 + $0x10] ss:$2 sm:$0xff]  ;;  %v3109_v26 = vld [vmem:[#allocation4 + $0x11] ss:$2 sm:$0xff]  ;;  %3095 = vst.msk [vmem:[#allocation4 + $0x20] sm:$0xff] %vm266_vm3, %v3087_v37  ;;  %v3088_v42 = vmax.f32 %v3080_v27, 0.0 }
 0x362   : > { %v3115_v11 = vmax.f32 %v3101_v4, %v3109_v26  ;;  %v3099_v17 = vld [vmem:[#allocation4] ss:$2 sm:$0xff]  ;;  %v3107_v46 = vld [vmem:[#allocation4 + $0x1] ss:$2 sm:$0xff]  ;;  %3098 = vst.msk [vmem:[#allocation4 + $0x38] sm:$0xff] %vm266_vm3, %v3090_v44 }
 0x363   : > { %v3114_v3 = vmax.f32 %v3099_v17, %v3107_v46  ;;  %3096 = vst.msk [vmem:[#allocation4 + $0x28] sm:$0xff] %vm266_vm3, %v3088_v42 }
 0x364   : > { %v3125_v12 = vrot.slane %v3115_v11, 4 }
 0x365   : > { %v3119_v45 = vrot.slane %v3114_v3, 4 }
 0x366   : > { %v3127_v22 = vmax.f32 %v3115_v11, %v3125_v12 }
 0x367   : > { %v3121_v36 = vmax.f32 %v3114_v3, %v3119_v45 }
 0x368   : > { %3128 = vst.msk [vmem:[%s251_s20 + $0x4] sm:$0xf] %vm3122_vm5, %v3127_v22 }
 0x369   : > { %3123 = vst.msk [vmem:[%s251_s20] sm:$0xf] %vm3122_vm5, %v3121_v36  ;;  %v3105_v35 = vld [vmem:[#allocation4 + $0x30] ss:$2 sm:$0xff]  ;;  %v3113_v1 = vld [vmem:[#allocation4 + $0x31] ss:$2 sm:$0xff] }
 0x36a   : > { %v3117_v25 = vmax.f32 %v3105_v35, %v3113_v1  ;;  %v3103_v0 = vld [vmem:[#allocation4 + $0x20] ss:$2 sm:$0xff]  ;;  %v3111_v51 = vld [vmem:[#allocation4 + $0x21] ss:$2 sm:$0xff] }
 0x36b   : > { %v3116_v52 = vmax.f32 %v3103_v0, %v3111_v51 }
 0x36c   : > { %v3135_v60 = vrot.slane %v3117_v25, 4 }
 0x36d   : > { %v3130_v16 = vrot.slane %v3116_v52, 4 }
 0x36e   : > { %v3137_v56 = vmax.f32 %v3117_v25, %v3135_v60 }
 0x36f   : > { %v3132_v48 = vmax.f32 %v3116_v52, %v3130_v16 }
 0x370   : > { %3138 = vst.msk [vmem:[%s251_s20 + $0xc] sm:$0xf] %vm3122_vm5, %v3137_v56 }
 0x371   : > { %3133 = vst.msk [vmem:[%s251_s20 + $0x8] sm:$0xf] %vm3122_vm5, %v3132_v48 }
 0x372 PF: > { %s16_s21 = sadd.s32 1, %s3860_s21  }
 0x373   : > { %p13_p4 = scmp.ge.s32.totalorder %s16_s21, 4  }
 0x375   :  { %15 = sbr.rel (!%p13_p4) target bundleno = 1 (0x1), region = 104 }

// kernel: forward.4
= control target key start
LH: loop header
LB: loop body
LE: loop exit
PB: predicated region body
PF: predicated region fallthrough
CT: control target
= control target key end

     0   :  { %s11894_s21 = smov 0   ;;  %s15960_s0 = inlined_call_operand.vmem [shape: f32[2,256,4], index: 0, kind: input, shape index: {}]   ;;  %s15961_s1 = inlined_call_operand.vmem [shape: f32[9,256,1], index: 1, kind: input, shape index: {}]   ;;  %s15962_s2 = inlined_call_operand.vmem [shape: bf16[9,4,8], index: 2, kind: input, shape index: {}]   ;;  %s15963_s3 = inlined_call_operand.vmem [shape: f32[1,8], index: 3, kind: input, shape index: {}]   ;;  %s15964_s4 = inlined_call_operand.vmem [shape: bf16[9,8,8], index: 4, kind: input, shape index: {}]   ;;  %s15965_s5 = inlined_call_operand.vmem [shape: f32[1,8], index: 5, kind: input, shape index: {}]   ;;  %s15966_s6 = inlined_call_operand.vmem [shape: f32[2,64,8], index: 6, kind: output, shape index: {}]  }
   0x1 LB: > { %s9506_s22 = sadd.s32 4294967295, %s11855_s21   ;;  %p9510_p0 = scmp.ge.s32.totalorder %s11855_s21, 1  ;;  %s11855_s21 = sphi %s11894_s21, %s16_s21  }
   0x2   : > { %p212_p1 = scmp.lt.s32.totalorder %s11855_s21, 3 }
   0x4   : > { %p213_p2 = pnand %p9510_p0, %p212_p1 }
   0x6   : > { %216 = sbr.rel (%p213_p2) target bundleno = 1769 (0x6e9), region = 44 }
   0xd   : > { %v429_v0 = vld [vmem:[%s15961_s1 + $0x10] sm:$0xff]  ;;  %v427_v1 = vld [vmem:[%s15961_s1] sm:$0xff]  ;;  %vm253_vm0 = vcmask 31744   ;;  %v11857_v2 = vmov 0   ;;  %v15967_v3 = vmov 0.0   ;;  %v430_v4 = vld [vmem:[%s15961_s1 + $0x18] sm:$0xff] }
   0xe   : > { %11732 = vset.pattern.permute.xlu1 %v11857_v2  ;;  %11731 = vset.pattern.permute.xlu0 %v11857_v2  ;;  %256 = vst.msk [vmem:[#allocation2 + $0x10] sm:$0xff] %vm253_vm0, %v15967_v3  ;;  %257 = vst.msk [vmem:[#allocation2 + $0x18] sm:$0xff] %vm253_vm0, %v15967_v3  ;;  %v428_v5 = vld [vmem:[%s15961_s1 + $0x8] sm:$0xff]  ;;  %v431_v7 = vld [vmem:[%s15961_s1 + $0x20] sm:$0xff]  ;;  %p242_p3 = scmp.lt.s32.totalorder %s9506_s22, 1  ;;  %vm991_vm1 = vcmask 1041408  }
   0xf   : > { %471 = vperm.xlu1 %11732, %v429_v0   ;;  %461 = vperm.xlu0 %11731, %v427_v1   ;;  %254 = vst.msk [vmem:[#allocation2] sm:$0xff] %vm253_vm0, %v15967_v3  ;;  %255 = vst.msk [vmem:[#allocation2 + $0x8] sm:$0xff] %vm253_vm0, %v15967_v3  ;;  %v432_v6 = vld [vmem:[%s15961_s1 + $0x28] sm:$0xff]  ;;  %v434_v8 = vld [vmem:[%s15961_s1 + $0x38] sm:$0xff]  ;;  %vm290_vm2 = vcmask 25600   ;;  %vm292_vm3 = vcmask 64512  }
  0x10   : > { %258 = vst.msk [vmem:[#allocation2 + $0x20] sm:$0xff] %vm253_vm0, %v15967_v3  ;;  %259 = vst.msk [vmem:[#allocation2 + $0x28] sm:$0xff] %vm253_vm0, %v15967_v3  ;;  %v433_v9 = vld [vmem:[%s15961_s1 + $0x30] sm:$0xff]  ;;  %s16355_s22 = smov (!%p242_p3, %s9506_s22), 1  ;;  %v436_v10 = vld [vmem:[%s15961_s1 + $0x48] sm:$0xff]  ;;  %vm5474_vm4 = vcmask 1043456  }
  0x11   : > { %260 = vst.msk [vmem:[#allocation2 + $0x30] sm:$0xff] %vm253_vm0, %v15967_v3  ;;  %261 = vst.msk [vmem:[#allocation2 + $0x38] sm:$0xff] %vm253_vm0, %v15967_v3  ;;  %v435_v11 = vld [vmem:[%s15961_s1 + $0x40] sm:$0xff]  ;;  %s10271_s19 = sshll.u32 %s16355_s22, 8  ;;  %v438_v12 = vld [vmem:[%s15961_s1 + $0x58] sm:$0xff]  ;;  %vm329_vm5 = vcmask 58368  }
  0x12   : > { %262 = vst.msk [vmem:[#allocation2 + $0x40] sm:$0xff] %vm253_vm0, %v15967_v3  ;;  %263 = vst.msk [vmem:[#allocation2 + $0x48] sm:$0xff] %vm253_vm0, %v15967_v3  ;;  %s12014_s24 = scalar_lea.vmem %s15960_s0, %s10271_s19  ;;  %v437_v13 = vld [vmem:[%s15961_s1 + $0x50] sm:$0xff]  ;;  %v440_v16 = vld [vmem:[%s15961_s1 + $0x68] sm:$0xff]  ;;  %s10272_s23 = sshll.u32 %s16355_s22, 6 }
  0x13   : > { %264 = vst.msk [vmem:[#allocation2 + $0x50] sm:$0xff] %vm253_vm0, %v15967_v3  ;;  %265 = vst.msk [vmem:[#allocation2 + $0x58] sm:$0xff] %vm253_vm0, %v15967_v3  ;;  %476 = vperm.xlu1 %11732, %v430_v4   ;;  %466 = vperm.xlu0 %11731, %v428_v5   ;;  %v331_v14 = vld [vmem:[%s12014_s24] sm:$0xff]  ;;  %v332_v15 = vld [vmem:[%s12014_s24 + $0x8] sm:$0xff]  ;;  %s15891_s27 = scalar_lea.vmem %s15966_s6, %s10272_s23 }
  0x14   : > { %266 = vst.msk [vmem:[#allocation2 + $0x60] sm:$0xff] %vm253_vm0, %v15967_v3  ;;  %267 = vst.msk [vmem:[#allocation2 + $0x68] sm:$0xff] %vm253_vm0, %v15967_v3  ;;  %v439_v17 = vld [vmem:[%s15961_s1 + $0x60] sm:$0xff]  ;;  %v333_v18 = vld [vmem:[%s12014_s24 + $0x10] sm:$0xff] }
  0x15   : > { %268 = vst.msk [vmem:[#allocation2 + $0x70] sm:$0xff] %vm253_vm0, %v15967_v3  ;;  %269 = vst.msk [vmem:[#allocation2 + $0x78] sm:$0xff] %vm253_vm0, %v15967_v3  ;;  %v334_v19 = vld [vmem:[%s12014_s24 + $0x18] sm:$0xff]  ;;  %v335_v20 = vld [vmem:[%s12014_s24 + $0x20] sm:$0xff] }
  0x16   : > { %270 = vst.msk [vmem:[#allocation2 + $0x80] sm:$0xff] %vm253_vm0, %v15967_v3  ;;  %271 = vst.msk [vmem:[#allocation2 + $0x88] sm:$0xff] %vm253_vm0, %v15967_v3  ;;  %v336_v21 = vld [vmem:[%s12014_s24 + $0x28] sm:$0xff]  ;;  %v337_v22 = vld [vmem:[%s12014_s24 + $0x30] sm:$0xff] }
  0x17   : > { %272 = vst.msk [vmem:[#allocation2 + $0x90] sm:$0xff] %vm253_vm0, %v15967_v3  ;;  %273 = vst.msk [vmem:[#allocation2 + $0x98] sm:$0xff] %vm253_vm0, %v15967_v3  ;;  %486 = vperm.xlu1 %11732, %v432_v6   ;;  %481 = vperm.xlu0 %11731, %v431_v7   ;;  %v442_v23 = vld [vmem:[%s15961_s1 + $0x78] sm:$0xff]  ;;  %v441_v24 = vld [vmem:[%s15961_s1 + $0x70] sm:$0xff] }
  0x18   : > { %274 = vst.msk [vmem:[#allocation2 + $0xa0] sm:$0xff] %vm253_vm0, %v15967_v3  ;;  %275 = vst.msk [vmem:[#allocation2 + $0xa8] sm:$0xff] %vm253_vm0, %v15967_v3  ;;  %v338_v25 = vld [vmem:[%s12014_s24 + $0x38] sm:$0xff]  ;;  %v339_v26 = vld [vmem:[%s12014_s24 + $0x40] sm:$0xff] }
  0x19   : > { %276 = vst.msk [vmem:[#allocation2 + $0xb0] sm:$0xff] %vm253_vm0, %v15967_v3  ;;  %277 = vst.msk [vmem:[#allocation2 + $0xb8] sm:$0xff] %vm253_vm0, %v15967_v3  ;;  %v340_v27 = vld [vmem:[%s12014_s24 + $0x48] sm:$0xff]  ;;  %v341_v28 = vld [vmem:[%s12014_s24 + $0x50] sm:$0xff] }
  0x1a   : > { %278 = vst.msk [vmem:[#allocation2 + $0xc0] sm:$0xff] %vm253_vm0, %v15967_v3  ;;  %279 = vst.msk [vmem:[#allocation2 + $0xc8] sm:$0xff] %vm253_vm0, %v15967_v3  ;;  %v444_v29 = vld [vmem:[%s15961_s1 + $0x88] sm:$0xff]  ;;  %v342_v30 = vld [vmem:[%s12014_s24 + $0x58] sm:$0xff] }
  0x1b   : > { %280 = vst.msk [vmem:[#allocation2 + $0xd0] sm:$0xff] %vm253_vm0, %v15967_v3  ;;  %281 = vst.msk [vmem:[#allocation2 + $0xd8] sm:$0xff] %vm253_vm0, %v15967_v3  ;;  %496 = vperm.xlu1 %11732, %v434_v8   ;;  %491 = vperm.xlu0 %11731, %v433_v9   ;;  %v443_v31 = vld [vmem:[%s15961_s1 + $0x80] sm:$0xff]  ;;  %v344_v33 = vld [vmem:[%s12014_s24 + $0x68] sm:$0xff] }
  0x1c   : > { %282 = vst.msk [vmem:[#allocation2 + $0xe0] sm:$0xff] %vm253_vm0, %v15967_v3  ;;  %283 = vst.msk [vmem:[#allocation2 + $0xe8] sm:$0xff] %vm253_vm0, %v15967_v3  ;;  %v343_v32 = vld [vmem:[%s12014_s24 + $0x60] sm:$0xff]  ;;  %v345_v34 = vld [vmem:[%s12014_s24 + $0x70] sm:$0xff] }
  0x1d   : > { %284 = vst.msk [vmem:[#allocation2 + $0xf0] sm:$0xff] %vm253_vm0, %v15967_v3  ;;  %285 = vst.msk [vmem:[#allocation2 + $0xf8] sm:$0xff] %vm253_vm0, %v15967_v3  ;;  %v346_v35 = vld [vmem:[%s12014_s24 + $0x78] sm:$0xff]  ;;  %v445_v37 = vld [vmem:[%s15961_s1 + $0x90] sm:$0xff] }
  0x1e   : > { %286 = vst.msk [vmem:[#allocation2 + $0x100] sm:$0xff] %vm253_vm0, %v15967_v3  ;;  %287 = vst.msk [vmem:[#allocation2 + $0x108] sm:$0xff] %vm253_vm0, %v15967_v3  ;;  %v446_v36 = vld [vmem:[%s15961_s1 + $0x98] sm:$0xff]  ;;  %v347_v38 = vld [vmem:[%s12014_s24 + $0x80] sm:$0xff] }
  0x1f   : > { %288 = vst.msk [vmem:[#allocation2 + $0x110] sm:$0xff] %vm253_vm0, %v15967_v3  ;;  %289 = vst.msk [vmem:[#allocation2 + $0x118] sm:$0xff] %vm253_vm0, %v15967_v3  ;;  %506 = vperm.xlu1 %11732, %v436_v10   ;;  %501 = vperm.xlu0 %11731, %v435_v11   ;;  %v348_v39 = vld [vmem:[%s12014_s24 + $0x88] sm:$0xff]  ;;  %v349_v40 = vld [vmem:[%s12014_s24 + $0x90] sm:$0xff] }
  0x20   : > { %363 = vst.msk [vmem:[#allocation2 + $0x11] sm:$0xff] %vm253_vm0, %v331_v14  ;;  %364 = vst.msk [vmem:[#allocation2 + $0x19] sm:$0xff] %vm253_vm0, %v332_v15  ;;  %v448_v41 = vld [vmem:[%s15961_s1 + $0xa8] sm:$0xff]  ;;  %v447_v42 = vld [vmem:[%s15961_s1 + $0xa0] sm:$0xff] }
  0x21   : > { %365 = vst.msk [vmem:[#allocation2 + $0x21] sm:$0xff] %vm253_vm0, %v333_v18  ;;  %366 = vst.msk [vmem:[#allocation2 + $0x29] sm:$0xff] %vm253_vm0, %v334_v19  ;;  %v350_v43 = vld [vmem:[%s12014_s24 + $0x98] sm:$0xff]  ;;  %v351_v44 = vld [vmem:[%s12014_s24 + $0xa0] sm:$0xff] }
  0x22   : > { %367 = vst.msk [vmem:[#allocation2 + $0x31] sm:$0xff] %vm253_vm0, %v335_v20  ;;  %368 = vst.msk [vmem:[#allocation2 + $0x39] sm:$0xff] %vm253_vm0, %v336_v21  ;;  %v352_v45 = vld [vmem:[%s12014_s24 + $0xa8] sm:$0xff]  ;;  %v353_v46 = vld [vmem:[%s12014_s24 + $0xb0] sm:$0xff] }
  0x23   : > { %516 = vperm.xlu1 %11732, %v438_v12   ;;  %511 = vperm.xlu0 %11731, %v437_v13   ;;  %369 = vst.msk [vmem:[#allocation2 + $0x41] sm:$0xff] %vm253_vm0, %v337_v22  ;;  %370 = vst.msk [vmem:[#allocation2 + $0x49] sm:$0xff] %vm253_vm0, %v338_v25  ;;  %v354_v47 = vld [vmem:[%s12014_s24 + $0xb8] sm:$0xff]  ;;  %v449_v49 = vld [vmem:[%s15961_s1 + $0xb0] sm:$0xff] }
  0x24   : > { %371 = vst.msk [vmem:[#allocation2 + $0x51] sm:$0xff] %vm253_vm0, %v339_v26  ;;  %372 = vst.msk [vmem:[#allocation2 + $0x59] sm:$0xff] %vm253_vm0, %v340_v27  ;;  %v450_v48 = vld [vmem:[%s15961_s1 + $0xb8] sm:$0xff]  ;;  %v355_v50 = vld [vmem:[%s12014_s24 + $0xc0] sm:$0xff] }
  0x25   : > { %373 = vst.msk [vmem:[#allocation2 + $0x61] sm:$0xff] %vm253_vm0, %v341_v28  ;;  %374 = vst.msk [vmem:[#allocation2 + $0x69] sm:$0xff] %vm253_vm0, %v342_v30  ;;  %v356_v51 = vld [vmem:[%s12014_s24 + $0xc8] sm:$0xff]  ;;  %v451_v53 = vld [vmem:[%s15961_s1 + $0xc0] sm:$0xff] }
  0x26   : > { %375 = vst.msk [vmem:[#allocation2 + $0x71] sm:$0xff] %vm253_vm0, %v343_v32  ;;  %376 = vst.msk [vmem:[#allocation2 + $0x79] sm:$0xff] %vm253_vm0, %v344_v33  ;;  %v452_v52 = vld [vmem:[%s15961_s1 + $0xc8] sm:$0xff]  ;;  %v357_v54 = vld [vmem:[%s12014_s24 + $0xd0] sm:$0xff] }
  0x27   : > { %526 = vperm.xlu1 %11732, %v440_v16   ;;  %521 = vperm.xlu0 %11731, %v439_v17   ;;  %377 = vst.msk [vmem:[#allocation2 + $0x81] sm:$0xff] %vm253_vm0, %v345_v34  ;;  %378 = vst.msk [vmem:[#allocation2 + $0x89] sm:$0xff] %vm253_vm0, %v346_v35  ;;  %v358_v55 = vld [vmem:[%s12014_s24 + $0xd8] sm:$0xff]  ;;  %v453_v57 = vld [vmem:[%s15961_s1 + $0xd0] sm:$0xff] }
  0x28   : > { %379 = vst.msk [vmem:[#allocation2 + $0x91] sm:$0xff] %vm253_vm0, %v347_v38  ;;  %380 = vst.msk [vmem:[#allocation2 + $0x99] sm:$0xff] %vm253_vm0, %v348_v39  ;;  %v454_v56 = vld [vmem:[%s15961_s1 + $0xd8] sm:$0xff]  ;;  %v359_v58 = vld [vmem:[%s12014_s24 + $0xe0] sm:$0xff] }
  0x29   : > { %381 = vst.msk [vmem:[#allocation2 + $0xa1] sm:$0xff] %vm253_vm0, %v349_v40  ;;  %382 = vst.msk [vmem:[#allocation2 + $0xa9] sm:$0xff] %vm253_vm0, %v350_v43  ;;  %v360_v59 = vld [vmem:[%s12014_s24 + $0xe8] sm:$0xff]  ;;  %v455_v61 = vld [vmem:[%s15961_s1 + $0xe0] sm:$0xff] }
  0x2a   : > { %383 = vst.msk [vmem:[#allocation2 + $0xb1] sm:$0xff] %vm253_vm0, %v351_v44  ;;  %384 = vst.msk [vmem:[#allocation2 + $0xb9] sm:$0xff] %vm253_vm0, %v352_v45  ;;  %v456_v60 = vld [vmem:[%s15961_s1 + $0xe8] sm:$0xff]  ;;  %v458_v62 = vld [vmem:[%s15961_s1 + $0xf8] sm:$0xff] }
  0x2b   : > { %536 = vperm.xlu1 %11732, %v442_v23   ;;  %531 = vperm.xlu0 %11731, %v441_v24   ;;  %385 = vst.msk [vmem:[#allocation2 + $0xc1] sm:$0xff] %vm253_vm0, %v353_v46  ;;  %386 = vst.msk [vmem:[#allocation2 + $0xc9] sm:$0xff] %vm253_vm0, %v354_v47  ;;  %v457_v63 = vld [vmem:[%s15961_s1 + $0xf0] sm:$0xff]  ;;  %v9516_v0 = vld [vmem:[%s15961_s1 + $0x108] sm:$0xff] }
  0x2c   : > { %387 = vst.msk [vmem:[#allocation2 + $0xd1] sm:$0xff] %vm253_vm0, %v355_v50  ;;  %388 = vst.msk [vmem:[#allocation2 + $0xd9] sm:$0xff] %vm253_vm0, %v356_v51  ;;  %v9515_v1 = vld [vmem:[%s15961_s1 + $0x100] sm:$0xff]  ;;  %v9518_v4 = vld [vmem:[%s15961_s1 + $0x118] sm:$0xff] }
  0x2d   : > { %389 = vst.msk [vmem:[#allocation2 + $0xe1] sm:$0xff] %vm253_vm0, %v357_v54  ;;  %390 = vst.msk [vmem:[#allocation2 + $0xe9] sm:$0xff] %vm253_vm0, %v358_v55  ;;  %v9547_v2 = vld [vmem:[%s15962_s2 + $0x2] sm:$0x3]  ;;  %v9517_v5 = vld [vmem:[%s15961_s1 + $0x110] sm:$0xff] }
  0x2e   : > { %391 = vst.msk [vmem:[#allocation2 + $0xf1] sm:$0xff] %vm253_vm0, %v359_v58  ;;  %392 = vst.msk [vmem:[#allocation2 + $0xf9] sm:$0xff] %vm253_vm0, %v360_v59  ;;  %11703 = vmatprep.subr.msk.bf16.mxu0 %vm991_vm1, %v9547_v2  ;;  %v993_v6 = vsel %vm991_vm1, %v9547_v2, 0  ;;  %v9520_v7 = vld [vmem:[%s15961_s1 + $0x128] sm:$0xff]  ;;  %v9519_v8 = vld [vmem:[%s15961_s1 + $0x120] sm:$0xff] }
  0x2f   : > { %546 = vperm.xlu1 %11732, %v444_v29   ;;  %541 = vperm.xlu0 %11731, %v443_v31   ;;  %v12168_v9 = vld [vmem:[%s15962_s2] sm:$0x3]  ;;  %v9522_v10 = vld [vmem:[%s15961_s1 + $0x138] sm:$0xff]  ;;  %v9521_v11 = vld [vmem:[%s15961_s1 + $0x130] sm:$0xff]  ;;  %291 = vst.msk [vmem:[#allocation2 + $0x120] sm:$0x3] %vm290_vm2, %v15967_v3 }
  0x30   : > { %10580 = vmatpush3.bf16.msra.mxu0 %v993_v6  ;;  %v9524_v12 = vld [vmem:[%s15961_s1 + $0x148] sm:$0xff]  ;;  %v9523_v13 = vld [vmem:[%s15961_s1 + $0x140] sm:$0xff]  ;;  %v9526_v14 = vld [vmem:[%s15961_s1 + $0x158] sm:$0xff] }
  0x31   : > { %11704 = vmatprep.subr.msk.bf16.mxu0 %vm991_vm1, %v12168_v9  ;;  %v9525_v15 = vld [vmem:[%s15961_s1 + $0x150] sm:$0xff]  ;;  %v9528_v16 = vld [vmem:[%s15961_s1 + $0x168] sm:$0xff]  ;;  %v9527_v17 = vld [vmem:[%s15961_s1 + $0x160] sm:$0xff] }
  0x32   : > { %v9530_v18 = vld [vmem:[%s15961_s1 + $0x178] sm:$0xff]  ;;  %v9529_v19 = vld [vmem:[%s15961_s1 + $0x170] sm:$0xff]  ;;  %v9532_v20 = vld [vmem:[%s15961_s1 + $0x188] sm:$0xff] }
  0x33   : > { %556 = vperm.xlu1 %11732, %v446_v36   ;;  %551 = vperm.xlu0 %11731, %v445_v37   ;;  %v9531_v21 = vld [vmem:[%s15961_s1 + $0x180] sm:$0xff]  ;;  %v9534_v22 = vld [vmem:[%s15961_s1 + $0x198] sm:$0xff]  ;;  %v9533_v23 = vld [vmem:[%s15961_s1 + $0x190] sm:$0xff] }
  0x34   : > { %v9536_v24 = vld [vmem:[%s15961_s1 + $0x1a8] sm:$0xff]  ;;  %v9535_v25 = vld [vmem:[%s15961_s1 + $0x1a0] sm:$0xff]  ;;  %v9538_v26 = vld [vmem:[%s15961_s1 + $0x1b8] sm:$0xff] }
  0x35   : > { %v9537_v27 = vld [vmem:[%s15961_s1 + $0x1b0] sm:$0xff]  ;;  %v9540_v28 = vld [vmem:[%s15961_s1 + $0x1c8] sm:$0xff]  ;;  %v9539_v29 = vld [vmem:[%s15961_s1 + $0x1c0] sm:$0xff] }
  0x36   : > { %v9542_v30 = vld [vmem:[%s15961_s1 + $0x1d8] sm:$0xff]  ;;  %v9541_v31 = vld [vmem:[%s15961_s1 + $0x1d0] sm:$0xff]  ;;  %v9544_v32 = vld [vmem:[%s15961_s1 + $0x1e8] sm:$0xff] }
  0x37   : > { %566 = vperm.xlu1 %11732, %v448_v41   ;;  %561 = vperm.xlu0 %11731, %v447_v42   ;;  %v9543_v33 = vld [vmem:[%s15961_s1 + $0x1e0] sm:$0xff]  ;;  %v9546_v34 = vld [vmem:[%s15961_s1 + $0x1f8] sm:$0xff]  ;;  %v9545_v35 = vld [vmem:[%s15961_s1 + $0x1f0] sm:$0xff] }
  0x38   : > { %v9581_v36 = vld [vmem:[%s15961_s1 + $0x208] sm:$0xff]  ;;  %v9580_v37 = vld [vmem:[%s15961_s1 + $0x200] sm:$0xff]  ;;  %v9583_v40 = vld [vmem:[%s15961_s1 + $0x218] sm:$0xff] }
  0x39   : > { %v9582_v41 = vld [vmem:[%s15961_s1 + $0x210] sm:$0xff]  ;;  %v9585_v44 = vld [vmem:[%s15961_s1 + $0x228] sm:$0xff]  ;;  %v9584_v45 = vld [vmem:[%s15961_s1 + $0x220] sm:$0xff] }
  0x3a   : > { %v9596_v6 = vld [vmem:[%s15961_s1 + $0x280] sm:$0xff] }
  0x3b   : > { %576 = vperm.xlu1 %11732, %v450_v48   ;;  %571 = vperm.xlu0 %11731, %v449_v49   ;;  %v9587_v48 = vld [vmem:[%s15961_s1 + $0x238] sm:$0xff]  ;;  %v9586_v49 = vld [vmem:[%s15961_s1 + $0x230] sm:$0xff] }
  0x3f   : > { %586 = vperm.xlu1 %11732, %v452_v52   ;;  %581 = vperm.xlu0 %11731, %v451_v53   ;;  %v9589_v52 = vld [vmem:[%s15961_s1 + $0x248] sm:$0xff]  ;;  %v9588_v53 = vld [vmem:[%s15961_s1 + $0x240] sm:$0xff] }
  0x43   : > { %596 = vperm.xlu1 %11732, %v454_v56   ;;  %591 = vperm.xlu0 %11731, %v453_v57   ;;  %v9591_v56 = vld [vmem:[%s15961_s1 + $0x258] sm:$0xff]  ;;  %v9590_v57 = vld [vmem:[%s15961_s1 + $0x250] sm:$0xff] }
  0x47   : > { %606 = vperm.xlu1 %11732, %v456_v60   ;;  %601 = vperm.xlu0 %11731, %v455_v61   ;;  %v9593_v60 = vld [vmem:[%s15961_s1 + $0x268] sm:$0xff]  ;;  %v9592_v61 = vld [vmem:[%s15961_s1 + $0x260] sm:$0xff] }
  0x4b   : > { %616 = vperm.xlu1 %11732, %v458_v62   ;;  %611 = vperm.xlu0 %11731, %v457_v63  }
  0x4f   : > { %740 = vperm.xlu1 %11732, %v9516_v0   ;;  %735 = vperm.xlu0 %11731, %v9515_v1   ;;  %v9595_v0 = vld [vmem:[%s15961_s1 + $0x278] sm:$0xff]  ;;  %v9594_v1 = vld [vmem:[%s15961_s1 + $0x270] sm:$0xff] }
  0x53   : > { %750 = vperm.xlu1 %11732, %v9518_v4   ;;  %745 = vperm.xlu0 %11731, %v9517_v5   ;;  %v9597_v5 = vld [vmem:[%s15961_s1 + $0x288] sm:$0xff] }
  0x57   : > { %760 = vperm.xlu1 %11732, %v9520_v7   ;;  %755 = vperm.xlu0 %11731, %v9519_v8  }
  0x5b   : > { %770 = vperm.xlu1 %11732, %v9522_v10   ;;  %765 = vperm.xlu0 %11731, %v9521_v11   ;;  %v9599_v10 = vld [vmem:[%s15961_s1 + $0x298] sm:$0xff]  ;;  %v9598_v11 = vld [vmem:[%s15961_s1 + $0x290] sm:$0xff] }
  0x5f   : > { %780 = vperm.xlu1 %11732, %v9524_v12   ;;  %775 = vperm.xlu0 %11731, %v9523_v13  }
  0x63   : > { %790 = vperm.xlu1 %11732, %v9526_v14   ;;  %785 = vperm.xlu0 %11731, %v9525_v15   ;;  %v9601_v14 = vld [vmem:[%s15961_s1 + $0x2a8] sm:$0xff]  ;;  %v9600_v15 = vld [vmem:[%s15961_s1 + $0x2a0] sm:$0xff] }
  0x67   : > { %800 = vperm.xlu1 %11732, %v9528_v16   ;;  %795 = vperm.xlu0 %11731, %v9527_v17  }
  0x6b   : > { %810 = vperm.xlu1 %11732, %v9530_v18   ;;  %805 = vperm.xlu0 %11731, %v9529_v19   ;;  %v9603_v18 = vld [vmem:[%s15961_s1 + $0x2b8] sm:$0xff]  ;;  %v9602_v19 = vld [vmem:[%s15961_s1 + $0x2b0] sm:$0xff] }
  0x6f   : > { %820 = vperm.xlu1 %11732, %v9532_v20   ;;  %815 = vperm.xlu0 %11731, %v9531_v21  }
  0x73   : > { %830 = vperm.xlu1 %11732, %v9534_v22   ;;  %825 = vperm.xlu0 %11731, %v9533_v23   ;;  %v9605_v22 = vld [vmem:[%s15961_s1 + $0x2c8] sm:$0xff]  ;;  %v9604_v23 = vld [vmem:[%s15961_s1 + $0x2c0] sm:$0xff] }
  0x77   : > { %840 = vperm.xlu1 %11732, %v9536_v24   ;;  %835 = vperm.xlu0 %11731, %v9535_v25  }
  0x7b   : > { %850 = vperm.xlu1 %11732, %v9538_v26   ;;  %845 = vperm.xlu0 %11731, %v9537_v27   ;;  %v9607_v26 = vld [vmem:[%s15961_s1 + $0x2d8] sm:$0xff]  ;;  %v9606_v27 = vld [vmem:[%s15961_s1 + $0x2d0] sm:$0xff] }
  0x7f   : > { %860 = vperm.xlu1 %11732, %v9540_v28   ;;  %855 = vperm.xlu0 %11731, %v9539_v29  }
  0x83   : > { %870 = vperm.xlu1 %11732, %v9542_v30   ;;  %865 = vperm.xlu0 %11731, %v9541_v31   ;;  %v9609_v30 = vld [vmem:[%s15961_s1 + $0x2e8] sm:$0xff]  ;;  %v9608_v31 = vld [vmem:[%s15961_s1 + $0x2e0] sm:$0xff] }
  0x87   : > { %880 = vperm.xlu1 %11732, %v9544_v32   ;;  %875 = vperm.xlu0 %11731, %v9543_v33   ;;  %v361_v32 = vld [vmem:[%s12014_s24 + $0xf0] sm:$0xff] }
  0x88   : > { %393 = vst.msk [vmem:[#allocation2 + $0x101] sm:$0xff] %vm253_vm0, %v361_v32  ;;  %v675_v32 = vld [vmem:[#allocation2 + $0x39] sm:$0xff] }
  0x8b   : > { %890 = vperm.xlu1 %11732, %v9546_v34   ;;  %885 = vperm.xlu0 %11731, %v9545_v35   ;;  %v9611_v35 = vld [vmem:[%s15961_s1 + $0x2f8] sm:$0xff] }
  0x8e   : > { %v12256_v38 = vpop.permute.xlu1 %471  ;;  %v12258_v39 = vpop.permute.xlu0 %461 }
  0x8f   : > { %1440 = vperm.xlu1 %11732, %v9581_v36   ;;  %1435 = vperm.xlu0 %11731, %v9580_v37   ;;  %v9610_v36 = vld [vmem:[%s15961_s1 + $0x2f0] sm:$0xff] }
  0x92   : > { %v12266_v42 = vpop.permute.xlu1 %476  ;;  %v12268_v43 = vpop.permute.xlu0 %466 }
  0x93   : > { %1450 = vperm.xlu1 %11732, %v9583_v40   ;;  %1445 = vperm.xlu0 %11731, %v9582_v41   ;;  %v669_v41 = vld [vmem:[#allocation2 + $0x9] sm:$0xff] }
  0x96   : > { %v12276_v46 = vpop.permute.xlu1 %486  ;;  %v12278_v47 = vpop.permute.xlu0 %481 }
  0x97   : > { %1460 = vperm.xlu1 %11732, %v9585_v44   ;;  %1455 = vperm.xlu0 %11731, %v9584_v45   ;;  %v668_v44 = vld [vmem:[#allocation2 + $0x1] sm:$0xff] }
  0x98   : > { %v9630_v45 = vld [vmem:[%s15961_s1 + $0x308] sm:$0xff] }
  0x9a   : > { %v12286_v50 = vpop.permute.xlu1 %496  ;;  %v12288_v51 = vpop.permute.xlu0 %491 }
  0x9b   : > { %1470 = vperm.xlu1 %11732, %v9587_v48   ;;  %1465 = vperm.xlu0 %11731, %v9586_v49   ;;  %v9629_v48 = vld [vmem:[%s15961_s1 + $0x300] sm:$0xff] }
  0x9e   : > { %v12296_v54 = vpop.permute.xlu1 %506  ;;  %v12298_v55 = vpop.permute.xlu0 %501 }
  0x9f   : > { %1480 = vperm.xlu1 %11732, %v9589_v52   ;;  %1475 = vperm.xlu0 %11731, %v9588_v53  }
  0xa2   : > { %v12306_v58 = vpop.permute.xlu1 %516  ;;  %v12308_v59 = vpop.permute.xlu0 %511 }
  0xa3   : > { %1490 = vperm.xlu1 %11732, %v9591_v56   ;;  %1485 = vperm.xlu0 %11731, %v9590_v57   ;;  %v671_v57 = vld [vmem:[#allocation2 + $0x19] sm:$0xff] }
  0xa6   : > { %v12316_v62 = vpop.permute.xlu1 %526  ;;  %v12318_v63 = vpop.permute.xlu0 %521 }
  0xa7   : > { %1500 = vperm.xlu1 %11732, %v9593_v60   ;;  %1495 = vperm.xlu0 %11731, %v9592_v61   ;;  %v670_v60 = vld [vmem:[#allocation2 + $0x11] sm:$0xff] }
  0xa8   : > { %v9632_v61 = vld [vmem:[%s15961_s1 + $0x318] sm:$0xff] }
  0xaa   : > { %v12326_v2 = vpop.permute.xlu1 %536  ;;  %v12328_v4 = vpop.permute.xlu0 %531 }
  0xab   : > { %1510 = vperm.xlu1 %11732, %v9595_v0   ;;  %1505 = vperm.xlu0 %11731, %v9594_v1   ;;  %v9631_v0 = vld [vmem:[%s15961_s1 + $0x310] sm:$0xff] }
  0xae   : > { %v12336_v7 = vpop.permute.xlu1 %546  ;;  %v12338_v8 = vpop.permute.xlu0 %541 }
  0xaf   : > { %1520 = vperm.xlu1 %11732, %v9597_v5   ;;  %1515 = vperm.xlu0 %11731, %v9596_v6  }
  0xb2   : > { %v12346_v12 = vpop.permute.xlu1 %556  ;;  %v12348_v13 = vpop.permute.xlu0 %551 }
  0xb3   : > { %1530 = vperm.xlu1 %11732, %v9599_v10   ;;  %1525 = vperm.xlu0 %11731, %v9598_v11  }
  0xb6   : > { %v12356_v16 = vpop.permute.xlu1 %566  ;;  %v12358_v17 = vpop.permute.xlu0 %561 }
  0xb7   : > { %1540 = vperm.xlu1 %11732, %v9601_v14   ;;  %1535 = vperm.xlu0 %11731, %v9600_v15   ;;  %v673_v14 = vld [vmem:[#allocation2 + $0x29] sm:$0xff]  ;;  %v672_v15 = vld [vmem:[#allocation2 + $0x21] sm:$0xff] }
  0xba   : > { %v12366_v20 = vpop.permute.xlu1 %576  ;;  %v12368_v21 = vpop.permute.xlu0 %571 }
  0xbb   : > { %1550 = vperm.xlu1 %11732, %v9603_v18   ;;  %1545 = vperm.xlu0 %11731, %v9602_v19   ;;  %v9634_v18 = vld [vmem:[%s15961_s1 + $0x328] sm:$0xff]  ;;  %v9633_v19 = vld [vmem:[%s15961_s1 + $0x320] sm:$0xff] }
  0xbe   : > { %v12376_v24 = vpop.permute.xlu1 %586  ;;  %v12378_v25 = vpop.permute.xlu0 %581 }
  0xbf   : > { %1560 = vperm.xlu1 %11732, %v9605_v22   ;;  %1555 = vperm.xlu0 %11731, %v9604_v23  }
  0xc2   : > { %v12386_v28 = vpop.permute.xlu1 %596  ;;  %v12388_v29 = vpop.permute.xlu0 %591 }
  0xc3   : > { %1570 = vperm.xlu1 %11732, %v9607_v26   ;;  %1565 = vperm.xlu0 %11731, %v9606_v27   ;;  %v1205_v27 = vsel %vm991_vm1, %v12168_v9, 0  ;;  %v9635_v9 = vld [vmem:[%s15961_s1 + $0x330] sm:$0xff] }
  0xc6   : > { %v12398_v33 = vpop.permute.xlu1 %606  ;;  %v12400_v34 = vpop.permute.xlu0 %601 }
  0xc7   : > { %1580 = vperm.xlu1 %11732, %v9609_v30   ;;  %1575 = vperm.xlu0 %11731, %v9608_v31  }
  0xca   : > { %v12408_v37 = vpop.permute.xlu1 %616  ;;  %v12410_v40 = vpop.permute.xlu0 %611 }
  0xcb   : > { %1590 = vperm.xlu1 %11732, %v9611_v35   ;;  %1585 = vperm.xlu0 %11731, %v9610_v36   ;;  %v12436_v35 = vld [vmem:[%s15962_s2 + $0x4] sm:$0x3]  ;;  %v674_v36 = vld [vmem:[#allocation2 + $0x31] sm:$0xff] }
  0xce   : > { %v741_v49 = vpop.permute.xlu1 %740  ;;  %v736_v52 = vpop.permute.xlu0 %735 }
  0xcf   : > { %v894_v53 = vmul.f32 %v741_v49, %v669_v41  ;;  %v893_v56 = vmul.f32 %v736_v52, %v668_v44  ;;  %1959 = vperm.xlu1 %11732, %v9630_v45   ;;  %1954 = vperm.xlu0 %11731, %v9629_v48   ;;  %v9636_v41 = vld [vmem:[%s15961_s1 + $0x338] sm:$0xff] }
  0xd1   : > { %v925_v1 = vpack.c.bf16 %v894_v53, %v893_v56  ;;  %v677_v53 = vld [vmem:[#allocation2 + $0x49] sm:$0xff]  ;;  %v676_v56 = vld [vmem:[#allocation2 + $0x41] sm:$0xff] }
  0xd2   : > { %v751_v5 = vpop.permute.xlu1 %750  ;;  %v746_v6 = vpop.permute.xlu0 %745 }
  0xd3   : > { %v896_v10 = vmul.f32 %v751_v5, %v671_v57  ;;  %v895_v11 = vmul.f32 %v746_v6, %v670_v60  ;;  %1969 = vperm.xlu1 %11732, %v9632_v61   ;;  %1964 = vperm.xlu0 %11731, %v9631_v0   ;;  %v9638_v57 = vld [vmem:[%s15961_s1 + $0x348] sm:$0xff]  ;;  %v9637_v60 = vld [vmem:[%s15961_s1 + $0x340] sm:$0xff] }
  0xd4   : > { %10581 = vmatprep.mubr.msk.bf16.mxu0 %vm253_vm0, %v925_v1 }
  0xd5   : > { %v926_v22 = vpack.c.bf16 %v896_v10, %v895_v11  ;;  %v679_v10 = vld [vmem:[#allocation2 + $0x59] sm:$0xff]  ;;  %v678_v11 = vld [vmem:[#allocation2 + $0x51] sm:$0xff] }
  0xd6   : > { %v761_v23 = vpop.permute.xlu1 %760  ;;  %v756_v26 = vpop.permute.xlu0 %755 }
  0xd7   : > { %v898_v30 = vmul.f32 %v761_v23, %v673_v14  ;;  %v897_v31 = vmul.f32 %v756_v26, %v672_v15  ;;  %1979 = vperm.xlu1 %11732, %v9634_v18   ;;  %1974 = vperm.xlu0 %11731, %v9633_v19   ;;  %v9640_v14 = vld [vmem:[%s15961_s1 + $0x358] sm:$0xff]  ;;  %v9639_v15 = vld [vmem:[%s15961_s1 + $0x350] sm:$0xff] }
  0xd8   : > { %10582 = vmatmul.mubr.msk.bf16.vlgmr.msra.gmra.mrb[0].mxu0 %vm253_vm0, %v926_v22 }
  0xd9   : > { %v927_v44 = vpack.c.bf16 %v898_v30, %v897_v31  ;;  %10614 = vmatpush3.bf16.msra.mxu0 %v1205_v27  ;;  %v681_v27 = vld [vmem:[#allocation2 + $0x69] sm:$0xff]  ;;  %v680_v30 = vld [vmem:[#allocation2 + $0x61] sm:$0xff] }
  0xda   : > { %v771_v45 = vpop.permute.xlu1 %770  ;;  %v766_v48 = vpop.permute.xlu0 %765  ;;  %11705 = vmatprep.subr.msk.bf16.mxu0 %vm991_vm1, %v12436_v35  ;;  %v9642_v31 = vld [vmem:[%s15961_s1 + $0x368] sm:$0xff] }
  0xdb   : > { %v900_v49 = vmul.f32 %v771_v45, %v675_v32  ;;  %v899_v52 = vmul.f32 %v766_v48, %v674_v36  ;;  %1989 = vperm.xlu1 %11732, %v9636_v41   ;;  %1984 = vperm.xlu0 %11731, %v9635_v9   ;;  %v9641_v32 = vld [vmem:[%s15961_s1 + $0x360] sm:$0xff] }
  0xdc   : > { %10585 = vmatprep.mubr.msk.bf16.mxu0 %vm253_vm0, %v927_v44  ;;  %v683_v48 = vld [vmem:[#allocation2 + $0x79] sm:$0xff] }
  0xdd   : > { %v928_v61 = vpack.c.bf16 %v900_v49, %v899_v52  ;;  %v682_v49 = vld [vmem:[#allocation2 + $0x71] sm:$0xff] }
  0xde   : > { %v781_v0 = vpop.permute.xlu1 %780  ;;  %v776_v1 = vpop.permute.xlu0 %775  ;;  %v9644_v52 = vld [vmem:[%s15961_s1 + $0x378] sm:$0xff] }
  0xdf   : > { %v902_v5 = vmul.f32 %v781_v0, %v677_v53  ;;  %v901_v6 = vmul.f32 %v776_v1, %v676_v56  ;;  %1999 = vperm.xlu1 %11732, %v9638_v57   ;;  %1994 = vperm.xlu0 %11731, %v9637_v60   ;;  %v9643_v53 = vld [vmem:[%s15961_s1 + $0x370] sm:$0xff] }
  0xe0   : > { %10586 = vmatmul.mubr.msk.bf16.gmra.mrb[4].mxu0 %vm253_vm0, %v928_v61  ;;  %v685_v1 = vld [vmem:[#allocation2 + $0x89] sm:$0xff] }
  0xe1   : > { %v929_v18 = vpack.c.bf16 %v902_v5, %v901_v6  ;;  %v684_v5 = vld [vmem:[#allocation2 + $0x81] sm:$0xff] }
  0xe2   : > { %v791_v19 = vpop.permute.xlu1 %790  ;;  %v786_v22 = vpop.permute.xlu0 %785  ;;  %v9646_v6 = vld [vmem:[%s15961_s1 + $0x388] sm:$0xff] }
  0xe3   : > { %v904_v23 = vmul.f32 %v791_v19, %v679_v10  ;;  %v903_v26 = vmul.f32 %v786_v22, %v678_v11  ;;  %2009 = vperm.xlu1 %11732, %v9640_v14   ;;  %2004 = vperm.xlu0 %11731, %v9639_v15   ;;  %v9645_v10 = vld [vmem:[%s15961_s1 + $0x380] sm:$0xff] }
  0xe4   : > { %10589 = vmatprep.mubr.msk.bf16.mxu0 %vm253_vm0, %v929_v18  ;;  %v687_v22 = vld [vmem:[#allocation2 + $0x99] sm:$0xff] }
  0xe5   : > { %v930_v36 = vpack.c.bf16 %v904_v23, %v903_v26  ;;  %v686_v23 = vld [vmem:[#allocation2 + $0x91] sm:$0xff] }
  0xe6   : > { %v801_v41 = vpop.permute.xlu1 %800  ;;  %v796_v9 = vpop.permute.xlu0 %795  ;;  %v9648_v26 = vld [vmem:[%s15961_s1 + $0x398] sm:$0xff] }
  0xe7   : > { %v906_v44 = vmul.f32 %v801_v41, %v681_v27  ;;  %v905_v45 = vmul.f32 %v796_v9, %v680_v30  ;;  %2019 = vperm.xlu1 %11732, %v9642_v31   ;;  %2014 = vperm.xlu0 %11731, %v9641_v32   ;;  %v9647_v27 = vld [vmem:[%s15961_s1 + $0x390] sm:$0xff] }
  0xe8   : > { %10590 = vmatmul.mubr.msk.bf16.gmra.mrb[8].mxu0 %vm253_vm0, %v930_v36  ;;  %v689_v9 = vld [vmem:[#allocation2 + $0xa9] sm:$0xff] }
  0xe9   : > { %v931_v56 = vpack.c.bf16 %v906_v44, %v905_v45  ;;  %v688_v44 = vld [vmem:[#allocation2 + $0xa1] sm:$0xff] }
  0xea   : > { %v811_v57 = vpop.permute.xlu1 %810  ;;  %v806_v60 = vpop.permute.xlu0 %805  ;;  %v9650_v45 = vld [vmem:[%s15961_s1 + $0x3a8] sm:$0xff] }
  0xeb   : > { %v908_v61 = vmul.f32 %v811_v57, %v683_v48  ;;  %v907_v0 = vmul.f32 %v806_v60, %v682_v49  ;;  %2029 = vperm.xlu1 %11732, %v9644_v52   ;;  %2024 = vperm.xlu0 %11731, %v9643_v53   ;;  %v9649_v48 = vld [vmem:[%s15961_s1 + $0x3a0] sm:$0xff] }
  0xec   : > { %10593 = vmatprep.mubr.msk.bf16.mxu0 %vm253_vm0, %v931_v56  ;;  %v691_v60 = vld [vmem:[#allocation2 + $0xb9] sm:$0xff] }
  0xed   : > { %v932_v11 = vpack.c.bf16 %v908_v61, %v907_v0  ;;  %v690_v61 = vld [vmem:[#allocation2 + $0xb1] sm:$0xff] }
  0xee   : > { %v821_v14 = vpop.permute.xlu1 %820  ;;  %v816_v15 = vpop.permute.xlu0 %815  ;;  %v9652_v0 = vld [vmem:[%s15961_s1 + $0x3b8] sm:$0xff] }
  0xef   : > { %v910_v18 = vmul.f32 %v821_v14, %v685_v1  ;;  %v909_v19 = vmul.f32 %v816_v15, %v684_v5  ;;  %2039 = vperm.xlu1 %11732, %v9646_v6   ;;  %2034 = vperm.xlu0 %11731, %v9645_v10   ;;  %v9651_v1 = vld [vmem:[%s15961_s1 + $0x3b0] sm:$0xff] }
  0xf0   : > { %10594 = vmatmul.mubr.msk.bf16.gmra.mrb[12].mxu0 %vm253_vm0, %v932_v11  ;;  %v693_v15 = vld [vmem:[#allocation2 + $0xc9] sm:$0xff] }
  0xf1   : > { %v933_v30 = vpack.c.bf16 %v910_v18, %v909_v19  ;;  %v692_v18 = vld [vmem:[#allocation2 + $0xc1] sm:$0xff] }
  0xf2   : > { %v831_v31 = vpop.permute.xlu1 %830  ;;  %v826_v32 = vpop.permute.xlu0 %825  ;;  %v9654_v19 = vld [vmem:[%s15961_s1 + $0x3c8] sm:$0xff] }
  0xf3   : > { %v912_v36 = vmul.f32 %v831_v31, %v687_v22  ;;  %v911_v41 = vmul.f32 %v826_v32, %v686_v23  ;;  %2049 = vperm.xlu1 %11732, %v9648_v26   ;;  %2044 = vperm.xlu0 %11731, %v9647_v27   ;;  %v9653_v22 = vld [vmem:[%s15961_s1 + $0x3c0] sm:$0xff] }
  0xf4   : > { %10597 = vmatprep.mubr.msk.bf16.mxu0 %vm253_vm0, %v933_v30  ;;  %v695_v32 = vld [vmem:[#allocation2 + $0xd9] sm:$0xff] }
  0xf5   : > { %v934_v49 = vpack.c.bf16 %v912_v36, %v911_v41  ;;  %v694_v36 = vld [vmem:[#allocation2 + $0xd1] sm:$0xff] }
  0xf6   : > { %v841_v52 = vpop.permute.xlu1 %840  ;;  %v836_v53 = vpop.permute.xlu0 %835  ;;  %v9656_v41 = vld [vmem:[%s15961_s1 + $0x3d8] sm:$0xff] }
  0xf7   : > { %v914_v56 = vmul.f32 %v841_v52, %v689_v9  ;;  %v913_v57 = vmul.f32 %v836_v53, %v688_v44  ;;  %2059 = vperm.xlu1 %11732, %v9650_v45   ;;  %2054 = vperm.xlu0 %11731, %v9649_v48   ;;  %v9655_v9 = vld [vmem:[%s15961_s1 + $0x3d0] sm:$0xff] }
  0xf8   : > { %10598 = vmatmul.mubr.msk.bf16.gmra.mrb[16].mxu0 %vm253_vm0, %v934_v49  ;;  %v697_v53 = vld [vmem:[#allocation2 + $0xe9] sm:$0xff] }
  0xf9   : > { %v935_v5 = vpack.c.bf16 %v914_v56, %v913_v57  ;;  %v696_v56 = vld [vmem:[#allocation2 + $0xe1] sm:$0xff] }
  0xfa   : > { %v851_v6 = vpop.permute.xlu1 %850  ;;  %v846_v10 = vpop.permute.xlu0 %845  ;;  %v9658_v57 = vld [vmem:[%s15961_s1 + $0x3e8] sm:$0xff] }
  0xfb   : > { %v916_v11 = vmul.f32 %v851_v6, %v691_v60  ;;  %v915_v14 = vmul.f32 %v846_v10, %v690_v61  ;;  %2069 = vperm.xlu1 %11732, %v9652_v0   ;;  %2064 = vperm.xlu0 %11731, %v9651_v1   ;;  %v9657_v60 = vld [vmem:[%s15961_s1 + $0x3e0] sm:$0xff]  ;;  %v362_v61 = vld [vmem:[%s12014_s24 + $0xf8] sm:$0xff]  ;;  %v396_v6 = vld [vmem:[#allocation2 + $0x8] sm:$0xff] }
  0xfc   : > { %10601 = vmatprep.mubr.msk.bf16.mxu0 %vm253_vm0, %v935_v5  ;;  %394 = vst.msk [vmem:[#allocation2 + $0x109] sm:$0xff] %vm253_vm0, %v362_v61  ;;  %v397_v61 = vld [vmem:[#allocation2 + $0x10] sm:$0xff] }
  0xfd   : > { %v936_v23 = vpack.c.bf16 %v916_v11, %v915_v14  ;;  %v699_v14 = vld [vmem:[#allocation2 + $0xf9] sm:$0xff] }
  0xfe   : > { %v861_v26 = vpop.permute.xlu1 %860  ;;  %v856_v27 = vpop.permute.xlu0 %855 }
  0xff   : > { %v918_v30 = vmul.f32 %v861_v26, %v693_v15  ;;  %v917_v31 = vmul.f32 %v856_v27, %v692_v18  ;;  %2079 = vperm.xlu1 %11732, %v9654_v19   ;;  %2074 = vperm.xlu0 %11731, %v9653_v22   ;;  %v698_v15 = vld [vmem:[#allocation2 + $0xf1] sm:$0xff] }
 0x100   : > { %10602 = vmatmul.mubr.msk.bf16.gmra.mrb[20].mxu0 %vm253_vm0, %v936_v23  ;;  %v9660_v18 = vld [vmem:[%s15961_s1 + $0x3f8] sm:$0xff]  ;;  %v9659_v19 = vld [vmem:[%s15961_s1 + $0x3f0] sm:$0xff]  ;;  %v395_v23 = vld [vmem:[#allocation2] sm:$0xff] }
 0x101   : > { %v937_v44 = vpack.c.bf16 %v918_v30, %v917_v31  ;;  %v620_v30 = vmul.f32 %v12268_v43, %v396_v6 }
 0x102   : > { %v871_v45 = vpop.permute.xlu1 %870  ;;  %v866_v48 = vpop.permute.xlu0 %865 }
 0x103   : > { %v920_v49 = vmul.f32 %v871_v45, %v695_v32  ;;  %v919_v52 = vmul.f32 %v866_v48, %v694_v36  ;;  %2089 = vperm.xlu1 %11732, %v9656_v41   ;;  %2084 = vperm.xlu0 %11731, %v9655_v9   ;;  %v9696_v36 = vld [vmem:[%s15961_s1 + $0x508] sm:$0xff]  ;;  %v9695_v41 = vld [vmem:[%s15961_s1 + $0x500] sm:$0xff]  ;;  %v619_v9 = vmul.f32 %v12258_v39, %v395_v23  ;;  %v398_v45 = vld [vmem:[#allocation2 + $0x18] sm:$0xff] }
 0x104   : > { %10605 = vmatprep.mubr.msk.bf16.mxu0 %vm253_vm0, %v937_v44  ;;  %v9697_v39 = vld [vmem:[%s15961_s1 + $0x510] sm:$0xff]  ;;  %v403_v23 = vld [vmem:[#allocation2 + $0x40] sm:$0xff] }
 0x105   : > { %v938_v0 = vpack.c.bf16 %v920_v49, %v919_v52  ;;  %v651_v49 = vpack.c.bf16 %v620_v30, %v619_v9  ;;  %v400_v52 = vld [vmem:[#allocation2 + $0x28] sm:$0xff]  ;;  %v9702_v9 = vld [vmem:[%s15961_s1 + $0x538] sm:$0xff] }
 0x106   : > { %v881_v1 = vpop.permute.xlu1 %880  ;;  %v876_v5 = vpop.permute.xlu0 %875 }
 0x107   : > { %v922_v10 = vmul.f32 %v881_v1, %v697_v53  ;;  %v921_v11 = vmul.f32 %v876_v5, %v696_v56  ;;  %2099 = vperm.xlu1 %11732, %v9658_v57   ;;  %2094 = vperm.xlu0 %11731, %v9657_v60   ;;  %v399_v53 = vld [vmem:[#allocation2 + $0x20] sm:$0xff]  ;;  %v1370_v57 = vld [vmem:[#allocation2 + $0x12] sm:$0xff]  ;;  %v624_v1 = vmul.f32 %v12276_v46, %v400_v52 }
 0x108   : > { %10606 = vmatmul.mubr.msk.bf16.gmra.mrb[24].mxu0 %vm253_vm0, %v938_v0  ;;  %v1371_v56 = vld [vmem:[#allocation2 + $0x1a] sm:$0xff]  ;;  %v622_v0 = vmul.f32 %v12266_v42, %v398_v45 }
 0x109   : > { %v939_v22 = vpack.c.bf16 %v922_v10, %v921_v11  ;;  %v9698_v60 = vld [vmem:[%s15961_s1 + $0x518] sm:$0xff]  ;;  %v623_v10 = vmul.f32 %v12278_v47, %v399_v53  ;;  %v9699_v42 = vld [vmem:[%s15961_s1 + $0x520] sm:$0xff] }
 0x10a   : > { %v891_v26 = vpop.permute.xlu1 %890  ;;  %v886_v27 = vpop.permute.xlu0 %885 }
 0x10b   : > { %v924_v31 = vmul.f32 %v891_v26, %v699_v14  ;;  %v923_v32 = vmul.f32 %v886_v27, %v698_v15  ;;  %2109 = vperm.xlu1 %11732, %v9660_v18   ;;  %2104 = vperm.xlu0 %11731, %v9659_v19   ;;  %v621_v15 = vmul.f32 %v12256_v38, %v397_v61  ;;  %v9700_v18 = vld [vmem:[%s15961_s1 + $0x528] sm:$0xff]  ;;  %v402_v19 = vld [vmem:[#allocation2 + $0x38] sm:$0xff]  ;;  %v1692_v38 = vsel %vm991_vm1, %v12436_v35, 0  ;;  %v9701_v35 = vld [vmem:[%s15961_s1 + $0x530] sm:$0xff] }
 0x10c   : > { %10609 = vmatprep.mubr.msk.bf16.mxu0 %vm253_vm0, %v939_v22  ;;  %v401_v22 = vld [vmem:[#allocation2 + $0x30] sm:$0xff]  ;;  %v653_v30 = vpack.c.bf16 %v624_v1, %v623_v10  ;;  %v406_v61 = vld [vmem:[#allocation2 + $0x58] sm:$0xff]  ;;  %v407_v10 = vld [vmem:[#allocation2 + $0x60] sm:$0xff] }
 0x10d   : > { %v940_v44 = vpack.c.bf16 %v924_v31, %v923_v32  ;;  %v652_v47 = vpack.c.bf16 %v622_v0, %v621_v15  ;;  %v404_v31 = vld [vmem:[#allocation2 + $0x48] sm:$0xff]  ;;  %v1375_v32 = vld [vmem:[#allocation2 + $0x3a] sm:$0xff]  ;;  %v625_v45 = vmul.f32 %v12288_v51, %v401_v22 }
 0x10e   : > { %v12542_v48 = vpop.permute.xlu1 %1440  ;;  %v12544_v43 = vpop.permute.xlu0 %1435  ;;  %v9703_v51 = vld [vmem:[%s15961_s1 + $0x540] sm:$0xff] }
 0x10f   : > { %2772 = vperm.xlu1 %11732, %v9696_v36   ;;  %2767 = vperm.xlu0 %11731, %v9695_v41   ;;  %v12579_v36 = vld [vmem:[%s15962_s2 + $0x6] sm:$0x3]  ;;  %v1374_v41 = vld [vmem:[#allocation2 + $0x32] sm:$0xff]  ;;  %v1379_v15 = vld [vmem:[#allocation2 + $0x5a] sm:$0xff] }
 0x110   : > { %10610 = vmatmul.mubr.msk.bf16.gmra.mrb[28].mxu0 %vm253_vm0, %v940_v44  ;;  %v626_v44 = vmul.f32 %v12286_v50, %v402_v19  ;;  %v9704_v50 = vld [vmem:[%s15961_s1 + $0x548] sm:$0xff]  ;;  %v630_v19 = vmul.f32 %v12306_v58, %v406_v61  ;;  %v9707_v58 = vld [vmem:[%s15961_s1 + $0x560] sm:$0xff] }
 0x111   : > { %10615 = vmatprep.mubr.msk.bf16.mxu0 %vm253_vm0, %v651_v49  ;;  %v628_v49 = vmul.f32 %v12296_v54, %v404_v31  ;;  %v631_v31 = vmul.f32 %v12318_v63, %v407_v10  ;;  %v409_v63 = vld [vmem:[#allocation2 + $0x70] sm:$0xff] }
 0x112   : > { %v1451_v5 = vpop.permute.xlu1 %1450  ;;  %v1446_v6 = vpop.permute.xlu0 %1445 }
 0x113   : > { %v12557_v11 = vmul.f32 %v1451_v5, %v1371_v56  ;;  %v12559_v14 = vmul.f32 %v1446_v6, %v1370_v57  ;;  %2782 = vperm.xlu1 %11732, %v9698_v60   ;;  %2777 = vperm.xlu0 %11731, %v9697_v39   ;;  %v627_v56 = vmul.f32 %v12298_v55, %v403_v23  ;;  %v405_v55 = vld [vmem:[#allocation2 + $0x50] sm:$0xff]  ;;  %v408_v6 = vld [vmem:[#allocation2 + $0x68] sm:$0xff] }
 0x114   : > { %v654_v39 = vpack.c.bf16 %v626_v44, %v625_v45  ;;  %v629_v22 = vmul.f32 %v12308_v59, %v405_v55  ;;  %v632_v23 = vmul.f32 %v12316_v62, %v408_v6  ;;  %v633_v55 = vmul.f32 %v12328_v4, %v409_v63 }
 0x115   : > { %v1626_v46 = vpack.c.bf16 %v12557_v11, %v12559_v14  ;;  %v655_v5 = vpack.c.bf16 %v628_v49, %v627_v56  ;;  %v1383_v56 = vld [vmem:[#allocation2 + $0x7a] sm:$0xff] }
 0x116   : > { %v12570_v26 = vpop.permute.xlu1 %1460  ;;  %v12572_v27 = vpop.permute.xlu0 %1455  ;;  %v656_v62 = vpack.c.bf16 %v630_v19, %v629_v22  ;;  %v657_v49 = vpack.c.bf16 %v632_v23, %v631_v31  ;;  %v414_v19 = vld [vmem:[#allocation2 + $0x98] sm:$0xff]  ;;  %v415_v31 = vld [vmem:[#allocation2 + $0xa0] sm:$0xff] }
 0x117   : > { %2792 = vperm.xlu1 %11732, %v9700_v18   ;;  %2787 = vperm.xlu0 %11731, %v9699_v42   ;;  %v1378_v18 = vld [vmem:[#allocation2 + $0x52] sm:$0xff]  ;;  %v638_v63 = vmul.f32 %v12346_v12, %v414_v19  ;;  %v9715_v12 = vld [vmem:[%s15961_s1 + $0x5a0] sm:$0xff] }
 0x118   : > { %10616 = vmatmul.mubr.msk.bf16.vlgmr.msra.gmra.mrb[0].mxu0 %vm253_vm0, %v652_v47  ;;  %v9706_v42 = vld [vmem:[%s15961_s1 + $0x558] sm:$0xff]  ;;  %v9705_v47 = vld [vmem:[%s15961_s1 + $0x550] sm:$0xff] }
 0x119   : > { %10648 = vmatpush3.bf16.msra.mxu0 %v1692_v38  ;;  %10619 = vmatprep.mubr.msk.bf16.mxu0 %vm253_vm0, %v653_v30  ;;  %v9718_v19 = vld [vmem:[%s15961_s1 + $0x5b8] sm:$0xff] }
 0x11a   : > { %v1471_v52 = vpop.permute.xlu1 %1470  ;;  %v1466_v53 = vpop.permute.xlu0 %1465  ;;  %11706 = vmatprep.subr.msk.bf16.mxu0 %vm991_vm1, %v12579_v36 }
 0x11b   : > { %v12595_v57 = vmul.f32 %v1471_v52, %v1375_v32  ;;  %v12597_v60 = vmul.f32 %v1466_v53, %v1374_v41  ;;  %2802 = vperm.xlu1 %11732, %v9702_v9   ;;  %2797 = vperm.xlu0 %11731, %v9701_v35   ;;  %v9708_v9 = vld [vmem:[%s15961_s1 + $0x568] sm:$0xff]  ;;  %v410_v35 = vld [vmem:[#allocation2 + $0x78] sm:$0xff]  ;;  %v411_v53 = vld [vmem:[#allocation2 + $0x80] sm:$0xff] }
 0x11c   : > { %v412_v52 = vld [vmem:[#allocation2 + $0x88] sm:$0xff]  ;;  %v634_v61 = vmul.f32 %v12326_v2, %v410_v35  ;;  %v9711_v2 = vld [vmem:[%s15961_s1 + $0x580] sm:$0xff]  ;;  %v9713_v35 = vld [vmem:[%s15961_s1 + $0x590] sm:$0xff] }
 0x11d   : > { %v1628_v54 = vpack.c.bf16 %v12595_v57, %v12597_v60 }
 0x11e   : > { %v12607_v0 = vpop.permute.xlu1 %1480  ;;  %v12609_v1 = vpop.permute.xlu0 %1475 }
 0x11f   : > { %2812 = vperm.xlu1 %11732, %v9704_v50   ;;  %2807 = vperm.xlu0 %11731, %v9703_v51   ;;  %v1382_v50 = vld [vmem:[#allocation2 + $0x72] sm:$0xff] }
 0x120   : > { %10620 = vmatmul.mubr.msk.bf16.gmra.mrb[4].mxu0 %vm253_vm0, %v654_v39  ;;  %v9710_v51 = vld [vmem:[%s15961_s1 + $0x578] sm:$0xff]  ;;  %v9709_v39 = vld [vmem:[%s15961_s1 + $0x570] sm:$0xff] }
 0x121   : > { %10623 = vmatprep.mubr.msk.bf16.mxu0 %vm253_vm0, %v655_v5  ;;  %v636_v5 = vmul.f32 %v12336_v7, %v412_v52  ;;  %v658_v7 = vpack.c.bf16 %v634_v61, %v633_v55  ;;  %v9716_v61 = vld [vmem:[%s15961_s1 + $0x5a8] sm:$0xff]  ;;  %v418_v55 = vld [vmem:[#allocation2 + $0xb8] sm:$0xff] }
 0x122   : > { %v1491_v38 = vpop.permute.xlu1 %1490  ;;  %v1486_v30 = vpop.permute.xlu0 %1485 }
 0x123   : > { %v12623_v32 = vmul.f32 %v1491_v38, %v1379_v15  ;;  %v12625_v41 = vmul.f32 %v1486_v30, %v1378_v18  ;;  %2822 = vperm.xlu1 %11732, %v9706_v42   ;;  %2817 = vperm.xlu0 %11731, %v9705_v47   ;;  %v635_v15 = vmul.f32 %v12338_v8, %v411_v53  ;;  %v9712_v47 = vld [vmem:[%s15961_s1 + $0x588] sm:$0xff]  ;;  %v413_v8 = vld [vmem:[#allocation2 + $0x90] sm:$0xff] }
 0x124   : > { %v416_v30 = vld [vmem:[#allocation2 + $0xa8] sm:$0xff] }
 0x125   : > { %v1630_v59 = vpack.c.bf16 %v12623_v32, %v12625_v41  ;;  %v659_v38 = vpack.c.bf16 %v636_v5, %v635_v15  ;;  %v640_v52 = vmul.f32 %v12356_v16, %v416_v30  ;;  %v420_v15 = vld [vmem:[#allocation2 + $0xc8] sm:$0xff] }
 0x126   : > { %v12635_v44 = vpop.permute.xlu1 %1500  ;;  %v12637_v45 = vpop.permute.xlu0 %1495 }
 0x127   : > { %2832 = vperm.xlu1 %11732, %v9708_v9   ;;  %2827 = vperm.xlu0 %11731, %v9707_v58   ;;  %v1387_v9 = vld [vmem:[#allocation2 + $0x9a] sm:$0xff]  ;;  %v1386_v58 = vld [vmem:[#allocation2 + $0x92] sm:$0xff] }
 0x128   : > { %10624 = vmatmul.mubr.msk.bf16.gmra.mrb[8].mxu0 %vm253_vm0, %v656_v62  ;;  %v9714_v62 = vld [vmem:[%s15961_s1 + $0x598] sm:$0xff] }
 0x129   : > { %10627 = vmatprep.mubr.msk.bf16.mxu0 %vm253_vm0, %v657_v49  ;;  %v637_v49 = vmul.f32 %v12348_v13, %v413_v8  ;;  %v9717_v8 = vld [vmem:[%s15961_s1 + $0x5b0] sm:$0xff] }
 0x12a   : > { %v1511_v6 = vpop.permute.xlu1 %1510  ;;  %v1506_v10 = vpop.permute.xlu0 %1505 }
 0x12b   : > { %v12651_v18 = vmul.f32 %v1511_v6, %v1383_v56  ;;  %v12653_v42 = vmul.f32 %v1506_v10, %v1382_v50  ;;  %2842 = vperm.xlu1 %11732, %v9710_v51   ;;  %2837 = vperm.xlu0 %11731, %v9709_v39   ;;  %v639_v50 = vmul.f32 %v12358_v17, %v415_v31  ;;  %v417_v17 = vld [vmem:[#allocation2 + $0xb0] sm:$0xff] }
 0x12c   : > { %v660_v16 = vpack.c.bf16 %v638_v63, %v637_v49  ;;  %v641_v30 = vmul.f32 %v12368_v21, %v417_v17  ;;  %v644_v31 = vmul.f32 %v12376_v24, %v420_v15  ;;  %v9720_v49 = vld [vmem:[%s15961_s1 + $0x5c8] sm:$0xff]  ;;  %v9722_v17 = vld [vmem:[%s15961_s1 + $0x5d8] sm:$0xff] }
 0x12d   : > { %v1632_v4 = vpack.c.bf16 %v12651_v18, %v12653_v42  ;;  %v661_v10 = vpack.c.bf16 %v640_v52, %v639_v50  ;;  %v422_v52 = vld [vmem:[#allocation2 + $0xd8] sm:$0xff] }
 0x12e   : > { %v12663_v22 = vpop.permute.xlu1 %1520  ;;  %v12665_v23 = vpop.permute.xlu0 %1515  ;;  %v646_v15 = vmul.f32 %v12386_v28, %v422_v52  ;;  %v9723_v28 = vld [vmem:[%s15961_s1 + $0x5e0] sm:$0xff]  ;;  %v1398_v52 = vld [vmem:[#allocation2 + $0xf2] sm:$0xff] }
 0x12f   : > { %2852 = vperm.xlu1 %11732, %v9712_v47   ;;  %2847 = vperm.xlu0 %11731, %v9711_v2   ;;  %v419_v47 = vld [vmem:[#allocation2 + $0xc0] sm:$0xff] }
 0x130   : > { %10628 = vmatmul.mubr.msk.bf16.gmra.mrb[12].mxu0 %vm253_vm0, %v658_v7  ;;  %v1391_v2 = vld [vmem:[#allocation2 + $0xba] sm:$0xff]  ;;  %v1390_v7 = vld [vmem:[#allocation2 + $0xb2] sm:$0xff] }
 0x131   : > { %10631 = vmatprep.mubr.msk.bf16.mxu0 %vm253_vm0, %v659_v38  ;;  %v642_v38 = vmul.f32 %v12366_v20, %v418_v55  ;;  %v9719_v20 = vld [vmem:[%s15961_s1 + $0x5c0] sm:$0xff]  ;;  %v1394_v55 = vld [vmem:[#allocation2 + $0xd2] sm:$0xff] }
 0x132   : > { %v1531_v53 = vpop.permute.xlu1 %1530  ;;  %v1526_v56 = vpop.permute.xlu0 %1525 }
 0x133   : > { %v12679_v51 = vmul.f32 %v1531_v53, %v1387_v9  ;;  %v12681_v39 = vmul.f32 %v1526_v56, %v1386_v58  ;;  %2862 = vperm.xlu1 %11732, %v9714_v62   ;;  %2857 = vperm.xlu0 %11731, %v9713_v35   ;;  %v643_v62 = vmul.f32 %v12378_v25, %v419_v47  ;;  %v421_v25 = vld [vmem:[#allocation2 + $0xd0] sm:$0xff] }
 0x134   : > { %v662_v24 = vpack.c.bf16 %v642_v38, %v641_v30  ;;  %v645_v47 = vmul.f32 %v12388_v29, %v421_v25  ;;  %v1399_v25 = vld [vmem:[#allocation2 + $0xfa] sm:$0xff] }
 0x135   : > { %v1634_v13 = vpack.c.bf16 %v12679_v51, %v12681_v39  ;;  %v663_v50 = vpack.c.bf16 %v644_v31, %v643_v62  ;;  %v9724_v31 = vld [vmem:[%s15961_s1 + $0x5e8] sm:$0xff] }
 0x136   : > { %v12691_v5 = vpop.permute.xlu1 %1540  ;;  %v12693_v6 = vpop.permute.xlu0 %1535 }
 0x137   : > { %2872 = vperm.xlu1 %11732, %v9716_v61   ;;  %2867 = vperm.xlu0 %11731, %v9715_v12   ;;  %v424_v61 = vld [vmem:[#allocation2 + $0xe8] sm:$0xff]  ;;  %v423_v12 = vld [vmem:[#allocation2 + $0xe0] sm:$0xff] }
 0x138   : > { %10632 = vmatmul.mubr.msk.bf16.gmra.mrb[16].mxu0 %vm253_vm0, %v660_v16  ;;  %v1395_v16 = vld [vmem:[#allocation2 + $0xda] sm:$0xff] }
 0x139   : > { %10635 = vmatprep.mubr.msk.bf16.mxu0 %vm253_vm0, %v661_v10  ;;  %v9721_v10 = vld [vmem:[%s15961_s1 + $0x5d0] sm:$0xff] }
 0x13a   : > { %v1551_v9 = vpop.permute.xlu1 %1550  ;;  %v1546_v58 = vpop.permute.xlu0 %1545 }
 0x13b   : > { %v12707_v35 = vmul.f32 %v1551_v9, %v1391_v2  ;;  %v12709_v63 = vmul.f32 %v1546_v58, %v1390_v7  ;;  %2882 = vperm.xlu1 %11732, %v9718_v19   ;;  %2877 = vperm.xlu0 %11731, %v9717_v8   ;;  %v648_v2 = vmul.f32 %v12398_v33, %v424_v61  ;;  %v426_v9 = vld [vmem:[#allocation2 + $0xf8] sm:$0xff]  ;;  %v9725_v61 = vld [vmem:[%s15961_s1 + $0x5f0] sm:$0xff] }
 0x13c   : > { %v647_v8 = vmul.f32 %v12400_v34, %v423_v12  ;;  %v664_v33 = vpack.c.bf16 %v646_v15, %v645_v47  ;;  %v425_v34 = vld [vmem:[#allocation2 + $0xf0] sm:$0xff]  ;;  %v650_v12 = vmul.f32 %v12408_v37, %v426_v9  ;;  %v9744_v37 = vld [vmem:[%s15961_s1 + $0x600] sm:$0xff] }
 0x13d   : > { %v1636_v21 = vpack.c.bf16 %v12707_v35, %v12709_v63  ;;  %v1889_v9 = vld [vmem:[#allocation2 + $0x20] sm:$0xff] }
 0x13e   : > { %v12719_v53 = vpop.permute.xlu1 %1560  ;;  %v12721_v56 = vpop.permute.xlu0 %1555 }
 0x13f   : > { %2892 = vperm.xlu1 %11732, %v9720_v49   ;;  %2887 = vperm.xlu0 %11731, %v9719_v20   ;;  %v665_v49 = vpack.c.bf16 %v648_v2, %v647_v8  ;;  %v1369_v20 = vld [vmem:[#allocation2 + $0xa] sm:$0xff] }
 0x140   : > { %10636 = vmatmul.mubr.msk.bf16.gmra.mrb[20].mxu0 %vm253_vm0, %v662_v24  ;;  %v1368_v24 = vld [vmem:[#allocation2 + $0x2] sm:$0xff] }
 0x141   : > { %10639 = vmatprep.mubr.msk.bf16.mxu0 %vm253_vm0, %v663_v50  ;;  %v9726_v50 = vld [vmem:[%s15961_s1 + $0x5f8] sm:$0xff]  ;;  %v1593_v15 = vmul.f32 %v12544_v43, %v1368_v24 }
 0x142   : > { %v1571_v7 = vpop.permute.xlu1 %1570  ;;  %v1566_v19 = vpop.permute.xlu0 %1565 }
 0x143   : > { %v12735_v38 = vmul.f32 %v1571_v7, %v1395_v16  ;;  %v12737_v30 = vmul.f32 %v1566_v19, %v1394_v55  ;;  %2902 = vperm.xlu1 %11732, %v9722_v17   ;;  %2897 = vperm.xlu0 %11731, %v9721_v10   ;;  %v649_v16 = vmul.f32 %v12410_v40, %v425_v34  ;;  %v9745_v7 = vld [vmem:[%s15961_s1 + $0x608] sm:$0xff]  ;;  %v9747_v34 = vld [vmem:[%s15961_s1 + $0x618] sm:$0xff] }
 0x144   : > { %v1594_v55 = vmul.f32 %v12542_v48, %v1369_v20 }
 0x145   : > { %v1638_v29 = vpack.c.bf16 %v12735_v38, %v12737_v30  ;;  %v666_v48 = vpack.c.bf16 %v650_v12, %v649_v16  ;;  %v9749_v12 = vld [vmem:[%s15961_s1 + $0x628] sm:$0xff]  ;;  %v9748_v16 = vld [vmem:[%s15961_s1 + $0x620] sm:$0xff] }
 0x146   : > { %v12747_v58 = vpop.permute.xlu1 %1580  ;;  %v12749_v62 = vpop.permute.xlu0 %1575  ;;  %v1625_v8 = vpack.c.bf16 %v1594_v55, %v1593_v15  ;;  %v1377_v55 = vld [vmem:[#allocation2 + $0x4a] sm:$0xff] }
 0x147   : > { %2912 = vperm.xlu1 %11732, %v9724_v31   ;;  %2907 = vperm.xlu0 %11731, %v9723_v28   ;;  %v1373_v31 = vld [vmem:[#allocation2 + $0x2a] sm:$0xff]  ;;  %v1372_v28 = vld [vmem:[#allocation2 + $0x22] sm:$0xff] }
 0x148   : > { %10640 = vmatmul.mubr.msk.bf16.gmra.mrb[24].mxu0 %vm253_vm0, %v664_v33  ;;  %v1890_v33 = vld [vmem:[#allocation2 + $0x28] sm:$0xff]  ;;  %v1598_v20 = vmul.f32 %v12570_v26, %v1373_v31  ;;  %v9750_v31 = vld [vmem:[%s15961_s1 + $0x630] sm:$0xff] }
 0x149   : > { %10643 = vmatprep.mubr.msk.bf16.mxu0 %vm253_vm0, %v665_v49  ;;  %v9746_v49 = vld [vmem:[%s15961_s1 + $0x610] sm:$0xff] }
 0x14a   : > { %v1591_v17 = vpop.permute.xlu1 %1590  ;;  %v1586_v10 = vpop.permute.xlu0 %1585 }
 0x14b   : > { %v12763_v47 = vmul.f32 %v1591_v17, %v1399_v25  ;;  %v12765_v2 = vmul.f32 %v1586_v10, %v1398_v52  ;;  %2922 = vperm.xlu1 %11732, %v9726_v50   ;;  %2917 = vperm.xlu0 %11731, %v9725_v61   ;;  %v1597_v25 = vmul.f32 %v12572_v27, %v1372_v28  ;;  %v2211_v10 = vsel %vm991_vm1, %v12579_v36, 0  ;;  %v9751_v36 = vld [vmem:[%s15961_s1 + $0x638] sm:$0xff] }
 0x14c   : > { %v1602_v28 = vmul.f32 %v12607_v0, %v1377_v55  ;;  %v9752_v0 = vld [vmem:[%s15961_s1 + $0x640] sm:$0xff]  ;;  %v9755_v55 = vld [vmem:[%s15961_s1 + $0x658] sm:$0xff] }
 0x14d   : > { %v1640_v40 = vpack.c.bf16 %v12763_v47, %v12765_v2  ;;  %v1627_v15 = vpack.c.bf16 %v1598_v20, %v1597_v25  ;;  %v1380_v25 = vld [vmem:[#allocation2 + $0x62] sm:$0xff] }
 0x14e   : > { %v12775_v19 = vpop.permute.xlu1 %1959  ;;  %v12777_v43 = vpop.permute.xlu0 %1954  ;;  %v9798_v2 = vld [vmem:[%s15961_s1 + $0x728] sm:$0xff] }
 0x14f   : > { %3291 = vperm.xlu1 %11732, %v9745_v7   ;;  %3286 = vperm.xlu0 %11731, %v9744_v37   ;;  %v1376_v7 = vld [vmem:[#allocation2 + $0x42] sm:$0xff] }
 0x150   : > { %10644 = vmatmul.mubr.msk.bf16.gmra.mrb[28].mxu0 %vm253_vm0, %v666_v48  ;;  %v1894_v37 = vld [vmem:[#allocation2 + $0x48] sm:$0xff]  ;;  %v1601_v11 = vmul.f32 %v12609_v1, %v1376_v7 }
 0x151   : > { %10649 = vmatprep.mubr.msk.bf16.mxu0 %vm253_vm0, %v1625_v8  ;;  %v12810_v48 = vld [vmem:[%s15962_s2 + $0x8] sm:$0x3]  ;;  %v1893_v8 = vld [vmem:[#allocation2 + $0x40] sm:$0xff] }
 0x152   : > { %v1970_v24 = vpop.permute.xlu1 %1969  ;;  %v1965_v52 = vpop.permute.xlu0 %1964 }
 0x153   : > { %v12789_v50 = vmul.f32 %v1970_v24, %v1890_v33  ;;  %v12791_v61 = vmul.f32 %v1965_v52, %v1889_v9  ;;  %3301 = vperm.xlu1 %11732, %v9747_v34   ;;  %3296 = vperm.xlu0 %11731, %v9746_v49   ;;  %v9753_v34 = vld [vmem:[%s15961_s1 + $0x648] sm:$0xff]  ;;  %v1629_v24 = vpack.c.bf16 %v1602_v28, %v1601_v11 }
 0x154   : > { %v1381_v52 = vld [vmem:[#allocation2 + $0x6a] sm:$0xff] }
 0x155   : > { %v2145_v26 = vpack.c.bf16 %v12789_v50, %v12791_v61  ;;  %v1902_v11 = vld [vmem:[#allocation2 + $0x88] sm:$0xff] }
 0x156   : > { %v12801_v17 = vpop.permute.xlu1 %1979  ;;  %v12803_v27 = vpop.permute.xlu0 %1974 }
 0x157   : > { %3311 = vperm.xlu1 %11732, %v9749_v12   ;;  %3306 = vperm.xlu0 %11731, %v9748_v16   ;;  %v1898_v12 = vld [vmem:[#allocation2 + $0x68] sm:$0xff]  ;;  %v1897_v16 = vld [vmem:[#allocation2 + $0x60] sm:$0xff] }
 0x158   : > { %10650 = vmatmul.mubr.msk.bf16.vlgmr.msra.gmra.mrb[0].mxu0 %vm253_vm0, %v1626_v46 }
 0x159   : > { %10682 = vmatpush3.bf16.msra.mxu0 %v2211_v10  ;;  %10653 = vmatprep.mubr.msk.bf16.mxu0 %vm253_vm0, %v1627_v15  ;;  %v9754_v10 = vld [vmem:[%s15961_s1 + $0x650] sm:$0xff]  ;;  %v1606_v15 = vmul.f32 %v12635_v44, %v1381_v52 }
 0x15a   : > { %v1990_v33 = vpop.permute.xlu1 %1989  ;;  %v1985_v9 = vpop.permute.xlu0 %1984  ;;  %11707 = vmatprep.subr.msk.bf16.mxu0 %vm991_vm1, %v12810_v48 }
 0x15b   : > { %v12827_v14 = vmul.f32 %v1990_v33, %v1894_v37  ;;  %v12829_v46 = vmul.f32 %v1985_v9, %v1893_v8  ;;  %3321 = vperm.xlu1 %11732, %v9751_v36   ;;  %3316 = vperm.xlu0 %11731, %v9750_v31   ;;  %v1605_v8 = vmul.f32 %v12637_v45, %v1380_v25  ;;  %v9756_v36 = vld [vmem:[%s15961_s1 + $0x660] sm:$0xff]  ;;  %v1385_v33 = vld [vmem:[#allocation2 + $0x8a] sm:$0xff] }
 0x15c   : > { %v1384_v9 = vld [vmem:[#allocation2 + $0x82] sm:$0xff]  ;;  %v1610_v52 = vmul.f32 %v12663_v22, %v1385_v33 }
 0x15d   : > { %v2147_v49 = vpack.c.bf16 %v12827_v14, %v12829_v46  ;;  %v1631_v28 = vpack.c.bf16 %v1606_v15, %v1605_v8  ;;  %v1906_v8 = vld [vmem:[#allocation2 + $0xa8] sm:$0xff] }
 0x15e   : > { %v12839_v20 = vpop.permute.xlu1 %1999  ;;  %v12841_v1 = vpop.permute.xlu0 %1994  ;;  %v9806_v46 = vld [vmem:[%s15961_s1 + $0x768] sm:$0xff] }
 0x15f   : > { %3331 = vperm.xlu1 %11732, %v9753_v34   ;;  %3326 = vperm.xlu0 %11731, %v9752_v0   ;;  %v1901_v34 = vld [vmem:[#allocation2 + $0x80] sm:$0xff]  ;;  %v9759_v0 = vld [vmem:[%s15961_s1 + $0x678] sm:$0xff] }
 0x160   : > { %10654 = vmatmul.mubr.msk.bf16.gmra.mrb[4].mxu0 %vm253_vm0, %v1628_v54  ;;  %v9757_v54 = vld [vmem:[%s15961_s1 + $0x668] sm:$0xff] }
 0x161   : > { %10657 = vmatprep.mubr.msk.bf16.mxu0 %vm253_vm0, %v1629_v24  ;;  %v9758_v24 = vld [vmem:[%s15961_s1 + $0x670] sm:$0xff] }
 0x162   : > { %v2010_v7 = vpop.permute.xlu1 %2009  ;;  %v2005_v37 = vpop.permute.xlu0 %2004 }
 0x163   : > { %v12856_v57 = vmul.f32 %v2010_v7, %v1898_v12  ;;  %v12858_v60 = vmul.f32 %v2005_v37, %v1897_v16  ;;  %3341 = vperm.xlu1 %11732, %v9755_v55   ;;  %3336 = vperm.xlu0 %11731, %v9754_v10   ;;  %v1609_v16 = vmul.f32 %v12665_v23, %v1384_v9  ;;  %v9760_v55 = vld [vmem:[%s15961_s1 + $0x680] sm:$0xff]  ;;  %v1389_v7 = vld [vmem:[#allocation2 + $0xaa] sm:$0xff] }
 0x164   : > { %v1388_v37 = vld [vmem:[#allocation2 + $0xa2] sm:$0xff]  ;;  %v1614_v33 = vmul.f32 %v12691_v5, %v1389_v7 }
 0x165   : > { %v2149_v44 = vpack.c.bf16 %v12856_v57, %v12858_v60  ;;  %v1633_v15 = vpack.c.bf16 %v1610_v52, %v1609_v16  ;;  %v1910_v16 = vld [vmem:[#allocation2 + $0xc8] sm:$0xff] }
 0x166   : > { %v12868_v31 = vpop.permute.xlu1 %2019  ;;  %v12870_v45 = vpop.permute.xlu0 %2014  ;;  %v9810_v60 = vld [vmem:[%s15961_s1 + $0x788] sm:$0xff] }
 0x167   : > { %3351 = vperm.xlu1 %11732, %v9757_v54   ;;  %3346 = vperm.xlu0 %11731, %v9756_v36   ;;  %v1905_v54 = vld [vmem:[#allocation2 + $0xa0] sm:$0xff]  ;;  %v9763_v36 = vld [vmem:[%s15961_s1 + $0x698] sm:$0xff] }
 0x168   : > { %10658 = vmatmul.mubr.msk.bf16.gmra.mrb[8].mxu0 %vm253_vm0, %v1630_v59  ;;  %v9761_v59 = vld [vmem:[%s15961_s1 + $0x688] sm:$0xff] }
 0x169   : > { %10661 = vmatprep.mubr.msk.bf16.mxu0 %vm253_vm0, %v1631_v28  ;;  %v9762_v28 = vld [vmem:[%s15961_s1 + $0x690] sm:$0xff] }
 0x16a   : > { %v2030_v25 = vpop.permute.xlu1 %2029  ;;  %v2025_v12 = vpop.permute.xlu0 %2024 }
 0x16b   : > { %v12885_v32 = vmul.f32 %v2030_v25, %v1902_v11  ;;  %v12887_v41 = vmul.f32 %v2025_v12, %v1901_v34  ;;  %3361 = vperm.xlu1 %11732, %v9759_v0   ;;  %3356 = vperm.xlu0 %11731, %v9758_v24   ;;  %v1613_v34 = vmul.f32 %v12693_v6, %v1388_v37  ;;  %v9764_v0 = vld [vmem:[%s15961_s1 + $0x6a0] sm:$0xff]  ;;  %v1393_v25 = vld [vmem:[#allocation2 + $0xca] sm:$0xff] }
 0x16c   : > { %v1392_v12 = vld [vmem:[#allocation2 + $0xc2] sm:$0xff]  ;;  %v1618_v7 = vmul.f32 %v12719_v53, %v1393_v25 }
 0x16d   : > { %v2151_v22 = vpack.c.bf16 %v12885_v32, %v12887_v41  ;;  %v1635_v52 = vpack.c.bf16 %v1614_v33, %v1613_v34  ;;  %v1914_v34 = vld [vmem:[#allocation2 + $0xe8] sm:$0xff] }
 0x16e   : > { %v12897_v10 = vpop.permute.xlu1 %2039  ;;  %v12899_v23 = vpop.permute.xlu0 %2034  ;;  %v9814_v41 = vld [vmem:[%s15961_s1 + $0x7a8] sm:$0xff] }
 0x16f   : > { %3371 = vperm.xlu1 %11732, %v9761_v59   ;;  %3366 = vperm.xlu0 %11731, %v9760_v55   ;;  %v1909_v59 = vld [vmem:[#allocation2 + $0xc0] sm:$0xff]  ;;  %v9767_v55 = vld [vmem:[%s15961_s1 + $0x6b8] sm:$0xff] }
 0x170   : > { %10662 = vmatmul.mubr.msk.bf16.gmra.mrb[12].mxu0 %vm253_vm0, %v1632_v4  ;;  %v9765_v4 = vld [vmem:[%s15961_s1 + $0x6a8] sm:$0xff] }
 0x171   : > { %10665 = vmatprep.mubr.msk.bf16.mxu0 %vm253_vm0, %v1633_v15  ;;  %v9766_v15 = vld [vmem:[%s15961_s1 + $0x6b0] sm:$0xff] }
 0x172   : > { %v2050_v9 = vpop.permute.xlu1 %2049  ;;  %v2045_v11 = vpop.permute.xlu0 %2044 }
 0x173   : > { %v12914_v18 = vmul.f32 %v2050_v9, %v1906_v8  ;;  %v12916_v42 = vmul.f32 %v2045_v11, %v1905_v54  ;;  %3381 = vperm.xlu1 %11732, %v9763_v36   ;;  %3376 = vperm.xlu0 %11731, %v9762_v28   ;;  %v1617_v54 = vmul.f32 %v12721_v56, %v1392_v12  ;;  %v9768_v36 = vld [vmem:[%s15961_s1 + $0x6c0] sm:$0xff]  ;;  %v1397_v9 = vld [vmem:[#allocation2 + $0xea] sm:$0xff] }
 0x174   : > { %v1396_v11 = vld [vmem:[#allocation2 + $0xe2] sm:$0xff]  ;;  %v1622_v25 = vmul.f32 %v12747_v58, %v1397_v9 }
 0x175   : > { %v2153_v5 = vpack.c.bf16 %v12914_v18, %v12916_v42  ;;  %v1637_v33 = vpack.c.bf16 %v1618_v7, %v1617_v54  ;;  %v1917_v54 = vld [vmem:[#allocation2 + $0x100] sm:$0xff]  ;;  %v9818_v42 = vld [vmem:[%s15961_s1 + $0x7c8] sm:$0xff] }
 0x176   : > { %v12926_v24 = vpop.permute.xlu1 %2059  ;;  %v12928_v6 = vpop.permute.xlu0 %2054 }
 0x177   : > { %3391 = vperm.xlu1 %11732, %v9765_v4   ;;  %3386 = vperm.xlu0 %11731, %v9764_v0   ;;  %v1913_v4 = vld [vmem:[#allocation2 + $0xe0] sm:$0xff]  ;;  %v9771_v0 = vld [vmem:[%s15961_s1 + $0x6d8] sm:$0xff] }
 0x178   : > { %10666 = vmatmul.mubr.msk.bf16.gmra.mrb[16].mxu0 %vm253_vm0, %v1634_v13  ;;  %v9769_v13 = vld [vmem:[%s15961_s1 + $0x6c8] sm:$0xff] }
 0x179   : > { %10669 = vmatprep.mubr.msk.bf16.mxu0 %vm253_vm0, %v1635_v52  ;;  %v9770_v52 = vld [vmem:[%s15961_s1 + $0x6d0] sm:$0xff] }
 0x17a   : > { %v2070_v37 = vpop.permute.xlu1 %2069  ;;  %v2065_v8 = vpop.permute.xlu0 %2064 }
 0x17b   : > { %v12943_v51 = vmul.f32 %v2070_v37, %v1910_v16  ;;  %v12945_v39 = vmul.f32 %v2065_v8, %v1909_v59  ;;  %3401 = vperm.xlu1 %11732, %v9767_v55   ;;  %3396 = vperm.xlu0 %11731, %v9766_v15   ;;  %v1621_v59 = vmul.f32 %v12749_v62, %v1396_v11  ;;  %v9772_v55 = vld [vmem:[%s15961_s1 + $0x6e0] sm:$0xff]  ;;  %v1888_v37 = vld [vmem:[#allocation2 + $0x18] sm:$0xff]  ;;  %v1887_v8 = vld [vmem:[#allocation2 + $0x10] sm:$0xff] }
 0x17c   : > { %v2113_v9 = vmul.f32 %v12775_v19, %v1888_v37 }
 0x17d   : > { %v2155_v53 = vpack.c.bf16 %v12943_v51, %v12945_v39  ;;  %v1639_v7 = vpack.c.bf16 %v1622_v25, %v1621_v59  ;;  %v9796_v59 = vld [vmem:[%s15961_s1 + $0x718] sm:$0xff]  ;;  %v9822_v39 = vld [vmem:[%s15961_s1 + $0x7e8] sm:$0xff] }
 0x17e   : > { %v12955_v28 = vpop.permute.xlu1 %2079  ;;  %v12957_v56 = vpop.permute.xlu0 %2074 }
 0x17f   : > { %3411 = vperm.xlu1 %11732, %v9769_v13   ;;  %3406 = vperm.xlu0 %11731, %v9768_v36   ;;  %v1918_v13 = vld [vmem:[#allocation2 + $0x108] sm:$0xff]  ;;  %v9775_v36 = vld [vmem:[%s15961_s1 + $0x6f8] sm:$0xff] }
 0x180   : > { %10670 = vmatmul.mubr.msk.bf16.gmra.mrb[20].mxu0 %vm253_vm0, %v1636_v21  ;;  %v9773_v21 = vld [vmem:[%s15961_s1 + $0x6e8] sm:$0xff] }
 0x181   : > { %10673 = vmatprep.mubr.msk.bf16.mxu0 %vm253_vm0, %v1637_v33  ;;  %v9774_v33 = vld [vmem:[%s15961_s1 + $0x6f0] sm:$0xff] }
 0x182   : > { %v2090_v12 = vpop.permute.xlu1 %2089  ;;  %v2085_v16 = vpop.permute.xlu0 %2084 }
 0x183   : > { %v12972_v35 = vmul.f32 %v2090_v12, %v1914_v34  ;;  %v12974_v63 = vmul.f32 %v2085_v16, %v1913_v4  ;;  %3421 = vperm.xlu1 %11732, %v9771_v0   ;;  %3416 = vperm.xlu0 %11731, %v9770_v52   ;;  %v2112_v4 = vmul.f32 %v12777_v43, %v1887_v8  ;;  %v9793_v0 = vld [vmem:[%s15961_s1 + $0x700] sm:$0xff]  ;;  %v1892_v12 = vld [vmem:[#allocation2 + $0x38] sm:$0xff]  ;;  %v1891_v16 = vld [vmem:[#allocation2 + $0x30] sm:$0xff] }
 0x184   : > { %v2117_v37 = vmul.f32 %v12801_v17, %v1892_v12  ;;  %v2116_v47 = vmul.f32 %v12803_v27, %v1891_v16  ;;  %v13049_v27 = vld [vmem:[%s15962_s2 + $0xa] sm:$0x3]  ;;  %v1900_v12 = vld [vmem:[#allocation2 + $0x78] sm:$0xff]  ;;  %v9803_v16 = vld [vmem:[%s15961_s1 + $0x750] sm:$0xff] }
 0x185   : > { %v2157_v58 = vpack.c.bf16 %v12972_v35, %v12974_v63  ;;  %v2144_v25 = vpack.c.bf16 %v2113_v9, %v2112_v4  ;;  %v9800_v9 = vld [vmem:[%s15961_s1 + $0x738] sm:$0xff]  ;;  %v9801_v4 = vld [vmem:[%s15961_s1 + $0x740] sm:$0xff]  ;;  %v9843_v35 = vld [vmem:[%s15961_s1 + $0x808] sm:$0xff] }
 0x186   : > { %v12984_v15 = vpop.permute.xlu1 %2099  ;;  %v12986_v62 = vpop.permute.xlu0 %2094  ;;  %v2146_v17 = vpack.c.bf16 %v2117_v37, %v2116_v47  ;;  %v2125_v37 = vmul.f32 %v12868_v31, %v1900_v12  ;;  %v1903_v31 = vld [vmem:[#allocation2 + $0x90] sm:$0xff]  ;;  %v9842_v63 = vld [vmem:[%s15961_s1 + $0x800] sm:$0xff] }
 0x187   : > { %3431 = vperm.xlu1 %11732, %v9773_v21   ;;  %3426 = vperm.xlu0 %11731, %v9772_v55   ;;  %v9795_v21 = vld [vmem:[%s15961_s1 + $0x710] sm:$0xff]  ;;  %v2128_v57 = vmul.f32 %v12899_v23, %v1903_v31  ;;  %v9812_v23 = vld [vmem:[%s15961_s1 + $0x798] sm:$0xff] }
 0x188   : > { %10674 = vmatmul.mubr.msk.bf16.gmra.mrb[24].mxu0 %vm253_vm0, %v1638_v29  ;;  %v9794_v29 = vld [vmem:[%s15961_s1 + $0x708] sm:$0xff] }
 0x189   : > { %10677 = vmatprep.mubr.msk.bf16.mxu0 %vm253_vm0, %v1639_v7 }
 0x18a   : > { %v2110_v11 = vpop.permute.xlu1 %2109  ;;  %v2105_v34 = vpop.permute.xlu0 %2104 }
 0x18b   : > { %v13001_v38 = vmul.f32 %v2110_v11, %v1918_v13  ;;  %v13003_v30 = vmul.f32 %v2105_v34, %v1917_v54  ;;  %3441 = vperm.xlu1 %11732, %v9775_v36   ;;  %3436 = vperm.xlu0 %11731, %v9774_v33   ;;  %v2505_v13 = vsel %vm991_vm1, %v12810_v48, 0  ;;  %v1896_v36 = vld [vmem:[#allocation2 + $0x58] sm:$0xff]  ;;  %v1895_v33 = vld [vmem:[#allocation2 + $0x50] sm:$0xff] }
 0x18c   : > { %v9799_v48 = vld [vmem:[%s15961_s1 + $0x730] sm:$0xff]  ;;  %v2121_v50 = vmul.f32 %v12839_v20, %v1896_v36  ;;  %v2120_v61 = vmul.f32 %v12841_v1, %v1895_v33  ;;  %v9804_v1 = vld [vmem:[%s15961_s1 + $0x758] sm:$0xff] }
 0x18d   : > { %v2159_v19 = vpack.c.bf16 %v13001_v38, %v13003_v30  ;;  %v1899_v20 = vld [vmem:[#allocation2 + $0x70] sm:$0xff]  ;;  %v2411_v38 = vld [vmem:[#allocation2 + $0x39] sm:$0xff]  ;;  %v9847_v30 = vld [vmem:[%s15961_s1 + $0x828] sm:$0xff] }
 0x18e   : > { %v13013_v52 = vpop.permute.xlu1 %2772  ;;  %v13015_v43 = vpop.permute.xlu0 %2767  ;;  %v2124_v14 = vmul.f32 %v12870_v45, %v1899_v20  ;;  %v9808_v45 = vld [vmem:[%s15961_s1 + $0x778] sm:$0xff] }
 0x18f   : > { %3810 = vperm.xlu1 %11732, %v9794_v29   ;;  %3805 = vperm.xlu0 %11731, %v9793_v0  }
 0x190   : > { %10678 = vmatmul.mubr.msk.bf16.gmra.mrb[28].mxu0 %vm253_vm0, %v1640_v40  ;;  %v9797_v40 = vld [vmem:[%s15961_s1 + $0x720] sm:$0xff] }
 0x191   : > { %10683 = vmatprep.mubr.msk.bf16.mxu0 %vm253_vm0, %v2144_v25  ;;  %v2148_v25 = vpack.c.bf16 %v2121_v50, %v2120_v61 }
 0x192   : > { %v13028_v55 = vpop.permute.xlu1 %2782  ;;  %v13030_v7 = vpop.permute.xlu0 %2777 }
 0x193   : > { %3820 = vperm.xlu1 %11732, %v9796_v59   ;;  %3815 = vperm.xlu0 %11731, %v9795_v21  }
 0x196   : > { %v13040_v8 = vpop.permute.xlu1 %2792  ;;  %v13042_v54 = vpop.permute.xlu0 %2787 }
 0x197   : > { %3830 = vperm.xlu1 %11732, %v9798_v2   ;;  %3825 = vperm.xlu0 %11731, %v9797_v40   ;;  %v2150_v40 = vpack.c.bf16 %v2125_v37, %v2124_v14  ;;  %v1912_v14 = vld [vmem:[#allocation2 + $0xd8] sm:$0xff] }
 0x198   : > { %10684 = vmatmul.mubr.msk.bf16.vlgmr.msra.gmra.mrb[0].mxu0 %vm253_vm0, %v2145_v26  ;;  %v9802_v26 = vld [vmem:[%s15961_s1 + $0x748] sm:$0xff] }
 0x199   : > { %10716 = vmatpush3.bf16.msra.mxu0 %v2505_v13  ;;  %10687 = vmatprep.mubr.msk.bf16.mxu0 %vm253_vm0, %v2146_v17  ;;  %v1904_v13 = vld [vmem:[#allocation2 + $0x98] sm:$0xff]  ;;  %v9807_v17 = vld [vmem:[%s15961_s1 + $0x770] sm:$0xff] }
 0x19a   : > { %v13062_v11 = vpop.permute.xlu1 %2802  ;;  %v13064_v34 = vpop.permute.xlu0 %2797  ;;  %11708 = vmatprep.subr.msk.bf16.mxu0 %vm991_vm1, %v13049_v27 }
 0x19b   : > { %3840 = vperm.xlu1 %11732, %v9800_v9   ;;  %3835 = vperm.xlu0 %11731, %v9799_v48   ;;  %v2129_v9 = vmul.f32 %v12897_v10, %v1904_v13  ;;  %v1907_v10 = vld [vmem:[#allocation2 + $0xb0] sm:$0xff]  ;;  %v2137_v13 = vmul.f32 %v12955_v28, %v1912_v14  ;;  %v9845_v14 = vld [vmem:[%s15961_s1 + $0x818] sm:$0xff] }
 0x19c   : > { %v2132_v32 = vmul.f32 %v12928_v6, %v1907_v10  ;;  %v9816_v6 = vld [vmem:[%s15961_s1 + $0x7b8] sm:$0xff]  ;;  %v1915_v28 = vld [vmem:[#allocation2 + $0xf0] sm:$0xff] }
 0x19d   : > { %v2152_v61 = vpack.c.bf16 %v2129_v9, %v2128_v57  ;;  %v1916_v9 = vld [vmem:[#allocation2 + $0xf8] sm:$0xff]  ;;  %v9819_v57 = vld [vmem:[%s15961_s1 + $0x7d0] sm:$0xff]  ;;  %v2140_v51 = vmul.f32 %v12986_v62, %v1915_v28 }
 0x19e   : > { %v13076_v29 = vpop.permute.xlu1 %2812  ;;  %v13078_v0 = vpop.permute.xlu0 %2807  ;;  %v9824_v62 = vld [vmem:[%s15961_s1 + $0x7f8] sm:$0xff] }
 0x19f   : > { %3850 = vperm.xlu1 %11732, %v9802_v26   ;;  %3845 = vperm.xlu0 %11731, %v9801_v4   ;;  %v1908_v26 = vld [vmem:[#allocation2 + $0xb8] sm:$0xff]  ;;  %v9811_v4 = vld [vmem:[%s15961_s1 + $0x790] sm:$0xff] }
 0x1a0   : > { %10688 = vmatmul.mubr.msk.bf16.gmra.mrb[4].mxu0 %vm253_vm0, %v2147_v49  ;;  %v9805_v49 = vld [vmem:[%s15961_s1 + $0x760] sm:$0xff]  ;;  %v2133_v20 = vmul.f32 %v12926_v24, %v1908_v26  ;;  %v1911_v24 = vld [vmem:[#allocation2 + $0xd0] sm:$0xff] }
 0x1a1   : > { %10691 = vmatprep.mubr.msk.bf16.mxu0 %vm253_vm0, %v2148_v25  ;;  %v2136_v18 = vmul.f32 %v12957_v56, %v1911_v24  ;;  %v9820_v56 = vld [vmem:[%s15961_s1 + $0x7d8] sm:$0xff]  ;;  %v9844_v24 = vld [vmem:[%s15961_s1 + $0x810] sm:$0xff] }
 0x1a2   : > { %v13091_v59 = vpop.permute.xlu1 %2822  ;;  %v13093_v21 = vpop.permute.xlu0 %2817  ;;  %v2154_v37 = vpack.c.bf16 %v2133_v20, %v2132_v32  ;;  %v2406_v32 = vld [vmem:[#allocation2 + $0x11] sm:$0xff] }
 0x1a3   : > { %3860 = vperm.xlu1 %11732, %v9804_v1   ;;  %3855 = vperm.xlu0 %11731, %v9803_v16  }
 0x1a6   : > { %v13103_v47 = vpop.permute.xlu1 %2832  ;;  %v13105_v2 = vpop.permute.xlu0 %2827 }
 0x1a7   : > { %3870 = vperm.xlu1 %11732, %v9806_v46   ;;  %3865 = vperm.xlu0 %11731, %v9805_v49   ;;  %v9815_v46 = vld [vmem:[%s15961_s1 + $0x7b0] sm:$0xff] }
 0x1a8   : > { %10692 = vmatmul.mubr.msk.bf16.gmra.mrb[8].mxu0 %vm253_vm0, %v2149_v44  ;;  %v9809_v44 = vld [vmem:[%s15961_s1 + $0x780] sm:$0xff] }
 0x1a9   : > { %10695 = vmatprep.mubr.msk.bf16.mxu0 %vm253_vm0, %v2150_v40 }
 0x1aa   : > { %v13118_v36 = vpop.permute.xlu1 %2842  ;;  %v13120_v33 = vpop.permute.xlu0 %2837 }
 0x1ab   : > { %3880 = vperm.xlu1 %11732, %v9808_v45   ;;  %3875 = vperm.xlu0 %11731, %v9807_v17   ;;  %v2156_v17 = vpack.c.bf16 %v2137_v13, %v2136_v18 }
 0x1ae   : > { %v13130_v48 = vpop.permute.xlu1 %2852  ;;  %v13132_v50 = vpop.permute.xlu0 %2847 }
 0x1af   : > { %3890 = vperm.xlu1 %11732, %v9810_v60   ;;  %3885 = vperm.xlu0 %11731, %v9809_v44  }
 0x1b0   : > { %10696 = vmatmul.mubr.msk.bf16.gmra.mrb[12].mxu0 %vm253_vm0, %v2151_v22  ;;  %v9813_v22 = vld [vmem:[%s15961_s1 + $0x7a0] sm:$0xff] }
 0x1b1   : > { %10699 = vmatprep.mubr.msk.bf16.mxu0 %vm253_vm0, %v2152_v61  ;;  %v2141_v61 = vmul.f32 %v12984_v15, %v1916_v9 }
 0x1b2   : > { %v13145_v25 = vpop.permute.xlu1 %2862  ;;  %v13147_v12 = vpop.permute.xlu0 %2857 }
 0x1b3   : > { %3900 = vperm.xlu1 %11732, %v9812_v23   ;;  %3895 = vperm.xlu0 %11731, %v9811_v4   ;;  %v2158_v15 = vpack.c.bf16 %v2141_v61, %v2140_v51  ;;  %v9823_v23 = vld [vmem:[%s15961_s1 + $0x7f0] sm:$0xff]  ;;  %v9849_v61 = vld [vmem:[%s15961_s1 + $0x838] sm:$0xff] }
 0x1b4   : > { %v9848_v51 = vld [vmem:[%s15961_s1 + $0x830] sm:$0xff] }
 0x1b6   : > { %v13157_v1 = vpop.permute.xlu1 %2872  ;;  %v13159_v16 = vpop.permute.xlu0 %2867 }
 0x1b7   : > { %3910 = vperm.xlu1 %11732, %v9814_v41   ;;  %3905 = vperm.xlu0 %11731, %v9813_v22   ;;  %v2407_v41 = vld [vmem:[#allocation2 + $0x19] sm:$0xff] }
 0x1b8   : > { %10700 = vmatmul.mubr.msk.bf16.gmra.mrb[16].mxu0 %vm253_vm0, %v2153_v5  ;;  %v9817_v5 = vld [vmem:[%s15961_s1 + $0x7c0] sm:$0xff] }
 0x1b9   : > { %10703 = vmatprep.mubr.msk.bf16.mxu0 %vm253_vm0, %v2154_v37 }
 0x1ba   : > { %v13172_v49 = vpop.permute.xlu1 %2882  ;;  %v13174_v40 = vpop.permute.xlu0 %2877 }
 0x1bb   : > { %3920 = vperm.xlu1 %11732, %v9816_v6   ;;  %3915 = vperm.xlu0 %11731, %v9815_v46   ;;  %v2408_v6 = vld [vmem:[#allocation2 + $0x21] sm:$0xff]  ;;  %v2409_v46 = vld [vmem:[#allocation2 + $0x29] sm:$0xff] }
 0x1be   : > { %v13184_v31 = vpop.permute.xlu1 %2892  ;;  %v13186_v45 = vpop.permute.xlu0 %2887 }
 0x1bf   : > { %3930 = vperm.xlu1 %11732, %v9818_v42   ;;  %3925 = vperm.xlu0 %11731, %v9817_v5   ;;  %v2410_v42 = vld [vmem:[#allocation2 + $0x31] sm:$0xff]  ;;  %v2439_v5 = vpack.c.bf16 %v2409_v46, %v2408_v6  ;;  %v2416_v46 = vld [vmem:[#allocation2 + $0x61] sm:$0xff] }
 0x1c0   : > { %10704 = vmatmul.mubr.msk.bf16.gmra.mrb[20].mxu0 %vm253_vm0, %v2155_v53  ;;  %v9821_v53 = vld [vmem:[%s15961_s1 + $0x7e0] sm:$0xff]  ;;  %v9852_v6 = vld [vmem:[%s15961_s1 + $0x850] sm:$0xff] }
 0x1c1   : > { %10707 = vmatprep.mubr.msk.bf16.mxu0 %vm253_vm0, %v2156_v17  ;;  %v2440_v17 = vpack.c.bf16 %v2411_v38, %v2410_v42  ;;  %v2417_v42 = vld [vmem:[#allocation2 + $0x69] sm:$0xff] }
 0x1c2   : > { %v13199_v60 = vpop.permute.xlu1 %2902  ;;  %v13201_v44 = vpop.permute.xlu0 %2897 }
 0x1c3   : > { %3940 = vperm.xlu1 %11732, %v9820_v56   ;;  %3935 = vperm.xlu0 %11731, %v9819_v57   ;;  %v3024_v56 = vsel %vm991_vm1, %v13049_v27, 0  ;;  %v13271_v57 = vld [vmem:[%s15962_s2 + $0xc] sm:$0x3]  ;;  %v2412_v27 = vld [vmem:[#allocation2 + $0x41] sm:$0xff] }
 0x1c6   : > { %v13212_v26 = vpop.permute.xlu1 %2912  ;;  %v13214_v10 = vpop.permute.xlu0 %2907 }
 0x1c7   : > { %3950 = vperm.xlu1 %11732, %v9822_v39   ;;  %3945 = vperm.xlu0 %11731, %v9821_v53   ;;  %v2413_v39 = vld [vmem:[#allocation2 + $0x49] sm:$0xff] }
 0x1c8   : > { %10708 = vmatmul.mubr.msk.bf16.gmra.mrb[24].mxu0 %vm253_vm0, %v2157_v58  ;;  %v2438_v58 = vpack.c.bf16 %v2407_v41, %v2406_v32  ;;  %v9851_v32 = vld [vmem:[%s15961_s1 + $0x848] sm:$0xff]  ;;  %v9850_v41 = vld [vmem:[%s15961_s1 + $0x840] sm:$0xff] }
 0x1c9   : > { %10711 = vmatprep.mubr.msk.bf16.mxu0 %vm253_vm0, %v2158_v15 }
 0x1ca   : > { %v13227_v4 = vpop.permute.xlu1 %2922  ;;  %v13229_v20 = vpop.permute.xlu0 %2917 }
 0x1cb   : > { %3960 = vperm.xlu1 %11732, %v9824_v62   ;;  %3955 = vperm.xlu0 %11731, %v9823_v23   ;;  %v2414_v62 = vld [vmem:[#allocation2 + $0x51] sm:$0xff]  ;;  %v2415_v23 = vld [vmem:[#allocation2 + $0x59] sm:$0xff] }
 0x1ce   : > { %v13237_v22 = vpop.permute.xlu1 %3291  ;;  %v13239_v37 = vpop.permute.xlu0 %3286 }
 0x1cf   : > { %4329 = vperm.xlu1 %11732, %v9843_v35   ;;  %4324 = vperm.xlu0 %11731, %v9842_v63   ;;  %v2441_v35 = vpack.c.bf16 %v2413_v39, %v2412_v27  ;;  %v2442_v63 = vpack.c.bf16 %v2415_v23, %v2414_v62  ;;  %v9857_v62 = vld [vmem:[%s15961_s1 + $0x878] sm:$0xff]  ;;  %v9856_v23 = vld [vmem:[%s15961_s1 + $0x870] sm:$0xff] }
 0x1d0   : > { %10712 = vmatmul.mubr.msk.bf16.gmra.mrb[28].mxu0 %vm253_vm0, %v2159_v19  ;;  %v9846_v19 = vld [vmem:[%s15961_s1 + $0x820] sm:$0xff] }
 0x1d1   : > { %10717 = vmatprep.mubr.msk.bf16.mxu0 %vm253_vm0, %v2438_v58 }
 0x1d2   : > { %v13252_v13 = vpop.permute.xlu1 %3301  ;;  %v13254_v18 = vpop.permute.xlu0 %3296 }
 0x1d3   : > { %4339 = vperm.xlu1 %11732, %v9845_v14   ;;  %4334 = vperm.xlu0 %11731, %v9844_v24   ;;  %v9853_v24 = vld [vmem:[%s15961_s1 + $0x858] sm:$0xff] }
 0x1d6   : > { %v13262_v9 = vpop.permute.xlu1 %3311  ;;  %v13264_v28 = vpop.permute.xlu0 %3306 }
 0x1d7   : > { %4349 = vperm.xlu1 %11732, %v9847_v30   ;;  %4344 = vperm.xlu0 %11731, %v9846_v19   ;;  %v2418_v19 = vld [vmem:[#allocation2 + $0x71] sm:$0xff] }
 0x1d8   : > { %10718 = vmatmul.mubr.msk.bf16.vlgmr.msra.gmra.mrb[0].mxu0 %vm253_vm0, %v2439_v5  ;;  %v2419_v5 = vld [vmem:[#allocation2 + $0x79] sm:$0xff] }
 0x1d9   : > { %10750 = vmatpush3.bf16.msra.mxu0 %v3024_v56  ;;  %10721 = vmatprep.mubr.msk.bf16.mxu0 %vm253_vm0, %v2440_v17  ;;  %v9855_v17 = vld [vmem:[%s15961_s1 + $0x868] sm:$0xff]  ;;  %v9854_v56 = vld [vmem:[%s15961_s1 + $0x860] sm:$0xff] }
 0x1da   : > { %v13281_v53 = vpop.permute.xlu1 %3321  ;;  %v13283_v15 = vpop.permute.xlu0 %3316  ;;  %11709 = vmatprep.subr.msk.bf16.mxu0 %vm991_vm1, %v13271_v57 }
 0x1db   : > { %4359 = vperm.xlu1 %11732, %v9849_v61   ;;  %4354 = vperm.xlu0 %11731, %v9848_v51   ;;  %v2443_v61 = vpack.c.bf16 %v2417_v42, %v2416_v46  ;;  %v2444_v51 = vpack.c.bf16 %v2419_v5, %v2418_v19  ;;  %v9859_v46 = vld [vmem:[%s15961_s1 + $0x888] sm:$0xff]  ;;  %v9858_v42 = vld [vmem:[%s15961_s1 + $0x880] sm:$0xff] }
 0x1de   : > { %v13293_v58 = vpop.permute.xlu1 %3331  ;;  %v13295_v14 = vpop.permute.xlu0 %3326 }
 0x1df   : > { %4369 = vperm.xlu1 %11732, %v9851_v32   ;;  %4364 = vperm.xlu0 %11731, %v9850_v41   ;;  %v2420_v32 = vld [vmem:[#allocation2 + $0x81] sm:$0xff]  ;;  %v2421_v41 = vld [vmem:[#allocation2 + $0x89] sm:$0xff] }
 0x1e0   : > { %10722 = vmatmul.mubr.msk.bf16.gmra.mrb[4].mxu0 %vm253_vm0, %v2441_v35  ;;  %v2445_v19 = vpack.c.bf16 %v2421_v41, %v2420_v32 }
 0x1e1   : > { %10725 = vmatprep.mubr.msk.bf16.mxu0 %vm253_vm0, %v2442_v63 }
 0x1e2   : > { %v13305_v38 = vpop.permute.xlu1 %3341  ;;  %v13307_v30 = vpop.permute.xlu0 %3336 }
 0x1e3   : > { %4379 = vperm.xlu1 %11732, %v9853_v24   ;;  %4374 = vperm.xlu0 %11731, %v9852_v6   ;;  %v2422_v24 = vld [vmem:[#allocation2 + $0x91] sm:$0xff]  ;;  %v2423_v6 = vld [vmem:[#allocation2 + $0x99] sm:$0xff] }
 0x1e4   : > { %v2446_v5 = vpack.c.bf16 %v2423_v6, %v2422_v24  ;;  %v2426_v24 = vld [vmem:[#allocation2 + $0xb1] sm:$0xff]  ;;  %v2427_v6 = vld [vmem:[#allocation2 + $0xb9] sm:$0xff] }
 0x1e6   : > { %v13315_v27 = vpop.permute.xlu1 %3351  ;;  %v13317_v39 = vpop.permute.xlu0 %3346 }
 0x1e7   : > { %4389 = vperm.xlu1 %11732, %v9855_v17   ;;  %4384 = vperm.xlu0 %11731, %v9854_v56  }
 0x1e8   : > { %10726 = vmatmul.mubr.msk.bf16.gmra.mrb[8].mxu0 %vm253_vm0, %v2443_v61  ;;  %v9861_v61 = vld [vmem:[%s15961_s1 + $0x898] sm:$0xff] }
 0x1e9   : > { %10729 = vmatprep.mubr.msk.bf16.mxu0 %vm253_vm0, %v2444_v51  ;;  %v9860_v51 = vld [vmem:[%s15961_s1 + $0x890] sm:$0xff] }
 0x1ea   : > { %v13327_v35 = vpop.permute.xlu1 %3361  ;;  %v13329_v63 = vpop.permute.xlu0 %3356 }
 0x1eb   : > { %4399 = vperm.xlu1 %11732, %v9857_v62   ;;  %4394 = vperm.xlu0 %11731, %v9856_v23   ;;  %v2424_v62 = vld [vmem:[#allocation2 + $0xa1] sm:$0xff]  ;;  %v2425_v23 = vld [vmem:[#allocation2 + $0xa9] sm:$0xff] }
 0x1ee   : > { %v13337_v17 = vpop.permute.xlu1 %3371  ;;  %v13339_v56 = vpop.permute.xlu0 %3366 }
 0x1ef   : > { %16001 = vst [vmem:[#allocation5_spill] sm:$0xff] %v13339_v56  ;;  %4409 = vperm.xlu1 %11732, %v9859_v46   ;;  %4404 = vperm.xlu0 %11731, %v9858_v42   ;;  %v9863_v46 = vld [vmem:[%s15961_s1 + $0x8a8] sm:$0xff]  ;;  %v9862_v42 = vld [vmem:[%s15961_s1 + $0x8a0] sm:$0xff] }
 0x1f0   : > { %10730 = vmatmul.mubr.msk.bf16.gmra.mrb[12].mxu0 %vm253_vm0, %v2445_v19  ;;  %v2447_v19 = vpack.c.bf16 %v2425_v23, %v2424_v62  ;;  %v2428_v62 = vld [vmem:[#allocation2 + $0xc1] sm:$0xff]  ;;  %v2429_v23 = vld [vmem:[#allocation2 + $0xc9] sm:$0xff] }
 0x1f1   : > { %10733 = vmatprep.mubr.msk.bf16.mxu0 %vm253_vm0, %v2446_v5  ;;  %v2448_v5 = vpack.c.bf16 %v2427_v6, %v2426_v24 }
 0x1f2   : > { %v13349_v32 = vpop.permute.xlu1 %3381  ;;  %v13351_v41 = vpop.permute.xlu0 %3376 }
 0x1f3   : > { %16002 = vst [vmem:[#allocation6_spill] sm:$0xff] %v13349_v32  ;;  %16003 = vst [vmem:[#allocation7_spill] sm:$0xff] %v13351_v41  ;;  %4419 = vperm.xlu1 %11732, %v9861_v61   ;;  %4414 = vperm.xlu0 %11731, %v9860_v51   ;;  %v9865_v61 = vld [vmem:[%s15961_s1 + $0x8b8] sm:$0xff]  ;;  %v9864_v51 = vld [vmem:[%s15961_s1 + $0x8b0] sm:$0xff] }
 0x1f6   : > { %v13359_v3 = vpop.permute.xlu1 %3391  ;;  %v13361_v56 = vpop.permute.xlu0 %3386 }
 0x1f7   : > { %16004 = vst [vmem:[#allocation8_spill] sm:$0xff] %v13359_v3  ;;  %16005 = vst [vmem:[#allocation9_spill] sm:$0xff] %v13361_v56  ;;  %4429 = vperm.xlu1 %11732, %v9863_v46   ;;  %4424 = vperm.xlu0 %11731, %v9862_v42   ;;  %v2430_v46 = vld [vmem:[#allocation2 + $0xd1] sm:$0xff]  ;;  %v2431_v42 = vld [vmem:[#allocation2 + $0xd9] sm:$0xff]  ;;  %v2449_v3 = vpack.c.bf16 %v2429_v23, %v2428_v62 }
 0x1f8   : > { %10734 = vmatmul.mubr.msk.bf16.gmra.mrb[16].mxu0 %vm253_vm0, %v2447_v19  ;;  %v9867_v19 = vld [vmem:[%s15961_s1 + $0x8c8] sm:$0xff]  ;;  %v9866_v56 = vld [vmem:[%s15961_s1 + $0x8c0] sm:$0xff] }
 0x1f9   : > { %10737 = vmatprep.mubr.msk.bf16.mxu0 %vm253_vm0, %v2448_v5  ;;  %v2450_v5 = vpack.c.bf16 %v2431_v42, %v2430_v46  ;;  %v2432_v62 = vld [vmem:[#allocation2 + $0xe1] sm:$0xff]  ;;  %v2433_v23 = vld [vmem:[#allocation2 + $0xe9] sm:$0xff] }
 0x1fa   : > { %v13371_v24 = vpop.permute.xlu1 %3401  ;;  %v13373_v6 = vpop.permute.xlu0 %3396 }
 0x1fb   : > { %16006 = vst [vmem:[#allocation10_spill] sm:$0xff] %v13371_v24  ;;  %16007 = vst [vmem:[#allocation11_spill] sm:$0xff] %v13373_v6  ;;  %4439 = vperm.xlu1 %11732, %v9865_v61   ;;  %4434 = vperm.xlu0 %11731, %v9864_v51   ;;  %v9869_v61 = vld [vmem:[%s15961_s1 + $0x8d8] sm:$0xff]  ;;  %v9868_v51 = vld [vmem:[%s15961_s1 + $0x8d0] sm:$0xff] }
 0x1fe   : > { %v13381_v41 = vpop.permute.xlu1 %3411  ;;  %v13383_v32 = vpop.permute.xlu0 %3406 }
 0x1ff   : > { %16008 = vst [vmem:[#allocation12_spill] sm:$0xff] %v13381_v41  ;;  %16009 = vst [vmem:[#allocation13_spill] sm:$0xff] %v13383_v32  ;;  %4449 = vperm.xlu1 %11732, %v9867_v19   ;;  %4444 = vperm.xlu0 %11731, %v9866_v56   ;;  %v2434_v19 = vld [vmem:[#allocation2 + $0xf1] sm:$0xff]  ;;  %v2435_v56 = vld [vmem:[#allocation2 + $0xf9] sm:$0xff]  ;;  %v2451_v41 = vpack.c.bf16 %v2433_v23, %v2432_v62 }
 0x200   : > { %10738 = vmatmul.mubr.msk.bf16.gmra.mrb[20].mxu0 %vm253_vm0, %v2449_v3  ;;  %v9871_v3 = vld [vmem:[%s15961_s1 + $0x8e8] sm:$0xff]  ;;  %v9870_v32 = vld [vmem:[%s15961_s1 + $0x8e0] sm:$0xff] }
 0x201   : > { %10741 = vmatprep.mubr.msk.bf16.mxu0 %vm253_vm0, %v2450_v5  ;;  %v2452_v5 = vpack.c.bf16 %v2435_v56, %v2434_v19  ;;  %v11733_v19 = vld [vmem:[#allocation2 + $0x1a] sm:$0xff] }
 0x202   : > { %v13393_v46 = vpop.permute.xlu1 %3421  ;;  %v13395_v42 = vpop.permute.xlu0 %3416  ;;  %v2926_v56 = vmul.f32 %v11733_v19, %v13013_v52 }
 0x203   : > { %16010 = vst [vmem:[#allocation14_spill] sm:$0xff] %v13395_v42  ;;  %4459 = vperm.xlu1 %11732, %v9869_v61   ;;  %4454 = vperm.xlu0 %11731, %v9868_v51   ;;  %v9873_v61 = vld [vmem:[%s15961_s1 + $0x8f8] sm:$0xff]  ;;  %v9872_v51 = vld [vmem:[%s15961_s1 + $0x8f0] sm:$0xff]  ;;  %v16013_v42 = vmov 0.0  }
 0x204   : > { %294 = vst.msk [vmem:[#allocation3 + $0x8] sm:$0xff] %vm292_vm3, %v16013_v42  ;;  %293 = vst.msk [vmem:[#allocation3] sm:$0xff] %vm292_vm3, %v16013_v42 }
 0x205   : > { %295 = vst.msk [vmem:[#allocation3 + $0x10] sm:$0xff] %vm292_vm3, %v16013_v42  ;;  %296 = vst.msk [vmem:[#allocation3 + $0x18] sm:$0xff] %vm292_vm3, %v16013_v42 }
 0x206   : > { %v13403_v6 = vpop.permute.xlu1 %3431  ;;  %v13405_v24 = vpop.permute.xlu0 %3426  ;;  %297 = vst.msk [vmem:[#allocation3 + $0x20] sm:$0xff] %vm292_vm3, %v16013_v42  ;;  %298 = vst.msk [vmem:[#allocation3 + $0x28] sm:$0xff] %vm292_vm3, %v16013_v42 }
 0x207   : > { %16011 = vst [vmem:[#allocation15_spill] sm:$0xff] %v13403_v6  ;;  %16012 = vst [vmem:[#allocation16_spill] sm:$0xff] %v13405_v24  ;;  %4469 = vperm.xlu1 %11732, %v9871_v3   ;;  %4464 = vperm.xlu0 %11731, %v9870_v32   ;;  %v13487_v32 = vld [vmem:[#allocation2 + $0x101] sm:$0xff]  ;;  %v11734_v3 = vld [vmem:[#allocation2 + $0x12] sm:$0xff] }
 0x208   : > { %10742 = vmatmul.mubr.msk.bf16.gmra.mrb[24].mxu0 %vm253_vm0, %v2451_v41  ;;  %299 = vst.msk [vmem:[#allocation3 + $0x30] sm:$0xff] %vm292_vm3, %v16013_v42  ;;  %300 = vst.msk [vmem:[#allocation3 + $0x38] sm:$0xff] %vm292_vm3, %v16013_v42  ;;  %v13489_v41 = vld [vmem:[#allocation2 + $0x109] sm:$0xff]  ;;  %v2925_v24 = vmul.f32 %v11734_v3, %v13015_v43  ;;  %v4914_v43 = vld [vmem:[%s15961_s1 + $0x18] sm:$0xff] }
 0x209   : > { %301 = vst.msk [vmem:[#allocation3 + $0x40] sm:$0xff] %vm292_vm3, %v16013_v42  ;;  %302 = vst.msk [vmem:[#allocation3 + $0x48] sm:$0xff] %vm292_vm3, %v16013_v42  ;;  %10745 = vmatprep.mubr.msk.bf16.mxu0 %vm253_vm0, %v2452_v5  ;;  %v4912_v5 = vld [vmem:[%s15961_s1 + $0x8] sm:$0xff] }
 0x20a   : > { %303 = vst.msk [vmem:[#allocation3 + $0x50] sm:$0xff] %vm292_vm3, %v16013_v42  ;;  %304 = vst.msk [vmem:[#allocation3 + $0x58] sm:$0xff] %vm292_vm3, %v16013_v42  ;;  %v13491_v62 = vpop.permute.xlu1 %3441  ;;  %v13493_v23 = vpop.permute.xlu0 %3436  ;;  %v2957_v52 = vpack.c.bf16 %v2926_v56, %v2925_v24  ;;  %v11736_v3 = vld [vmem:[#allocation2 + $0x22] sm:$0xff] }
 0x20b   : > { %305 = vst.msk [vmem:[#allocation3 + $0x60] sm:$0xff] %vm292_vm3, %v16013_v42  ;;  %306 = vst.msk [vmem:[#allocation3 + $0x68] sm:$0xff] %vm292_vm3, %v16013_v42  ;;  %4479 = vperm.xlu1 %11732, %v9873_v61   ;;  %4474 = vperm.xlu0 %11731, %v9872_v51   ;;  %v4913_v61 = vld [vmem:[%s15961_s1 + $0x10] sm:$0xff]  ;;  %v2927_v24 = vmul.f32 %v11736_v3, %v13030_v7 }
 0x20c   : > { %307 = vst.msk [vmem:[#allocation3 + $0x70] sm:$0xff] %vm292_vm3, %v16013_v42  ;;  %308 = vst.msk [vmem:[#allocation3 + $0x78] sm:$0xff] %vm292_vm3, %v16013_v42  ;;  %v11735_v51 = vld [vmem:[#allocation2 + $0x2a] sm:$0xff] }
 0x20d   : > { %309 = vst.msk [vmem:[#allocation3 + $0x80] sm:$0xff] %vm292_vm3, %v16013_v42  ;;  %310 = vst.msk [vmem:[#allocation3 + $0x88] sm:$0xff] %vm292_vm3, %v16013_v42  ;;  %v2928_v19 = vmul.f32 %v11735_v51, %v13028_v55  ;;  %v4915_v55 = vld [vmem:[%s15961_s1 + $0x20] sm:$0xff] }
 0x20e   : > { %311 = vst.msk [vmem:[#allocation3 + $0x90] sm:$0xff] %vm292_vm3, %v16013_v42  ;;  %312 = vst.msk [vmem:[#allocation3 + $0x98] sm:$0xff] %vm292_vm3, %v16013_v42  ;;  %v13507_v6 = vpop.permute.xlu0 %3805 }
 0x20f   : > { %313 = vst.msk [vmem:[#allocation3 + $0xa0] sm:$0xff] %vm292_vm3, %v16013_v42  ;;  %314 = vst.msk [vmem:[#allocation3 + $0xa8] sm:$0xff] %vm292_vm3, %v16013_v42  ;;  %4950 = vperm.xlu1 %11732, %v4912_v5   ;;  %v2958_v7 = vpack.c.bf16 %v2928_v19, %v2927_v24 }
 0x210   : > { %315 = vst.msk [vmem:[#allocation3 + $0xb0] sm:$0xff] %vm292_vm3, %v16013_v42  ;;  %316 = vst.msk [vmem:[#allocation3 + $0xb8] sm:$0xff] %vm292_vm3, %v16013_v42 }
 0x211   : > { %317 = vst.msk [vmem:[#allocation3 + $0xc0] sm:$0xff] %vm292_vm3, %v16013_v42  ;;  %318 = vst.msk [vmem:[#allocation3 + $0xc8] sm:$0xff] %vm292_vm3, %v16013_v42 }
 0x212   : > { %319 = vst.msk [vmem:[#allocation3 + $0xd0] sm:$0xff] %vm292_vm3, %v16013_v42  ;;  %320 = vst.msk [vmem:[#allocation3 + $0xd8] sm:$0xff] %vm292_vm3, %v16013_v42 }
 0x213   : > { %321 = vst.msk [vmem:[#allocation3 + $0xe0] sm:$0xff] %vm292_vm3, %v16013_v42  ;;  %322 = vst.msk [vmem:[#allocation3 + $0xe8] sm:$0xff] %vm292_vm3, %v16013_v42  ;;  %4960 = vperm.xlu1 %11732, %v4914_v43   ;;  %v4917_v43 = vld [vmem:[%s15961_s1 + $0x30] sm:$0xff] }
 0x214   : > { %323 = vst.msk [vmem:[#allocation3 + $0xf0] sm:$0xff] %vm292_vm3, %v16013_v42  ;;  %324 = vst.msk [vmem:[#allocation3 + $0xf8] sm:$0xff] %vm292_vm3, %v16013_v42 }
 0x215   : > { %325 = vst.msk [vmem:[#allocation3 + $0x100] sm:$0xff] %vm292_vm3, %v16013_v42  ;;  %326 = vst.msk [vmem:[#allocation3 + $0x108] sm:$0xff] %vm292_vm3, %v16013_v42 }
 0x216   : > { %327 = vst.msk [vmem:[#allocation3 + $0x110] sm:$0xff] %vm292_vm3, %v16013_v42  ;;  %328 = vst.msk [vmem:[#allocation3 + $0x118] sm:$0xff] %vm292_vm3, %v16013_v42  ;;  %v4911_v42 = vld [vmem:[%s15961_s1] sm:$0xff] }
 0x217   : > { %16014 = vst [vmem:[#allocation17_spill] sm:$0xff] %v13487_v32  ;;  %16015 = vst [vmem:[#allocation18_spill] sm:$0xff] %v13489_v41  ;;  %4945 = vperm.xlu0 %11731, %v4911_v42   ;;  %v13521_v42 = vpop.permute.xlu0 %3815 }
 0x218   : > { %16016 = vst [vmem:[#allocation19_spill] sm:$0xff] %v13491_v62  ;;  %16017 = vst [vmem:[#allocation20_spill] sm:$0xff] %v13493_v23  ;;  %v2453_v62 = vpack.c.bf16 %v13489_v41, %v13487_v32  ;;  %v13505_v23 = vpop.permute.xlu1 %3810  ;;  %v11738_v32 = vld [vmem:[#allocation2 + $0x32] sm:$0xff] }
 0x219   : > { %v2929_v41 = vmul.f32 %v11738_v32, %v13042_v54  ;;  %v13540_v54 = vld [vmem:[%s15962_s2 + $0xe] sm:$0x3]  ;;  %v4918_v32 = vld [vmem:[%s15961_s1 + $0x38] sm:$0xff] }
 0x21a   : > { %10746 = vmatmul.mubr.msk.bf16.gmra.mrb[28].mxu0 %vm253_vm0, %v2453_v62  ;;  %v11737_v62 = vld [vmem:[#allocation2 + $0x3a] sm:$0xff] }
 0x21b   : > { %10751 = vmatprep.mubr.msk.bf16.mxu0 %vm253_vm0, %v2957_v52  ;;  %v2930_v5 = vmul.f32 %v11737_v62, %v13040_v8  ;;  %4955 = vperm.xlu0 %11731, %v4913_v61   ;;  %v4916_v52 = vld [vmem:[%s15961_s1 + $0x28] sm:$0xff]  ;;  %v13533_v3 = vpop.permute.xlu0 %3825  ;;  %v3543_v8 = vsel %vm991_vm1, %v13271_v57, 0 }
 0x21c   : > { %v13519_v56 = vpop.permute.xlu1 %3820  ;;  %4970 = vperm.xlu1 %11732, %v4916_v52   ;;  %v11739_v57 = vld [vmem:[#allocation2 + $0x4a] sm:$0xff]  ;;  %v11740_v61 = vld [vmem:[#allocation2 + $0x42] sm:$0xff]  ;;  %v11741_v52 = vld [vmem:[#allocation2 + $0x5a] sm:$0xff] }
 0x21d   : > { %v2959_v62 = vpack.c.bf16 %v2930_v5, %v2929_v41  ;;  %v2932_v41 = vmul.f32 %v11739_v57, %v13062_v11  ;;  %v2931_v19 = vmul.f32 %v11740_v61, %v13064_v34  ;;  %v4920_v11 = vld [vmem:[%s15961_s1 + $0x48] sm:$0xff]  ;;  %v4919_v34 = vld [vmem:[%s15961_s1 + $0x40] sm:$0xff] }
 0x21f   : > { %4965 = vperm.xlu0 %11731, %v4915_v55   ;;  %v13554_v5 = vpop.permute.xlu0 %3835  ;;  %v2934_v55 = vmul.f32 %v11741_v52, %v13076_v29  ;;  %v4922_v29 = vld [vmem:[%s15961_s1 + $0x58] sm:$0xff] }
 0x220   : > { %v13531_v51 = vpop.permute.xlu1 %3830  ;;  %16018 = vst [vmem:[#allocation21_spill] sm:$0xff] %v13554_v5  ;;  %4980 = vperm.xlu1 %11732, %v4918_v32   ;;  %v11743_v32 = vld [vmem:[#allocation2 + $0x6a] sm:$0xff] }
 0x222   : > { %10752 = vmatmul.mubr.msk.bf16.vlgmr.msra.gmra.mrb[0].mxu0 %vm253_vm0, %v2958_v7  ;;  %v11742_v7 = vld [vmem:[#allocation2 + $0x52] sm:$0xff] }
 0x223   : > { %10784 = vmatpush3.bf16.msra.mxu0 %v3543_v8  ;;  %10755 = vmatprep.mubr.msk.bf16.mxu0 %vm253_vm0, %v2959_v62  ;;  %v2933_v8 = vmul.f32 %v11742_v7, %v13078_v0  ;;  %v2960_v62 = vpack.c.bf16 %v2932_v41, %v2931_v19  ;;  %v13568_v61 = vpop.permute.xlu0 %3845  ;;  %v4921_v0 = vld [vmem:[%s15961_s1 + $0x50] sm:$0xff]  ;;  %v11744_v41 = vld [vmem:[#allocation2 + $0x62] sm:$0xff]  ;;  %v11745_v7 = vld [vmem:[#allocation2 + $0x7a] sm:$0xff] }
 0x224   : > { %v13552_v24 = vpop.permute.xlu1 %3840  ;;  %11710 = vmatprep.subr.msk.bf16.mxu0 %vm991_vm1, %v13540_v54  ;;  %4975 = vperm.xlu0 %11731, %v4917_v43   ;;  %v2936_v43 = vmul.f32 %v11743_v32, %v13091_v59  ;;  %v2935_v19 = vmul.f32 %v11744_v41, %v13093_v21  ;;  %v4923_v59 = vld [vmem:[%s15961_s1 + $0x60] sm:$0xff] }
 0x225   : > { %v2961_v5 = vpack.c.bf16 %v2934_v55, %v2933_v8  ;;  %4990 = vperm.xlu1 %11732, %v4920_v11   ;;  %v2938_v8 = vmul.f32 %v11745_v7, %v13103_v47  ;;  %v11746_v11 = vld [vmem:[#allocation2 + $0x72] sm:$0xff] }
 0x226   : > { %v2962_v21 = vpack.c.bf16 %v2936_v43, %v2935_v19  ;;  %v4926_v47 = vld [vmem:[%s15961_s1 + $0x78] sm:$0xff]  ;;  %v11748_v43 = vld [vmem:[#allocation2 + $0x82] sm:$0xff] }
 0x227   : > { %v13582_v55 = vpop.permute.xlu0 %3855  ;;  %v2939_v19 = vmul.f32 %v11748_v43, %v13120_v33 }
 0x228   : > { %v13566_v57 = vpop.permute.xlu1 %3850  ;;  %4985 = vperm.xlu0 %11731, %v4919_v34   ;;  %v2937_v34 = vmul.f32 %v11746_v11, %v13105_v2  ;;  %v4925_v2 = vld [vmem:[%s15961_s1 + $0x70] sm:$0xff]  ;;  %v11749_v11 = vld [vmem:[#allocation2 + $0x9a] sm:$0xff] }
 0x229   : > { %5000 = vperm.xlu1 %11732, %v4922_v29   ;;  %v11747_v29 = vld [vmem:[#allocation2 + $0x8a] sm:$0xff] }
 0x22a   : > { %10756 = vmatmul.mubr.msk.bf16.gmra.mrb[4].mxu0 %vm253_vm0, %v2960_v62  ;;  %v2963_v41 = vpack.c.bf16 %v2938_v8, %v2937_v34  ;;  %v2942_v34 = vmul.f32 %v11749_v11, %v13130_v48  ;;  %v4930_v48 = vld [vmem:[%s15961_s1 + $0x98] sm:$0xff] }
 0x22b   : > { %10759 = vmatprep.mubr.msk.bf16.mxu0 %vm253_vm0, %v2961_v5  ;;  %v4924_v5 = vld [vmem:[%s15961_s1 + $0x68] sm:$0xff]  ;;  %v13594_v32 = vpop.permute.xlu0 %3865 }
 0x22c   : > { %v13580_v52 = vpop.permute.xlu1 %3860  ;;  %4995 = vperm.xlu0 %11731, %v4921_v0   ;;  %v2940_v0 = vmul.f32 %v11747_v29, %v13118_v36  ;;  %v4927_v36 = vld [vmem:[%s15961_s1 + $0x80] sm:$0xff] }
 0x22d   : > { %5010 = vperm.xlu1 %11732, %v4924_v5   ;;  %v11750_v5 = vld [vmem:[#allocation2 + $0x92] sm:$0xff] }
 0x22e   : > { %v2964_v33 = vpack.c.bf16 %v2940_v0, %v2939_v19  ;;  %v11752_v0 = vld [vmem:[#allocation2 + $0xa2] sm:$0xff] }
 0x22f   : > { %v13608_v8 = vpop.permute.xlu0 %3875  ;;  %v2943_v19 = vmul.f32 %v11752_v0, %v13147_v12 }
 0x230   : > { %v13592_v62 = vpop.permute.xlu1 %3870  ;;  %5005 = vperm.xlu0 %11731, %v4923_v59   ;;  %v2941_v59 = vmul.f32 %v11750_v5, %v13132_v50  ;;  %v4929_v50 = vld [vmem:[%s15961_s1 + $0x90] sm:$0xff]  ;;  %v11753_v5 = vld [vmem:[#allocation2 + $0xba] sm:$0xff] }
 0x231   : > { %5020 = vperm.xlu1 %11732, %v4926_v47   ;;  %v11751_v47 = vld [vmem:[#allocation2 + $0xaa] sm:$0xff] }
 0x232   : > { %10760 = vmatmul.mubr.msk.bf16.gmra.mrb[8].mxu0 %vm253_vm0, %v2962_v21  ;;  %v4928_v21 = vld [vmem:[%s15961_s1 + $0x88] sm:$0xff]  ;;  %v2965_v43 = vpack.c.bf16 %v2942_v34, %v2941_v59  ;;  %v2946_v59 = vmul.f32 %v11753_v5, %v13157_v1  ;;  %v4934_v1 = vld [vmem:[%s15961_s1 + $0xb8] sm:$0xff] }
 0x233   : > { %10763 = vmatprep.mubr.msk.bf16.mxu0 %vm253_vm0, %v2963_v41  ;;  %v13620_v29 = vpop.permute.xlu0 %3885 }
 0x234   : > { %v13606_v7 = vpop.permute.xlu1 %3880  ;;  %5015 = vperm.xlu0 %11731, %v4925_v2   ;;  %v2944_v2 = vmul.f32 %v11751_v47, %v13145_v25  ;;  %v4931_v25 = vld [vmem:[%s15961_s1 + $0xa0] sm:$0xff] }
 0x235   : > { %5030 = vperm.xlu1 %11732, %v4928_v21   ;;  %v11754_v21 = vld [vmem:[#allocation2 + $0xb2] sm:$0xff] }
 0x236   : > { %v2966_v12 = vpack.c.bf16 %v2944_v2, %v2943_v19  ;;  %v11756_v2 = vld [vmem:[#allocation2 + $0xc2] sm:$0xff] }
 0x237   : > { %v13634_v34 = vpop.permute.xlu0 %3895  ;;  %v2947_v19 = vmul.f32 %v11756_v2, %v13174_v40 }
 0x238   : > { %v13618_v41 = vpop.permute.xlu1 %3890  ;;  %5025 = vperm.xlu0 %11731, %v4927_v36   ;;  %v2945_v36 = vmul.f32 %v11754_v21, %v13159_v16  ;;  %v4933_v16 = vld [vmem:[%s15961_s1 + $0xb0] sm:$0xff]  ;;  %v11757_v21 = vld [vmem:[#allocation2 + $0xda] sm:$0xff] }
 0x239   : > { %5040 = vperm.xlu1 %11732, %v4930_v48   ;;  %v11755_v48 = vld [vmem:[#allocation2 + $0xca] sm:$0xff] }
 0x23a   : > { %10764 = vmatmul.mubr.msk.bf16.gmra.mrb[12].mxu0 %vm253_vm0, %v2964_v33  ;;  %v4932_v33 = vld [vmem:[%s15961_s1 + $0xa8] sm:$0xff]  ;;  %v2967_v0 = vpack.c.bf16 %v2946_v59, %v2945_v36  ;;  %v2950_v36 = vmul.f32 %v11757_v21, %v13184_v31  ;;  %v4938_v31 = vld [vmem:[%s15961_s1 + $0xd8] sm:$0xff] }
 0x23b   : > { %10767 = vmatprep.mubr.msk.bf16.mxu0 %vm253_vm0, %v2965_v43  ;;  %v13646_v47 = vpop.permute.xlu0 %3905 }
 0x23c   : > { %v13632_v11 = vpop.permute.xlu1 %3900  ;;  %5035 = vperm.xlu0 %11731, %v4929_v50   ;;  %v2948_v50 = vmul.f32 %v11755_v48, %v13172_v49  ;;  %v4935_v49 = vld [vmem:[%s15961_s1 + $0xc0] sm:$0xff] }
 0x23d   : > { %5050 = vperm.xlu1 %11732, %v4932_v33   ;;  %v11758_v33 = vld [vmem:[#allocation2 + $0xd2] sm:$0xff] }
 0x23e   : > { %v2968_v40 = vpack.c.bf16 %v2948_v50, %v2947_v19  ;;  %v11760_v50 = vld [vmem:[#allocation2 + $0xe2] sm:$0xff] }
 0x23f   : > { %v13660_v59 = vpop.permute.xlu0 %3915  ;;  %v2951_v19 = vmul.f32 %v11760_v50, %v13201_v44 }
 0x240   : > { %v13644_v43 = vpop.permute.xlu1 %3910  ;;  %5045 = vperm.xlu0 %11731, %v4931_v25   ;;  %v2949_v25 = vmul.f32 %v11758_v33, %v13186_v45  ;;  %v4937_v45 = vld [vmem:[%s15961_s1 + $0xd0] sm:$0xff]  ;;  %v11761_v33 = vld [vmem:[#allocation2 + $0xfa] sm:$0xff] }
 0x241   : > { %5060 = vperm.xlu1 %11732, %v4934_v1   ;;  %v11759_v1 = vld [vmem:[#allocation2 + $0xea] sm:$0xff] }
 0x242   : > { %10768 = vmatmul.mubr.msk.bf16.gmra.mrb[16].mxu0 %vm253_vm0, %v2966_v12  ;;  %v4936_v12 = vld [vmem:[%s15961_s1 + $0xc8] sm:$0xff]  ;;  %v2969_v2 = vpack.c.bf16 %v2950_v36, %v2949_v25  ;;  %v2954_v25 = vmul.f32 %v11761_v33, %v13212_v26 }
 0x243   : > { %10771 = vmatprep.mubr.msk.bf16.mxu0 %vm253_vm0, %v2967_v0  ;;  %v13672_v48 = vpop.permute.xlu0 %3925  ;;  %v2731_v26 = vld [vmem:[#allocation2 + $0x10a] sm:$0xff]  ;;  %v2730_v33 = vld [vmem:[#allocation2 + $0x102] sm:$0xff] }
 0x244   : > { %v13658_v5 = vpop.permute.xlu1 %3920  ;;  %5055 = vperm.xlu0 %11731, %v4933_v16   ;;  %v2952_v16 = vmul.f32 %v11759_v1, %v13199_v60  ;;  %v4939_v60 = vld [vmem:[%s15961_s1 + $0xe0] sm:$0xff] }
 0x245   : > { %5070 = vperm.xlu1 %11732, %v4936_v12   ;;  %v11762_v12 = vld [vmem:[#allocation2 + $0xf2] sm:$0xff] }
 0x246   : > { %v2970_v44 = vpack.c.bf16 %v2952_v16, %v2951_v19  ;;  %v2955_v16 = vmul.f32 %v13229_v20, %v2730_v33 }
 0x247   : > { %v13686_v36 = vpop.permute.xlu0 %3935 }
 0x248   : > { %v13670_v0 = vpop.permute.xlu1 %3930  ;;  %5065 = vperm.xlu0 %11731, %v4935_v49   ;;  %v2953_v49 = vmul.f32 %v11762_v12, %v13214_v10  ;;  %v4942_v10 = vld [vmem:[%s15961_s1 + $0xf8] sm:$0xff]  ;;  %v11763_v12 = vld [vmem:[#allocation2 + $0x28] sm:$0xff] }
 0x249   : > { %5080 = vperm.xlu1 %11732, %v4938_v31   ;;  %v4941_v31 = vld [vmem:[%s15961_s1 + $0xf0] sm:$0xff] }
 0x24a   : > { %10772 = vmatmul.mubr.msk.bf16.gmra.mrb[20].mxu0 %vm253_vm0, %v2968_v40  ;;  %v4940_v40 = vld [vmem:[%s15961_s1 + $0xe8] sm:$0xff]  ;;  %v2971_v50 = vpack.c.bf16 %v2954_v25, %v2953_v49  ;;  %v3445_v49 = vmul.f32 %v11763_v12, %v13237_v22  ;;  %v9895_v22 = vld [vmem:[%s15961_s1 + $0x118] sm:$0xff] }
 0x24b   : > { %10775 = vmatprep.mubr.msk.bf16.mxu0 %vm253_vm0, %v2969_v2  ;;  %v13698_v1 = vpop.permute.xlu0 %3945 }
 0x24c   : > { %v13684_v21 = vpop.permute.xlu1 %3940  ;;  %5075 = vperm.xlu0 %11731, %v4937_v45   ;;  %v2956_v45 = vmul.f32 %v13227_v4, %v2731_v26  ;;  %v9892_v4 = vld [vmem:[%s15961_s1 + $0x100] sm:$0xff] }
 0x24d   : > { %5090 = vperm.xlu1 %11732, %v4940_v40   ;;  %v11764_v40 = vld [vmem:[#allocation2 + $0x20] sm:$0xff] }
 0x24e   : > { %v2972_v20 = vpack.c.bf16 %v2956_v45, %v2955_v16  ;;  %v11766_v45 = vld [vmem:[#allocation2 + $0x30] sm:$0xff] }
 0x24f   : > { %v13712_v25 = vpop.permute.xlu0 %3955  ;;  %v3446_v16 = vmul.f32 %v11766_v45, %v13254_v18 }
 0x250   : > { %v13696_v2 = vpop.permute.xlu1 %3950  ;;  %5085 = vperm.xlu0 %11731, %v4939_v60   ;;  %v3444_v60 = vmul.f32 %v11764_v40, %v13239_v37  ;;  %v9894_v37 = vld [vmem:[%s15961_s1 + $0x110] sm:$0xff]  ;;  %v11767_v40 = vld [vmem:[#allocation2 + $0x48] sm:$0xff] }
 0x251   : > { %5100 = vperm.xlu1 %11732, %v4942_v10   ;;  %v11765_v10 = vld [vmem:[#allocation2 + $0x38] sm:$0xff] }
 0x252   : > { %10776 = vmatmul.mubr.msk.bf16.gmra.mrb[24].mxu0 %vm253_vm0, %v2970_v44  ;;  %v9893_v44 = vld [vmem:[%s15961_s1 + $0x108] sm:$0xff]  ;;  %v3476_v33 = vpack.c.bf16 %v3445_v49, %v3444_v60  ;;  %v3449_v60 = vmul.f32 %v11767_v40, %v13262_v9  ;;  %v4062_v9 = vsel %vm991_vm1, %v13540_v54, 0  ;;  %v11769_v54 = vld [vmem:[#allocation2 + $0x58] sm:$0xff] }
 0x253   : > { %10779 = vmatprep.mubr.msk.bf16.mxu0 %vm253_vm0, %v2971_v50  ;;  %v13724_v26 = vpop.permute.xlu0 %4324 }
 0x254   : > { %v13710_v19 = vpop.permute.xlu1 %3960  ;;  %5095 = vperm.xlu0 %11731, %v4941_v31   ;;  %v3447_v31 = vmul.f32 %v11765_v10, %v13252_v13  ;;  %v9896_v13 = vld [vmem:[%s15961_s1 + $0x120] sm:$0xff] }
 0x255   : > { %5223 = vperm.xlu1 %11732, %v9893_v44   ;;  %v11768_v44 = vld [vmem:[#allocation2 + $0x40] sm:$0xff] }
 0x256   : > { %v3477_v18 = vpack.c.bf16 %v3447_v31, %v3446_v16  ;;  %v3451_v31 = vmul.f32 %v11769_v54, %v13281_v53  ;;  %v11770_v16 = vld [vmem:[#allocation2 + $0x50] sm:$0xff]  ;;  %v9901_v53 = vld [vmem:[%s15961_s1 + $0x148] sm:$0xff] }
 0x257   : > { %v13738_v49 = vpop.permute.xlu0 %4334  ;;  %v3450_v40 = vmul.f32 %v11770_v16, %v13283_v15  ;;  %v9900_v15 = vld [vmem:[%s15961_s1 + $0x140] sm:$0xff] }
 0x258   : > { %v13722_v50 = vpop.permute.xlu1 %4329  ;;  %5218 = vperm.xlu0 %11731, %v9892_v4   ;;  %v3448_v4 = vmul.f32 %v11768_v44, %v13264_v28  ;;  %v13757_v28 = vld [vmem:[%s15962_s2 + $0x10] sm:$0x3] }
 0x259   : > { %5233 = vperm.xlu1 %11732, %v9895_v22   ;;  %v9899_v22 = vld [vmem:[%s15961_s1 + $0x138] sm:$0xff] }
 0x25a   : > { %10780 = vmatmul.mubr.msk.bf16.gmra.mrb[28].mxu0 %vm253_vm0, %v2972_v20  ;;  %v9897_v20 = vld [vmem:[%s15961_s1 + $0x128] sm:$0xff]  ;;  %v3478_v45 = vpack.c.bf16 %v3449_v60, %v3448_v4 }
 0x25b   : > { %10785 = vmatprep.mubr.msk.bf16.mxu0 %vm253_vm0, %v3476_v33  ;;  %v13750_v10 = vpop.permute.xlu0 %4344  ;;  %v11771_v4 = vld [vmem:[#allocation2 + $0x68] sm:$0xff] }
 0x25c   : > { %v13736_v12 = vpop.permute.xlu1 %4339  ;;  %5228 = vperm.xlu0 %11731, %v9894_v37   ;;  %v9898_v37 = vld [vmem:[%s15961_s1 + $0x130] sm:$0xff] }
 0x25d   : > { %5243 = vperm.xlu1 %11732, %v9897_v20   ;;  %v3453_v20 = vmul.f32 %v11771_v4, %v13293_v58  ;;  %v9903_v58 = vld [vmem:[%s15961_s1 + $0x158] sm:$0xff] }
 0x25f   : > { %v13771_v44 = vpop.permute.xlu0 %4354 }
 0x260   : > { %v13748_v33 = vpop.permute.xlu1 %4349  ;;  %5238 = vperm.xlu0 %11731, %v9896_v13   ;;  %v11772_v13 = vld [vmem:[#allocation2 + $0x60] sm:$0xff] }
 0x261   : > { %5253 = vperm.xlu1 %11732, %v9899_v22   ;;  %v11773_v22 = vld [vmem:[#allocation2 + $0x78] sm:$0xff] }
 0x262   : > { %10786 = vmatmul.mubr.msk.bf16.vlgmr.msra.gmra.mrb[0].mxu0 %vm253_vm0, %v3477_v18  ;;  %v3452_v18 = vmul.f32 %v11772_v13, %v13295_v14  ;;  %v9902_v14 = vld [vmem:[%s15961_s1 + $0x150] sm:$0xff]  ;;  %v11775_v13 = vld [vmem:[#allocation2 + $0x88] sm:$0xff] }
 0x263   : > { %10818 = vmatpush3.bf16.msra.mxu0 %v4062_v9  ;;  %10789 = vmatprep.mubr.msk.bf16.mxu0 %vm253_vm0, %v3478_v45  ;;  %v3479_v9 = vpack.c.bf16 %v3451_v31, %v3450_v40  ;;  %v13785_v54 = vpop.permute.xlu0 %4364  ;;  %v11774_v31 = vld [vmem:[#allocation2 + $0x70] sm:$0xff] }
 0x264   : > { %v13769_v60 = vpop.permute.xlu1 %4359  ;;  %11711 = vmatprep.subr.msk.bf16.mxu0 %vm991_vm1, %v13757_v28  ;;  %5248 = vperm.xlu0 %11731, %v9898_v37   ;;  %v3480_v16 = vpack.c.bf16 %v3453_v20, %v3452_v18  ;;  %v3455_v37 = vmul.f32 %v11773_v22, %v13305_v38  ;;  %v3454_v40 = vmul.f32 %v11774_v31, %v13307_v30  ;;  %v9904_v38 = vld [vmem:[%s15961_s1 + $0x160] sm:$0xff] }
 0x265   : > { %5263 = vperm.xlu1 %11732, %v9901_v53   ;;  %v3457_v18 = vmul.f32 %v11775_v13, %v13315_v27  ;;  %v11776_v53 = vld [vmem:[#allocation2 + $0x80] sm:$0xff]  ;;  %v9907_v27 = vld [vmem:[%s15961_s1 + $0x178] sm:$0xff] }
 0x266   : > { %v3481_v30 = vpack.c.bf16 %v3455_v37, %v3454_v40  ;;  %v11778_v37 = vld [vmem:[#allocation2 + $0x90] sm:$0xff] }
 0x267   : > { %v13799_v20 = vpop.permute.xlu0 %4374  ;;  %v3458_v40 = vmul.f32 %v11778_v37, %v13329_v63 }
 0x268   : > { %v13783_v45 = vpop.permute.xlu1 %4369  ;;  %5258 = vperm.xlu0 %11731, %v9900_v15   ;;  %v3456_v15 = vmul.f32 %v11776_v53, %v13317_v39  ;;  %v9906_v39 = vld [vmem:[%s15961_s1 + $0x170] sm:$0xff]  ;;  %v11779_v53 = vld [vmem:[#allocation2 + $0xa8] sm:$0xff] }
 0x269   : > { %5273 = vperm.xlu1 %11732, %v9903_v58   ;;  %v11777_v58 = vld [vmem:[#allocation2 + $0x98] sm:$0xff] }
 0x26a   : > { %10790 = vmatmul.mubr.msk.bf16.gmra.mrb[4].mxu0 %vm253_vm0, %v3479_v9  ;;  %v9905_v9 = vld [vmem:[%s15961_s1 + $0x168] sm:$0xff]  ;;  %v3482_v31 = vpack.c.bf16 %v3457_v18, %v3456_v15  ;;  %v3461_v15 = vmul.f32 %v11779_v53, %v13337_v17  ;;  %v9911_v17 = vld [vmem:[%s15961_s1 + $0x198] sm:$0xff]  ;;  %v11782_v53 = vld [vmem:[#allocation2 + $0xb0] sm:$0xff] }
 0x26b   : > { %10793 = vmatprep.mubr.msk.bf16.mxu0 %vm253_vm0, %v3480_v16  ;;  %v13811_v22 = vpop.permute.xlu0 %4384 }
 0x26c   : > { %v13797_v4 = vpop.permute.xlu1 %4379  ;;  %5268 = vperm.xlu0 %11731, %v9902_v14   ;;  %v3459_v14 = vmul.f32 %v11777_v58, %v13327_v35  ;;  %v9908_v35 = vld [vmem:[%s15961_s1 + $0x180] sm:$0xff] }
 0x26d   : > { %5283 = vperm.xlu1 %11732, %v9905_v9   ;;  %v11780_v9 = vld [vmem:[#allocation2 + $0xa0] sm:$0xff] }
 0x26e   : > { %v3483_v63 = vpack.c.bf16 %v3459_v14, %v3458_v40  ;;  %v16024_v14 = vld [vmem:[#allocation6_spill] sm:$0xff] }
 0x26f   : > { %v13825_v18 = vpop.permute.xlu0 %4394 }
 0x270   : > { %v13809_v16 = vpop.permute.xlu1 %4389  ;;  %5278 = vperm.xlu0 %11731, %v9904_v38   ;;  %16020 = vst [vmem:[#allocation23_spill] sm:$0xff] %v13825_v18  ;;  %v16021_v38 = vld [vmem:[#allocation5_spill] sm:$0xff] }
 0x271   : > { %5293 = vperm.xlu1 %11732, %v9907_v27   ;;  %v9910_v27 = vld [vmem:[%s15961_s1 + $0x190] sm:$0xff] }
 0x272   : > { %10794 = vmatmul.mubr.msk.bf16.gmra.mrb[8].mxu0 %vm253_vm0, %v3481_v30  ;;  %v3460_v30 = vmul.f32 %v11780_v9, %v16021_v38  ;;  %v16025_v9 = vld [vmem:[#allocation7_spill] sm:$0xff] }
 0x273   : > { %10797 = vmatprep.mubr.msk.bf16.mxu0 %vm253_vm0, %v3482_v31  ;;  %v9909_v31 = vld [vmem:[%s15961_s1 + $0x188] sm:$0xff]  ;;  %v13837_v37 = vpop.permute.xlu0 %4404 }
 0x274   : > { %v13823_v13 = vpop.permute.xlu1 %4399  ;;  %5288 = vperm.xlu0 %11731, %v9906_v39   ;;  %16023 = vst [vmem:[#allocation24_spill] sm:$0xff] %v13837_v37  ;;  %v3484_v18 = vpack.c.bf16 %v3461_v15, %v3460_v30  ;;  %v11781_v39 = vld [vmem:[#allocation2 + $0xb8] sm:$0xff]  ;;  %v3462_v15 = vmul.f32 %v11782_v53, %v16025_v9  ;;  %v11784_v37 = vld [vmem:[#allocation2 + $0xc0] sm:$0xff] }
 0x275   : > { %16019 = vst [vmem:[#allocation22_spill] sm:$0xff] %v13823_v13  ;;  %5303 = vperm.xlu1 %11732, %v9909_v31   ;;  %v3463_v40 = vmul.f32 %v11781_v39, %v16024_v14  ;;  %v11783_v31 = vld [vmem:[#allocation2 + $0xc8] sm:$0xff]  ;;  %v9912_v39 = vld [vmem:[%s15961_s1 + $0x1a0] sm:$0xff] }
 0x277   : > { %v13851_v30 = vpop.permute.xlu0 %4414  ;;  %v3485_v14 = vpack.c.bf16 %v3463_v40, %v3462_v15  ;;  %v11786_v15 = vld [vmem:[#allocation2 + $0xd0] sm:$0xff] }
 0x278   : > { %v13835_v58 = vpop.permute.xlu1 %4409  ;;  %5298 = vperm.xlu0 %11731, %v9908_v35   ;;  %16027 = vst [vmem:[#allocation7_spill] sm:$0xff] %v13851_v30  ;;  %v16028_v35 = vld [vmem:[#allocation8_spill] sm:$0xff] }
 0x279   : > { %16022 = vst [vmem:[#allocation5_spill] sm:$0xff] %v13835_v58  ;;  %v16029_v58 = vld [vmem:[#allocation9_spill] sm:$0xff]  ;;  %5313 = vperm.xlu1 %11732, %v9911_v17   ;;  %v11785_v17 = vld [vmem:[#allocation2 + $0xd8] sm:$0xff] }
 0x27a   : > { %10798 = vmatmul.mubr.msk.bf16.gmra.mrb[12].mxu0 %vm253_vm0, %v3483_v63  ;;  %v3465_v63 = vmul.f32 %v11783_v31, %v16028_v35  ;;  %v3464_v13 = vmul.f32 %v11784_v37, %v16029_v58  ;;  %v9915_v58 = vld [vmem:[%s15961_s1 + $0x1b8] sm:$0xff]  ;;  %v9914_v37 = vld [vmem:[%s15961_s1 + $0x1b0] sm:$0xff]  ;;  %v16033_v31 = vld [vmem:[#allocation11_spill] sm:$0xff] }
 0x27b   : > { %10801 = vmatprep.mubr.msk.bf16.mxu0 %vm253_vm0, %v3484_v18  ;;  %v9913_v18 = vld [vmem:[%s15961_s1 + $0x1a8] sm:$0xff]  ;;  %v13863_v9 = vpop.permute.xlu0 %4424 }
 0x27c   : > { %v13849_v38 = vpop.permute.xlu1 %4419  ;;  %5308 = vperm.xlu0 %11731, %v9910_v27   ;;  %16031 = vst [vmem:[#allocation9_spill] sm:$0xff] %v13863_v9  ;;  %v3486_v30 = vpack.c.bf16 %v3465_v63, %v3464_v13  ;;  %v16032_v27 = vld [vmem:[#allocation10_spill] sm:$0xff]  ;;  %v3466_v13 = vmul.f32 %v11786_v15, %v16033_v31  ;;  %v11788_v9 = vld [vmem:[#allocation2 + $0xe0] sm:$0xff] }
 0x27d   : > { %16026 = vst [vmem:[#allocation6_spill] sm:$0xff] %v13849_v38  ;;  %5323 = vperm.xlu1 %11732, %v9913_v18   ;;  %v3467_v40 = vmul.f32 %v11785_v17, %v16032_v27  ;;  %v11787_v18 = vld [vmem:[#allocation2 + $0xe8] sm:$0xff]  ;;  %v9916_v17 = vld [vmem:[%s15961_s1 + $0x1c0] sm:$0xff] }
 0x27f   : > { %v13877_v63 = vpop.permute.xlu0 %4434  ;;  %v3487_v27 = vpack.c.bf16 %v3467_v40, %v3466_v13  ;;  %v11790_v40 = vld [vmem:[#allocation2 + $0xf0] sm:$0xff]  ;;  %v16039_v13 = vld [vmem:[#allocation14_spill] sm:$0xff] }
 0x280   : > { %v13861_v53 = vpop.permute.xlu1 %4429  ;;  %5318 = vperm.xlu0 %11731, %v9912_v39   ;;  %16034 = vst [vmem:[#allocation10_spill] sm:$0xff] %v13877_v63  ;;  %v16035_v39 = vld [vmem:[#allocation12_spill] sm:$0xff] }
 0x281   : > { %16030 = vst [vmem:[#allocation8_spill] sm:$0xff] %v13861_v53  ;;  %v16036_v53 = vld [vmem:[#allocation13_spill] sm:$0xff]  ;;  %5333 = vperm.xlu1 %11732, %v9915_v58   ;;  %v11789_v58 = vld [vmem:[#allocation2 + $0xf8] sm:$0xff] }
 0x282   : > { %10802 = vmatmul.mubr.msk.bf16.gmra.mrb[16].mxu0 %vm253_vm0, %v3485_v14  ;;  %v3469_v14 = vmul.f32 %v11787_v18, %v16035_v39  ;;  %v3468_v38 = vmul.f32 %v11788_v9, %v16036_v53  ;;  %v9919_v53 = vld [vmem:[%s15961_s1 + $0x1d8] sm:$0xff]  ;;  %v9918_v9 = vld [vmem:[%s15961_s1 + $0x1d0] sm:$0xff] }
 0x283   : > { %10805 = vmatprep.mubr.msk.bf16.mxu0 %vm253_vm0, %v3486_v30  ;;  %v9917_v30 = vld [vmem:[%s15961_s1 + $0x1c8] sm:$0xff]  ;;  %v13889_v31 = vpop.permute.xlu0 %4444 }
 0x284   : > { %v13875_v35 = vpop.permute.xlu1 %4439  ;;  %5328 = vperm.xlu0 %11731, %v9914_v37   ;;  %16038 = vst [vmem:[#allocation12_spill] sm:$0xff] %v13889_v31  ;;  %v3488_v63 = vpack.c.bf16 %v3469_v14, %v3468_v38  ;;  %v3471_v37 = vmul.f32 %v11789_v58, %v13393_v46  ;;  %v3470_v38 = vmul.f32 %v11790_v40, %v16039_v13  ;;  %v11791_v14 = vld [vmem:[#allocation2 + $0x108] sm:$0xff]  ;;  %v9920_v46 = vld [vmem:[%s15961_s1 + $0x1e0] sm:$0xff] }
 0x285   : > { %5343 = vperm.xlu1 %11732, %v9917_v30   ;;  %v16041_v30 = vld [vmem:[#allocation15_spill] sm:$0xff]  ;;  %v16042_v31 = vld [vmem:[#allocation16_spill] sm:$0xff] }
 0x286   : > { %v3489_v58 = vpack.c.bf16 %v3471_v37, %v3470_v38  ;;  %v16045_v38 = vld [vmem:[#allocation20_spill] sm:$0xff] }
 0x287   : > { %v13903_v39 = vpop.permute.xlu0 %4454 }
 0x288   : > { %v13887_v15 = vpop.permute.xlu1 %4449  ;;  %5338 = vperm.xlu0 %11731, %v9916_v17   ;;  %16040 = vst [vmem:[#allocation13_spill] sm:$0xff] %v13903_v39  ;;  %v3473_v17 = vmul.f32 %v11791_v14, %v16041_v30  ;;  %v3250_v14 = vld [vmem:[#allocation2 + $0x118] sm:$0xff]  ;;  %v3249_v30 = vld [vmem:[#allocation2 + $0x110] sm:$0xff] }
 0x289   : > { %16037 = vst [vmem:[#allocation11_spill] sm:$0xff] %v13887_v15  ;;  %5353 = vperm.xlu1 %11732, %v9919_v53   ;;  %v9922_v53 = vld [vmem:[%s15961_s1 + $0x1f0] sm:$0xff] }
 0x28a   : > { %10806 = vmatmul.mubr.msk.bf16.gmra.mrb[20].mxu0 %vm253_vm0, %v3487_v27  ;;  %v11792_v27 = vld [vmem:[#allocation2 + $0x100] sm:$0xff] }
 0x28b   : > { %10809 = vmatprep.mubr.msk.bf16.mxu0 %vm253_vm0, %v3488_v63  ;;  %v3472_v15 = vmul.f32 %v11792_v27, %v16042_v31  ;;  %v9921_v63 = vld [vmem:[%s15961_s1 + $0x1e8] sm:$0xff]  ;;  %v13915_v13 = vpop.permute.xlu0 %4464  ;;  %v9923_v31 = vld [vmem:[%s15961_s1 + $0x1f8] sm:$0xff] }
 0x28c   : > { %v13901_v18 = vpop.permute.xlu1 %4459  ;;  %5348 = vperm.xlu0 %11731, %v9918_v9   ;;  %16043 = vst [vmem:[#allocation14_spill] sm:$0xff] %v13915_v13  ;;  %v16044_v9 = vld [vmem:[#allocation19_spill] sm:$0xff] }
 0x28d   : > { %v3490_v39 = vpack.c.bf16 %v3473_v17, %v3472_v15  ;;  %5363 = vperm.xlu1 %11732, %v9921_v63   ;;  %v3475_v37 = vmul.f32 %v16044_v9, %v3250_v14  ;;  %v3474_v15 = vmul.f32 %v16045_v38, %v3249_v30  ;;  %v11793_v63 = vld [vmem:[#allocation2 + $0x29] sm:$0xff]  ;;  %v9957_v14 = vld [vmem:[%s15961_s1 + $0x200] sm:$0xff] }
 0x28f   : > { %v13929_v27 = vpop.permute.xlu0 %4474  ;;  %v3491_v30 = vpack.c.bf16 %v3475_v37, %v3474_v15  ;;  %v11796_v37 = vld [vmem:[#allocation2 + $0x31] sm:$0xff] }
 0x290   : > { %v13913_v40 = vpop.permute.xlu1 %4469  ;;  %5358 = vperm.xlu0 %11731, %v9920_v46   ;;  %16046 = vst [vmem:[#allocation15_spill] sm:$0xff] %v13929_v27  ;;  %v3964_v46 = vmul.f32 %v11793_v63, %v13505_v23  ;;  %v9959_v23 = vld [vmem:[%s15961_s1 + $0x210] sm:$0xff] }
 0x291   : > { %5373 = vperm.xlu1 %11732, %v9923_v31   ;;  %v11795_v31 = vld [vmem:[#allocation2 + $0x39] sm:$0xff] }
 0x292   : > { %10810 = vmatmul.mubr.msk.bf16.gmra.mrb[24].mxu0 %vm253_vm0, %v3489_v58  ;;  %v11794_v58 = vld [vmem:[#allocation2 + $0x21] sm:$0xff] }
 0x293   : > { %10813 = vmatprep.mubr.msk.bf16.mxu0 %vm253_vm0, %v3490_v39  ;;  %v3963_v13 = vmul.f32 %v11794_v58, %v13507_v6  ;;  %v9958_v39 = vld [vmem:[%s15961_s1 + $0x208] sm:$0xff]  ;;  %v9960_v6 = vld [vmem:[%s15961_s1 + $0x218] sm:$0xff] }
 0x294   : > { %v13927_v17 = vpop.permute.xlu1 %4479  ;;  %5368 = vperm.xlu0 %11731, %v9922_v53   ;;  %v3966_v53 = vmul.f32 %v11795_v31, %v13519_v56  ;;  %v9961_v56 = vld [vmem:[%s15961_s1 + $0x220] sm:$0xff] }
 0x295   : > { %v3995_v27 = vpack.c.bf16 %v3964_v46, %v3963_v13  ;;  %5922 = vperm.xlu1 %11732, %v9958_v39   ;;  %v3965_v13 = vmul.f32 %v11796_v37, %v13521_v42  ;;  %v11797_v46 = vld [vmem:[#allocation2 + $0x49] sm:$0xff]  ;;  %v11798_v39 = vld [vmem:[#allocation2 + $0x41] sm:$0xff] }
 0x296   : > { %v13941_v38 = vpop.permute.xlu0 %4945  ;;  %v3968_v58 = vmul.f32 %v11797_v46, %v13531_v51  ;;  %v4581_v51 = vsel %vm991_vm1, %v13757_v28, 0  ;;  %v11800_v28 = vld [vmem:[#allocation2 + $0x51] sm:$0xff] }
 0x297   : > { %v3996_v42 = vpack.c.bf16 %v3966_v53, %v3965_v13  ;;  %v16047_v13 = vld [vmem:[#allocation21_spill] sm:$0xff] }
 0x298   : > { %v13939_v9 = vpop.permute.xlu1 %4950  ;;  %5917 = vperm.xlu0 %11731, %v9957_v14   ;;  %v3967_v14 = vmul.f32 %v11798_v39, %v13533_v3  ;;  %v9964_v3 = vld [vmem:[%s15961_s1 + $0x238] sm:$0xff]  ;;  %v3969_v46 = vmul.f32 %v11800_v28, %v16047_v13 }
 0x299   : > { %5932 = vperm.xlu1 %11732, %v9960_v6   ;;  %v9963_v6 = vld [vmem:[%s15961_s1 + $0x230] sm:$0xff] }
 0x29a   : > { %10814 = vmatmul.mubr.msk.bf16.gmra.mrb[28].mxu0 %vm253_vm0, %v3491_v30  ;;  %v13955_v63 = vpop.permute.xlu0 %4955  ;;  %v3997_v37 = vpack.c.bf16 %v3968_v58, %v3967_v14  ;;  %v11801_v14 = vld [vmem:[#allocation2 + $0x69] sm:$0xff] }
 0x29b   : > { %10819 = vmatprep.mubr.msk.bf16.mxu0 %vm253_vm0, %v3995_v27  ;;  %v9962_v27 = vld [vmem:[%s15961_s1 + $0x228] sm:$0xff] }
 0x29c   : > { %v13953_v15 = vpop.permute.xlu1 %4960  ;;  %5927 = vperm.xlu0 %11731, %v9959_v23   ;;  %v11799_v23 = vld [vmem:[#allocation2 + $0x59] sm:$0xff] }
 0x29d   : > { %5942 = vperm.xlu1 %11732, %v9962_v27   ;;  %v3970_v53 = vmul.f32 %v11799_v23, %v13552_v24  ;;  %v3972_v27 = vmul.f32 %v11801_v14, %v13566_v57  ;;  %v9965_v24 = vld [vmem:[%s15961_s1 + $0x240] sm:$0xff]  ;;  %v9968_v57 = vld [vmem:[%s15961_s1 + $0x258] sm:$0xff] }
 0x29e   : > { %v13967_v31 = vpop.permute.xlu0 %4965 }
 0x2a0   : > { %v13965_v30 = vpop.permute.xlu1 %4970  ;;  %5937 = vperm.xlu0 %11731, %v9961_v56   ;;  %v11802_v56 = vld [vmem:[#allocation2 + $0x61] sm:$0xff] }
 0x2a1   : > { %5952 = vperm.xlu1 %11732, %v9964_v3   ;;  %v11803_v3 = vld [vmem:[#allocation2 + $0x79] sm:$0xff] }
 0x2a2   : > { %10820 = vmatmul.mubr.msk.bf16.vlgmr.msra.gmra.mrb[0].mxu0 %vm253_vm0, %v3996_v42  ;;  %v3971_v42 = vmul.f32 %v11802_v56, %v13568_v61  ;;  %v9967_v61 = vld [vmem:[%s15961_s1 + $0x250] sm:$0xff] }
 0x2a3   : > { %10852 = vmatpush3.bf16.msra.mxu0 %v4581_v51  ;;  %10823 = vmatprep.mubr.msk.bf16.mxu0 %vm253_vm0, %v3997_v37  ;;  %v13983_v39 = vpop.permute.xlu0 %4975  ;;  %v9966_v51 = vld [vmem:[%s15961_s1 + $0x248] sm:$0xff]  ;;  %v3998_v37 = vpack.c.bf16 %v3970_v53, %v3969_v46  ;;  %v11804_v53 = vld [vmem:[#allocation2 + $0x71] sm:$0xff] }
 0x2a4   : > { %v13981_v58 = vpop.permute.xlu1 %4980  ;;  %5947 = vperm.xlu0 %11731, %v9963_v6   ;;  %v3999_v13 = vpack.c.bf16 %v3972_v27, %v3971_v42  ;;  %v3974_v6 = vmul.f32 %v11803_v3, %v13580_v52  ;;  %v3973_v46 = vmul.f32 %v11804_v53, %v13582_v55  ;;  %v11805_v56 = vld [vmem:[#allocation2 + $0x89] sm:$0xff]  ;;  %v9969_v52 = vld [vmem:[%s15961_s1 + $0x260] sm:$0xff] }
 0x2a5   : > { %5962 = vperm.xlu1 %11732, %v9966_v51   ;;  %v3976_v42 = vmul.f32 %v11805_v56, %v13592_v62  ;;  %v11806_v51 = vld [vmem:[#allocation2 + $0x81] sm:$0xff]  ;;  %v9972_v62 = vld [vmem:[%s15961_s1 + $0x278] sm:$0xff] }
 0x2a6   : > { %v4000_v55 = vpack.c.bf16 %v3974_v6, %v3973_v46  ;;  %v11808_v6 = vld [vmem:[#allocation2 + $0x91] sm:$0xff] }
 0x2a7   : > { %v13995_v28 = vpop.permute.xlu0 %4985  ;;  %v3977_v46 = vmul.f32 %v11808_v6, %v13608_v8 }
 0x2a8   : > { %v13993_v23 = vpop.permute.xlu1 %4990  ;;  %5957 = vperm.xlu0 %11731, %v9965_v24   ;;  %v3975_v24 = vmul.f32 %v11806_v51, %v13594_v32  ;;  %v9971_v32 = vld [vmem:[%s15961_s1 + $0x270] sm:$0xff] }
 0x2a9   : > { %5972 = vperm.xlu1 %11732, %v9968_v57   ;;  %v11807_v57 = vld [vmem:[#allocation2 + $0x99] sm:$0xff]  ;;  %v11809_v51 = vld [vmem:[#allocation2 + $0xa9] sm:$0xff] }
 0x2aa   : > { %10824 = vmatmul.mubr.msk.bf16.gmra.mrb[4].mxu0 %vm253_vm0, %v3998_v37  ;;  %v9970_v37 = vld [vmem:[%s15961_s1 + $0x268] sm:$0xff]  ;;  %v4001_v53 = vpack.c.bf16 %v3976_v42, %v3975_v24  ;;  %v3980_v24 = vmul.f32 %v11809_v51, %v13618_v41  ;;  %v9976_v41 = vld [vmem:[%s15961_s1 + $0x298] sm:$0xff] }
 0x2ab   : > { %10827 = vmatprep.mubr.msk.bf16.mxu0 %vm253_vm0, %v3999_v13  ;;  %v14009_v27 = vpop.permute.xlu0 %4995 }
 0x2ac   : > { %v14007_v14 = vpop.permute.xlu1 %5000  ;;  %5967 = vperm.xlu0 %11731, %v9967_v61   ;;  %v3978_v61 = vmul.f32 %v11807_v57, %v13606_v7  ;;  %v9973_v7 = vld [vmem:[%s15961_s1 + $0x280] sm:$0xff] }
 0x2ad   : > { %5982 = vperm.xlu1 %11732, %v9970_v37   ;;  %v11810_v37 = vld [vmem:[#allocation2 + $0xa1] sm:$0xff] }
 0x2ae   : > { %v4002_v8 = vpack.c.bf16 %v3978_v61, %v3977_v46  ;;  %v11812_v61 = vld [vmem:[#allocation2 + $0xb1] sm:$0xff] }
 0x2af   : > { %v14021_v3 = vpop.permute.xlu0 %5005  ;;  %v3981_v46 = vmul.f32 %v11812_v61, %v13634_v34 }
 0x2b0   : > { %v14019_v13 = vpop.permute.xlu1 %5010  ;;  %5977 = vperm.xlu0 %11731, %v9969_v52   ;;  %v3979_v52 = vmul.f32 %v11810_v37, %v13620_v29  ;;  %v9975_v29 = vld [vmem:[%s15961_s1 + $0x290] sm:$0xff] }
 0x2b1   : > { %5992 = vperm.xlu1 %11732, %v9972_v62   ;;  %v11811_v62 = vld [vmem:[#allocation2 + $0xb9] sm:$0xff]  ;;  %v11813_v37 = vld [vmem:[#allocation2 + $0xc9] sm:$0xff] }
 0x2b2   : > { %10828 = vmatmul.mubr.msk.bf16.gmra.mrb[8].mxu0 %vm253_vm0, %v4000_v55  ;;  %v9974_v55 = vld [vmem:[%s15961_s1 + $0x288] sm:$0xff]  ;;  %v4003_v6 = vpack.c.bf16 %v3980_v24, %v3979_v52  ;;  %v3984_v52 = vmul.f32 %v11813_v37, %v13644_v43  ;;  %v9980_v43 = vld [vmem:[%s15961_s1 + $0x2b8] sm:$0xff] }
 0x2b3   : > { %10831 = vmatprep.mubr.msk.bf16.mxu0 %vm253_vm0, %v4001_v53  ;;  %v14035_v42 = vpop.permute.xlu0 %5015 }
 0x2b4   : > { %v14033_v56 = vpop.permute.xlu1 %5020  ;;  %16049 = vst [vmem:[#allocation19_spill] sm:$0xff] %v14035_v42  ;;  %5987 = vperm.xlu0 %11731, %v9971_v32   ;;  %v3982_v32 = vmul.f32 %v11811_v62, %v13632_v11  ;;  %v9977_v11 = vld [vmem:[%s15961_s1 + $0x2a0] sm:$0xff] }
 0x2b5   : > { %16048 = vst [vmem:[#allocation16_spill] sm:$0xff] %v14033_v56  ;;  %6002 = vperm.xlu1 %11732, %v9974_v55   ;;  %v11814_v55 = vld [vmem:[#allocation2 + $0xc1] sm:$0xff] }
 0x2b6   : > { %v4004_v34 = vpack.c.bf16 %v3982_v32, %v3981_v46  ;;  %v11816_v32 = vld [vmem:[#allocation2 + $0xd1] sm:$0xff] }
 0x2b7   : > { %v14047_v57 = vpop.permute.xlu0 %5025  ;;  %v3985_v46 = vmul.f32 %v11816_v32, %v13660_v59 }
 0x2b8   : > { %v14045_v53 = vpop.permute.xlu1 %5030  ;;  %16051 = vst [vmem:[#allocation21_spill] sm:$0xff] %v14047_v57  ;;  %5997 = vperm.xlu0 %11731, %v9973_v7   ;;  %v3983_v7 = vmul.f32 %v11814_v55, %v13646_v47  ;;  %v9979_v47 = vld [vmem:[%s15961_s1 + $0x2b0] sm:$0xff] }
 0x2b9   : > { %16050 = vst [vmem:[#allocation20_spill] sm:$0xff] %v14045_v53  ;;  %6012 = vperm.xlu1 %11732, %v9976_v41   ;;  %v11815_v41 = vld [vmem:[#allocation2 + $0xd9] sm:$0xff]  ;;  %v11817_v55 = vld [vmem:[#allocation2 + $0xe9] sm:$0xff] }
 0x2ba   : > { %10832 = vmatmul.mubr.msk.bf16.gmra.mrb[12].mxu0 %vm253_vm0, %v4002_v8  ;;  %v9978_v8 = vld [vmem:[%s15961_s1 + $0x2a8] sm:$0xff]  ;;  %v4005_v61 = vpack.c.bf16 %v3984_v52, %v3983_v7  ;;  %v3988_v7 = vmul.f32 %v11817_v55, %v13670_v0  ;;  %v9984_v0 = vld [vmem:[%s15961_s1 + $0x2d8] sm:$0xff] }
 0x2bb   : > { %10835 = vmatprep.mubr.msk.bf16.mxu0 %vm253_vm0, %v4003_v6  ;;  %v14061_v24 = vpop.permute.xlu0 %5035 }
 0x2bc   : > { %v14059_v51 = vpop.permute.xlu1 %5040  ;;  %16053 = vst [vmem:[#allocation26_spill] sm:$0xff] %v14061_v24  ;;  %6007 = vperm.xlu0 %11731, %v9975_v29   ;;  %v3986_v29 = vmul.f32 %v11815_v41, %v13658_v5  ;;  %v9981_v5 = vld [vmem:[%s15961_s1 + $0x2c0] sm:$0xff]  ;;  %v10035_v24 = vld [vmem:[%s15961_s1 + $0x3e8] sm:$0xff] }
 0x2bd   : > { %16052 = vst [vmem:[#allocation25_spill] sm:$0xff] %v14059_v51  ;;  %6022 = vperm.xlu1 %11732, %v9978_v8   ;;  %v11818_v8 = vld [vmem:[#allocation2 + $0xe1] sm:$0xff] }
 0x2be   : > { %v4006_v59 = vpack.c.bf16 %v3986_v29, %v3985_v46  ;;  %v11820_v29 = vld [vmem:[#allocation2 + $0xf1] sm:$0xff] }
 0x2bf   : > { %v14073_v62 = vpop.permute.xlu0 %5045  ;;  %v3989_v46 = vmul.f32 %v11820_v29, %v13686_v36 }
 0x2c0   : > { %v14071_v6 = vpop.permute.xlu1 %5050  ;;  %16055 = vst [vmem:[#allocation28_spill] sm:$0xff] %v14073_v62  ;;  %6017 = vperm.xlu0 %11731, %v9977_v11   ;;  %v3987_v11 = vmul.f32 %v11818_v8, %v13672_v48  ;;  %v9983_v48 = vld [vmem:[%s15961_s1 + $0x2d0] sm:$0xff]  ;;  %v16062_v8 = vld [vmem:[#allocation18_spill] sm:$0xff] }
 0x2c1   : > { %16054 = vst [vmem:[#allocation27_spill] sm:$0xff] %v14071_v6  ;;  %6032 = vperm.xlu1 %11732, %v9980_v43   ;;  %v11819_v43 = vld [vmem:[#allocation2 + $0xf9] sm:$0xff] }
 0x2c2   : > { %10836 = vmatmul.mubr.msk.bf16.gmra.mrb[16].mxu0 %vm253_vm0, %v4004_v34  ;;  %v9982_v34 = vld [vmem:[%s15961_s1 + $0x2c8] sm:$0xff]  ;;  %v4007_v32 = vpack.c.bf16 %v3988_v7, %v3987_v11  ;;  %v3992_v11 = vmul.f32 %v13696_v2, %v16062_v8  ;;  %v3769_v2 = vld [vmem:[#allocation2 + $0x119] sm:$0xff]  ;;  %v3768_v8 = vld [vmem:[#allocation2 + $0x111] sm:$0xff] }
 0x2c3   : > { %10839 = vmatprep.mubr.msk.bf16.mxu0 %vm253_vm0, %v4005_v61  ;;  %v14087_v52 = vpop.permute.xlu0 %5055  ;;  %v4288_v6 = vld [vmem:[#allocation2 + $0x11a] sm:$0xff] }
 0x2c4   : > { %v14085_v37 = vpop.permute.xlu1 %5060  ;;  %16057 = vst [vmem:[#allocation30_spill] sm:$0xff] %v14087_v52  ;;  %6027 = vperm.xlu0 %11731, %v9979_v47   ;;  %v3990_v47 = vmul.f32 %v11819_v43, %v13684_v21  ;;  %v9985_v21 = vld [vmem:[%s15961_s1 + $0x2e0] sm:$0xff] }
 0x2c5   : > { %16056 = vst [vmem:[#allocation29_spill] sm:$0xff] %v14085_v37  ;;  %6042 = vperm.xlu1 %11732, %v9982_v34   ;;  %v16063_v34 = vld [vmem:[#allocation17_spill] sm:$0xff]  ;;  %v4280_v52 = vld [vmem:[#allocation2 + $0xda] sm:$0xff] }
 0x2c6   : > { %v4008_v36 = vpack.c.bf16 %v3990_v47, %v3989_v46  ;;  %v3994_v47 = vmul.f32 %v13710_v19, %v3769_v2  ;;  %v3993_v46 = vmul.f32 %v13712_v25, %v3768_v8  ;;  %v10006_v19 = vld [vmem:[%s15961_s1 + $0x300] sm:$0xff] }
 0x2c7   : > { %v14099_v41 = vpop.permute.xlu0 %5065  ;;  %v4284_v37 = vld [vmem:[#allocation2 + $0xfa] sm:$0xff] }
 0x2c8   : > { %v14097_v61 = vpop.permute.xlu1 %5070  ;;  %16059 = vst [vmem:[#allocation32_spill] sm:$0xff] %v14099_v41  ;;  %6037 = vperm.xlu0 %11731, %v9981_v5   ;;  %v3991_v5 = vmul.f32 %v13698_v1, %v16063_v34  ;;  %v4257_v1 = vld [vmem:[#allocation2 + $0x22] sm:$0xff]  ;;  %v4010_v25 = vpack.c.bf16 %v3994_v47, %v3993_v46  ;;  %v10008_v47 = vld [vmem:[%s15961_s1 + $0x310] sm:$0xff] }
 0x2c9   : > { %16058 = vst [vmem:[#allocation31_spill] sm:$0xff] %v14097_v61  ;;  %6052 = vperm.xlu1 %11732, %v9984_v0   ;;  %v9988_v0 = vld [vmem:[%s15961_s1 + $0x2f8] sm:$0xff]  ;;  %v10031_v41 = vld [vmem:[%s15961_s1 + $0x3c8] sm:$0xff] }
 0x2ca   : > { %10840 = vmatmul.mubr.msk.bf16.gmra.mrb[20].mxu0 %vm253_vm0, %v4006_v59  ;;  %v9986_v59 = vld [vmem:[%s15961_s1 + $0x2e8] sm:$0xff]  ;;  %v4009_v29 = vpack.c.bf16 %v3992_v11, %v3991_v5 }
 0x2cb   : > { %10843 = vmatprep.mubr.msk.bf16.mxu0 %vm253_vm0, %v4007_v32  ;;  %v14113_v7 = vpop.permute.xlu0 %5075 }
 0x2cc   : > { %v14111_v55 = vpop.permute.xlu1 %5080  ;;  %16061 = vst [vmem:[#allocation34_spill] sm:$0xff] %v14113_v7  ;;  %6047 = vperm.xlu0 %11731, %v9983_v48   ;;  %v4258_v7 = vld [vmem:[#allocation2 + $0x2a] sm:$0xff] }
 0x2cd   : > { %16060 = vst [vmem:[#allocation33_spill] sm:$0xff] %v14111_v55  ;;  %6062 = vperm.xlu1 %11732, %v9986_v59   ;;  %v9987_v48 = vld [vmem:[%s15961_s1 + $0x2f0] sm:$0xff]  ;;  %v4483_v5 = vmul.f32 %v13722_v50, %v4258_v7  ;;  %v4482_v59 = vmul.f32 %v13724_v26, %v4257_v1  ;;  %v10027_v55 = vld [vmem:[%s15961_s1 + $0x3a8] sm:$0xff] }
 0x2ce   : > { %v4259_v50 = vld [vmem:[#allocation2 + $0x32] sm:$0xff]  ;;  %v4262_v7 = vld [vmem:[#allocation2 + $0x4a] sm:$0xff] }
 0x2cf   : > { %v14127_v43 = vpop.permute.xlu0 %5085 }
 0x2d0   : > { %v14125_v32 = vpop.permute.xlu1 %5090  ;;  %16065 = vst [vmem:[#allocation17_spill] sm:$0xff] %v14127_v43  ;;  %6057 = vperm.xlu0 %11731, %v9985_v21   ;;  %v5153_v21 = vld [vmem:[#allocation3 + $0x9] sm:$0xff] }
 0x2d1   : > { %16064 = vst [vmem:[#allocation18_spill] sm:$0xff] %v14125_v32  ;;  %6072 = vperm.xlu1 %11732, %v9988_v0   ;;  %v4261_v0 = vld [vmem:[#allocation2 + $0x42] sm:$0xff]  ;;  %v16075_v32 = vld [vmem:[#allocation9_spill] sm:$0xff] }
 0x2d2   : > { %10844 = vmatmul.mubr.msk.bf16.gmra.mrb[24].mxu0 %vm253_vm0, %v4008_v36  ;;  %v5152_v36 = vld [vmem:[#allocation3 + $0x1] sm:$0xff] }
 0x2d3   : > { %10847 = vmatprep.mubr.msk.bf16.mxu0 %vm253_vm0, %v4009_v29  ;;  %v14141_v34 = vpop.permute.xlu0 %5095  ;;  %v10007_v29 = vld [vmem:[%s15961_s1 + $0x308] sm:$0xff] }
 0x2d4   : > { %v14139_v11 = vpop.permute.xlu1 %5100  ;;  %16067 = vst [vmem:[#allocation36_spill] sm:$0xff] %v14141_v34  ;;  %6067 = vperm.xlu0 %11731, %v9987_v48   ;;  %v4514_v34 = vpack.c.bf16 %v4483_v5, %v4482_v59  ;;  %v10009_v48 = vld [vmem:[%s15961_s1 + $0x318] sm:$0xff]  ;;  %v4484_v59 = vmul.f32 %v13738_v49, %v4259_v50  ;;  %v4265_v50 = vld [vmem:[#allocation2 + $0x62] sm:$0xff] }
 0x2d5   : > { %16066 = vst [vmem:[#allocation35_spill] sm:$0xff] %v14139_v11  ;;  %v4260_v11 = vld [vmem:[#allocation2 + $0x3a] sm:$0xff]  ;;  %6440 = vperm.xlu1 %11732, %v10007_v29   ;;  %v4487_v29 = vmul.f32 %v13748_v33, %v4262_v7 }
 0x2d6   : > { %v4485_v5 = vmul.f32 %v13736_v12, %v4260_v11  ;;  %v10010_v12 = vld [vmem:[%s15961_s1 + $0x320] sm:$0xff]  ;;  %v10013_v7 = vld [vmem:[%s15961_s1 + $0x338] sm:$0xff] }
 0x2d7   : > { %v5219_v8 = vpop.permute.xlu0 %5218 }
 0x2d8   : > { %v5224_v2 = vpop.permute.xlu1 %5223  ;;  %v5376_v1 = vmul.f32 %v5219_v8, %v5152_v36  ;;  %6435 = vperm.xlu0 %11731, %v10006_v19   ;;  %v4486_v19 = vmul.f32 %v13750_v10, %v4261_v0  ;;  %v4515_v49 = vpack.c.bf16 %v4485_v5, %v4484_v59  ;;  %v4263_v10 = vld [vmem:[#allocation2 + $0x52] sm:$0xff]  ;;  %v4266_v8 = vld [vmem:[#allocation2 + $0x6a] sm:$0xff]  ;;  %v4490_v5 = vmul.f32 %v13785_v54, %v4265_v50  ;;  %v4269_v54 = vld [vmem:[#allocation2 + $0x82] sm:$0xff] }
 0x2d9   : > { %v5377_v26 = vmul.f32 %v5224_v2, %v5153_v21  ;;  %6450 = vperm.xlu1 %11732, %v10009_v48   ;;  %v4264_v2 = vld [vmem:[#allocation2 + $0x5a] sm:$0xff]  ;;  %v4488_v0 = vmul.f32 %v13771_v44, %v4263_v10  ;;  %v10015_v59 = vld [vmem:[%s15961_s1 + $0x348] sm:$0xff] }
 0x2da   : > { %10848 = vmatmul.mubr.msk.bf16.gmra.mrb[28].mxu0 %vm253_vm0, %v4010_v25  ;;  %v4516_v33 = vpack.c.bf16 %v4487_v29, %v4486_v19 }
 0x2db   : > { %10853 = vmatprep.mubr.msk.bf16.mxu0 %vm253_vm0, %v4514_v34  ;;  %v5408_v46 = vpack.c.bf16 %v5377_v26, %v5376_v1  ;;  %v14163_v36 = vpop.permute.xlu0 %5228  ;;  %v10011_v34 = vld [vmem:[%s15961_s1 + $0x328] sm:$0xff]  ;;  %v10012_v26 = vld [vmem:[%s15961_s1 + $0x330] sm:$0xff]  ;;  %v4489_v1 = vmul.f32 %v13769_v60, %v4264_v2  ;;  %v10014_v60 = vld [vmem:[%s15961_s1 + $0x340] sm:$0xff] }
 0x2dc   : > { %v14161_v21 = vpop.permute.xlu1 %5233  ;;  %6445 = vperm.xlu0 %11731, %v10008_v47   ;;  %v10016_v2 = vld [vmem:[%s15961_s1 + $0x350] sm:$0xff] }
 0x2dd   : > { %10887 = vmatprep.mubr.msk.bf16.mxu1 %vm292_vm3, %v5408_v46  ;;  %6460 = vperm.xlu1 %11732, %v10011_v34   ;;  %v4491_v46 = vmul.f32 %v13783_v45, %v4266_v8  ;;  %v4517_v29 = vpack.c.bf16 %v4489_v1, %v4488_v0  ;;  %v4267_v45 = vld [vmem:[#allocation2 + $0x72] sm:$0xff]  ;;  %v4494_v1 = vmul.f32 %v13811_v22, %v4269_v54  ;;  %v10019_v0 = vld [vmem:[%s15961_s1 + $0x368] sm:$0xff]  ;;  %v16069_v54 = vld [vmem:[#allocation23_spill] sm:$0xff] }
 0x2de   : > { %v4492_v8 = vmul.f32 %v13799_v20, %v4267_v45  ;;  %v4273_v22 = vld [vmem:[#allocation2 + $0xa2] sm:$0xff]  ;;  %v16068_v45 = vld [vmem:[#allocation22_spill] sm:$0xff] }
 0x2df   : > { %v14176_v25 = vpop.permute.xlu0 %5238  ;;  %v4518_v34 = vpack.c.bf16 %v4491_v46, %v4490_v5 }
 0x2e0   : > { %v14174_v11 = vpop.permute.xlu1 %5243  ;;  %6455 = vperm.xlu0 %11731, %v10010_v12   ;;  %v4268_v12 = vld [vmem:[#allocation2 + $0x7a] sm:$0xff] }
 0x2e1   : > { %6470 = vperm.xlu1 %11732, %v10013_v7   ;;  %v4493_v10 = vmul.f32 %v13797_v4, %v4268_v12  ;;  %v10018_v4 = vld [vmem:[%s15961_s1 + $0x360] sm:$0xff]  ;;  %v10020_v12 = vld [vmem:[%s15961_s1 + $0x370] sm:$0xff] }
 0x2e2   : > { %10854 = vmatmul.mubr.msk.bf16.vlgmr.msra.gmra.mrb[0].mxu0 %vm253_vm0, %v4515_v49  ;;  %v4270_v49 = vld [vmem:[#allocation2 + $0x8a] sm:$0xff] }
 0x2e3   : > { %10857 = vmatprep.mubr.msk.bf16.mxu0 %vm253_vm0, %v4516_v33  ;;  %v14190_v47 = vpop.permute.xlu0 %5248  ;;  %v10017_v33 = vld [vmem:[%s15961_s1 + $0x358] sm:$0xff]  ;;  %v4519_v46 = vpack.c.bf16 %v4493_v10, %v4492_v8  ;;  %v16070_v8 = vld [vmem:[#allocation5_spill] sm:$0xff] }
 0x2e4   : > { %v14188_v48 = vpop.permute.xlu1 %5253  ;;  %6465 = vperm.xlu0 %11731, %v10012_v26   ;;  %v4495_v26 = vmul.f32 %v13809_v16, %v4270_v49  ;;  %v4271_v16 = vld [vmem:[#allocation2 + $0x92] sm:$0xff] }
 0x2e5   : > { %6480 = vperm.xlu1 %11732, %v10015_v59  }
 0x2e6   : > { %v4520_v59 = vpack.c.bf16 %v4495_v26, %v4494_v1  ;;  %v16071_v1 = vld [vmem:[#allocation24_spill] sm:$0xff] }
 0x2e7   : > { %v14202_v19 = vpop.permute.xlu0 %5258 }
 0x2e8   : > { %v14200_v44 = vpop.permute.xlu1 %5263  ;;  %6475 = vperm.xlu0 %11731, %v10014_v60   ;;  %v4272_v60 = vld [vmem:[#allocation2 + $0x9a] sm:$0xff] }
 0x2e9   : > { %6490 = vperm.xlu1 %11732, %v10017_v33   ;;  %v4497_v49 = vmul.f32 %v16068_v45, %v4272_v60  ;;  %v4496_v33 = vmul.f32 %v16069_v54, %v4271_v16  ;;  %v4276_v54 = vld [vmem:[#allocation2 + $0xba] sm:$0xff] }
 0x2ea   : > { %10858 = vmatmul.mubr.msk.bf16.gmra.mrb[4].mxu0 %vm253_vm0, %v4517_v29  ;;  %v4274_v29 = vld [vmem:[#allocation2 + $0xaa] sm:$0xff] }
 0x2eb   : > { %10861 = vmatprep.mubr.msk.bf16.mxu0 %vm253_vm0, %v4518_v34  ;;  %v14216_v7 = vpop.permute.xlu0 %5268  ;;  %v10021_v34 = vld [vmem:[%s15961_s1 + $0x378] sm:$0xff]  ;;  %v4499_v26 = vmul.f32 %v16070_v8, %v4274_v29  ;;  %v4278_v8 = vld [vmem:[#allocation2 + $0xca] sm:$0xff] }
 0x2ec   : > { %v14214_v50 = vpop.permute.xlu1 %5273  ;;  %6485 = vperm.xlu0 %11731, %v10016_v2   ;;  %v4275_v29 = vld [vmem:[#allocation2 + $0xb2] sm:$0xff] }
 0x2ed   : > { %6500 = vperm.xlu1 %11732, %v10019_v0   ;;  %v4498_v0 = vmul.f32 %v16071_v1, %v4273_v22  ;;  %v4277_v22 = vld [vmem:[#allocation2 + $0xc2] sm:$0xff] }
 0x2ee   : > { %v4502_v43 = vmul.f32 %v16075_v32, %v4277_v22  ;;  %v4281_v32 = vld [vmem:[#allocation2 + $0xe2] sm:$0xff]  ;;  %v10029_v22 = vld [vmem:[%s15961_s1 + $0x3b8] sm:$0xff] }
 0x2ef   : > { %v14228_v5 = vpop.permute.xlu0 %5278  ;;  %v4522_v45 = vpack.c.bf16 %v4499_v26, %v4498_v0  ;;  %v16073_v26 = vld [vmem:[#allocation7_spill] sm:$0xff] }
 0x2f0   : > { %v14226_v20 = vpop.permute.xlu1 %5283  ;;  %6495 = vperm.xlu0 %11731, %v10018_v4   ;;  %v10023_v4 = vld [vmem:[%s15961_s1 + $0x388] sm:$0xff]  ;;  %v4500_v1 = vmul.f32 %v16073_v26, %v4275_v29 }
 0x2f1   : > { %6510 = vperm.xlu1 %11732, %v10021_v34   ;;  %v10025_v34 = vld [vmem:[%s15961_s1 + $0x398] sm:$0xff] }
 0x2f2   : > { %10862 = vmatmul.mubr.msk.bf16.gmra.mrb[8].mxu0 %vm253_vm0, %v4519_v46  ;;  %v10022_v46 = vld [vmem:[%s15961_s1 + $0x380] sm:$0xff] }
 0x2f3   : > { %10865 = vmatprep.mubr.msk.bf16.mxu0 %vm253_vm0, %v4520_v59  ;;  %v14242_v10 = vpop.permute.xlu0 %5288  ;;  %v4521_v59 = vpack.c.bf16 %v4497_v49, %v4496_v33  ;;  %v16072_v49 = vld [vmem:[#allocation6_spill] sm:$0xff] }
 0x2f4   : > { %v14240_v2 = vpop.permute.xlu1 %5293  ;;  %6505 = vperm.xlu0 %11731, %v10020_v12   ;;  %v10024_v12 = vld [vmem:[%s15961_s1 + $0x390] sm:$0xff]  ;;  %v4501_v33 = vmul.f32 %v16072_v49, %v4276_v54 }
 0x2f5   : > { %6520 = vperm.xlu1 %11732, %v10023_v4  }
 0x2f6   : > { %v4523_v54 = vpack.c.bf16 %v4501_v33, %v4500_v1 }
 0x2f7   : > { %v14254_v16 = vpop.permute.xlu0 %5298 }
 0x2f8   : > { %v14252_v60 = vpop.permute.xlu1 %5303  ;;  %6515 = vperm.xlu0 %11731, %v10022_v46   ;;  %v16074_v46 = vld [vmem:[#allocation8_spill] sm:$0xff] }
 0x2f9   : > { %6530 = vperm.xlu1 %11732, %v10025_v34   ;;  %v10028_v34 = vld [vmem:[%s15961_s1 + $0x3b0] sm:$0xff] }
 0x2fa   : > { %10866 = vmatmul.mubr.msk.bf16.gmra.mrb[12].mxu0 %vm253_vm0, %v4521_v59  ;;  %v4503_v59 = vmul.f32 %v16074_v46, %v4278_v8  ;;  %v4279_v8 = vld [vmem:[#allocation2 + $0xd2] sm:$0xff]  ;;  %v4282_v46 = vld [vmem:[#allocation2 + $0xea] sm:$0xff] }
 0x2fb   : > { %10869 = vmatprep.mubr.msk.bf16.mxu0 %vm253_vm0, %v4522_v45  ;;  %v14268_v4 = vpop.permute.xlu0 %5308  ;;  %v10026_v45 = vld [vmem:[%s15961_s1 + $0x3a0] sm:$0xff] }
 0x2fc   : > { %v14266_v0 = vpop.permute.xlu1 %5313  ;;  %6525 = vperm.xlu0 %11731, %v10024_v12   ;;  %v4524_v26 = vpack.c.bf16 %v4503_v59, %v4502_v43  ;;  %v4505_v43 = vmul.f32 %v13875_v35, %v4280_v52  ;;  %v16076_v12 = vld [vmem:[#allocation10_spill] sm:$0xff]  ;;  %v16077_v59 = vld [vmem:[#allocation11_spill] sm:$0xff] }
 0x2fd   : > { %6540 = vperm.xlu1 %11732, %v10027_v55   ;;  %v4504_v33 = vmul.f32 %v16076_v12, %v4279_v8  ;;  %v10030_v35 = vld [vmem:[%s15961_s1 + $0x3c0] sm:$0xff] }
 0x2ff   : > { %v14280_v49 = vpop.permute.xlu0 %5318  ;;  %v4525_v52 = vpack.c.bf16 %v4505_v43, %v4504_v33  ;;  %v16079_v43 = vld [vmem:[#allocation13_spill] sm:$0xff] }
 0x300   : > { %v14278_v29 = vpop.permute.xlu1 %5323  ;;  %6535 = vperm.xlu0 %11731, %v10026_v45   ;;  %v4507_v45 = vmul.f32 %v16077_v59, %v4282_v46  ;;  %v4283_v46 = vld [vmem:[#allocation2 + $0xf2] sm:$0xff]  ;;  %v4286_v59 = vld [vmem:[#allocation2 + $0x10a] sm:$0xff] }
 0x301   : > { %6550 = vperm.xlu1 %11732, %v10029_v22   ;;  %v10033_v22 = vld [vmem:[%s15961_s1 + $0x3d8] sm:$0xff]  ;;  %v4508_v33 = vmul.f32 %v16079_v43, %v4283_v46 }
 0x302   : > { %10870 = vmatmul.mubr.msk.bf16.gmra.mrb[16].mxu0 %vm253_vm0, %v4523_v54  ;;  %v16078_v54 = vld [vmem:[#allocation12_spill] sm:$0xff] }
 0x303   : > { %10873 = vmatprep.mubr.msk.bf16.mxu0 %vm253_vm0, %v4524_v26  ;;  %v14294_v55 = vpop.permute.xlu0 %5328  ;;  %v4506_v61 = vmul.f32 %v16078_v54, %v4281_v32  ;;  %v4285_v32 = vld [vmem:[#allocation2 + $0x102] sm:$0xff]  ;;  %v4511_v54 = vmul.f32 %v13913_v40, %v4286_v59  ;;  %v4287_v40 = vld [vmem:[#allocation2 + $0x112] sm:$0xff] }
 0x304   : > { %v14292_v1 = vpop.permute.xlu1 %5333  ;;  %6545 = vperm.xlu0 %11731, %v10028_v34   ;;  %v10032_v34 = vld [vmem:[%s15961_s1 + $0x3d0] sm:$0xff]  ;;  %v10037_v59 = vld [vmem:[%s15961_s1 + $0x3f8] sm:$0xff] }
 0x305   : > { %v4526_v12 = vpack.c.bf16 %v4507_v45, %v4506_v61  ;;  %6560 = vperm.xlu1 %11732, %v10031_v41   ;;  %v4509_v61 = vmul.f32 %v13901_v18, %v4284_v37  ;;  %v10034_v18 = vld [vmem:[%s15961_s1 + $0x3e0] sm:$0xff] }
 0x307   : > { %v14306_v8 = vpop.permute.xlu0 %5338  ;;  %v4527_v37 = vpack.c.bf16 %v4509_v61, %v4508_v33 }
 0x308   : > { %v14304_v26 = vpop.permute.xlu1 %5343  ;;  %6555 = vperm.xlu0 %11731, %v10030_v35   ;;  %v16080_v35 = vld [vmem:[#allocation14_spill] sm:$0xff] }
 0x309   : > { %6570 = vperm.xlu1 %11732, %v10033_v22   ;;  %v4513_v22 = vmul.f32 %v13927_v17, %v4288_v6  ;;  %v10075_v6 = vld [vmem:[%s15961_s1 + $0x518] sm:$0xff] }
 0x30a   : > { %10874 = vmatmul.mubr.msk.bf16.gmra.mrb[20].mxu0 %vm253_vm0, %v4525_v52  ;;  %v4510_v52 = vmul.f32 %v16080_v35, %v4285_v32  ;;  %v10036_v32 = vld [vmem:[%s15961_s1 + $0x3f0] sm:$0xff]  ;;  %v10072_v35 = vld [vmem:[%s15961_s1 + $0x500] sm:$0xff] }
 0x30b   : > { %10877 = vmatprep.mubr.msk.bf16.mxu0 %vm253_vm0, %v4526_v12  ;;  %v14320_v41 = vpop.permute.xlu0 %5348 }
 0x30c   : > { %v14318_v45 = vpop.permute.xlu1 %5353  ;;  %6565 = vperm.xlu0 %11731, %v10032_v34   ;;  %v4528_v43 = vpack.c.bf16 %v4511_v54, %v4510_v52  ;;  %v16081_v34 = vld [vmem:[#allocation15_spill] sm:$0xff]  ;;  %v10073_v54 = vld [vmem:[%s15961_s1 + $0x508] sm:$0xff] }
 0x30d   : > { %6580 = vperm.xlu1 %11732, %v10035_v24   ;;  %v4512_v61 = vmul.f32 %v16081_v34, %v4287_v40 }
 0x30f   : > { %v14332_v46 = vpop.permute.xlu0 %5358  ;;  %v4529_v52 = vpack.c.bf16 %v4513_v22, %v4512_v61  ;;  %v10079_v61 = vld [vmem:[%s15961_s1 + $0x538] sm:$0xff] }
 0x310   : > { %v14330_v12 = vpop.permute.xlu1 %5363  ;;  %6575 = vperm.xlu0 %11731, %v10034_v18  }
 0x311   : > { %6590 = vperm.xlu1 %11732, %v10037_v59   ;;  %v10077_v59 = vld [vmem:[%s15961_s1 + $0x528] sm:$0xff] }
 0x312   : > { %10878 = vmatmul.mubr.msk.bf16.gmra.mrb[24].mxu0 %vm253_vm0, %v4527_v37  ;;  %v10074_v37 = vld [vmem:[%s15961_s1 + $0x510] sm:$0xff] }
 0x313   : > { %10881 = vmatprep.mubr.msk.bf16.mxu0 %vm253_vm0, %v4528_v43  ;;  %v14346_v24 = vpop.permute.xlu0 %5368 }
 0x314   : > { %v14344_v33 = vpop.permute.xlu1 %5373  ;;  %6585 = vperm.xlu0 %11731, %v10036_v32   ;;  %v10076_v32 = vld [vmem:[%s15961_s1 + $0x520] sm:$0xff] }
 0x315   : > { %7252 = vperm.xlu1 %11732, %v10073_v54   ;;  %v10078_v54 = vld [vmem:[%s15961_s1 + $0x530] sm:$0xff] }
 0x317   : > { %v14356_v17 = vpop.permute.xlu0 %5917 }
 0x318   : > { %v14354_v18 = vpop.permute.xlu1 %5922  ;;  %16083 = vst [vmem:[#allocation23_spill] sm:$0xff] %v14356_v17  ;;  %7247 = vperm.xlu0 %11731, %v10072_v35   ;;  %v10186_v17 = vld [vmem:[%s15961_s1 + $0x780] sm:$0xff] }
 0x319   : > { %16082 = vst [vmem:[#allocation22_spill] sm:$0xff] %v14354_v18  ;;  %7262 = vperm.xlu1 %11732, %v10075_v6   ;;  %v10081_v6 = vld [vmem:[%s15961_s1 + $0x548] sm:$0xff] }
 0x31a   : > { %10882 = vmatmul.mubr.msk.bf16.gmra.mrb[28].mxu0 %vm253_vm0, %v4529_v52 }
 0x31b   : > { %v14367_v40 = vpop.permute.xlu0 %5927 }
 0x31c   : > { %v14365_v43 = vpop.permute.xlu1 %5932  ;;  %16085 = vst [vmem:[#allocation24_spill] sm:$0xff] %v14367_v40  ;;  %7257 = vperm.xlu0 %11731, %v10074_v37   ;;  %v10080_v37 = vld [vmem:[%s15961_s1 + $0x540] sm:$0xff]  ;;  %v10187_v40 = vld [vmem:[%s15961_s1 + $0x788] sm:$0xff] }
 0x31d   : > { %16084 = vst [vmem:[#allocation5_spill] sm:$0xff] %v14365_v43  ;;  %7272 = vperm.xlu1 %11732, %v10077_v59  }
 0x31f   : > { %v14377_v34 = vpop.permute.xlu0 %5937 }
 0x320   : > { %v14375_v22 = vpop.permute.xlu1 %5942  ;;  %16087 = vst [vmem:[#allocation7_spill] sm:$0xff] %v14377_v34  ;;  %7267 = vperm.xlu0 %11731, %v10076_v32  }
 0x321   : > { %16086 = vst [vmem:[#allocation6_spill] sm:$0xff] %v14375_v22  ;;  %7282 = vperm.xlu1 %11732, %v10079_v61   ;;  %v10082_v61 = vld [vmem:[%s15961_s1 + $0x550] sm:$0xff] }
 0x323   : > { %v14387_v52 = vpop.permute.xlu0 %5947 }
 0x324   : > { %v14385_v35 = vpop.permute.xlu1 %5952  ;;  %16089 = vst [vmem:[#allocation9_spill] sm:$0xff] %v14387_v52  ;;  %7277 = vperm.xlu0 %11731, %v10078_v54  }
 0x325   : > { %16088 = vst [vmem:[#allocation8_spill] sm:$0xff] %v14385_v35  ;;  %7292 = vperm.xlu1 %11732, %v10081_v6   ;;  %v10083_v35 = vld [vmem:[%s15961_s1 + $0x558] sm:$0xff]  ;;  %v10084_v6 = vld [vmem:[%s15961_s1 + $0x560] sm:$0xff] }
 0x327   : > { %v14397_v32 = vpop.permute.xlu0 %5957 }
 0x328   : > { %v14395_v59 = vpop.permute.xlu1 %5962  ;;  %16091 = vst [vmem:[#allocation11_spill] sm:$0xff] %v14397_v32  ;;  %7287 = vperm.xlu0 %11731, %v10080_v37   ;;  %v10085_v32 = vld [vmem:[%s15961_s1 + $0x568] sm:$0xff] }
 0x329   : > { %16090 = vst [vmem:[#allocation10_spill] sm:$0xff] %v14395_v59  ;;  %7302 = vperm.xlu1 %11732, %v10083_v35   ;;  %v10086_v35 = vld [vmem:[%s15961_s1 + $0x570] sm:$0xff] }
 0x32b   : > { %v14407_v52 = vpop.permute.xlu0 %5967 }
 0x32c   : > { %v14405_v54 = vpop.permute.xlu1 %5972  ;;  %16093 = vst [vmem:[#allocation13_spill] sm:$0xff] %v14407_v52  ;;  %7297 = vperm.xlu0 %11731, %v10082_v61  }
 0x32d   : > { %16092 = vst [vmem:[#allocation12_spill] sm:$0xff] %v14405_v54  ;;  %7312 = vperm.xlu1 %11732, %v10085_v32   ;;  %v10087_v54 = vld [vmem:[%s15961_s1 + $0x578] sm:$0xff]  ;;  %v10088_v32 = vld [vmem:[%s15961_s1 + $0x580] sm:$0xff] }
 0x32f   : > { %v14417_v59 = vpop.permute.xlu0 %5977 }
 0x330   : > { %v14415_v37 = vpop.permute.xlu1 %5982  ;;  %16095 = vst [vmem:[#allocation15_spill] sm:$0xff] %v14417_v59  ;;  %7307 = vperm.xlu0 %11731, %v10084_v6   ;;  %v10089_v59 = vld [vmem:[%s15961_s1 + $0x588] sm:$0xff] }
 0x331   : > { %16094 = vst [vmem:[#allocation14_spill] sm:$0xff] %v14415_v37  ;;  %7322 = vperm.xlu1 %11732, %v10087_v54   ;;  %v10090_v54 = vld [vmem:[%s15961_s1 + $0x590] sm:$0xff] }
 0x333   : > { %v14427_v52 = vpop.permute.xlu0 %5987 }
 0x334   : > { %v14425_v61 = vpop.permute.xlu1 %5992  ;;  %16097 = vst [vmem:[#allocation38_spill] sm:$0xff] %v14427_v52  ;;  %7317 = vperm.xlu0 %11731, %v10086_v35  }
 0x335   : > { %16096 = vst [vmem:[#allocation37_spill] sm:$0xff] %v14425_v61  ;;  %7332 = vperm.xlu1 %11732, %v10089_v59   ;;  %v10091_v61 = vld [vmem:[%s15961_s1 + $0x598] sm:$0xff]  ;;  %v10092_v59 = vld [vmem:[%s15961_s1 + $0x5a0] sm:$0xff] }
 0x337   : > { %v14437_v37 = vpop.permute.xlu0 %5997 }
 0x338   : > { %v14435_v6 = vpop.permute.xlu1 %6002  ;;  %16099 = vst [vmem:[#allocation40_spill] sm:$0xff] %v14437_v37  ;;  %7327 = vperm.xlu0 %11731, %v10088_v32   ;;  %v10093_v37 = vld [vmem:[%s15961_s1 + $0x5a8] sm:$0xff] }
 0x339   : > { %16098 = vst [vmem:[#allocation39_spill] sm:$0xff] %v14435_v6  ;;  %7342 = vperm.xlu1 %11732, %v10091_v61   ;;  %v10094_v61 = vld [vmem:[%s15961_s1 + $0x5b0] sm:$0xff] }
 0x33b   : > { %v14447_v52 = vpop.permute.xlu0 %6007 }
 0x33c   : > { %v14445_v35 = vpop.permute.xlu1 %6012  ;;  %16101 = vst [vmem:[#allocation42_spill] sm:$0xff] %v14447_v52  ;;  %7337 = vperm.xlu0 %11731, %v10090_v54  }
 0x33d   : > { %16100 = vst [vmem:[#allocation41_spill] sm:$0xff] %v14445_v35  ;;  %7352 = vperm.xlu1 %11732, %v10093_v37   ;;  %v10095_v35 = vld [vmem:[%s15961_s1 + $0x5b8] sm:$0xff] }
 0x33f   : > { %v14457_v6 = vpop.permute.xlu0 %6017 }
 0x340   : > { %v14455_v32 = vpop.permute.xlu1 %6022  ;;  %16103 = vst [vmem:[#allocation44_spill] sm:$0xff] %v14457_v6  ;;  %7347 = vperm.xlu0 %11731, %v10092_v59   ;;  %v10097_v59 = vld [vmem:[%s15961_s1 + $0x5c8] sm:$0xff]  ;;  %v10096_v6 = vld [vmem:[%s15961_s1 + $0x5c0] sm:$0xff] }
 0x341   : > { %16102 = vst [vmem:[#allocation43_spill] sm:$0xff] %v14455_v32  ;;  %v9924_v32 = vld [vmem:[%s15964_s4 + $0x4] sm:$0xf]  ;;  %7362 = vperm.xlu1 %11732, %v10095_v35   ;;  %v10099_v35 = vld [vmem:[%s15961_s1 + $0x5d8] sm:$0xff] }
 0x342   : > { %v5476_v37 = vsel %vm5474_vm4, %v9924_v32, 0  ;;  %11712 = vmatprep.subr.msk.bf16.mxu1 %vm5474_vm4, %v9924_v32  ;;  %v14497_v32 = vld [vmem:[%s15964_s4] sm:$0xf] }
 0x343   : > { %v14467_v52 = vpop.permute.xlu0 %6027  ;;  %10886 = vmatpush3.bf16.msra.mxu1 %v5476_v37  ;;  %v10100_v37 = vld [vmem:[%s15961_s1 + $0x5e0] sm:$0xff] }
 0x344   : > { %v14465_v54 = vpop.permute.xlu1 %6032  ;;  %16105 = vst [vmem:[#allocation46_spill] sm:$0xff] %v14467_v52  ;;  %7357 = vperm.xlu0 %11731, %v10094_v61   ;;  %v10098_v61 = vld [vmem:[%s15961_s1 + $0x5d0] sm:$0xff]  ;;  %11713 = vmatprep.subr.msk.bf16.mxu1 %vm5474_vm4, %v14497_v32 }
 0x345   : > { %16104 = vst [vmem:[#allocation45_spill] sm:$0xff] %v14465_v54  ;;  %7372 = vperm.xlu1 %11732, %v10097_v59  }
 0x347   : > { %v14482_v52 = vpop.permute.xlu0 %6037 }
 0x348   : > { %v14480_v54 = vpop.permute.xlu1 %6042  ;;  %16107 = vst [vmem:[#allocation48_spill] sm:$0xff] %v14482_v52  ;;  %7367 = vperm.xlu0 %11731, %v10096_v6   ;;  %v10101_v6 = vld [vmem:[%s15961_s1 + $0x5e8] sm:$0xff] }
 0x349   : > { %16106 = vst [vmem:[#allocation47_spill] sm:$0xff] %v14480_v54  ;;  %7382 = vperm.xlu1 %11732, %v10099_v35   ;;  %v10126_v54 = vld [vmem:[%s15961_s1 + $0x628] sm:$0xff] }
 0x34b   : > { %v14492_v22 = vpop.permute.xlu0 %6047 }
 0x34c   : > { %v14490_v34 = vpop.permute.xlu1 %6052  ;;  %16109 = vst [vmem:[#allocation50_spill] sm:$0xff] %v14492_v22  ;;  %7377 = vperm.xlu0 %11731, %v10098_v61   ;;  %v10103_v61 = vld [vmem:[%s15961_s1 + $0x5f8] sm:$0xff] }
 0x34d   : > { %16108 = vst [vmem:[#allocation49_spill] sm:$0xff] %v14490_v34  ;;  %7392 = vperm.xlu1 %11732, %v10101_v6   ;;  %v10102_v34 = vld [vmem:[%s15961_s1 + $0x5f0] sm:$0xff]  ;;  %v10121_v6 = vld [vmem:[%s15961_s1 + $0x600] sm:$0xff] }
 0x34f   : > { %v14509_v35 = vpop.permute.xlu0 %6057 }
 0x350   : > { %v14507_v59 = vpop.permute.xlu1 %6062  ;;  %16111 = vst [vmem:[#allocation52_spill] sm:$0xff] %v14509_v35  ;;  %7387 = vperm.xlu0 %11731, %v10100_v37   ;;  %v10122_v35 = vld [vmem:[%s15961_s1 + $0x608] sm:$0xff] }
 0x351   : > { %16110 = vst [vmem:[#allocation51_spill] sm:$0xff] %v14507_v59  ;;  %7402 = vperm.xlu1 %11732, %v10103_v61  }
 0x353   : > { %v14519_v52 = vpop.permute.xlu0 %6067 }
 0x354   : > { %v14517_v22 = vpop.permute.xlu1 %6072  ;;  %16113 = vst [vmem:[#allocation54_spill] sm:$0xff] %v14519_v52  ;;  %7397 = vperm.xlu0 %11731, %v10102_v34   ;;  %v10123_v34 = vld [vmem:[%s15961_s1 + $0x610] sm:$0xff] }
 0x355   : > { %16112 = vst [vmem:[#allocation53_spill] sm:$0xff] %v14517_v22  ;;  %7770 = vperm.xlu1 %11732, %v10122_v35   ;;  %v10124_v22 = vld [vmem:[%s15961_s1 + $0x618] sm:$0xff]  ;;  %v10125_v35 = vld [vmem:[%s15961_s1 + $0x620] sm:$0xff] }
 0x357   : > { %v14529_v59 = vpop.permute.xlu0 %6435 }
 0x358   : > { %v14527_v37 = vpop.permute.xlu1 %6440  ;;  %7765 = vperm.xlu0 %11731, %v10121_v6  }
 0x359   : > { %7780 = vperm.xlu1 %11732, %v10124_v22   ;;  %v10127_v22 = vld [vmem:[%s15961_s1 + $0x630] sm:$0xff] }
 0x35b   : > { %v14539_v52 = vpop.permute.xlu0 %6445 }
 0x35c   : > { %v14537_v61 = vpop.permute.xlu1 %6450  ;;  %16115 = vst [vmem:[#allocation56_spill] sm:$0xff] %v14539_v52  ;;  %7775 = vperm.xlu0 %11731, %v10123_v34  }
 0x35d   : > { %16114 = vst [vmem:[#allocation55_spill] sm:$0xff] %v14537_v61  ;;  %7790 = vperm.xlu1 %11732, %v10126_v54   ;;  %v10128_v61 = vld [vmem:[%s15961_s1 + $0x638] sm:$0xff]  ;;  %v10129_v54 = vld [vmem:[%s15961_s1 + $0x640] sm:$0xff] }
 0x35f   : > { %v14549_v43 = vpop.permute.xlu0 %6455 }
 0x360   : > { %v14547_v6 = vpop.permute.xlu1 %6460  ;;  %16117 = vst [vmem:[#allocation58_spill] sm:$0xff] %v14549_v43  ;;  %7785 = vperm.xlu0 %11731, %v10125_v35   ;;  %v10130_v43 = vld [vmem:[%s15961_s1 + $0x648] sm:$0xff] }
 0x361   : > { %16116 = vst [vmem:[#allocation57_spill] sm:$0xff] %v14547_v6  ;;  %7800 = vperm.xlu1 %11732, %v10128_v61   ;;  %v10131_v61 = vld [vmem:[%s15961_s1 + $0x650] sm:$0xff] }
 0x363   : > { %v14559_v52 = vpop.permute.xlu0 %6465 }
 0x364   : > { %v14557_v34 = vpop.permute.xlu1 %6470  ;;  %16119 = vst [vmem:[#allocation60_spill] sm:$0xff] %v14559_v52  ;;  %7795 = vperm.xlu0 %11731, %v10127_v22  }
 0x365   : > { %16118 = vst [vmem:[#allocation59_spill] sm:$0xff] %v14557_v34  ;;  %7810 = vperm.xlu1 %11732, %v10130_v43   ;;  %v10132_v34 = vld [vmem:[%s15961_s1 + $0x658] sm:$0xff]  ;;  %v10133_v43 = vld [vmem:[%s15961_s1 + $0x660] sm:$0xff] }
 0x367   : > { %v14569_v6 = vpop.permute.xlu0 %6475 }
 0x368   : > { %v14567_v35 = vpop.permute.xlu1 %6480  ;;  %16121 = vst [vmem:[#allocation62_spill] sm:$0xff] %v14569_v6  ;;  %7805 = vperm.xlu0 %11731, %v10129_v54   ;;  %v10134_v6 = vld [vmem:[%s15961_s1 + $0x668] sm:$0xff] }
 0x369   : > { %16120 = vst [vmem:[#allocation61_spill] sm:$0xff] %v14567_v35  ;;  %7820 = vperm.xlu1 %11732, %v10132_v34   ;;  %v10135_v34 = vld [vmem:[%s15961_s1 + $0x670] sm:$0xff] }
 0x36b   : > { %v14579_v52 = vpop.permute.xlu0 %6485 }
 0x36c   : > { %v14577_v22 = vpop.permute.xlu1 %6490  ;;  %16123 = vst [vmem:[#allocation64_spill] sm:$0xff] %v14579_v52  ;;  %7815 = vperm.xlu0 %11731, %v10131_v61  }
 0x36d   : > { %16122 = vst [vmem:[#allocation63_spill] sm:$0xff] %v14577_v22  ;;  %7830 = vperm.xlu1 %11732, %v10134_v6   ;;  %v10136_v22 = vld [vmem:[%s15961_s1 + $0x678] sm:$0xff]  ;;  %v10137_v6 = vld [vmem:[%s15961_s1 + $0x680] sm:$0xff] }
 0x36f   : > { %v14589_v35 = vpop.permute.xlu0 %6495 }
 0x370   : > { %v14587_v54 = vpop.permute.xlu1 %6500  ;;  %16125 = vst [vmem:[#allocation66_spill] sm:$0xff] %v14589_v35  ;;  %7825 = vperm.xlu0 %11731, %v10133_v43   ;;  %v10138_v35 = vld [vmem:[%s15961_s1 + $0x688] sm:$0xff] }
 0x371   : > { %16124 = vst [vmem:[#allocation65_spill] sm:$0xff] %v14587_v54  ;;  %7840 = vperm.xlu1 %11732, %v10136_v22   ;;  %v10139_v22 = vld [vmem:[%s15961_s1 + $0x690] sm:$0xff] }
 0x373   : > { %v14599_v52 = vpop.permute.xlu0 %6505 }
 0x374   : > { %v14597_v61 = vpop.permute.xlu1 %6510  ;;  %16127 = vst [vmem:[#allocation68_spill] sm:$0xff] %v14599_v52  ;;  %7835 = vperm.xlu0 %11731, %v10135_v34  }
 0x375   : > { %16126 = vst [vmem:[#allocation67_spill] sm:$0xff] %v14597_v61  ;;  %7850 = vperm.xlu1 %11732, %v10138_v35   ;;  %v10140_v61 = vld [vmem:[%s15961_s1 + $0x698] sm:$0xff]  ;;  %v10141_v35 = vld [vmem:[%s15961_s1 + $0x6a0] sm:$0xff] }
 0x377   : > { %v14609_v54 = vpop.permute.xlu0 %6515 }
 0x378   : > { %v14607_v43 = vpop.permute.xlu1 %6520  ;;  %16129 = vst [vmem:[#allocation70_spill] sm:$0xff] %v14609_v54  ;;  %7845 = vperm.xlu0 %11731, %v10137_v6   ;;  %v10142_v54 = vld [vmem:[%s15961_s1 + $0x6a8] sm:$0xff] }
 0x379   : > { %16128 = vst [vmem:[#allocation69_spill] sm:$0xff] %v14607_v43  ;;  %7860 = vperm.xlu1 %11732, %v10140_v61   ;;  %v10143_v61 = vld [vmem:[%s15961_s1 + $0x6b0] sm:$0xff] }
 0x37b   : > { %v14619_v52 = vpop.permute.xlu0 %6525 }
 0x37c   : > { %v14617_v34 = vpop.permute.xlu1 %6530  ;;  %16131 = vst [vmem:[#allocation72_spill] sm:$0xff] %v14619_v52  ;;  %7855 = vperm.xlu0 %11731, %v10139_v22  }
 0x37d   : > { %16130 = vst [vmem:[#allocation71_spill] sm:$0xff] %v14617_v34  ;;  %7870 = vperm.xlu1 %11732, %v10142_v54   ;;  %v10144_v34 = vld [vmem:[%s15961_s1 + $0x6b8] sm:$0xff]  ;;  %v10145_v54 = vld [vmem:[%s15961_s1 + $0x6c0] sm:$0xff] }
 0x37f   : > { %v14629_v43 = vpop.permute.xlu0 %6535 }
 0x380   : > { %v14627_v6 = vpop.permute.xlu1 %6540  ;;  %16133 = vst [vmem:[#allocation74_spill] sm:$0xff] %v14629_v43  ;;  %7865 = vperm.xlu0 %11731, %v10141_v35   ;;  %v10146_v43 = vld [vmem:[%s15961_s1 + $0x6c8] sm:$0xff] }
 0x381   : > { %16132 = vst [vmem:[#allocation73_spill] sm:$0xff] %v14627_v6  ;;  %7880 = vperm.xlu1 %11732, %v10144_v34   ;;  %v10147_v34 = vld [vmem:[%s15961_s1 + $0x6d0] sm:$0xff] }
 0x383   : > { %v14639_v52 = vpop.permute.xlu0 %6545 }
 0x384   : > { %v14637_v22 = vpop.permute.xlu1 %6550  ;;  %16135 = vst [vmem:[#allocation76_spill] sm:$0xff] %v14639_v52  ;;  %7875 = vperm.xlu0 %11731, %v10143_v61  }
 0x385   : > { %16134 = vst [vmem:[#allocation75_spill] sm:$0xff] %v14637_v22  ;;  %7890 = vperm.xlu1 %11732, %v10146_v43   ;;  %v10148_v22 = vld [vmem:[%s15961_s1 + $0x6d8] sm:$0xff]  ;;  %v10149_v43 = vld [vmem:[%s15961_s1 + $0x6e0] sm:$0xff] }
 0x387   : > { %v14649_v6 = vpop.permute.xlu0 %6555 }
 0x388   : > { %v14647_v35 = vpop.permute.xlu1 %6560  ;;  %16137 = vst [vmem:[#allocation78_spill] sm:$0xff] %v14649_v6  ;;  %7885 = vperm.xlu0 %11731, %v10145_v54   ;;  %v10150_v6 = vld [vmem:[%s15961_s1 + $0x6e8] sm:$0xff] }
 0x389   : > { %16136 = vst [vmem:[#allocation77_spill] sm:$0xff] %v14647_v35  ;;  %7900 = vperm.xlu1 %11732, %v10148_v22   ;;  %v10151_v22 = vld [vmem:[%s15961_s1 + $0x6f0] sm:$0xff] }
 0x38b   : > { %v14659_v52 = vpop.permute.xlu0 %6565 }
 0x38c   : > { %v14657_v61 = vpop.permute.xlu1 %6570  ;;  %16139 = vst [vmem:[#allocation80_spill] sm:$0xff] %v14659_v52  ;;  %7895 = vperm.xlu0 %11731, %v10147_v34  }
 0x38d   : > { %16138 = vst [vmem:[#allocation79_spill] sm:$0xff] %v14657_v61  ;;  %7910 = vperm.xlu1 %11732, %v10150_v6   ;;  %v10152_v61 = vld [vmem:[%s15961_s1 + $0x6f8] sm:$0xff]  ;;  %v10170_v6 = vld [vmem:[%s15961_s1 + $0x700] sm:$0xff] }
 0x38f   : > { %v14669_v35 = vpop.permute.xlu0 %6575 }
 0x390   : > { %v14667_v54 = vpop.permute.xlu1 %6580  ;;  %16141 = vst [vmem:[#allocation82_spill] sm:$0xff] %v14669_v35  ;;  %7905 = vperm.xlu0 %11731, %v10149_v43   ;;  %v10171_v35 = vld [vmem:[%s15961_s1 + $0x708] sm:$0xff] }
 0x391   : > { %16140 = vst [vmem:[#allocation81_spill] sm:$0xff] %v14667_v54  ;;  %7920 = vperm.xlu1 %11732, %v10152_v61   ;;  %v10172_v61 = vld [vmem:[%s15961_s1 + $0x710] sm:$0xff] }
 0x393   : > { %v14679_v52 = vpop.permute.xlu0 %6585 }
 0x394   : > { %v14677_v34 = vpop.permute.xlu1 %6590  ;;  %16143 = vst [vmem:[#allocation84_spill] sm:$0xff] %v14679_v52  ;;  %7915 = vperm.xlu0 %11731, %v10151_v22  }
 0x395   : > { %16142 = vst [vmem:[#allocation83_spill] sm:$0xff] %v14677_v34  ;;  %8288 = vperm.xlu1 %11732, %v10171_v35   ;;  %v10173_v34 = vld [vmem:[%s15961_s1 + $0x718] sm:$0xff]  ;;  %v10174_v35 = vld [vmem:[%s15961_s1 + $0x720] sm:$0xff] }
 0x397   : > { %v14689_v54 = vpop.permute.xlu0 %7247 }
 0x398   : > { %v14687_v43 = vpop.permute.xlu1 %7252  ;;  %16145 = vst [vmem:[#allocation86_spill] sm:$0xff] %v14689_v54  ;;  %8283 = vperm.xlu0 %11731, %v10170_v6  }
 0x399   : > { %16144 = vst [vmem:[#allocation85_spill] sm:$0xff] %v14687_v43  ;;  %8298 = vperm.xlu1 %11732, %v10173_v34   ;;  %v10175_v43 = vld [vmem:[%s15961_s1 + $0x728] sm:$0xff]  ;;  %v10176_v34 = vld [vmem:[%s15961_s1 + $0x730] sm:$0xff] }
 0x39b   : > { %v14699_v52 = vpop.permute.xlu0 %7257 }
 0x39c   : > { %v14697_v22 = vpop.permute.xlu1 %7262  ;;  %16147 = vst [vmem:[#allocation88_spill] sm:$0xff] %v14699_v52  ;;  %8293 = vperm.xlu0 %11731, %v10172_v61   ;;  %v10177_v52 = vld [vmem:[%s15961_s1 + $0x738] sm:$0xff] }
 0x39d   : > { %16146 = vst [vmem:[#allocation87_spill] sm:$0xff] %v14697_v22  ;;  %8308 = vperm.xlu1 %11732, %v10175_v43   ;;  %v10178_v43 = vld [vmem:[%s15961_s1 + $0x740] sm:$0xff] }
 0x39f   : > { %v14709_v54 = vpop.permute.xlu0 %7267 }
 0x3a0   : > { %v14707_v6 = vpop.permute.xlu1 %7272  ;;  %16149 = vst [vmem:[#allocation90_spill] sm:$0xff] %v14709_v54  ;;  %8303 = vperm.xlu0 %11731, %v10174_v35  }
 0x3a1   : > { %16148 = vst [vmem:[#allocation89_spill] sm:$0xff] %v14707_v6  ;;  %8318 = vperm.xlu1 %11732, %v10177_v52   ;;  %v10179_v6 = vld [vmem:[%s15961_s1 + $0x748] sm:$0xff]  ;;  %v10180_v52 = vld [vmem:[%s15961_s1 + $0x750] sm:$0xff] }
 0x3a3   : > { %v14719_v22 = vpop.permute.xlu0 %7277 }
 0x3a4   : > { %v14717_v61 = vpop.permute.xlu1 %7282  ;;  %16151 = vst [vmem:[#allocation92_spill] sm:$0xff] %v14719_v22  ;;  %8313 = vperm.xlu0 %11731, %v10176_v34   ;;  %v10181_v22 = vld [vmem:[%s15961_s1 + $0x758] sm:$0xff] }
 0x3a5   : > { %16150 = vst [vmem:[#allocation91_spill] sm:$0xff] %v14717_v61  ;;  %8328 = vperm.xlu1 %11732, %v10179_v6   ;;  %v10182_v6 = vld [vmem:[%s15961_s1 + $0x760] sm:$0xff] }
 0x3a7   : > { %v14729_v54 = vpop.permute.xlu0 %7287 }
 0x3a8   : > { %v14727_v35 = vpop.permute.xlu1 %7292  ;;  %16153 = vst [vmem:[#allocation94_spill] sm:$0xff] %v14729_v54  ;;  %8323 = vperm.xlu0 %11731, %v10178_v43  }
 0x3a9   : > { %16152 = vst [vmem:[#allocation93_spill] sm:$0xff] %v14727_v35  ;;  %8338 = vperm.xlu1 %11732, %v10181_v22   ;;  %v10183_v35 = vld [vmem:[%s15961_s1 + $0x768] sm:$0xff]  ;;  %v10184_v22 = vld [vmem:[%s15961_s1 + $0x770] sm:$0xff] }
 0x3ab   : > { %v14739_v61 = vpop.permute.xlu0 %7297 }
 0x3ac   : > { %v14737_v34 = vpop.permute.xlu1 %7302  ;;  %16155 = vst [vmem:[#allocation96_spill] sm:$0xff] %v14739_v61  ;;  %8333 = vperm.xlu0 %11731, %v10180_v52   ;;  %v10185_v61 = vld [vmem:[%s15961_s1 + $0x778] sm:$0xff]  ;;  %v14760_v52 = vld [vmem:[%s15963_s3] ss:$0 sm:$0xff] }
 0x3ad   : > { %16154 = vst [vmem:[#allocation95_spill] sm:$0xff] %v14737_v34  ;;  %8348 = vperm.xlu1 %11732, %v10183_v35  }
 0x3af   : > { %v14749_v54 = vpop.permute.xlu0 %7307 }
 0x3b0   : > { %v14747_v43 = vpop.permute.xlu1 %7312  ;;  %16157 = vst [vmem:[#allocation98_spill] sm:$0xff] %v14749_v54  ;;  %8343 = vperm.xlu0 %11731, %v10182_v6  }
 0x3b1   : > { %16156 = vst [vmem:[#allocation97_spill] sm:$0xff] %v14747_v43  ;;  %8358 = vperm.xlu1 %11732, %v10185_v61  }
 0x3b3   : > { %v14764_v43 = vpop.permute.xlu0 %7317 }
 0x3b4   : > { %v14762_v34 = vpop.permute.xlu1 %7322  ;;  %16159 = vst [vmem:[#allocation100_spill] sm:$0xff] %v14764_v43  ;;  %8353 = vperm.xlu0 %11731, %v10184_v22  }
 0x3b5   : > { %16158 = vst [vmem:[#allocation99_spill] sm:$0xff] %v14762_v34  ;;  %v10855_v54 = vpop.f32.mrb[0].mxu0  ;;  %8368 = vperm.xlu1 %11732, %v10187_v40  }
 0x3b6   : > { %v4785_v35 = vadd.f32 %v10855_v54, %v14760_v52  ;;  %v4617_v6 = vpop.f32.mrb[1].mxu0 }
 0x3b7   : > { %v4783_v18 = vadd.f32 %v14760_v52, %v4617_v6  ;;  %v10856_v62 = vpop.f32.mrb[2].mxu0  ;;  %v14778_v42 = vpop.permute.xlu0 %7327  ;;  %v10189_v6 = vld [vmem:[%s15961_s1 + $0x798] sm:$0xff] }
 0x3b8   : > { %v4817_v34 = vmax.f32 %v4785_v35, 0.0  ;;  %v4786_v43 = vadd.f32 %v10856_v62, %v14760_v52  ;;  %v4620_v51 = vpop.f32.mrb[3].mxu0  ;;  %v14775_v61 = vpop.permute.xlu1 %7332  ;;  %16161 = vst [vmem:[#allocation102_spill] sm:$0xff] %v14778_v42  ;;  %8363 = vperm.xlu0 %11731, %v10186_v17   ;;  %v10188_v62 = vld [vmem:[%s15961_s1 + $0x790] sm:$0xff]  ;;  %v10191_v35 = vld [vmem:[%s15961_s1 + $0x7a8] sm:$0xff] }
 0x3b9   : > { %16160 = vst [vmem:[#allocation101_spill] sm:$0xff] %v14775_v61  ;;  %v4815_v22 = vmax.f32 %v4783_v18, 0.0  ;;  %v4784_v54 = vadd.f32 %v14760_v52, %v4620_v51  ;;  %8378 = vperm.xlu1 %11732, %v10189_v6  }
 0x3ba   : > { %4849 = vst.msk [vmem:[#allocation3 + $0x21] sm:$0xff] %vm292_vm3, %v4817_v34  ;;  %v4818_v53 = vmax.f32 %v4786_v43, 0.0 }
 0x3bb   : > { %4847 = vst.msk [vmem:[#allocation3 + $0x11] sm:$0xff] %vm292_vm3, %v4815_v22  ;;  %v4816_v18 = vmax.f32 %v4784_v54, 0.0  ;;  %v14792_v17 = vpop.permute.xlu0 %7337 }
 0x3bc   : > { %4850 = vst.msk [vmem:[#allocation3 + $0x29] sm:$0xff] %vm292_vm3, %v4818_v53  ;;  %v14789_v51 = vpop.permute.xlu1 %7342  ;;  %16163 = vst [vmem:[#allocation104_spill] sm:$0xff] %v14792_v17  ;;  %8373 = vperm.xlu0 %11731, %v10188_v62   ;;  %v10190_v53 = vld [vmem:[%s15961_s1 + $0x7a0] sm:$0xff] }
 0x3bd   : > { %16162 = vst [vmem:[#allocation103_spill] sm:$0xff] %v14789_v51  ;;  %4848 = vst.msk [vmem:[#allocation3 + $0x19] sm:$0xff] %vm292_vm3, %v4816_v18  ;;  %v10859_v40 = vpop.f32.mrb[4].mxu0  ;;  %8388 = vperm.xlu1 %11732, %v10191_v35  }
 0x3be   : > { %v4789_v34 = vadd.f32 %v10859_v40, %v14760_v52  ;;  %v4633_v43 = vpop.f32.mrb[5].mxu0 }
 0x3bf   : > { %v4787_v22 = vadd.f32 %v14760_v52, %v4633_v43  ;;  %v10860_v54 = vpop.f32.mrb[6].mxu0  ;;  %v14806_v61 = vpop.permute.xlu0 %7347  ;;  %v10193_v43 = vld [vmem:[%s15961_s1 + $0x7b8] sm:$0xff] }
 0x3c0   : > { %v4821_v18 = vmax.f32 %v4789_v34, 0.0  ;;  %v4790_v17 = vadd.f32 %v10860_v54, %v14760_v52  ;;  %v4636_v51 = vpop.f32.mrb[7].mxu0  ;;  %v14803_v6 = vpop.permute.xlu1 %7352  ;;  %16165 = vst [vmem:[#allocation106_spill] sm:$0xff] %v14806_v61  ;;  %8383 = vperm.xlu0 %11731, %v10190_v53   ;;  %v10192_v34 = vld [vmem:[%s15961_s1 + $0x7b0] sm:$0xff] }
 0x3c1   : > { %16164 = vst [vmem:[#allocation105_spill] sm:$0xff] %v14803_v6  ;;  %v4819_v62 = vmax.f32 %v4787_v22, 0.0  ;;  %v4788_v40 = vadd.f32 %v14760_v52, %v4636_v51  ;;  %8398 = vperm.xlu1 %11732, %v10193_v43  }
 0x3c2   : > { %4853 = vst.msk [vmem:[#allocation3 + $0x41] sm:$0xff] %vm292_vm3, %v4821_v18  ;;  %v4822_v42 = vmax.f32 %v4790_v17, 0.0  ;;  %v5154_v54 = vld [vmem:[#allocation3 + $0x11] sm:$0xff]  ;;  %v5156_v18 = vld [vmem:[#allocation3 + $0x21] sm:$0xff] }
 0x3c3   : > { %4851 = vst.msk [vmem:[#allocation3 + $0x31] sm:$0xff] %vm292_vm3, %v4819_v62  ;;  %v4820_v22 = vmax.f32 %v4788_v40, 0.0  ;;  %v5157_v51 = vld [vmem:[#allocation3 + $0x29] sm:$0xff]  ;;  %v14820_v17 = vpop.permute.xlu0 %7357  ;;  %v5378_v61 = vmul.f32 %v14163_v36, %v5154_v54  ;;  %v10194_v36 = vld [vmem:[%s15961_s1 + $0x7c0] sm:$0xff] }
 0x3c4   : > { %4854 = vst.msk [vmem:[#allocation3 + $0x49] sm:$0xff] %vm292_vm3, %v4822_v42  ;;  %v14817_v35 = vpop.permute.xlu1 %7362  ;;  %v5155_v53 = vld [vmem:[#allocation3 + $0x19] sm:$0xff]  ;;  %16167 = vst [vmem:[#allocation108_spill] sm:$0xff] %v14820_v17  ;;  %8393 = vperm.xlu0 %11731, %v10192_v34   ;;  %v5381_v62 = vmul.f32 %v14174_v11, %v5157_v51  ;;  %v14825_v40 = vld [vmem:[#allocation3 + $0x10] sm:$0xff]  ;;  %v5380_v11 = vmul.f32 %v14176_v25, %v5156_v18 }
 0x3c5   : > { %16166 = vst [vmem:[#allocation107_spill] sm:$0xff] %v14817_v35  ;;  %4852 = vst.msk [vmem:[#allocation3 + $0x39] sm:$0xff] %vm292_vm3, %v4820_v22  ;;  %v10863_v6 = vpop.f32.mrb[8].mxu0  ;;  %v5379_v57 = vmul.f32 %v14161_v21, %v5155_v53  ;;  %v14827_v42 = vld [vmem:[#allocation3 + $0x18] sm:$0xff]  ;;  %v10195_v22 = vld [vmem:[%s15961_s1 + $0x7c8] sm:$0xff]  ;;  %v5688_v21 = vsel %vm5474_vm4, %v14497_v32, 0 }
 0x3c6   : > { %v4793_v35 = vadd.f32 %v10863_v6, %v14760_v52  ;;  %v4649_v56 = vpop.f32.mrb[9].mxu0  ;;  %v14854_v32 = vmul.f32 %v14527_v37, %v14827_v42  ;;  %8408 = vperm.xlu1 %11732, %v10195_v22   ;;  %v5410_v18 = vpack.c.bf16 %v5381_v62, %v5380_v11 }
 0x3c7   : > { %v4791_v43 = vadd.f32 %v14760_v52, %v4649_v56  ;;  %v10864_v34 = vpop.f32.mrb[10].mxu0  ;;  %v5409_v17 = vpack.c.bf16 %v5379_v57, %v5378_v61  ;;  %v14846_v56 = vld [vmem:[%s15964_s4 + $0x8] sm:$0xf]  ;;  %v14850_v57 = vmul.f32 %v14529_v59, %v14825_v40  ;;  %v10197_v59 = vld [vmem:[%s15961_s1 + $0x7d8] sm:$0xff] }
 0x3c8   : > { %v4825_v54 = vmax.f32 %v4793_v35, 0.0  ;;  %v4794_v6 = vadd.f32 %v10864_v34, %v14760_v52  ;;  %v4652_v51 = vpop.f32.mrb[11].mxu0  ;;  %v14841_v53 = vpop.permute.xlu1 %7372  ;;  %8403 = vperm.xlu0 %11731, %v10194_v36  }
 0x3c9   : > { %v4823_v25 = vmax.f32 %v4791_v43, 0.0  ;;  %v4792_v61 = vadd.f32 %v14760_v52, %v4652_v51  ;;  %v14857_v35 = vpop.permute.xlu0 %7367  ;;  %10888 = vmatmul.mubr.msk.bf16.vlgmr.msra.gmra.mrb[0].mxu1 %vm292_vm3, %v5409_v17  ;;  %v10196_v17 = vld [vmem:[%s15961_s1 + $0x7d0] sm:$0xff] }
 0x3ca   : > { %4857 = vst.msk [vmem:[#allocation3 + $0x61] sm:$0xff] %vm292_vm3, %v4825_v54  ;;  %v4826_v34 = vmax.f32 %v4794_v6, 0.0  ;;  %10920 = vmatpush3.bf16.msra.mxu1 %v5688_v21  ;;  %v5158_v37 = vld [vmem:[#allocation3 + $0x31] sm:$0xff]  ;;  %10891 = vmatprep.mubr.msk.bf16.mxu1 %vm292_vm3, %v5410_v18  ;;  %v5160_v62 = vld [vmem:[#allocation3 + $0x41] sm:$0xff] }
 0x3cb   : > { %4855 = vst.msk [vmem:[#allocation3 + $0x51] sm:$0xff] %vm292_vm3, %v4823_v25  ;;  %v4824_v51 = vmax.f32 %v4792_v61, 0.0  ;;  %v5161_v22 = vld [vmem:[#allocation3 + $0x49] sm:$0xff]  ;;  %11714 = vmatprep.subr.msk.bf16.mxu1 %vm5474_vm4, %v14846_v56  ;;  %8418 = vperm.xlu1 %11732, %v10197_v59   ;;  %v5382_v25 = vmul.f32 %v14190_v47, %v5158_v37  ;;  %v10198_v47 = vld [vmem:[%s15961_s1 + $0x7e0] sm:$0xff] }
 0x3cc   : > { %4858 = vst.msk [vmem:[#allocation3 + $0x69] sm:$0xff] %vm292_vm3, %v4826_v34  ;;  %v14874_v21 = vpop.permute.xlu1 %7382  ;;  %v5159_v36 = vld [vmem:[#allocation3 + $0x39] sm:$0xff]  ;;  %v5385_v11 = vmul.f32 %v14200_v44, %v5161_v22  ;;  %8413 = vperm.xlu0 %11731, %v10196_v17   ;;  %v5384_v44 = vmul.f32 %v14202_v19, %v5160_v62 }
 0x3cd   : > { %16168 = vst [vmem:[#allocation109_spill] sm:$0xff] %v14874_v21  ;;  %4856 = vst.msk [vmem:[#allocation3 + $0x59] sm:$0xff] %vm292_vm3, %v4824_v51  ;;  %v14878_v54 = vpop.permute.xlu0 %7377  ;;  %v10867_v6 = vpop.f32.mrb[12].mxu0  ;;  %v5383_v61 = vmul.f32 %v14188_v48, %v5159_v36  ;;  %v10199_v34 = vld [vmem:[%s15961_s1 + $0x7e8] sm:$0xff] }
 0x3ce   : > { %16169 = vst [vmem:[#allocation110_spill] sm:$0xff] %v14878_v54  ;;  %v4797_v18 = vadd.f32 %v10867_v6, %v14760_v52  ;;  %v4665_v43 = vpop.f32.mrb[13].mxu0  ;;  %v5412_v36 = vpack.c.bf16 %v5385_v11, %v5384_v44  ;;  %v10201_v11 = vld [vmem:[%s15961_s1 + $0x7f8] sm:$0xff] }
 0x3cf   : > { %v4795_v51 = vadd.f32 %v14760_v52, %v4665_v43  ;;  %v10868_v22 = vpop.f32.mrb[14].mxu0  ;;  %v5411_v54 = vpack.c.bf16 %v5383_v61, %v5382_v25  ;;  %8428 = vperm.xlu1 %11732, %v10199_v34   ;;  %v16170_v43 = vmov 0.0  }
 0x3d0   : > { %v4829_v59 = vmax.f32 %v4797_v18, 0.0  ;;  %v4798_v48 = vadd.f32 %v10868_v22, %v14760_v52  ;;  %v4668_v37 = vpop.f32.mrb[15].mxu0  ;;  %v14892_v17 = vpop.permute.xlu1 %7392  ;;  %330 = vst.msk [vmem:[#allocation3 + $0x120] sm:$0x3] %vm329_vm5, %v16170_v43  ;;  %8423 = vperm.xlu0 %11731, %v10198_v47  }
 0x3d1   : > { %v4827_v6 = vmax.f32 %v4795_v51, 0.0  ;;  %v4796_v21 = vadd.f32 %v14760_v52, %v4668_v37  ;;  %v14895_v19 = vpop.permute.xlu0 %7387  ;;  %10892 = vmatmul.mubr.msk.bf16.gmra.mrb[4].mxu1 %vm292_vm3, %v5411_v54  ;;  %v10200_v54 = vld [vmem:[%s15961_s1 + $0x7f0] sm:$0xff] }
 0x3d2   : > { %4861 = vst.msk [vmem:[#allocation3 + $0x81] sm:$0xff] %vm292_vm3, %v4829_v59  ;;  %v4830_v62 = vmax.f32 %v4798_v48, 0.0  ;;  %10895 = vmatprep.mubr.msk.bf16.mxu1 %vm292_vm3, %v5412_v36  ;;  %v5162_v25 = vld [vmem:[#allocation3 + $0x51] sm:$0xff]  ;;  %v5164_v18 = vld [vmem:[#allocation3 + $0x61] sm:$0xff] }
 0x3d3   : > { %4859 = vst.msk [vmem:[#allocation3 + $0x71] sm:$0xff] %vm292_vm3, %v4827_v6  ;;  %v4828_v61 = vmax.f32 %v4796_v21, 0.0  ;;  %v5165_v34 = vld [vmem:[#allocation3 + $0x69] sm:$0xff]  ;;  %8438 = vperm.xlu1 %11732, %v10201_v11   ;;  %v5386_v21 = vmul.f32 %v14216_v7, %v5162_v25  ;;  %v10220_v6 = vld [vmem:[%s15961_s1 + $0x808] sm:$0xff]  ;;  %v10219_v7 = vld [vmem:[%s15961_s1 + $0x800] sm:$0xff] }
 0x3d4   : > { %4862 = vst.msk [vmem:[#allocation3 + $0x89] sm:$0xff] %vm292_vm3, %v4830_v62  ;;  %v14909_v44 = vpop.permute.xlu1 %7402  ;;  %v5163_v51 = vld [vmem:[#allocation3 + $0x59] sm:$0xff]  ;;  %v5389_v22 = vmul.f32 %v14226_v20, %v5165_v34  ;;  %8433 = vperm.xlu0 %11731, %v10200_v54   ;;  %v5388_v20 = vmul.f32 %v14228_v5, %v5164_v18  ;;  %v14927_v34 = vld [vmem:[#allocation3 + $0x28] sm:$0xff] }
 0x3d5   : > { %16171 = vst [vmem:[#allocation111_spill] sm:$0xff] %v14909_v44  ;;  %4860 = vst.msk [vmem:[#allocation3 + $0x79] sm:$0xff] %vm292_vm3, %v4828_v61  ;;  %v14913_v47 = vpop.permute.xlu0 %7397  ;;  %v10871_v59 = vpop.f32.mrb[16].mxu0  ;;  %v5387_v48 = vmul.f32 %v14214_v50, %v5163_v51 }
 0x3d6   : > { %16172 = vst [vmem:[#allocation112_spill] sm:$0xff] %v14913_v47  ;;  %v4801_v37 = vadd.f32 %v10871_v59, %v14760_v52  ;;  %v4681_v36 = vpop.f32.mrb[17].mxu0  ;;  %v5414_v51 = vpack.c.bf16 %v5389_v22, %v5388_v20  ;;  %v10222_v22 = vld [vmem:[%s15961_s1 + $0x818] sm:$0xff] }
 0x3d7   : > { %v4799_v43 = vadd.f32 %v14760_v52, %v4681_v36  ;;  %v10872_v62 = vpop.f32.mrb[18].mxu0  ;;  %v5413_v61 = vpack.c.bf16 %v5387_v48, %v5386_v21  ;;  %v14933_v21 = vld [vmem:[#allocation3 + $0x20] sm:$0xff]  ;;  %8806 = vperm.xlu1 %11732, %v10220_v6   ;;  %v10221_v6 = vld [vmem:[%s15961_s1 + $0x810] sm:$0xff] }
 0x3d8   : > { %v4833_v11 = vmax.f32 %v4801_v37, 0.0  ;;  %v4802_v50 = vadd.f32 %v10872_v62, %v14760_v52  ;;  %v4684_v25 = vpop.f32.mrb[19].mxu0  ;;  %v7771_v54 = vpop.permute.xlu1 %7770  ;;  %8801 = vperm.xlu0 %11731, %v10219_v7  }
 0x3d9   : > { %v4831_v59 = vmax.f32 %v4799_v43, 0.0  ;;  %v4800_v44 = vadd.f32 %v14760_v52, %v4684_v25  ;;  %v14931_v5 = vmul.f32 %v7771_v54, %v14927_v34  ;;  %v7766_v18 = vpop.permute.xlu0 %7765  ;;  %10896 = vmatmul.mubr.msk.bf16.gmra.mrb[8].mxu1 %vm292_vm3, %v5413_v61  ;;  %v5168_v43 = vld [vmem:[#allocation3 + $0x81] sm:$0xff] }
 0x3da   : > { %4865 = vst.msk [vmem:[#allocation3 + $0xa1] sm:$0xff] %vm292_vm3, %v4833_v11  ;;  %v4834_v48 = vmax.f32 %v4802_v50, 0.0  ;;  %v14938_v37 = vmul.f32 %v7766_v18, %v14933_v21  ;;  %10899 = vmatprep.mubr.msk.bf16.mxu1 %vm292_vm3, %v5414_v51  ;;  %v5166_v36 = vld [vmem:[#allocation3 + $0x71] sm:$0xff] }
 0x3db   : > { %16173 = vst [vmem:[#allocation113_spill] sm:$0xff] %v14931_v5  ;;  %4863 = vst.msk [vmem:[#allocation3 + $0x91] sm:$0xff] %vm292_vm3, %v4831_v59  ;;  %v4832_v20 = vmax.f32 %v4800_v44, 0.0  ;;  %v5169_v62 = vld [vmem:[#allocation3 + $0x89] sm:$0xff]  ;;  %v14951_v11 = vld [vmem:[#allocation3 + $0x38] sm:$0xff]  ;;  %8816 = vperm.xlu1 %11732, %v10222_v22   ;;  %v5390_v18 = vmul.f32 %v14242_v10, %v5166_v36 }
 0x3dc   : > { %16174 = vst [vmem:[#allocation114_spill] sm:$0xff] %v14938_v37  ;;  %4866 = vst.msk [vmem:[#allocation3 + $0xa9] sm:$0xff] %vm292_vm3, %v4834_v48  ;;  %v7781_v7 = vpop.permute.xlu1 %7780  ;;  %v5167_v50 = vld [vmem:[#allocation3 + $0x79] sm:$0xff]  ;;  %v5393_v25 = vmul.f32 %v14252_v60, %v5169_v62  ;;  %v14958_v51 = vld [vmem:[#allocation3 + $0x30] sm:$0xff]  ;;  %8811 = vperm.xlu0 %11731, %v10221_v6   ;;  %v5392_v62 = vmul.f32 %v14254_v16, %v5168_v43 }
 0x3dd   : > { %4864 = vst.msk [vmem:[#allocation3 + $0x99] sm:$0xff] %vm292_vm3, %v4832_v20  ;;  %v14956_v44 = vmul.f32 %v7781_v7, %v14951_v11  ;;  %v7776_v54 = vpop.permute.xlu0 %7775  ;;  %v10875_v59 = vpop.f32.mrb[20].mxu0  ;;  %v5391_v48 = vmul.f32 %v14240_v2, %v5167_v50  ;;  %v10224_v20 = vld [vmem:[%s15961_s1 + $0x828] sm:$0xff]  ;;  %v10223_v2 = vld [vmem:[%s15961_s1 + $0x820] sm:$0xff] }
 0x3de   : > { %v14963_v61 = vmul.f32 %v7776_v54, %v14958_v51  ;;  %v4805_v37 = vadd.f32 %v10875_v59, %v14760_v52  ;;  %v4697_v60 = vpop.f32.mrb[21].mxu0  ;;  %v14977_v59 = vld [vmem:[#allocation3 + $0x48] sm:$0xff]  ;;  %v5416_v47 = vpack.c.bf16 %v5393_v25, %v5392_v62  ;;  %v10226_v25 = vld [vmem:[%s15961_s1 + $0x838] sm:$0xff] }
 0x3df   : > { %16175 = vst [vmem:[#allocation115_spill] sm:$0xff] %v14956_v44  ;;  %v4803_v7 = vadd.f32 %v14760_v52, %v4697_v60  ;;  %v10876_v22 = vpop.f32.mrb[22].mxu0  ;;  %v5415_v5 = vpack.c.bf16 %v5391_v48, %v5390_v18  ;;  %v14983_v60 = vld [vmem:[#allocation3 + $0x40] sm:$0xff]  ;;  %8826 = vperm.xlu1 %11732, %v10224_v20  }
 0x3e0   : > { %16176 = vst [vmem:[#allocation116_spill] sm:$0xff] %v14963_v61  ;;  %v4837_v36 = vmax.f32 %v4805_v37, 0.0  ;;  %v4806_v6 = vadd.f32 %v10876_v22, %v14760_v52  ;;  %v4700_v50 = vpop.f32.mrb[23].mxu0  ;;  %v7791_v54 = vpop.permute.xlu1 %7790  ;;  %8821 = vperm.xlu0 %11731, %v10223_v2  }
 0x3e1   : > { %v4835_v16 = vmax.f32 %v4803_v7, 0.0  ;;  %v4804_v43 = vadd.f32 %v14760_v52, %v4700_v50  ;;  %v14981_v18 = vmul.f32 %v7791_v54, %v14977_v59  ;;  %v7786_v48 = vpop.permute.xlu0 %7785  ;;  %10900 = vmatmul.mubr.msk.bf16.gmra.mrb[12].mxu1 %vm292_vm3, %v5415_v5  ;;  %v10225_v5 = vld [vmem:[%s15961_s1 + $0x830] sm:$0xff] }
 0x3e2   : > { %4869 = vst.msk [vmem:[#allocation3 + $0xc1] sm:$0xff] %vm292_vm3, %v4837_v36  ;;  %v4838_v37 = vmax.f32 %v4806_v6, 0.0  ;;  %v14988_v22 = vmul.f32 %v7786_v48, %v14983_v60  ;;  %10903 = vmatprep.mubr.msk.bf16.mxu1 %vm292_vm3, %v5416_v47  ;;  %v5170_v62 = vld [vmem:[#allocation3 + $0x91] sm:$0xff]  ;;  %v5172_v20 = vld [vmem:[#allocation3 + $0xa1] sm:$0xff] }
 0x3e3   : > { %16177 = vst [vmem:[#allocation117_spill] sm:$0xff] %v14981_v18  ;;  %4867 = vst.msk [vmem:[#allocation3 + $0xb1] sm:$0xff] %vm292_vm3, %v4835_v16  ;;  %v4836_v7 = vmax.f32 %v4804_v43, 0.0  ;;  %v5173_v36 = vld [vmem:[#allocation3 + $0xa9] sm:$0xff]  ;;  %v15001_v6 = vld [vmem:[#allocation3 + $0x58] sm:$0xff]  ;;  %8836 = vperm.xlu1 %11732, %v10226_v25  }
 0x3e4   : > { %16178 = vst [vmem:[#allocation118_spill] sm:$0xff] %v14988_v22  ;;  %4870 = vst.msk [vmem:[#allocation3 + $0xc9] sm:$0xff] %vm292_vm3, %v4838_v37  ;;  %v7801_v47 = vpop.permute.xlu1 %7800  ;;  %v5171_v50 = vld [vmem:[#allocation3 + $0x99] sm:$0xff]  ;;  %v5397_v54 = vmul.f32 %v14278_v29, %v5173_v36  ;;  %v15008_v48 = vld [vmem:[#allocation3 + $0x50] sm:$0xff]  ;;  %v5394_v37 = vmul.f32 %v14268_v4, %v5170_v62  ;;  %8831 = vperm.xlu0 %11731, %v10225_v5   ;;  %v5396_v36 = vmul.f32 %v14280_v49, %v5172_v20 }
 0x3e5   : > { %4868 = vst.msk [vmem:[#allocation3 + $0xb9] sm:$0xff] %vm292_vm3, %v4836_v7  ;;  %v15006_v16 = vmul.f32 %v7801_v47, %v15001_v6  ;;  %v7796_v43 = vpop.permute.xlu0 %7795  ;;  %v10879_v10 = vpop.f32.mrb[24].mxu0  ;;  %v5395_v2 = vmul.f32 %v14266_v0, %v5171_v50  ;;  %v10228_v7 = vld [vmem:[%s15961_s1 + $0x848] sm:$0xff]  ;;  %v10227_v0 = vld [vmem:[%s15961_s1 + $0x840] sm:$0xff] }
 0x3e6   : > { %v15013_v22 = vmul.f32 %v7796_v43, %v15008_v48  ;;  %v4809_v18 = vadd.f32 %v10879_v10, %v14760_v52  ;;  %v4713_v29 = vpop.f32.mrb[25].mxu0  ;;  %v15027_v43 = vld [vmem:[#allocation3 + $0x68] sm:$0xff]  ;;  %v5418_v44 = vpack.c.bf16 %v5397_v54, %v5396_v36  ;;  %v10230_v54 = vld [vmem:[%s15961_s1 + $0x858] sm:$0xff] }
 0x3e7   : > { %16179 = vst [vmem:[#allocation119_spill] sm:$0xff] %v15006_v16  ;;  %v4807_v47 = vadd.f32 %v14760_v52, %v4713_v29  ;;  %v10880_v25 = vpop.f32.mrb[26].mxu0  ;;  %v5417_v61 = vpack.c.bf16 %v5395_v2, %v5394_v37  ;;  %v15033_v29 = vld [vmem:[#allocation3 + $0x60] sm:$0xff]  ;;  %8846 = vperm.xlu1 %11732, %v10228_v7  }
 0x3e8   : > { %16180 = vst [vmem:[#allocation120_spill] sm:$0xff] %v15013_v22  ;;  %v4841_v10 = vmax.f32 %v4809_v18, 0.0  ;;  %v4810_v62 = vadd.f32 %v10880_v25, %v14760_v52  ;;  %v4716_v5 = vpop.f32.mrb[27].mxu0  ;;  %v7811_v50 = vpop.permute.xlu1 %7810  ;;  %8841 = vperm.xlu0 %11731, %v10227_v0  }
 0x3e9   : > { %v4839_v49 = vmax.f32 %v4807_v47, 0.0  ;;  %v4808_v20 = vadd.f32 %v14760_v52, %v4716_v5  ;;  %v15031_v2 = vmul.f32 %v7811_v50, %v15027_v43  ;;  %v7806_v37 = vpop.permute.xlu0 %7805  ;;  %10904 = vmatmul.mubr.msk.bf16.gmra.mrb[16].mxu1 %vm292_vm3, %v5417_v61  ;;  %v10229_v61 = vld [vmem:[%s15961_s1 + $0x850] sm:$0xff] }
 0x3ea   : > { %4873 = vst.msk [vmem:[#allocation3 + $0xe1] sm:$0xff] %vm292_vm3, %v4841_v10  ;;  %v4842_v18 = vmax.f32 %v4810_v62, 0.0  ;;  %v15038_v25 = vmul.f32 %v7806_v37, %v15033_v29  ;;  %10907 = vmatprep.mubr.msk.bf16.mxu1 %vm292_vm3, %v5418_v44  ;;  %v5174_v36 = vld [vmem:[#allocation3 + $0xb1] sm:$0xff]  ;;  %v5176_v7 = vld [vmem:[#allocation3 + $0xc1] sm:$0xff] }
 0x3eb   : > { %16181 = vst [vmem:[#allocation121_spill] sm:$0xff] %v15031_v2  ;;  %4871 = vst.msk [vmem:[#allocation3 + $0xd1] sm:$0xff] %vm292_vm3, %v4839_v49  ;;  %v4840_v47 = vmax.f32 %v4808_v20, 0.0  ;;  %v5177_v10 = vld [vmem:[#allocation3 + $0xc9] sm:$0xff]  ;;  %v15051_v62 = vld [vmem:[#allocation3 + $0x78] sm:$0xff]  ;;  %8856 = vperm.xlu1 %11732, %v10230_v54  }
 0x3ec   : > { %16182 = vst [vmem:[#allocation122_spill] sm:$0xff] %v15038_v25  ;;  %4874 = vst.msk [vmem:[#allocation3 + $0xe9] sm:$0xff] %vm292_vm3, %v4842_v18  ;;  %v7821_v44 = vpop.permute.xlu1 %7820  ;;  %v5175_v5 = vld [vmem:[#allocation3 + $0xb9] sm:$0xff]  ;;  %v5401_v50 = vmul.f32 %v14304_v26, %v5177_v10  ;;  %v15058_v37 = vld [vmem:[#allocation3 + $0x70] sm:$0xff]  ;;  %v5398_v18 = vmul.f32 %v14294_v55, %v5174_v36  ;;  %8851 = vperm.xlu0 %11731, %v10229_v61   ;;  %v5400_v10 = vmul.f32 %v14306_v8, %v5176_v7 }
 0x3ed   : > { %4872 = vst.msk [vmem:[#allocation3 + $0xd9] sm:$0xff] %vm292_vm3, %v4840_v47  ;;  %v15056_v49 = vmul.f32 %v7821_v44, %v15051_v62  ;;  %v7816_v20 = vpop.permute.xlu0 %7815  ;;  %v10883_v4 = vpop.f32.mrb[28].mxu0  ;;  %v5399_v0 = vmul.f32 %v14292_v1, %v5175_v5  ;;  %v10232_v47 = vld [vmem:[%s15961_s1 + $0x868] sm:$0xff]  ;;  %v10231_v1 = vld [vmem:[%s15961_s1 + $0x860] sm:$0xff] }
 0x3ee   : > { %v15063_v25 = vmul.f32 %v7816_v20, %v15058_v37  ;;  %v4813_v2 = vadd.f32 %v10883_v4, %v14760_v52  ;;  %v4729_v26 = vpop.f32.mrb[29].mxu0  ;;  %v15077_v20 = vld [vmem:[#allocation3 + $0x88] sm:$0xff]  ;;  %v5420_v16 = vpack.c.bf16 %v5401_v50, %v5400_v10 }
 0x3ef   : > { %v4811_v44 = vadd.f32 %v14760_v52, %v4729_v26  ;;  %v10884_v54 = vpop.f32.mrb[30].mxu0  ;;  %v5419_v22 = vpack.c.bf16 %v5399_v0, %v5398_v18  ;;  %v15083_v26 = vld [vmem:[#allocation3 + $0x80] sm:$0xff]  ;;  %8866 = vperm.xlu1 %11732, %v10232_v47  }
 0x3f0   : > { %v4845_v4 = vmax.f32 %v4813_v2, 0.0  ;;  %v4814_v36 = vadd.f32 %v10884_v54, %v14760_v52  ;;  %v4732_v61 = vpop.f32.mrb[31].mxu0  ;;  %v7831_v5 = vpop.permute.xlu1 %7830  ;;  %8861 = vperm.xlu0 %11731, %v10231_v1  }
 0x3f1   : > { %v4843_v8 = vmax.f32 %v4811_v44, 0.0  ;;  %v4812_v7 = vadd.f32 %v14760_v52, %v4732_v61  ;;  %v15081_v0 = vmul.f32 %v7831_v5, %v15077_v20  ;;  %v7826_v18 = vpop.permute.xlu0 %7825  ;;  %10908 = vmatmul.mubr.msk.bf16.gmra.mrb[20].mxu1 %vm292_vm3, %v5419_v22  ;;  %v10234_v52 = vld [vmem:[%s15961_s1 + $0x878] sm:$0xff]  ;;  %v10233_v22 = vld [vmem:[%s15961_s1 + $0x870] sm:$0xff] }
 0x3f2   : > { %4877 = vst.msk [vmem:[#allocation3 + $0x101] sm:$0xff] %vm292_vm3, %v4845_v4  ;;  %v4846_v2 = vmax.f32 %v4814_v36, 0.0  ;;  %v15088_v54 = vmul.f32 %v7826_v18, %v15083_v26  ;;  %10911 = vmatprep.mubr.msk.bf16.mxu1 %vm292_vm3, %v5420_v16  ;;  %v5178_v50 = vld [vmem:[#allocation3 + $0xd1] sm:$0xff]  ;;  %v5180_v47 = vld [vmem:[#allocation3 + $0xe1] sm:$0xff] }
 0x3f3   : > { %4875 = vst.msk [vmem:[#allocation3 + $0xf1] sm:$0xff] %vm292_vm3, %v4843_v8  ;;  %v4844_v10 = vmax.f32 %v4812_v7, 0.0  ;;  %v5181_v44 = vld [vmem:[#allocation3 + $0xe9] sm:$0xff]  ;;  %v15101_v4 = vld [vmem:[#allocation3 + $0x98] sm:$0xff]  ;;  %8876 = vperm.xlu1 %11732, %v10234_v52   ;;  %v5402_v18 = vmul.f32 %v14320_v41, %v5178_v50 }
 0x3f4   : > { %16183 = vst [vmem:[#allocation123_spill] sm:$0xff] %v15088_v54  ;;  %4878 = vst.msk [vmem:[#allocation3 + $0x109] sm:$0xff] %vm292_vm3, %v4846_v2  ;;  %v7841_v16 = vpop.permute.xlu1 %7840  ;;  %v5179_v36 = vld [vmem:[#allocation3 + $0xd9] sm:$0xff]  ;;  %v5405_v61 = vmul.f32 %v14330_v12, %v5181_v44  ;;  %v15108_v7 = vld [vmem:[#allocation3 + $0x90] sm:$0xff]  ;;  %8871 = vperm.xlu0 %11731, %v10233_v22  }
 0x3f5   : > { %4876 = vst.msk [vmem:[#allocation3 + $0xf9] sm:$0xff] %vm292_vm3, %v4844_v10  ;;  %v15106_v5 = vmul.f32 %v7841_v16, %v15101_v4  ;;  %v7836_v8 = vpop.permute.xlu0 %7835  ;;  %v5403_v2 = vmul.f32 %v14318_v45, %v5179_v36  ;;  %v10236_v12 = vld [vmem:[%s15961_s1 + $0x888] sm:$0xff]  ;;  %v5404_v10 = vmul.f32 %v14332_v46, %v5180_v47  ;;  %v10235_v16 = vld [vmem:[%s15961_s1 + $0x880] sm:$0xff]  ;;  %v15124_v45 = vld [vmem:[#allocation3 + $0xa8] sm:$0xff] }
 0x3f6   : > { %v15113_v1 = vmul.f32 %v7836_v8, %v15108_v7  ;;  %v4880_v36 = vld [vmem:[#allocation3 + $0x8] sm:$0xff]  ;;  %v4879_v22 = vld [vmem:[#allocation3] sm:$0xff]  ;;  %v10238_v47 = vld [vmem:[%s15961_s1 + $0x898] sm:$0xff] }
 0x3f7   : > { %v5421_v44 = vpack.c.bf16 %v5403_v2, %v5402_v18  ;;  %v5422_v50 = vpack.c.bf16 %v5405_v61, %v5404_v10  ;;  %v15129_v54 = vld [vmem:[#allocation3 + $0xa0] sm:$0xff]  ;;  %8886 = vperm.xlu1 %11732, %v10236_v12   ;;  %v10237_v18 = vld [vmem:[%s15961_s1 + $0x890] sm:$0xff]  ;;  %v5104_v2 = vmul.f32 %v13939_v9, %v4880_v36  ;;  %v5103_v10 = vmul.f32 %v13941_v38, %v4879_v22  ;;  %v15151_v41 = vld [vmem:[#allocation3 + $0xb0] sm:$0xff] }
 0x3f8   : > { %16184 = vst [vmem:[#allocation124_spill] sm:$0xff] %v15113_v1  ;;  %v7851_v52 = vpop.permute.xlu1 %7850  ;;  %8881 = vperm.xlu0 %11731, %v10235_v16   ;;  %v10240_v36 = vld [vmem:[%s15961_s1 + $0x8a8] sm:$0xff] }
 0x3f9   : > { %v15127_v8 = vmul.f32 %v7851_v52, %v15124_v45  ;;  %v7846_v55 = vpop.permute.xlu0 %7845  ;;  %10912 = vmatmul.mubr.msk.bf16.gmra.mrb[24].mxu1 %vm292_vm3, %v5421_v44  ;;  %v15146_v44 = vld [vmem:[#allocation3 + $0xb8] sm:$0xff] }
 0x3fa   : > { %v15133_v46 = vmul.f32 %v7846_v55, %v15129_v54  ;;  %10915 = vmatprep.mubr.msk.bf16.mxu1 %vm292_vm3, %v5422_v50  ;;  %v5182_v61 = vld [vmem:[#allocation3 + $0xf1] sm:$0xff]  ;;  %v5135_v55 = vpack.c.bf16 %v5104_v2, %v5103_v10  ;;  %v10241_v10 = vld [vmem:[%s15961_s1 + $0x8b0] sm:$0xff] }
 0x3fb   : > { %8896 = vperm.xlu1 %11732, %v10238_v47   ;;  %v5406_v1 = vmul.f32 %v14346_v24, %v5182_v61  ;;  %v15166_v61 = vld [vmem:[#allocation3 + $0xc8] sm:$0xff]  ;;  %v10242_v2 = vld [vmem:[%s15961_s1 + $0x8b8] sm:$0xff]  ;;  %v5107_v47 = vmul.f32 %v14933_v21, %v13967_v31 }
 0x3fc   : > { %v7861_v12 = vpop.permute.xlu1 %7860  ;;  %v5183_v16 = vld [vmem:[#allocation3 + $0xf9] sm:$0xff]  ;;  %8891 = vperm.xlu0 %11731, %v10237_v18  }
 0x3fd   : > { %v15149_v52 = vmul.f32 %v7861_v12, %v15146_v44  ;;  %v7856_v50 = vpop.permute.xlu0 %7855  ;;  %v5407_v9 = vmul.f32 %v14344_v33, %v5183_v16  ;;  %v10239_v12 = vld [vmem:[%s15961_s1 + $0x8a0] sm:$0xff]  ;;  %v15171_v16 = vld [vmem:[#allocation3 + $0xc0] sm:$0xff] }
 0x3fe   : > { %v15156_v38 = vmul.f32 %v7856_v50, %v15151_v41  ;;  %v5106_v50 = vmul.f32 %v13953_v15, %v14827_v42  ;;  %v5108_v15 = vmul.f32 %v14927_v34, %v13965_v30  ;;  %v15219_v34 = vld [vmem:[%s15964_s4 + $0xc] sm:$0xf] }
 0x3ff   : > { %v5423_v22 = vpack.c.bf16 %v5407_v9, %v5406_v1  ;;  %8906 = vperm.xlu1 %11732, %v10240_v36  }
 0x400   : > { %v7871_v24 = vpop.permute.xlu1 %7870  ;;  %8901 = vperm.xlu0 %11731, %v10239_v12  }
 0x401   : > { %v15169_v33 = vmul.f32 %v7871_v24, %v15166_v61  ;;  %v7866_v18 = vpop.permute.xlu0 %7865  ;;  %10916 = vmatmul.mubr.msk.bf16.gmra.mrb[28].mxu1 %vm292_vm3, %v5423_v22  ;;  %v15188_v22 = vld [vmem:[#allocation3 + $0xd8] sm:$0xff]  ;;  %v15193_v24 = vld [vmem:[#allocation3 + $0xd0] sm:$0xff] }
 0x402   : > { %v15175_v1 = vmul.f32 %v7866_v18, %v15171_v16  ;;  %10921 = vmatprep.mubr.msk.bf16.mxu1 %vm292_vm3, %v5135_v55  ;;  %v5105_v18 = vmul.f32 %v13955_v63, %v14825_v40  ;;  %v10243_v63 = vld [vmem:[%s15961_s1 + $0x8c0] sm:$0xff]  ;;  %v15214_v40 = vld [vmem:[#allocation3 + $0xe8] sm:$0xff] }
 0x403   : > { %16185 = vst [vmem:[#allocation125_spill] sm:$0xff] %v15169_v33  ;;  %8916 = vperm.xlu1 %11732, %v10242_v2   ;;  %v6174_v2 = vsel %vm5474_vm4, %v14846_v56, 0  ;;  %v15224_v56 = vld [vmem:[#allocation3 + $0xe0] sm:$0xff]  ;;  %v16262_v33 = vld [vmem:[#allocation66_spill] sm:$0xff] }
 0x404   : > { %16186 = vst [vmem:[#allocation126_spill] sm:$0xff] %v15175_v1  ;;  %v7881_v36 = vpop.permute.xlu1 %7880  ;;  %8911 = vperm.xlu0 %11731, %v10241_v10   ;;  %v5136_v9 = vpack.c.bf16 %v5106_v50, %v5105_v18  ;;  %v5137_v50 = vpack.c.bf16 %v5108_v15, %v5107_v47  ;;  %v10246_v18 = vld [vmem:[%s15961_s1 + $0x8d8] sm:$0xff]  ;;  %v10248_v47 = vld [vmem:[%s15961_s1 + $0x8e8] sm:$0xff]  ;;  %v6376_v1 = vld [vmem:[#allocation3 + $0x48] sm:$0xff] }
 0x405   : > { %v15191_v12 = vmul.f32 %v7881_v36, %v15188_v22  ;;  %v7876_v55 = vpop.permute.xlu0 %7875  ;;  %v10244_v36 = vld [vmem:[%s15961_s1 + $0x8c8] sm:$0xff] }
 0x406   : > { %v15202_v42 = vmul.f32 %v7876_v55, %v15193_v24 }
 0x407   : > { %16187 = vst [vmem:[#allocation127_spill] sm:$0xff] %v15191_v12  ;;  %8926 = vperm.xlu1 %11732, %v10244_v36   ;;  %v15243_v36 = vld [vmem:[#allocation3 + $0xf8] sm:$0xff]  ;;  %v6375_v12 = vld [vmem:[#allocation3 + $0x40] sm:$0xff] }
 0x408   : > { %16188 = vst [vmem:[#allocation128_spill] sm:$0xff] %v15202_v42  ;;  %v7891_v30 = vpop.permute.xlu1 %7890  ;;  %8921 = vperm.xlu0 %11731, %v10243_v63   ;;  %v5112_v63 = vmul.f32 %v14977_v59, %v13993_v23  ;;  %v10247_v23 = vld [vmem:[%s15961_s1 + $0x8e0] sm:$0xff]  ;;  %v16254_v42 = vld [vmem:[#allocation58_spill] sm:$0xff] }
 0x409   : > { %v15222_v21 = vmul.f32 %v7891_v30, %v15214_v40  ;;  %v7886_v10 = vpop.permute.xlu0 %7885  ;;  %10922 = vmatmul.mubr.msk.bf16.vlgmr.msra.gmra.mrb[0].mxu1 %vm292_vm3, %v5136_v9  ;;  %v10245_v30 = vld [vmem:[%s15961_s1 + $0x8d0] sm:$0xff]  ;;  %v5110_v9 = vmul.f32 %v14951_v11, %v13981_v58  ;;  %v7725_v58 = vld [vmem:[#allocation3 + $0xf0] sm:$0xff]  ;;  %v5109_v11 = vmul.f32 %v14958_v51, %v13983_v39  ;;  %v15464_v59 = vld [vmem:[#allocation3 + $0xfa] sm:$0xff] }
 0x40a   : > { %v15228_v55 = vmul.f32 %v7886_v10, %v15224_v56  ;;  %10954 = vmatpush3.bf16.msra.mxu1 %v6174_v2  ;;  %10925 = vmatprep.mubr.msk.bf16.mxu1 %vm292_vm3, %v5137_v50  ;;  %v5111_v2 = vmul.f32 %v14983_v60, %v13995_v28  ;;  %v10250_v39 = vld [vmem:[%s15961_s1 + $0x8f8] sm:$0xff]  ;;  %v10249_v51 = vld [vmem:[%s15961_s1 + $0x8f0] sm:$0xff] }
 0x40b   : > { %16189 = vst [vmem:[#allocation129_spill] sm:$0xff] %v15222_v21  ;;  %11715 = vmatprep.subr.msk.bf16.mxu1 %vm5474_vm4, %v15219_v34  ;;  %8936 = vperm.xlu1 %11732, %v10246_v18   ;;  %v5138_v28 = vpack.c.bf16 %v5110_v9, %v5109_v11  ;;  %v5114_v18 = vmul.f32 %v15001_v6, %v14007_v14  ;;  %v16194_v6 = vld [vmem:[#allocation21_spill] sm:$0xff] }
 0x40c   : > { %16190 = vst [vmem:[#allocation130_spill] sm:$0xff] %v15228_v55  ;;  %v7901_v15 = vpop.permute.xlu1 %7900  ;;  %8931 = vperm.xlu0 %11731, %v10245_v30   ;;  %v5139_v60 = vpack.c.bf16 %v5112_v63, %v5111_v2  ;;  %v5115_v30 = vmul.f32 %v15033_v29, %v14021_v3  ;;  %v5116_v9 = vmul.f32 %v15027_v43, %v14019_v13  ;;  %v16193_v63 = vld [vmem:[#allocation16_spill] sm:$0xff]  ;;  %v16196_v43 = vld [vmem:[#allocation19_spill] sm:$0xff]  ;;  %v16197_v11 = vld [vmem:[#allocation25_spill] sm:$0xff] }
 0x40d   : > { %v15250_v10 = vmul.f32 %v7901_v15, %v15243_v36  ;;  %v7896_v50 = vpop.permute.xlu0 %7895  ;;  %v5118_v14 = vmul.f32 %v15051_v62, %v16193_v63  ;;  %v5119_v3 = vmul.f32 %v15083_v26, %v16194_v6  ;;  %v16195_v29 = vld [vmem:[#allocation20_spill] sm:$0xff]  ;;  %v16205_v63 = vld [vmem:[#allocation33_spill] sm:$0xff] }
 0x40e   : > { %v15254_v31 = vmul.f32 %v7896_v50, %v7725_v58  ;;  %v5141_v2 = vpack.c.bf16 %v5116_v9, %v5115_v30  ;;  %v5120_v13 = vmul.f32 %v15077_v20, %v16195_v29  ;;  %v5117_v50 = vmul.f32 %v15058_v37, %v16196_v43  ;;  %v16202_v9 = vld [vmem:[#allocation32_spill] sm:$0xff]  ;;  %v16206_v6 = vld [vmem:[#allocation17_spill] sm:$0xff]  ;;  %v16208_v29 = vld [vmem:[#allocation34_spill] sm:$0xff] }
 0x40f   : > { %16191 = vst [vmem:[#allocation131_spill] sm:$0xff] %v15250_v10  ;;  %8946 = vperm.xlu1 %11732, %v10248_v47   ;;  %v5113_v47 = vmul.f32 %v15008_v48, %v14009_v27  ;;  %v5852_v43 = vld [vmem:[#allocation3 + $0xa] sm:$0xff]  ;;  %v6371_v10 = vld [vmem:[#allocation3 + $0x20] sm:$0xff] }
 0x410   : > { %16192 = vst [vmem:[#allocation132_spill] sm:$0xff] %v15254_v31  ;;  %8941 = vperm.xlu0 %11731, %v10247_v23   ;;  %v5142_v27 = vpack.c.bf16 %v5118_v14, %v5117_v50  ;;  %v5143_v48 = vpack.c.bf16 %v5120_v13, %v5119_v3  ;;  %v16198_v23 = vld [vmem:[#allocation28_spill] sm:$0xff]  ;;  %v5130_v14 = vmul.f32 %v15188_v22, %v16205_v63  ;;  %v16207_v3 = vld [vmem:[#allocation18_spill] sm:$0xff]  ;;  %v6372_v55 = vld [vmem:[#allocation3 + $0x28] sm:$0xff] }
 0x411   : > { %10926 = vmatmul.mubr.msk.bf16.gmra.mrb[4].mxu1 %vm292_vm3, %v5138_v28  ;;  %v5140_v15 = vpack.c.bf16 %v5114_v18, %v5113_v47  ;;  %v5122_v28 = vmul.f32 %v15101_v4, %v16197_v11  ;;  %v5123_v62 = vmul.f32 %v15129_v54, %v16198_v23  ;;  %v16201_v18 = vld [vmem:[#allocation29_spill] sm:$0xff]  ;;  %v5127_v4 = vmul.f32 %v15171_v16, %v16202_v9  ;;  %v16203_v47 = vld [vmem:[#allocation31_spill] sm:$0xff] }
 0x412   : > { %10929 = vmatprep.mubr.msk.bf16.mxu1 %vm292_vm3, %v5139_v60  ;;  %v16199_v60 = vld [vmem:[#allocation27_spill] sm:$0xff]  ;;  %v5126_v30 = vmul.f32 %v15146_v44, %v16201_v18  ;;  %v5128_v54 = vmul.f32 %v15166_v61, %v16203_v47  ;;  %v5131_v44 = vmul.f32 %v15224_v56, %v16206_v6  ;;  %v5132_v16 = vmul.f32 %v15214_v40, %v16207_v3  ;;  %v5851_v50 = vld [vmem:[#allocation3 + $0x2] sm:$0xff]  ;;  %v16215_v18 = vld [vmem:[#allocation6_spill] sm:$0xff] }
 0x413   : > { %8956 = vperm.xlu1 %11732, %v10250_v39   ;;  %v5124_v26 = vmul.f32 %v15124_v45, %v16199_v60  ;;  %v16200_v39 = vld [vmem:[#allocation26_spill] sm:$0xff]  ;;  %v5129_v61 = vmul.f32 %v15193_v24, %v16208_v29  ;;  %v16211_v56 = vld [vmem:[#allocation36_spill] sm:$0xff]  ;;  %v16212_v23 = vld [vmem:[#allocation23_spill] sm:$0xff]  ;;  %16247 = vst [vmem:[#allocation27_spill] sm:$0xff] %v15464_v59 }
 0x414   : > { %8951 = vperm.xlu0 %11731, %v10249_v51   ;;  %v5121_v20 = vmul.f32 %v15108_v7, %v16200_v39  ;;  %v5147_v7 = vpack.c.bf16 %v5128_v54, %v5127_v4  ;;  %v6075_v40 = vmul.f32 %v16212_v23, %v5851_v50  ;;  %v15327_v24 = vld [vmem:[#allocation3 + $0x12] sm:$0xff]  ;;  %v15332_v39 = vld [vmem:[#allocation3 + $0x2a] sm:$0xff]  ;;  %v6692_v54 = vsel %vm5474_vm4, %v15219_v34, 0  ;;  %v16218_v6 = vld [vmem:[#allocation8_spill] sm:$0xff] }
 0x415   : > { %v5145_v37 = vpack.c.bf16 %v5124_v26, %v5123_v62  ;;  %v5148_v13 = vpack.c.bf16 %v5130_v14, %v5129_v61  ;;  %v15329_v26 = vld [vmem:[#allocation3 + $0x1a] sm:$0xff]  ;;  %v15357_v63 = vld [vmem:[#allocation3 + $0x4a] sm:$0xff]  ;;  %v15364_v3 = vld [vmem:[#allocation3 + $0x42] sm:$0xff] }
 0x416   : > { %v5144_v51 = vpack.c.bf16 %v5122_v28, %v5121_v20  ;;  %v5133_v28 = vmul.f32 %v7725_v58, %v16211_v56  ;;  %v16216_v9 = vld [vmem:[#allocation7_spill] sm:$0xff]  ;;  %v16217_v14 = vld [vmem:[#allocation9_spill] sm:$0xff]  ;;  %v16222_v56 = vld [vmem:[#allocation12_spill] sm:$0xff] }
 0x417   : > { %v16220_v61 = vld [vmem:[#allocation11_spill] sm:$0xff]  ;;  %v15384_v23 = vld [vmem:[#allocation3 + $0x62] sm:$0xff] }
 0x418   : > { %v15372_v50 = vld [vmem:[#allocation3 + $0x52] sm:$0xff] }
 0x419   : > { %10930 = vmatmul.mubr.msk.bf16.gmra.mrb[8].mxu1 %vm292_vm3, %v5140_v15  ;;  %v16204_v15 = vld [vmem:[#allocation30_spill] sm:$0xff] }
 0x41a   : > { %10933 = vmatprep.mubr.msk.bf16.mxu1 %vm292_vm3, %v5141_v2  ;;  %v5125_v45 = vmul.f32 %v15151_v41, %v16204_v15  ;;  %v5149_v41 = vpack.c.bf16 %v5132_v16, %v5131_v44  ;;  %v16219_v16 = vld [vmem:[#allocation10_spill] sm:$0xff] }
 0x41b   : > { %v6084_v29 = vmul.f32 %v16219_v16, %v15357_v63 }
 0x41c   : > { %v5146_v2 = vpack.c.bf16 %v5126_v30, %v5125_v45  ;;  %v6080_v30 = vmul.f32 %v16215_v18, %v15332_v39  ;;  %v15347_v45 = vld [vmem:[#allocation3 + $0x32] sm:$0xff]  ;;  %v15392_v18 = vld [vmem:[#allocation3 + $0x7a] sm:$0xff] }
 0x41d   : > { %v6081_v34 = vmul.f32 %v16217_v14, %v15347_v45  ;;  %v16227_v14 = vld [vmem:[#allocation39_spill] sm:$0xff] }
 0x421   : > { %10934 = vmatmul.mubr.msk.bf16.gmra.mrb[12].mxu1 %vm292_vm3, %v5142_v27  ;;  %v16209_v27 = vld [vmem:[#allocation35_spill] sm:$0xff] }
 0x422   : > { %10937 = vmatprep.mubr.msk.bf16.mxu1 %vm292_vm3, %v5143_v48  ;;  %v5134_v22 = vmul.f32 %v15243_v36, %v16209_v27  ;;  %v16210_v48 = vld [vmem:[#allocation22_spill] sm:$0xff]  ;;  %v16213_v36 = vld [vmem:[#allocation24_spill] sm:$0xff] }
 0x423   : > { %v6076_v11 = vmul.f32 %v16210_v48, %v5852_v43  ;;  %v6077_v20 = vmul.f32 %v16213_v36, %v15327_v24  ;;  %v15374_v27 = vld [vmem:[#allocation3 + $0x5a] sm:$0xff]  ;;  %v16221_v48 = vld [vmem:[#allocation13_spill] sm:$0xff] }
 0x424   : > { %v5150_v62 = vpack.c.bf16 %v5134_v22, %v5133_v28  ;;  %v15377_v22 = vld [vmem:[#allocation3 + $0x6a] sm:$0xff]  ;;  %v6086_v28 = vmul.f32 %v16222_v56, %v15374_v27 }
 0x425   : > { %v6107_v60 = vpack.c.bf16 %v6076_v11, %v6075_v40  ;;  %v6085_v11 = vmul.f32 %v16221_v48, %v15372_v50  ;;  %v16223_v40 = vld [vmem:[#allocation14_spill] sm:$0xff] }
 0x429   : > { %10938 = vmatmul.mubr.msk.bf16.gmra.mrb[16].mxu1 %vm292_vm3, %v5144_v51  ;;  %v16214_v51 = vld [vmem:[#allocation5_spill] sm:$0xff] }
 0x42a   : > { %10941 = vmatprep.mubr.msk.bf16.mxu1 %vm292_vm3, %v5145_v37  ;;  %v6078_v58 = vmul.f32 %v16214_v51, %v15329_v26  ;;  %v15339_v37 = vld [vmem:[#allocation3 + $0x22] sm:$0xff] }
 0x42b   : > { %v6079_v4 = vmul.f32 %v16216_v9, %v15339_v37  ;;  %v16225_v9 = vld [vmem:[#allocation38_spill] sm:$0xff] }
 0x42c   : > { %v6108_v47 = vpack.c.bf16 %v6078_v58, %v6077_v20  ;;  %v6112_v20 = vpack.c.bf16 %v6086_v28, %v6085_v11  ;;  %v15390_v58 = vld [vmem:[#allocation3 + $0x72] sm:$0xff]  ;;  %v16230_v11 = vld [vmem:[#allocation41_spill] sm:$0xff] }
 0x42d   : > { %v6109_v15 = vpack.c.bf16 %v6080_v30, %v6079_v4  ;;  %v15395_v30 = vld [vmem:[#allocation3 + $0x8a] sm:$0xff]  ;;  %v6089_v4 = vmul.f32 %v16225_v9, %v15390_v58  ;;  %v15420_v28 = vld [vmem:[#allocation3 + $0xa2] sm:$0xff]  ;;  %v15426_v9 = vld [vmem:[#allocation3 + $0xb2] sm:$0xff] }
 0x431   : > { %10942 = vmatmul.mubr.msk.bf16.gmra.mrb[20].mxu1 %vm292_vm3, %v5146_v2  ;;  %v15349_v2 = vld [vmem:[#allocation3 + $0x3a] sm:$0xff] }
 0x432   : > { %10945 = vmatprep.mubr.msk.bf16.mxu1 %vm292_vm3, %v5147_v7  ;;  %v15354_v7 = vld [vmem:[%s15964_s4 + $0x10] sm:$0xf]  ;;  %v6082_v44 = vmul.f32 %v16218_v6, %v15349_v2  ;;  %v16228_v6 = vld [vmem:[#allocation40_spill] sm:$0xff] }
 0x439   : > { %10946 = vmatmul.mubr.msk.bf16.gmra.mrb[24].mxu1 %vm292_vm3, %v5148_v13  ;;  %v6083_v13 = vmul.f32 %v16220_v61, %v15364_v3  ;;  %v15408_v61 = vld [vmem:[#allocation3 + $0x92] sm:$0xff] }
 0x43a   : > { %10949 = vmatprep.mubr.msk.bf16.mxu1 %vm292_vm3, %v5149_v41  ;;  %v6110_v41 = vpack.c.bf16 %v6082_v44, %v6081_v34  ;;  %v6092_v34 = vmul.f32 %v16227_v14, %v15395_v30 }
 0x43b   : > { %v6111_v43 = vpack.c.bf16 %v6084_v29, %v6083_v13  ;;  %v15410_v13 = vld [vmem:[#allocation3 + $0x9a] sm:$0xff] }
 0x43c   : > { %v6094_v56 = vmul.f32 %v16230_v11, %v15410_v13 }
 0x441   : > { %10950 = vmatmul.mubr.msk.bf16.gmra.mrb[28].mxu1 %vm292_vm3, %v5150_v62  ;;  %v6088_v62 = vmul.f32 %v16223_v40, %v15377_v22  ;;  %v16231_v40 = vld [vmem:[#allocation43_spill] sm:$0xff] }
 0x442   : > { %10955 = vmatprep.mubr.msk.bf16.mxu1 %vm292_vm3, %v6107_v60  ;;  %v16224_v60 = vld [vmem:[#allocation15_spill] sm:$0xff] }
 0x443   : > { %v6087_v36 = vmul.f32 %v16224_v60, %v15384_v23  ;;  %v16232_v60 = vld [vmem:[#allocation44_spill] sm:$0xff] }
 0x445   : > { %v6113_v51 = vpack.c.bf16 %v6088_v62, %v6087_v36  ;;  %v6095_v36 = vmul.f32 %v16232_v60, %v15420_v28  ;;  %v15449_v60 = vld [vmem:[#allocation3 + $0xea] sm:$0xff] }
 0x446   : > { %16240 = vst [vmem:[#allocation19_spill] sm:$0xff] %v15449_v60 }
 0x449   : > { %10956 = vmatmul.mubr.msk.bf16.vlgmr.msra.gmra.mrb[0].mxu1 %vm292_vm3, %v6108_v47  ;;  %v16226_v47 = vld [vmem:[#allocation37_spill] sm:$0xff] }
 0x44a   : > { %10988 = vmatpush3.bf16.msra.mxu1 %v6692_v54  ;;  %10959 = vmatprep.mubr.msk.bf16.mxu1 %vm292_vm3, %v6109_v15  ;;  %v6090_v54 = vmul.f32 %v16226_v47, %v15392_v18  ;;  %v15402_v15 = vld [vmem:[#allocation3 + $0x82] sm:$0xff]  ;;  %v15431_v47 = vld [vmem:[#allocation3 + $0xca] sm:$0xff] }
 0x44b   : > { %11716 = vmatprep.subr.msk.bf16.mxu1 %vm5474_vm4, %v15354_v7  ;;  %v6091_v44 = vmul.f32 %v16228_v6, %v15402_v15 }
 0x44c   : > { %v6114_v16 = vpack.c.bf16 %v6090_v54, %v6089_v4  ;;  %v15428_v4 = vld [vmem:[#allocation3 + $0xba] sm:$0xff]  ;;  %v16233_v54 = vld [vmem:[#allocation46_spill] sm:$0xff] }
 0x44d   : > { %v6115_v29 = vpack.c.bf16 %v6092_v34, %v6091_v44  ;;  %v6097_v14 = vmul.f32 %v16233_v54, %v15426_v9  ;;  %v16234_v34 = vld [vmem:[#allocation45_spill] sm:$0xff] }
 0x44e   : > { %v6098_v6 = vmul.f32 %v16234_v34, %v15428_v4  ;;  %v15438_v44 = vld [vmem:[#allocation3 + $0xc2] sm:$0xff] }
 0x44f   : > { %16235 = vst [vmem:[#allocation16_spill] sm:$0xff] %v15438_v44  ;;  %v15456_v34 = vld [vmem:[#allocation3 + $0xe2] sm:$0xff] }
 0x450   : > { %v6118_v11 = vpack.c.bf16 %v6098_v6, %v6097_v14  ;;  %16243 = vst [vmem:[#allocation25_spill] sm:$0xff] %v15456_v34  ;;  %v16244_v14 = vld [vmem:[#allocation51_spill] sm:$0xff] }
 0x451   : > { %10960 = vmatmul.mubr.msk.bf16.gmra.mrb[4].mxu1 %vm292_vm3, %v6110_v41  ;;  %v15413_v41 = vld [vmem:[#allocation3 + $0xaa] sm:$0xff]  ;;  %v6104_v6 = vmul.f32 %v16244_v14, %v15449_v60 }
 0x452   : > { %10963 = vmatprep.mubr.msk.bf16.mxu1 %vm292_vm3, %v6111_v43  ;;  %v16229_v43 = vld [vmem:[#allocation42_spill] sm:$0xff]  ;;  %v6096_v62 = vmul.f32 %v16231_v40, %v15413_v41 }
 0x453   : > { %v6093_v48 = vmul.f32 %v16229_v43, %v15408_v61  ;;  %v16237_v43 = vld [vmem:[#allocation48_spill] sm:$0xff]  ;;  %v15444_v40 = vld [vmem:[#allocation3 + $0xd2] sm:$0xff] }
 0x454   : > { %16238 = vst [vmem:[#allocation21_spill] sm:$0xff] %v15444_v40 }
 0x459   : > { %10964 = vmatmul.mubr.msk.bf16.gmra.mrb[8].mxu1 %vm292_vm3, %v6112_v20  ;;  %v6116_v20 = vpack.c.bf16 %v6094_v56, %v6093_v48  ;;  %v6099_v48 = vmul.f32 %v16237_v43, %v15438_v44 }
 0x45a   : > { %10967 = vmatprep.mubr.msk.bf16.mxu1 %vm292_vm3, %v6113_v51  ;;  %v6117_v51 = vpack.c.bf16 %v6096_v62, %v6095_v36  ;;  %v15446_v62 = vld [vmem:[#allocation3 + $0xda] sm:$0xff]  ;;  %v16241_v36 = vld [vmem:[#allocation50_spill] sm:$0xff] }
 0x45b   : > { %16239 = vst [vmem:[#allocation20_spill] sm:$0xff] %v15446_v62 }
 0x461   : > { %10968 = vmatmul.mubr.msk.bf16.gmra.mrb[12].mxu1 %vm292_vm3, %v6114_v16  ;;  %v16236_v16 = vld [vmem:[#allocation47_spill] sm:$0xff] }
 0x462   : > { %10971 = vmatprep.mubr.msk.bf16.mxu1 %vm292_vm3, %v6115_v29  ;;  %v6100_v29 = vmul.f32 %v16236_v16, %v15431_v47  ;;  %v16245_v16 = vld [vmem:[#allocation52_spill] sm:$0xff] }
 0x464   : > { %v6119_v56 = vpack.c.bf16 %v6100_v29, %v6099_v48  ;;  %v6103_v29 = vmul.f32 %v16245_v16, %v15456_v34 }
 0x466   : > { %v6121_v48 = vpack.c.bf16 %v6104_v6, %v6103_v29  ;;  %v16251_v6 = vld [vmem:[#allocation56_spill] sm:$0xff]  ;;  %v16252_v29 = vld [vmem:[#allocation55_spill] sm:$0xff] }
 0x467   : > { %v6595_v16 = vmul.f32 %v16251_v6, %v6371_v10  ;;  %v16256_v10 = vld [vmem:[#allocation59_spill] sm:$0xff]  ;;  %v16258_v6 = vld [vmem:[#allocation62_spill] sm:$0xff] }
 0x469   : > { %10972 = vmatmul.mubr.msk.bf16.gmra.mrb[16].mxu1 %vm292_vm3, %v6116_v20  ;;  %v6101_v20 = vmul.f32 %v16241_v36, %v15444_v40 }
 0x46a   : > { %10975 = vmatprep.mubr.msk.bf16.mxu1 %vm292_vm3, %v6117_v51  ;;  %v16242_v51 = vld [vmem:[#allocation49_spill] sm:$0xff] }
 0x46b   : > { %v6102_v54 = vmul.f32 %v16242_v51, %v15446_v62  ;;  %v16249_v51 = vld [vmem:[#allocation53_spill] sm:$0xff] }
 0x46c   : > { %v6106_v31 = vmul.f32 %v16249_v51, %v15464_v59 }
 0x46d   : > { %v6120_v43 = vpack.c.bf16 %v6102_v54, %v6101_v20  ;;  %v6374_v20 = vld [vmem:[#allocation3 + $0x38] sm:$0xff]  ;;  %v16250_v54 = vpack.c.bf16 %v14854_v32, %v14850_v57  ;;  %v15486_v57 = vld [vmem:[%s15964_s4 + $0x14] sm:$0xf] }
 0x46e   : > { %v6378_v32 = vld [vmem:[#allocation3 + $0x58] sm:$0xff] }
 0x471   : > { %10976 = vmatmul.mubr.msk.bf16.gmra.mrb[20].mxu1 %vm292_vm3, %v6118_v11  ;;  %v15462_v11 = vld [vmem:[#allocation3 + $0xf2] sm:$0xff] }
 0x472   : > { %10979 = vmatprep.mubr.msk.bf16.mxu1 %vm292_vm3, %v6119_v56  ;;  %16246 = vst [vmem:[#allocation28_spill] sm:$0xff] %v15462_v11  ;;  %v16248_v56 = vld [vmem:[#allocation54_spill] sm:$0xff] }
 0x473   : > { %v6105_v36 = vmul.f32 %v16248_v56, %v15462_v11  ;;  %v16253_v56 = vld [vmem:[#allocation57_spill] sm:$0xff] }
 0x474   : > { %v6598_v21 = vmul.f32 %v16253_v56, %v6374_v20  ;;  %v6600_v20 = vmul.f32 %v16256_v10, %v6376_v1  ;;  %v6380_v56 = vld [vmem:[#allocation3 + $0x68] sm:$0xff]  ;;  %v16260_v1 = vld [vmem:[#allocation63_spill] sm:$0xff] }
 0x475   : > { %v6122_v14 = vpack.c.bf16 %v6106_v31, %v6105_v36  ;;  %v6986_v36 = vsel %vm5474_vm4, %v15354_v7, 0 }
 0x479   : > { %10980 = vmatmul.mubr.msk.bf16.gmra.mrb[24].mxu1 %vm292_vm3, %v6120_v43  ;;  %v6596_v43 = vmul.f32 %v16252_v29, %v6372_v55  ;;  %v16255_v55 = vld [vmem:[#allocation60_spill] sm:$0xff] }
 0x47a   : > { %10983 = vmatprep.mubr.msk.bf16.mxu1 %vm292_vm3, %v6121_v48  ;;  %v6373_v48 = vld [vmem:[#allocation3 + $0x30] sm:$0xff] }
 0x47b   : > { %v6597_v51 = vmul.f32 %v16254_v42, %v6373_v48  ;;  %v6626_v31 = vpack.c.bf16 %v6596_v43, %v6595_v16  ;;  %v6599_v42 = vmul.f32 %v16255_v55, %v6375_v12  ;;  %v6379_v48 = vld [vmem:[#allocation3 + $0x60] sm:$0xff]  ;;  %v16261_v55 = vld [vmem:[#allocation65_spill] sm:$0xff] }
 0x47c   : > { %v16259_v12 = vld [vmem:[#allocation64_spill] sm:$0xff] }
 0x47d   : > { %v6628_v29 = vpack.c.bf16 %v6600_v20, %v6599_v42  ;;  %v6383_v42 = vld [vmem:[#allocation3 + $0x80] sm:$0xff]  ;;  %v6384_v20 = vld [vmem:[#allocation3 + $0x88] sm:$0xff] }
 0x481   : > { %10984 = vmatmul.mubr.msk.bf16.gmra.mrb[28].mxu1 %vm292_vm3, %v6122_v14  ;;  %v6627_v14 = vpack.c.bf16 %v6598_v21, %v6597_v51  ;;  %v16257_v21 = vld [vmem:[#allocation61_spill] sm:$0xff]  ;;  %v6382_v51 = vld [vmem:[#allocation3 + $0x78] sm:$0xff] }
 0x482   : > { %10989 = vmatprep.mubr.msk.bf16.mxu1 %vm292_vm3, %v16250_v54  ;;  %v6377_v54 = vld [vmem:[#allocation3 + $0x50] sm:$0xff]  ;;  %v6602_v7 = vmul.f32 %v16257_v21, %v6378_v32  ;;  %v6606_v10 = vmul.f32 %v16261_v55, %v6382_v51 }
 0x483   : > { %v6601_v16 = vmul.f32 %v16258_v6, %v6377_v54  ;;  %v16263_v6 = vld [vmem:[#allocation68_spill] sm:$0xff] }
 0x485   : > { %v6629_v43 = vpack.c.bf16 %v6602_v7, %v6601_v16  ;;  %v6386_v7 = vld [vmem:[#allocation3 + $0x98] sm:$0xff]  ;;  %v6607_v16 = vmul.f32 %v16263_v6, %v6383_v42  ;;  %v6389_v42 = vld [vmem:[#allocation3 + $0xb0] sm:$0xff] }
 0x489   : > { %10990 = vmatmul.mubr.msk.bf16.vlgmr.msra.gmra.mrb[0].mxu1 %vm292_vm3, %v6626_v31  ;;  %v6603_v31 = vmul.f32 %v16259_v12, %v6379_v48  ;;  %v6385_v48 = vld [vmem:[#allocation3 + $0x90] sm:$0xff] }
 0x48a   : > { %11022 = vmatpush3.bf16.msra.mxu1 %v6986_v36  ;;  %10993 = vmatprep.mubr.msk.bf16.mxu1 %vm292_vm3, %v6627_v14  ;;  %v6604_v36 = vmul.f32 %v16260_v1, %v6380_v56  ;;  %v6381_v14 = vld [vmem:[#allocation3 + $0x70] sm:$0xff]  ;;  %v16265_v56 = vld [vmem:[#allocation69_spill] sm:$0xff] }
 0x48b   : > { %11717 = vmatprep.subr.msk.bf16.mxu1 %vm5474_vm4, %v15486_v57  ;;  %v6605_v32 = vmul.f32 %v16262_v33, %v6381_v14  ;;  %v6610_v12 = vmul.f32 %v16265_v56, %v6386_v7  ;;  %v16266_v1 = vld [vmem:[#allocation70_spill] sm:$0xff]  ;;  %v6390_v14 = vld [vmem:[#allocation3 + $0xb8] sm:$0xff] }
 0x48c   : > { %v6630_v21 = vpack.c.bf16 %v6604_v36, %v6603_v31  ;;  %v6609_v51 = vmul.f32 %v16266_v1, %v6385_v48  ;;  %v6387_v31 = vld [vmem:[#allocation3 + $0xa0] sm:$0xff]  ;;  %v6388_v36 = vld [vmem:[#allocation3 + $0xa8] sm:$0xff] }
 0x48d   : > { %v6631_v54 = vpack.c.bf16 %v6606_v10, %v6605_v32  ;;  %v16267_v10 = vld [vmem:[#allocation72_spill] sm:$0xff] }
 0x48e   : > { %v6633_v33 = vpack.c.bf16 %v6610_v12, %v6609_v51  ;;  %v6611_v32 = vmul.f32 %v16267_v10, %v6387_v31  ;;  %v6394_v12 = vld [vmem:[#allocation3 + $0xd8] sm:$0xff]  ;;  %v16271_v1 = vld [vmem:[#allocation76_spill] sm:$0xff]  ;;  %v6393_v31 = vld [vmem:[#allocation3 + $0xd0] sm:$0xff] }
 0x491   : > { %10994 = vmatmul.mubr.msk.bf16.gmra.mrb[4].mxu1 %vm292_vm3, %v6628_v29  ;;  %v16264_v29 = vld [vmem:[#allocation67_spill] sm:$0xff] }
 0x492   : > { %10997 = vmatprep.mubr.msk.bf16.mxu1 %vm292_vm3, %v6629_v43  ;;  %v6608_v43 = vmul.f32 %v16264_v29, %v6384_v20  ;;  %v16269_v20 = vld [vmem:[#allocation73_spill] sm:$0xff]  ;;  %v16270_v29 = vld [vmem:[#allocation74_spill] sm:$0xff] }
 0x493   : > { %v6614_v6 = vmul.f32 %v16269_v20, %v6390_v14  ;;  %v6613_v7 = vmul.f32 %v16270_v29, %v6389_v42  ;;  %v16275_v29 = vld [vmem:[#allocation80_spill] sm:$0xff] }
 0x494   : > { %v6632_v55 = vpack.c.bf16 %v6608_v43, %v6607_v16  ;;  %v6391_v16 = vld [vmem:[#allocation3 + $0xc0] sm:$0xff]  ;;  %v6392_v43 = vld [vmem:[#allocation3 + $0xc8] sm:$0xff] }
 0x495   : > { %v6635_v48 = vpack.c.bf16 %v6614_v6, %v6613_v7  ;;  %v6615_v51 = vmul.f32 %v16271_v1, %v6391_v16  ;;  %v6398_v6 = vld [vmem:[#allocation3 + $0xf8] sm:$0xff]  ;;  %v6397_v16 = vld [vmem:[#allocation3 + $0xf0] sm:$0xff] }
 0x499   : > { %10998 = vmatmul.mubr.msk.bf16.gmra.mrb[8].mxu1 %vm292_vm3, %v6630_v21  ;;  %v16268_v21 = vld [vmem:[#allocation71_spill] sm:$0xff] }
 0x49a   : > { %11001 = vmatprep.mubr.msk.bf16.mxu1 %vm292_vm3, %v6631_v54  ;;  %v6612_v54 = vmul.f32 %v16268_v21, %v6388_v36  ;;  %v16273_v36 = vld [vmem:[#allocation77_spill] sm:$0xff]  ;;  %v16274_v21 = vld [vmem:[#allocation78_spill] sm:$0xff] }
 0x49b   : > { %v6618_v10 = vmul.f32 %v16273_v36, %v6394_v12  ;;  %v6617_v14 = vmul.f32 %v16274_v21, %v6393_v31 }
 0x49c   : > { %v6634_v56 = vpack.c.bf16 %v6612_v54, %v6611_v32  ;;  %v6395_v32 = vld [vmem:[#allocation3 + $0xe0] sm:$0xff]  ;;  %v6396_v54 = vld [vmem:[#allocation3 + $0xe8] sm:$0xff] }
 0x49d   : > { %v6637_v42 = vpack.c.bf16 %v6618_v10, %v6617_v14  ;;  %v6619_v7 = vmul.f32 %v16275_v29, %v6395_v32  ;;  %v16279_v10 = vld [vmem:[#allocation84_spill] sm:$0xff]  ;;  %v16280_v14 = vld [vmem:[#allocation83_spill] sm:$0xff] }
 0x4a1   : > { %11002 = vmatmul.mubr.msk.bf16.gmra.mrb[12].mxu1 %vm292_vm3, %v6632_v55  ;;  %v16272_v55 = vld [vmem:[#allocation75_spill] sm:$0xff] }
 0x4a2   : > { %11005 = vmatprep.mubr.msk.bf16.mxu1 %vm292_vm3, %v6633_v33  ;;  %v6616_v33 = vmul.f32 %v16272_v55, %v6392_v43  ;;  %v16277_v43 = vld [vmem:[#allocation81_spill] sm:$0xff]  ;;  %v16278_v55 = vld [vmem:[#allocation82_spill] sm:$0xff] }
 0x4a3   : > { %v6622_v1 = vmul.f32 %v16277_v43, %v6398_v6  ;;  %v6621_v12 = vmul.f32 %v16278_v55, %v6397_v16  ;;  %v6890_v6 = vld [vmem:[#allocation3 + $0x29] sm:$0xff]  ;;  %v7504_v16 = vsel %vm5474_vm4, %v15486_v57, 0  ;;  %v6891_v43 = vld [vmem:[#allocation3 + $0x31] sm:$0xff] }
 0x4a4   : > { %v6636_v20 = vpack.c.bf16 %v6616_v33, %v6615_v51  ;;  %v6399_v51 = vld [vmem:[#allocation3 + $0x100] sm:$0xff]  ;;  %v6400_v33 = vld [vmem:[#allocation3 + $0x108] sm:$0xff]  ;;  %v15537_v55 = vld [vmem:[%s15964_s4 + $0x18] sm:$0xf] }
 0x4a5   : > { %v6639_v31 = vpack.c.bf16 %v6622_v1, %v6621_v12  ;;  %v6623_v21 = vmul.f32 %v16279_v10, %v6399_v51  ;;  %v6894_v12 = vld [vmem:[#allocation3 + $0x49] sm:$0xff]  ;;  %v6895_v57 = vld [vmem:[#allocation3 + $0x51] sm:$0xff] }
 0x4a6   : > { %v6898_v10 = vld [vmem:[#allocation3 + $0x69] sm:$0xff] }
 0x4a9   : > { %11006 = vmatmul.mubr.msk.bf16.gmra.mrb[16].mxu1 %vm292_vm3, %v6634_v56  ;;  %v16276_v56 = vld [vmem:[#allocation79_spill] sm:$0xff] }
 0x4aa   : > { %11009 = vmatprep.mubr.msk.bf16.mxu1 %vm292_vm3, %v6635_v48  ;;  %v6620_v48 = vmul.f32 %v16276_v56, %v6396_v54  ;;  %v6887_v54 = vld [vmem:[#allocation3 + $0x11] sm:$0xff]  ;;  %v6889_v56 = vld [vmem:[#allocation3 + $0x21] sm:$0xff] }
 0x4ac   : > { %v6638_v36 = vpack.c.bf16 %v6620_v48, %v6619_v7  ;;  %v6892_v7 = vld [vmem:[#allocation3 + $0x39] sm:$0xff]  ;;  %v6920_v48 = vpack.c.bf16 %v6890_v6, %v6889_v56  ;;  %v6901_v6 = vld [vmem:[#allocation3 + $0x81] sm:$0xff]  ;;  %v6903_v56 = vld [vmem:[#allocation3 + $0x91] sm:$0xff] }
 0x4ad   : > { %v6921_v1 = vpack.c.bf16 %v6892_v7, %v6891_v43  ;;  %v6908_v43 = vld [vmem:[#allocation3 + $0xb9] sm:$0xff] }
 0x4b1   : > { %11010 = vmatmul.mubr.msk.bf16.gmra.mrb[20].mxu1 %vm292_vm3, %v6636_v20  ;;  %v6624_v20 = vmul.f32 %v16280_v14, %v6400_v33  ;;  %v6897_v14 = vld [vmem:[#allocation3 + $0x61] sm:$0xff] }
 0x4b2   : > { %11013 = vmatprep.mubr.msk.bf16.mxu1 %vm292_vm3, %v6637_v42  ;;  %v6888_v42 = vld [vmem:[#allocation3 + $0x19] sm:$0xff] }
 0x4b3   : > { %v6640_v32 = vpack.c.bf16 %v6624_v20, %v6623_v21  ;;  %v6919_v29 = vpack.c.bf16 %v6888_v42, %v6887_v54  ;;  %v6900_v21 = vld [vmem:[#allocation3 + $0x79] sm:$0xff]  ;;  %v6924_v20 = vpack.c.bf16 %v6898_v10, %v6897_v14  ;;  %v6899_v42 = vld [vmem:[#allocation3 + $0x71] sm:$0xff]  ;;  %v6902_v54 = vld [vmem:[#allocation3 + $0x89] sm:$0xff] }
 0x4b4   : > { %v6926_v7 = vpack.c.bf16 %v6902_v54, %v6901_v6 }
 0x4b9   : > { %11014 = vmatmul.mubr.msk.bf16.gmra.mrb[24].mxu1 %vm292_vm3, %v6638_v36  ;;  %v6896_v36 = vld [vmem:[#allocation3 + $0x59] sm:$0xff] }
 0x4ba   : > { %11017 = vmatprep.mubr.msk.bf16.mxu1 %vm292_vm3, %v6639_v31  ;;  %v6893_v31 = vld [vmem:[#allocation3 + $0x41] sm:$0xff]  ;;  %v6923_v33 = vpack.c.bf16 %v6896_v36, %v6895_v57  ;;  %v6907_v36 = vld [vmem:[#allocation3 + $0xb1] sm:$0xff]  ;;  %v6912_v57 = vld [vmem:[#allocation3 + $0xd9] sm:$0xff] }
 0x4bb   : > { %v6922_v51 = vpack.c.bf16 %v6894_v12, %v6893_v31  ;;  %v6929_v31 = vpack.c.bf16 %v6908_v43, %v6907_v36 }
 0x4c1   : > { %11018 = vmatmul.mubr.msk.bf16.gmra.mrb[28].mxu1 %vm292_vm3, %v6640_v32  ;;  %v6925_v32 = vpack.c.bf16 %v6900_v21, %v6899_v42  ;;  %v6911_v21 = vld [vmem:[#allocation3 + $0xd1] sm:$0xff]  ;;  %v6916_v42 = vld [vmem:[#allocation3 + $0xf9] sm:$0xff] }
 0x4c2   : > { %11023 = vmatprep.mubr.msk.bf16.mxu1 %vm292_vm3, %v6919_v29  ;;  %v6904_v29 = vld [vmem:[#allocation3 + $0x99] sm:$0xff]  ;;  %v6931_v14 = vpack.c.bf16 %v6912_v57, %v6911_v21  ;;  %v16284_v57 = vld [vmem:[#allocation90_spill] sm:$0xff] }
 0x4c9   : > { %11024 = vmatmul.mubr.msk.bf16.vlgmr.msra.gmra.mrb[0].mxu1 %vm292_vm3, %v6920_v48  ;;  %v6927_v48 = vpack.c.bf16 %v6904_v29, %v6903_v56  ;;  %v6915_v29 = vld [vmem:[#allocation3 + $0xf1] sm:$0xff] }
 0x4ca   : > { %11056 = vmatpush3.bf16.msra.mxu1 %v7504_v16  ;;  %11027 = vmatprep.mubr.msk.bf16.mxu1 %vm292_vm3, %v6921_v1  ;;  %v6906_v16 = vld [vmem:[#allocation3 + $0xa9] sm:$0xff]  ;;  %v6905_v1 = vld [vmem:[#allocation3 + $0xa1] sm:$0xff]  ;;  %v6933_v6 = vpack.c.bf16 %v6916_v42, %v6915_v29 }
 0x4cb   : > { %11718 = vmatprep.subr.msk.bf16.mxu1 %vm5474_vm4, %v15537_v55  ;;  %v6928_v12 = vpack.c.bf16 %v6906_v16, %v6905_v1  ;;  %v16281_v56 = vld [vmem:[#allocation86_spill] sm:$0xff]  ;;  %v16282_v16 = vld [vmem:[#allocation85_spill] sm:$0xff] }
 0x4cc   : > { %v7406_v43 = vmul.f32 %v16282_v16, %v15329_v26  ;;  %v15561_v1 = vld [vmem:[#allocation3 + $0x101] sm:$0xff] }
 0x4cd   : > { %v16286_v26 = vld [vmem:[#allocation88_spill] sm:$0xff] }
 0x4ce   : > { %v7407_v21 = vmul.f32 %v16286_v26, %v15339_v37  ;;  %v16290_v16 = vld [vmem:[#allocation92_spill] sm:$0xff] }
 0x4cf   : > { %v16294_v26 = vld [vmem:[#allocation96_spill] sm:$0xff] }
 0x4d1   : > { %11028 = vmatmul.mubr.msk.bf16.gmra.mrb[4].mxu1 %vm292_vm3, %v6922_v51  ;;  %v6910_v51 = vld [vmem:[#allocation3 + $0xc9] sm:$0xff] }
 0x4d2   : > { %11031 = vmatprep.mubr.msk.bf16.mxu1 %vm292_vm3, %v6923_v33  ;;  %v6909_v33 = vld [vmem:[#allocation3 + $0xc1] sm:$0xff] }
 0x4d3   : > { %v6930_v10 = vpack.c.bf16 %v6910_v51, %v6909_v33  ;;  %v7409_v33 = vmul.f32 %v16284_v57, %v15347_v45  ;;  %v16292_v57 = vld [vmem:[#allocation98_spill] sm:$0xff] }
 0x4d9   : > { %11032 = vmatmul.mubr.msk.bf16.gmra.mrb[8].mxu1 %vm292_vm3, %v6924_v20  ;;  %v6914_v20 = vld [vmem:[#allocation3 + $0xe9] sm:$0xff] }
 0x4da   : > { %11035 = vmatprep.mubr.msk.bf16.mxu1 %vm292_vm3, %v6925_v32  ;;  %v6913_v32 = vld [vmem:[#allocation3 + $0xe1] sm:$0xff] }
 0x4db   : > { %v6932_v54 = vpack.c.bf16 %v6914_v20, %v6913_v32  ;;  %v8022_v20 = vsel %vm5474_vm4, %v15537_v55, 0  ;;  %v15580_v32 = vld [vmem:[%s15964_s4 + $0x1c] sm:$0xf] }
 0x4e1   : > { %11036 = vmatmul.mubr.msk.bf16.gmra.mrb[12].mxu1 %vm292_vm3, %v6926_v7  ;;  %v15555_v7 = vld [vmem:[#allocation3 + $0x109] sm:$0xff] }
 0x4e2   : > { %11039 = vmatprep.mubr.msk.bf16.mxu1 %vm292_vm3, %v6927_v48  ;;  %v7405_v48 = vmul.f32 %v16281_v56, %v15327_v24  ;;  %v16285_v24 = vld [vmem:[#allocation89_spill] sm:$0xff] }
 0x4e3   : > { %v16289_v56 = vld [vmem:[#allocation93_spill] sm:$0xff] }
 0x4e4   : > { %v7437_v36 = vpack.c.bf16 %v7406_v43, %v7405_v48  ;;  %v7414_v48 = vmul.f32 %v16289_v56, %v15374_v27  ;;  %v7411_v43 = vmul.f32 %v16290_v16, %v15364_v3 }
 0x4e9   : > { %11040 = vmatmul.mubr.msk.bf16.gmra.mrb[16].mxu1 %vm292_vm3, %v6928_v12  ;;  %v6934_v12 = vpack.c.bf16 %v15555_v7, %v15561_v1 }
 0x4ea   : > { %11043 = vmatprep.mubr.msk.bf16.mxu1 %vm292_vm3, %v6929_v31  ;;  %v16283_v31 = vld [vmem:[#allocation87_spill] sm:$0xff] }
 0x4eb   : > { %v7408_v51 = vmul.f32 %v16283_v31, %v15332_v39  ;;  %v16291_v31 = vld [vmem:[#allocation95_spill] sm:$0xff] }
 0x4f1   : > { %11044 = vmatmul.mubr.msk.bf16.gmra.mrb[20].mxu1 %vm292_vm3, %v6930_v10  ;;  %v7410_v10 = vmul.f32 %v16285_v24, %v15349_v2  ;;  %v16293_v24 = vld [vmem:[#allocation97_spill] sm:$0xff] }
 0x4f2   : > { %11047 = vmatprep.mubr.msk.bf16.mxu1 %vm292_vm3, %v6931_v14  ;;  %v7438_v14 = vpack.c.bf16 %v7408_v51, %v7407_v21  ;;  %v7416_v51 = vmul.f32 %v16291_v31, %v15377_v22  ;;  %v7415_v21 = vmul.f32 %v16294_v26, %v15384_v23 }
 0x4f3   : > { %v7439_v42 = vpack.c.bf16 %v7410_v10, %v7409_v33  ;;  %v7417_v33 = vmul.f32 %v16292_v57, %v15390_v58  ;;  %v7418_v10 = vmul.f32 %v16293_v24, %v15392_v18 }
 0x4f9   : > { %11048 = vmatmul.mubr.msk.bf16.gmra.mrb[24].mxu1 %vm292_vm3, %v6932_v54  ;;  %v16287_v54 = vld [vmem:[#allocation91_spill] sm:$0xff] }
 0x4fa   : > { %11051 = vmatprep.mubr.msk.bf16.mxu1 %vm292_vm3, %v6933_v6  ;;  %v7412_v29 = vmul.f32 %v16287_v54, %v15357_v63  ;;  %v16288_v6 = vld [vmem:[#allocation94_spill] sm:$0xff] }
 0x4fb   : > { %v7413_v55 = vmul.f32 %v16288_v6, %v15372_v50 }
 0x501   : > { %11052 = vmatmul.mubr.msk.bf16.gmra.mrb[28].mxu1 %vm292_vm3, %v6934_v12  ;;  %v7440_v12 = vpack.c.bf16 %v7412_v29, %v7411_v43  ;;  %v16296_v29 = vld [vmem:[#allocation102_spill] sm:$0xff] }
 0x502   : > { %11057 = vmatprep.mubr.msk.bf16.mxu1 %vm292_vm3, %v7437_v36  ;;  %v7441_v36 = vpack.c.bf16 %v7414_v48, %v7413_v55  ;;  %v7421_v6 = vmul.f32 %v16296_v29, %v15408_v61  ;;  %v16297_v55 = vld [vmem:[#allocation101_spill] sm:$0xff]  ;;  %v16298_v48 = vld [vmem:[#allocation100_spill] sm:$0xff]  ;;  %v7430_v29 = vmul.f32 %v14841_v53, %v15446_v62  ;;  %v7434_v53 = vmul.f32 %v14892_v17, %v15464_v59 }
 0x503   : > { %v7422_v56 = vmul.f32 %v16297_v55, %v15410_v13  ;;  %v7419_v16 = vmul.f32 %v16298_v48, %v15402_v15  ;;  %v11821_v62 = vld [vmem:[#allocation3 + $0x29] sm:$0xff] }
 0x509   : > { %11058 = vmatmul.mubr.msk.bf16.vlgmr.msra.gmra.mrb[0].mxu1 %vm292_vm3, %v7438_v14  ;;  %v7442_v14 = vpack.c.bf16 %v7416_v51, %v7415_v21  ;;  %v16300_v51 = vld [vmem:[#allocation106_spill] sm:$0xff] }
 0x50a   : > { %11090 = vmatpush3.bf16.msra.mxu1 %v8022_v20  ;;  %11061 = vmatprep.mubr.msk.bf16.mxu1 %vm292_vm3, %v7439_v42  ;;  %v7443_v20 = vpack.c.bf16 %v7418_v10, %v7417_v33  ;;  %v16295_v42 = vld [vmem:[#allocation99_spill] sm:$0xff]  ;;  %v7425_v57 = vmul.f32 %v16300_v51, %v15426_v9  ;;  %v16301_v33 = vld [vmem:[#allocation105_spill] sm:$0xff]  ;;  %v16302_v10 = vld [vmem:[#allocation104_spill] sm:$0xff] }
 0x50b   : > { %11719 = vmatprep.subr.msk.bf16.mxu1 %vm5474_vm4, %v15580_v32  ;;  %v7420_v54 = vmul.f32 %v16295_v42, %v15395_v30  ;;  %v7426_v24 = vmul.f32 %v16301_v33, %v15428_v4  ;;  %v7423_v26 = vmul.f32 %v16302_v10, %v15420_v28  ;;  %v15644_v10 = vld [vmem:[#allocation3 + $0x10a] sm:$0xff] }
 0x50c   : > { %16307 = vst [vmem:[#allocation26_spill] sm:$0xff] %v15644_v10 }
 0x50d   : > { %v7444_v43 = vpack.c.bf16 %v7420_v54, %v7419_v16  ;;  %v7429_v54 = vmul.f32 %v14857_v35, %v15444_v40  ;;  %v7911_v16 = vpop.permute.xlu1 %7910  ;;  %v7433_v35 = vmul.f32 %v14895_v19, %v15462_v11 }
 0x50f   : > { %v7449_v48 = vpack.c.bf16 %v7430_v29, %v7429_v54 }
 0x511   : > { %11062 = vmatmul.mubr.msk.bf16.gmra.mrb[4].mxu1 %vm292_vm3, %v7440_v12  ;;  %v7445_v12 = vpack.c.bf16 %v7422_v56, %v7421_v6  ;;  %v16304_v6 = vld [vmem:[#allocation108_spill] sm:$0xff] }
 0x512   : > { %11065 = vmatprep.mubr.msk.bf16.mxu1 %vm292_vm3, %v7441_v36  ;;  %v16299_v36 = vld [vmem:[#allocation103_spill] sm:$0xff]  ;;  %v7427_v55 = vmul.f32 %v16304_v6, %v15438_v44  ;;  %v16311_v6 = vld [vmem:[#allocation113_spill] sm:$0xff] }
 0x513   : > { %v7424_v31 = vmul.f32 %v16299_v36, %v15413_v41 }
 0x515   : > { %v7446_v21 = vpack.c.bf16 %v7424_v31, %v7423_v26  ;;  %v16306_v31 = vld [vmem:[#allocation110_spill] sm:$0xff]  ;;  %v15646_v26 = vld [vmem:[#allocation3 + $0x102] sm:$0xff] }
 0x516   : > { %v7431_v51 = vmul.f32 %v16306_v31, %v15456_v34  ;;  %16308 = vst [vmem:[#allocation29_spill] sm:$0xff] %v15646_v26  ;;  %v7730_v34 = vld [vmem:[#allocation3 + $0x118] sm:$0xff] }
 0x519   : > { %11066 = vmatmul.mubr.msk.bf16.gmra.mrb[8].mxu1 %vm292_vm3, %v7442_v14  ;;  %v7447_v14 = vpack.c.bf16 %v7426_v24, %v7425_v57  ;;  %v7921_v57 = vpop.permute.xlu1 %7920 }
 0x51a   : > { %11069 = vmatprep.mubr.msk.bf16.mxu1 %vm292_vm3, %v7443_v20  ;;  %v16303_v20 = vld [vmem:[#allocation107_spill] sm:$0xff] }
 0x51b   : > { %v7428_v42 = vmul.f32 %v16303_v20, %v15431_v47  ;;  %v16310_v20 = vld [vmem:[#allocation111_spill] sm:$0xff] }
 0x51c   : > { %v7436_v17 = vmul.f32 %v15644_v10, %v16310_v20  ;;  %v16340_v10 = vld [vmem:[#allocation130_spill] sm:$0xff] }
 0x51d   : > { %v7448_v56 = vpack.c.bf16 %v7428_v42, %v7427_v55  ;;  %v8289_v42 = vpop.permute.xlu1 %8288  ;;  %v16312_v55 = vld [vmem:[#allocation114_spill] sm:$0xff] }
 0x51e   : > { %v8442_v44 = vmul.f32 %v11821_v62, %v8289_v42 }
 0x521   : > { %11070 = vmatmul.mubr.msk.bf16.gmra.mrb[12].mxu1 %vm292_vm3, %v7444_v43  ;;  %v7906_v43 = vpop.permute.xlu0 %7905 }
 0x522   : > { %11073 = vmatprep.mubr.msk.bf16.mxu1 %vm292_vm3, %v7445_v12  ;;  %v16305_v12 = vld [vmem:[#allocation109_spill] sm:$0xff] }
 0x523   : > { %v7432_v36 = vmul.f32 %v16305_v12, %v15449_v60 }
 0x525   : > { %v7916_v33 = vpop.permute.xlu0 %7915  ;;  %v7450_v24 = vpack.c.bf16 %v7432_v36, %v7431_v51  ;;  %v8540_v36 = vsel %vm5474_vm4, %v15580_v32, 0  ;;  %v16314_v51 = vld [vmem:[#allocation115_spill] sm:$0xff] }
 0x529   : > { %11074 = vmatmul.mubr.msk.bf16.gmra.mrb[16].mxu1 %vm292_vm3, %v7446_v21  ;;  %v7451_v21 = vpack.c.bf16 %v7434_v53, %v7433_v35  ;;  %v8284_v54 = vpop.permute.xlu0 %8283  ;;  %v15664_v35 = vld [vmem:[%s15964_s4 + $0x20] sm:$0xf] }
 0x52a   : > { %11077 = vmatprep.mubr.msk.bf16.mxu1 %vm292_vm3, %v7447_v14  ;;  %v16309_v14 = vld [vmem:[#allocation112_spill] sm:$0xff] }
 0x52b   : > { %v7435_v19 = vmul.f32 %v15646_v26, %v16309_v14  ;;  %v16317_v14 = vld [vmem:[#allocation117_spill] sm:$0xff] }
 0x52d   : > { %v7452_v29 = vpack.c.bf16 %v7436_v17, %v7435_v19  ;;  %v8294_v12 = vpop.permute.xlu0 %8293  ;;  %v16318_v19 = vld [vmem:[#allocation118_spill] sm:$0xff] }
 0x52e   : > { %v16319_v20 = vpack.c.bf16 %v16317_v14, %v16318_v19  ;;  %v16326_v14 = vpack.c.bf16 %v15056_v49, %v15063_v25  ;;  %v16327_v19 = vld [vmem:[#allocation123_spill] sm:$0xff]  ;;  %v16331_v25 = vpack.c.bf16 %v15127_v8, %v15133_v46  ;;  %v16337_v46 = vld [vmem:[#allocation128_spill] sm:$0xff] }
 0x52f   : > { %v16336_v8 = vld [vmem:[#allocation127_spill] sm:$0xff] }
 0x531   : > { %11078 = vmatmul.mubr.msk.bf16.gmra.mrb[20].mxu1 %vm292_vm3, %v7448_v56  ;;  %v16313_v56 = vpack.c.bf16 %v16311_v6, %v16312_v55  ;;  %v8304_v31 = vpop.permute.xlu0 %8303  ;;  %v16321_v6 = vld [vmem:[#allocation120_spill] sm:$0xff] }
 0x532   : > { %11081 = vmatprep.mubr.msk.bf16.mxu1 %vm292_vm3, %v7449_v48  ;;  %v8299_v48 = vpop.permute.xlu1 %8298 }
 0x535   : > { %v15678_v17 = vpop.permute.xlu0 %8313 }
 0x536   : > { %v8309_v53 = vpop.permute.xlu1 %8308 }
 0x539   : > { %11082 = vmatmul.mubr.msk.bf16.gmra.mrb[24].mxu1 %vm292_vm3, %v7450_v24  ;;  %v16315_v24 = vld [vmem:[#allocation116_spill] sm:$0xff] }
 0x53a   : > { %11085 = vmatprep.mubr.msk.bf16.mxu1 %vm292_vm3, %v7451_v21  ;;  %v16316_v21 = vpack.c.bf16 %v16314_v51, %v16315_v24  ;;  %v15676_v32 = vpop.permute.xlu1 %8318  ;;  %v16324_v51 = vld [vmem:[#allocation122_spill] sm:$0xff] }
 0x53e   : > { %v15688_v24 = vpop.permute.xlu1 %8328 }
 0x541   : > { %11086 = vmatmul.mubr.msk.bf16.gmra.mrb[28].mxu1 %vm292_vm3, %v7452_v29  ;;  %v16320_v29 = vld [vmem:[#allocation119_spill] sm:$0xff] }
 0x542   : > { %11091 = vmatprep.mubr.msk.bf16.mxu1 %vm292_vm3, %v16313_v56  ;;  %v16322_v55 = vpack.c.bf16 %v16320_v29, %v16321_v6  ;;  %v16323_v56 = vld [vmem:[#allocation121_spill] sm:$0xff]  ;;  %v15700_v29 = vpop.permute.xlu1 %8338 }
 0x549   : > { %11092 = vmatmul.mubr.msk.bf16.vlgmr.msra.gmra.mrb[0].mxu1 %vm292_vm3, %v16316_v21  ;;  %v15690_v21 = vpop.permute.xlu0 %8323 }
 0x54a   : > { %11124 = vmatpush3.bf16.msra.mxu1 %v8540_v36  ;;  %11095 = vmatprep.mubr.msk.bf16.mxu1 %vm292_vm3, %v16319_v20  ;;  %v16325_v36 = vpack.c.bf16 %v16323_v56, %v16324_v51  ;;  %v16328_v20 = vpack.c.bf16 %v15081_v0, %v16327_v19  ;;  %v16329_v51 = vld [vmem:[#allocation124_spill] sm:$0xff]  ;;  %v16333_v19 = vld [vmem:[#allocation125_spill] sm:$0xff] }
 0x54b   : > { %11720 = vmatprep.subr.msk.bf16.mxu1 %vm5474_vm4, %v15664_v35 }
 0x54d   : > { %v15702_v6 = vpop.permute.xlu0 %8333 }
 0x551   : > { %11096 = vmatmul.mubr.msk.bf16.gmra.mrb[4].mxu1 %vm292_vm3, %v16322_v55  ;;  %v15704_v55 = vpop.permute.xlu1 %8348  ;;  %v15706_v56 = vpop.permute.xlu0 %8343 }
 0x552   : > { %11099 = vmatprep.mubr.msk.bf16.mxu1 %vm292_vm3, %v16325_v36  ;;  %v16330_v36 = vpack.c.bf16 %v15106_v5, %v16329_v51 }
 0x555   : > { %v15716_v49 = vpop.permute.xlu1 %8358  ;;  %v15718_v0 = vpop.permute.xlu0 %8353 }
 0x559   : > { %11100 = vmatmul.mubr.msk.bf16.gmra.mrb[8].mxu1 %vm292_vm3, %v16326_v14  ;;  %v16332_v14 = vpack.c.bf16 %v15149_v52, %v15156_v38  ;;  %v15728_v5 = vpop.permute.xlu1 %8368  ;;  %v15730_v51 = vpop.permute.xlu0 %8363  ;;  %v7728_v52 = vld [vmem:[#allocation3 + $0x108] sm:$0xff]  ;;  %v7727_v38 = vld [vmem:[#allocation3 + $0x100] sm:$0xff] }
 0x55a   : > { %11103 = vmatprep.mubr.msk.bf16.mxu1 %vm292_vm3, %v16328_v20  ;;  %v16334_v20 = vld [vmem:[#allocation126_spill] sm:$0xff] }
 0x55b   : > { %v16335_v26 = vpack.c.bf16 %v16333_v19, %v16334_v20  ;;  %v7951_v20 = vmul.f32 %v7906_v43, %v7727_v38 }
 0x55d   : > { %v15742_v19 = vpop.permute.xlu0 %8373 }
 0x561   : > { %11104 = vmatmul.mubr.msk.bf16.gmra.mrb[12].mxu1 %vm292_vm3, %v16330_v36  ;;  %v16338_v36 = vpack.c.bf16 %v16336_v8, %v16337_v46  ;;  %v15746_v8 = vpop.permute.xlu0 %8383  ;;  %v16342_v46 = vld [vmem:[#allocation131_spill] sm:$0xff] }
 0x562   : > { %11107 = vmatprep.mubr.msk.bf16.mxu1 %vm292_vm3, %v16331_v25  ;;  %v16339_v25 = vld [vmem:[#allocation129_spill] sm:$0xff] }
 0x563   : > { %v16341_v11 = vpack.c.bf16 %v16339_v25, %v16340_v10  ;;  %v7954_v10 = vmul.f32 %v7921_v57, %v7730_v34  ;;  %v11825_v34 = vld [vmem:[#allocation3 + $0x49] sm:$0xff] }
 0x564   : > { %v8446_v57 = vmul.f32 %v11825_v34, %v8309_v53  ;;  %v11828_v53 = vld [vmem:[#allocation3 + $0x51] sm:$0xff] }
 0x565   : > { %v11832_v34 = vld [vmem:[#allocation3 + $0x71] sm:$0xff] }
 0x569   : > { %11108 = vmatmul.mubr.msk.bf16.gmra.mrb[16].mxu1 %vm292_vm3, %v16332_v14  ;;  %v15740_v14 = vpop.permute.xlu1 %8378 }
 0x56a   : > { %11111 = vmatprep.mubr.msk.bf16.mxu1 %vm292_vm3, %v16335_v26  ;;  %v7952_v26 = vmul.f32 %v7911_v16, %v7728_v52  ;;  %v11822_v16 = vld [vmem:[#allocation3 + $0x21] sm:$0xff] }
 0x56b   : > { %v8441_v43 = vmul.f32 %v11822_v16, %v8284_v54 }
 0x56c   : > { %v7969_v59 = vpack.c.bf16 %v7952_v26, %v7951_v20  ;;  %v15755_v26 = vpop.permute.xlu0 %8393 }
 0x56d   : > { %v15744_v60 = vpop.permute.xlu1 %8388  ;;  %v8473_v20 = vpack.c.bf16 %v8442_v44, %v8441_v43  ;;  %v9058_v44 = vsel %vm5474_vm4, %v15664_v35, 0  ;;  %v11829_v43 = vld [vmem:[#allocation3 + $0x69] sm:$0xff]  ;;  %v11830_v35 = vld [vmem:[#allocation3 + $0x61] sm:$0xff] }
 0x570   : > { %v15761_v54 = vpop.permute.xlu0 %8403 }
 0x571   : > { %11112 = vmatmul.mubr.msk.bf16.gmra.mrb[20].mxu1 %vm292_vm3, %v16338_v36  ;;  %v16343_v36 = vld [vmem:[#allocation132_spill] sm:$0xff]  ;;  %v15753_v38 = vpop.permute.xlu1 %8398 }
 0x572   : > { %11115 = vmatprep.mubr.msk.bf16.mxu1 %vm292_vm3, %v16341_v11  ;;  %v16344_v40 = vpack.c.bf16 %v16342_v46, %v16343_v36  ;;  %v7729_v11 = vld [vmem:[#allocation3 + $0x110] sm:$0xff] }
 0x573   : > { %v7953_v25 = vmul.f32 %v7916_v33, %v7729_v11  ;;  %v11824_v36 = vld [vmem:[#allocation3 + $0x31] sm:$0xff]  ;;  %v11826_v33 = vld [vmem:[#allocation3 + $0x41] sm:$0xff] }
 0x574   : > { %v8445_v62 = vmul.f32 %v11826_v33, %v8304_v31  ;;  %v8447_v31 = vmul.f32 %v11828_v53, %v15678_v17  ;;  %v15771_v16 = vpop.permute.xlu0 %8413 }
 0x575   : > { %v7970_v52 = vpack.c.bf16 %v7954_v10, %v7953_v25  ;;  %v15759_v42 = vpop.permute.xlu1 %8408 }
 0x576   : > { %v8475_v10 = vpack.c.bf16 %v8446_v57, %v8445_v62  ;;  %v8451_v57 = vmul.f32 %v11832_v34, %v15702_v6  ;;  %v11836_v6 = vld [vmem:[#allocation3 + $0x91] sm:$0xff] }
 0x577   : > { %v8455_v53 = vmul.f32 %v11836_v6, %v15718_v0  ;;  %v11846_v6 = vld [vmem:[#allocation3 + $0xe1] sm:$0xff] }
 0x579   : > { %11116 = vmatmul.mubr.msk.bf16.gmra.mrb[24].mxu1 %vm292_vm3, %v16344_v40  ;;  %v11823_v40 = vld [vmem:[#allocation3 + $0x39] sm:$0xff]  ;;  %v15769_v25 = vpop.permute.xlu1 %8418 }
 0x57a   : > { %11119 = vmatprep.mubr.msk.bf16.mxu1 %vm292_vm3, %v7969_v59  ;;  %v8444_v46 = vmul.f32 %v11823_v40, %v8299_v48  ;;  %v8443_v59 = vmul.f32 %v11824_v36, %v8294_v12  ;;  %v11827_v48 = vld [vmem:[#allocation3 + $0x59] sm:$0xff] }
 0x57b   : > { %v8448_v12 = vmul.f32 %v11827_v48, %v15676_v32  ;;  %v11831_v32 = vld [vmem:[#allocation3 + $0x79] sm:$0xff] }
 0x57c   : > { %v8474_v11 = vpack.c.bf16 %v8444_v46, %v8443_v59  ;;  %v15777_v59 = vpop.permute.xlu0 %8423  ;;  %v8452_v17 = vmul.f32 %v11831_v32, %v15700_v29  ;;  %v11835_v29 = vld [vmem:[#allocation3 + $0x99] sm:$0xff]  ;;  %v11840_v32 = vld [vmem:[#allocation3 + $0xb1] sm:$0xff] }
 0x57d   : > { %v8476_v40 = vpack.c.bf16 %v8448_v12, %v8447_v31  ;;  %v15775_v36 = vpop.permute.xlu1 %8428  ;;  %v8456_v12 = vmul.f32 %v11835_v29, %v15716_v49  ;;  %v8459_v0 = vmul.f32 %v11840_v32, %v15742_v19  ;;  %v11844_v19 = vld [vmem:[#allocation3 + $0xd1] sm:$0xff] }
 0x57e   : > { %v8463_v29 = vmul.f32 %v11844_v19, %v15755_v26 }
 0x581   : > { %11120 = vmatmul.mubr.msk.bf16.gmra.mrb[28].mxu1 %vm292_vm3, %v7970_v52  ;;  %v8450_v52 = vmul.f32 %v11829_v43, %v15688_v24  ;;  %v11833_v24 = vld [vmem:[#allocation3 + $0x89] sm:$0xff] }
 0x582   : > { %11125 = vmatprep.mubr.msk.bf16.mxu1 %vm292_vm3, %v8473_v20  ;;  %v8449_v20 = vmul.f32 %v11830_v35, %v15690_v21  ;;  %v8454_v33 = vmul.f32 %v11833_v24, %v15704_v55  ;;  %v11834_v21 = vld [vmem:[#allocation3 + $0x81] sm:$0xff]  ;;  %v11837_v55 = vld [vmem:[#allocation3 + $0xa9] sm:$0xff] }
 0x583   : > { %v8453_v62 = vmul.f32 %v11834_v21, %v15706_v56  ;;  %v8458_v31 = vmul.f32 %v11837_v55, %v15728_v5  ;;  %v11838_v56 = vld [vmem:[#allocation3 + $0xa1] sm:$0xff]  ;;  %v11841_v5 = vld [vmem:[#allocation3 + $0xc9] sm:$0xff] }
 0x584   : > { %v8477_v46 = vpack.c.bf16 %v8450_v52, %v8449_v20  ;;  %v8457_v43 = vmul.f32 %v11838_v56, %v15730_v51  ;;  %v8480_v20 = vpack.c.bf16 %v8456_v12, %v8455_v53  ;;  %v11842_v51 = vld [vmem:[#allocation3 + $0xc1] sm:$0xff]  ;;  %v11845_v12 = vld [vmem:[#allocation3 + $0xe9] sm:$0xff] }
 0x585   : > { %v8479_v48 = vpack.c.bf16 %v8454_v33, %v8453_v62  ;;  %v8461_v24 = vmul.f32 %v11842_v51, %v15746_v8  ;;  %v8465_v8 = vmul.f32 %v11846_v6, %v15761_v54  ;;  %v8469_v54 = vmul.f32 %v15777_v59, %v15561_v1 }
 0x589   : > { %11126 = vmatmul.mubr.msk.bf16.vlgmr.msra.gmra.mrb[0].mxu1 %vm292_vm3, %v8474_v11  ;;  %v8478_v11 = vpack.c.bf16 %v8452_v17, %v8451_v57  ;;  %v8462_v57 = vmul.f32 %v11841_v5, %v15744_v60  ;;  %v8466_v60 = vmul.f32 %v11845_v12, %v15759_v42  ;;  %v8470_v42 = vmul.f32 %v15775_v36, %v15555_v7  ;;  %v8247_v5 = vld [vmem:[#allocation3 + $0x111] sm:$0xff] }
 0x58a   : > { %11158 = vmatpush3.bf16.msra.mxu1 %v9058_v44  ;;  %11129 = vmatprep.mubr.msk.bf16.mxu1 %vm292_vm3, %v8475_v10  ;;  %v15785_v44 = vpop.permute.xlu1 %8438  ;;  %v15787_v10 = vpop.permute.xlu0 %8433 }
 0x58b   : > { %v8483_v21 = vpack.c.bf16 %v8462_v57, %v8461_v24  ;;  %v8485_v56 = vpack.c.bf16 %v8466_v60, %v8465_v8  ;;  %v8487_v32 = vpack.c.bf16 %v8470_v42, %v8469_v54  ;;  %v16346_v42 = vld [vmem:[#allocation20_spill] sm:$0xff] }
 0x58e   : > { %v8807_v52 = vpop.permute.xlu1 %8806  ;;  %v8802_v35 = vpop.permute.xlu0 %8801 }
 0x58f   : > { %v8960_v7 = vmul.f32 %v8807_v52, %v15332_v39  ;;  %v8959_v1 = vmul.f32 %v8802_v35, %v15339_v37 }
 0x591   : > { %11130 = vmatmul.mubr.msk.bf16.gmra.mrb[4].mxu1 %vm292_vm3, %v8476_v40  ;;  %v8481_v40 = vpack.c.bf16 %v8458_v31, %v8457_v43  ;;  %v11847_v43 = vld [vmem:[#allocation3 + $0xf9] sm:$0xff]  ;;  %v8991_v59 = vpack.c.bf16 %v8960_v7, %v8959_v1 }
 0x592   : > { %11133 = vmatprep.mubr.msk.bf16.mxu1 %vm292_vm3, %v8477_v46  ;;  %v11839_v46 = vld [vmem:[#allocation3 + $0xb9] sm:$0xff]  ;;  %v8817_v17 = vpop.permute.xlu1 %8816  ;;  %v8812_v34 = vpop.permute.xlu0 %8811 }
 0x593   : > { %v8460_v49 = vmul.f32 %v11839_v46, %v15740_v14  ;;  %v11843_v14 = vld [vmem:[#allocation3 + $0xd9] sm:$0xff] }
 0x594   : > { %v16351_v1 = vld [vmem:[#allocation28_spill] sm:$0xff] }
 0x595   : > { %v8482_v33 = vpack.c.bf16 %v8460_v49, %v8459_v0  ;;  %v8248_v0 = vld [vmem:[#allocation3 + $0x119] sm:$0xff] }
 0x596   : > { %v8827_v62 = vpop.permute.xlu1 %8826 }
 0x599   : > { %11134 = vmatmul.mubr.msk.bf16.gmra.mrb[8].mxu1 %vm292_vm3, %v8478_v11  ;;  %v8822_v11 = vpop.permute.xlu0 %8821 }
 0x59a   : > { %11137 = vmatprep.mubr.msk.bf16.mxu1 %vm292_vm3, %v8479_v48  ;;  %v8464_v48 = vmul.f32 %v11843_v14, %v15753_v38  ;;  %v8837_v55 = vpop.permute.xlu1 %8836  ;;  %v8468_v38 = vmul.f32 %v11847_v43, %v15769_v25  ;;  %v8472_v25 = vmul.f32 %v15785_v44, %v8248_v0  ;;  %v8961_v44 = vmul.f32 %v8812_v34, %v15347_v45  ;;  %v16349_v0 = vld [vmem:[#allocation25_spill] sm:$0xff] }
 0x59b   : > { %v8963_v14 = vmul.f32 %v8822_v11, %v15364_v3  ;;  %v8966_v35 = vmul.f32 %v8837_v55, %v15374_v27 }
 0x59c   : > { %v8484_v53 = vpack.c.bf16 %v8464_v48, %v8463_v29 }
 0x59d   : > { %v8832_v31 = vpop.permute.xlu0 %8831 }
 0x59e   : > { %v8965_v19 = vmul.f32 %v8832_v31, %v15372_v50 }
 0x5a0   : > { %v8994_v34 = vpack.c.bf16 %v8966_v35, %v8965_v19 }
 0x5a1   : > { %11138 = vmatmul.mubr.msk.bf16.gmra.mrb[12].mxu1 %vm292_vm3, %v8480_v20  ;;  %v11848_v20 = vld [vmem:[#allocation3 + $0xf1] sm:$0xff]  ;;  %v8842_v46 = vpop.permute.xlu0 %8841 }
 0x5a2   : > { %11141 = vmatprep.mubr.msk.bf16.mxu1 %vm292_vm3, %v8481_v40  ;;  %v8467_v26 = vmul.f32 %v11848_v20, %v15771_v16  ;;  %v8847_v40 = vpop.permute.xlu1 %8846  ;;  %v8471_v16 = vmul.f32 %v15787_v10, %v8247_v5  ;;  %v8964_v10 = vmul.f32 %v8827_v62, %v15357_v63  ;;  %v8967_v45 = vmul.f32 %v8842_v46, %v15384_v23 }
 0x5a4   : > { %v8486_v49 = vpack.c.bf16 %v8468_v38, %v8467_v26  ;;  %v8488_v36 = vpack.c.bf16 %v8472_v25, %v8471_v16  ;;  %v8993_v37 = vpack.c.bf16 %v8964_v10, %v8963_v14  ;;  %v16345_v38 = vld [vmem:[#allocation16_spill] sm:$0xff] }
 0x5a5   : > { %v8852_v51 = vpop.permute.xlu0 %8851 }
 0x5a6   : > { %v8857_v57 = vpop.permute.xlu1 %8856  ;;  %v8969_v11 = vmul.f32 %v8852_v51, %v15390_v58  ;;  %v16350_v51 = vld [vmem:[#allocation27_spill] sm:$0xff] }
 0x5a7   : > { %v8970_v62 = vmul.f32 %v8857_v57, %v15392_v18 }
 0x5a9   : > { %11142 = vmatmul.mubr.msk.bf16.gmra.mrb[16].mxu1 %vm292_vm3, %v8482_v33  ;;  %v8862_v33 = vpop.permute.xlu0 %8861  ;;  %v8996_v12 = vpack.c.bf16 %v8970_v62, %v8969_v11 }
 0x5aa   : > { %11145 = vmatprep.mubr.msk.bf16.mxu1 %vm292_vm3, %v8483_v21  ;;  %v8867_v24 = vpop.permute.xlu1 %8866  ;;  %v8962_v21 = vmul.f32 %v8817_v17, %v15349_v2  ;;  %v8968_v2 = vmul.f32 %v8847_v40, %v15377_v22  ;;  %v8971_v22 = vmul.f32 %v8862_v33, %v15402_v15  ;;  %v16347_v40 = vld [vmem:[#allocation21_spill] sm:$0xff] }
 0x5ab   : > { %v8972_v50 = vmul.f32 %v8867_v24, %v15395_v30  ;;  %v16353_v33 = vld [vmem:[#allocation29_spill] sm:$0xff] }
 0x5ac   : > { %v8992_v48 = vpack.c.bf16 %v8962_v21, %v8961_v44  ;;  %v8995_v3 = vpack.c.bf16 %v8968_v2, %v8967_v45  ;;  %v15869_v2 = vld [vmem:[%s15965_s5] ss:$0 sm:$0xff] }
 0x5ad   : > { %v8872_v52 = vpop.permute.xlu0 %8871  ;;  %v8997_v23 = vpack.c.bf16 %v8972_v50, %v8971_v22 }
 0x5ae   : > { %v8877_v39 = vpop.permute.xlu1 %8876  ;;  %v8973_v18 = vmul.f32 %v8872_v52, %v15408_v61  ;;  %v8765_v52 = vld [vmem:[#allocation3 + $0x112] sm:$0xff] }
 0x5af   : > { %v8974_v8 = vmul.f32 %v8877_v39, %v15410_v13 }
 0x5b1   : > { %11146 = vmatmul.mubr.msk.bf16.gmra.mrb[20].mxu1 %vm292_vm3, %v8484_v53  ;;  %v8882_v63 = vpop.permute.xlu0 %8881  ;;  %v8998_v55 = vpack.c.bf16 %v8974_v8, %v8973_v18 }
 0x5b2   : > { %11149 = vmatprep.mubr.msk.bf16.mxu1 %vm292_vm3, %v8485_v56  ;;  %v8887_v17 = vpop.permute.xlu1 %8886  ;;  %v8975_v53 = vmul.f32 %v8882_v63, %v15420_v28 }
 0x5b3   : > { %v8976_v58 = vmul.f32 %v8887_v17, %v15413_v41 }
 0x5b5   : > { %v8892_v27 = vpop.permute.xlu0 %8891  ;;  %v8999_v15 = vpack.c.bf16 %v8976_v58, %v8975_v53 }
 0x5b6   : > { %v8897_v29 = vpop.permute.xlu1 %8896  ;;  %v8977_v43 = vmul.f32 %v8892_v27, %v15426_v9 }
 0x5b7   : > { %v8978_v56 = vmul.f32 %v8897_v29, %v15428_v4 }
 0x5b9   : > { %11150 = vmatmul.mubr.msk.bf16.gmra.mrb[24].mxu1 %vm292_vm3, %v8486_v49  ;;  %v8902_v6 = vpop.permute.xlu0 %8901  ;;  %v9000_v26 = vpack.c.bf16 %v8978_v56, %v8977_v43 }
 0x5ba   : > { %11153 = vmatprep.mubr.msk.bf16.mxu1 %vm292_vm3, %v8487_v32  ;;  %v8907_v60 = vpop.permute.xlu1 %8906  ;;  %v8979_v61 = vmul.f32 %v8902_v6, %v16345_v38  ;;  %v16348_v32 = vld [vmem:[#allocation19_spill] sm:$0xff] }
 0x5bb   : > { %v8980_v13 = vmul.f32 %v8907_v60, %v15431_v47 }
 0x5bd   : > { %v8912_v31 = vpop.permute.xlu0 %8911  ;;  %v9001_v28 = vpack.c.bf16 %v8980_v13, %v8979_v61 }
 0x5be   : > { %v8917_v30 = vpop.permute.xlu1 %8916  ;;  %v8981_v46 = vmul.f32 %v8912_v31, %v16347_v40 }
 0x5bf   : > { %v8982_v54 = vmul.f32 %v8917_v30, %v16346_v42 }
 0x5c1   : > { %11154 = vmatmul.mubr.msk.bf16.gmra.mrb[28].mxu1 %vm292_vm3, %v8488_v36  ;;  %v8922_v41 = vpop.permute.xlu0 %8921  ;;  %v9002_v5 = vpack.c.bf16 %v8982_v54, %v8981_v46 }
 0x5c2   : > { %11159 = vmatprep.mubr.msk.bf16.mxu1 %vm292_vm3, %v8991_v59  ;;  %v8927_v20 = vpop.permute.xlu1 %8926  ;;  %v8983_v47 = vmul.f32 %v8922_v41, %v16349_v0  ;;  %v16352_v59 = vld [vmem:[#allocation26_spill] sm:$0xff] }
 0x5c3   : > { %v8984_v9 = vmul.f32 %v8927_v20, %v16348_v32 }
 0x5c5   : > { %v8932_v4 = vpop.permute.xlu0 %8931  ;;  %v9003_v25 = vpack.c.bf16 %v8984_v9, %v8983_v47 }
 0x5c6   : > { %v8937_v49 = vpop.permute.xlu1 %8936  ;;  %v8985_v36 = vmul.f32 %v8932_v4, %v16351_v1 }
 0x5c7   : > { %v8986_v7 = vmul.f32 %v8937_v49, %v16350_v51 }
 0x5c9   : > { %11160 = vmatmul.mubr.msk.bf16.vlgmr.msra.gmra.mrb[0].mxu1 %vm292_vm3, %v8992_v48  ;;  %v8942_v57 = vpop.permute.xlu0 %8941  ;;  %v9004_v44 = vpack.c.bf16 %v8986_v7, %v8985_v36  ;;  %v8766_v48 = vld [vmem:[#allocation3 + $0x11a] sm:$0xff] }
 0x5ca   : > { %11163 = vmatprep.mubr.msk.bf16.mxu1 %vm292_vm3, %v8993_v37  ;;  %v8947_v16 = vpop.permute.xlu1 %8946  ;;  %v8987_v21 = vmul.f32 %v8942_v57, %v16353_v33 }
 0x5cb   : > { %v8988_v24 = vmul.f32 %v8947_v16, %v16352_v59 }
 0x5cd   : > { %v9005_v10 = vpack.c.bf16 %v8988_v24, %v8987_v21  ;;  %v8952_v39 = vpop.permute.xlu0 %8951 }
 0x5ce   : > { %v8957_v14 = vpop.permute.xlu1 %8956  ;;  %v8989_v35 = vmul.f32 %v8952_v39, %v8765_v52 }
 0x5cf   : > { %v8990_v37 = vmul.f32 %v8957_v14, %v8766_v48 }
 0x5d1   : > { %11164 = vmatmul.mubr.msk.bf16.gmra.mrb[4].mxu1 %vm292_vm3, %v8994_v34  ;;  %v9006_v19 = vpack.c.bf16 %v8990_v37, %v8989_v35 }
 0x5d2   : > { %11167 = vmatprep.mubr.msk.bf16.mxu1 %vm292_vm3, %v8995_v3 }
 0x5d9   : > { %11168 = vmatmul.mubr.msk.bf16.gmra.mrb[8].mxu1 %vm292_vm3, %v8996_v12 }
 0x5da   : > { %11171 = vmatprep.mubr.msk.bf16.mxu1 %vm292_vm3, %v8997_v23 }
 0x5e1   : > { %11172 = vmatmul.mubr.msk.bf16.gmra.mrb[12].mxu1 %vm292_vm3, %v8998_v55 }
 0x5e2   : > { %11175 = vmatprep.mubr.msk.bf16.mxu1 %vm292_vm3, %v8999_v15 }
 0x5e9   : > { %11176 = vmatmul.mubr.msk.bf16.gmra.mrb[16].mxu1 %vm292_vm3, %v9000_v26 }
 0x5ea   : > { %11179 = vmatprep.mubr.msk.bf16.mxu1 %vm292_vm3, %v9001_v28 }
 0x5f1   : > { %11180 = vmatmul.mubr.msk.bf16.gmra.mrb[20].mxu1 %vm292_vm3, %v9002_v5 }
 0x5f2   : > { %11183 = vmatprep.mubr.msk.bf16.mxu1 %vm292_vm3, %v9003_v25 }
 0x5f9   : > { %11184 = vmatmul.mubr.msk.bf16.gmra.mrb[24].mxu1 %vm292_vm3, %v9004_v44 }
 0x5fa   : > { %11187 = vmatprep.mubr.msk.bf16.mxu1 %vm292_vm3, %v9005_v10 }
 0x601   : > { %11188 = vmatmul.mubr.msk.bf16.gmra.mrb[28].mxu1 %vm292_vm3, %v9006_v19 }
 0x69c   : > { %v11161_v45 = vpop.f32.mrb[0].mxu1 }
 0x69d   : > { %v9262_v17 = vadd.f32 %v11161_v45, %v15869_v2  ;;  %v9094_v63 = vpop.f32.mrb[1].mxu1 }
 0x69e   : > { %v9260_v34 = vadd.f32 %v15869_v2, %v9094_v63  ;;  %v11162_v3 = vpop.f32.mrb[2].mxu1 }
 0x69f   : > { %v9294_v62 = vmax.f32 %v9262_v17, 0.0  ;;  %v9263_v11 = vadd.f32 %v11162_v3, %v15869_v2  ;;  %v9097_v29 = vpop.f32.mrb[3].mxu1 }
 0x6a0   : > { %v9292_v27 = vmax.f32 %v9260_v34, 0.0  ;;  %v9261_v50 = vadd.f32 %v15869_v2, %v9097_v29 }
 0x6a1   : > { %9326 = vst.msk [vmem:[#allocation4 + $0x10] sm:$0xff] %vm292_vm3, %v9294_v62  ;;  %v9295_v22 = vmax.f32 %v9263_v11, 0.0 }
 0x6a2   : > { %9324 = vst.msk [vmem:[#allocation4] sm:$0xff] %vm292_vm3, %v9292_v27  ;;  %v9293_v12 = vmax.f32 %v9261_v50, 0.0 }
 0x6a3   : > { %9327 = vst.msk [vmem:[#allocation4 + $0x18] sm:$0xff] %vm292_vm3, %v9295_v22 }
 0x6a4   : > { %9325 = vst.msk [vmem:[#allocation4 + $0x8] sm:$0xff] %vm292_vm3, %v9293_v12  ;;  %v11165_v23 = vpop.f32.mrb[4].mxu1 }
 0x6a5   : > { %v9266_v60 = vadd.f32 %v11165_v23, %v15869_v2  ;;  %v9110_v6 = vpop.f32.mrb[5].mxu1 }
 0x6a6   : > { %v9264_v8 = vadd.f32 %v15869_v2, %v9110_v6  ;;  %v11166_v18 = vpop.f32.mrb[6].mxu1 }
 0x6a7   : > { %v9298_v58 = vmax.f32 %v9266_v60, 0.0  ;;  %v9267_v53 = vadd.f32 %v11166_v18, %v15869_v2  ;;  %v9113_v55 = vpop.f32.mrb[7].mxu1 }
 0x6a8   : > { %v9296_v30 = vmax.f32 %v9264_v8, 0.0  ;;  %v9265_v31 = vadd.f32 %v15869_v2, %v9113_v55 }
 0x6a9   : > { %9330 = vst.msk [vmem:[#allocation4 + $0x30] sm:$0xff] %vm292_vm3, %v9298_v58  ;;  %v9299_v15 = vmax.f32 %v9267_v53, 0.0 }
 0x6aa   : > { %v9358_v56 = vld [vmem:[#allocation4 + $0x10] ss:$2 sm:$0xff]  ;;  %v9390_v43 = vld [vmem:[#allocation4 + $0x11] ss:$2 sm:$0xff]  ;;  %9328 = vst.msk [vmem:[#allocation4 + $0x20] sm:$0xff] %vm292_vm3, %v9296_v30  ;;  %v9297_v13 = vmax.f32 %v9265_v31, 0.0 }
 0x6ab   : > { %v9420_v38 = vmax.f32 %v9358_v56, %v9390_v43  ;;  %v9356_v61 = vld [vmem:[#allocation4] ss:$2 sm:$0xff]  ;;  %v9388_v20 = vld [vmem:[#allocation4 + $0x1] ss:$2 sm:$0xff]  ;;  %9331 = vst.msk [vmem:[#allocation4 + $0x38] sm:$0xff] %vm292_vm3, %v9299_v15 }
 0x6ac   : > { %v9419_v41 = vmax.f32 %v9356_v61, %v9388_v20  ;;  %9329 = vst.msk [vmem:[#allocation4 + $0x28] sm:$0xff] %vm292_vm3, %v9297_v13  ;;  %v11169_v26 = vpop.f32.mrb[8].mxu1 }
 0x6ad   : > { %v9270_v28 = vadd.f32 %v11169_v26, %v15869_v2  ;;  %v9126_v42 = vpop.f32.mrb[9].mxu1 }
 0x6ae   : > { %v9435_v54 = vmax.f32 %v9419_v41, %v9420_v38  ;;  %v9268_v40 = vadd.f32 %v15869_v2, %v9126_v42  ;;  %v11170_v46 = vpop.f32.mrb[10].mxu1 }
 0x6af   : > { %v9302_v49 = vmax.f32 %v9270_v28, 0.0  ;;  %v9271_v4 = vadd.f32 %v11170_v46, %v15869_v2  ;;  %v9129_v32 = vpop.f32.mrb[11].mxu1 }
 0x6b0   : > { %9436 = vst.msk [vmem:[%s15891_s27] sm:$0xff] %vm292_vm3, %v9435_v54  ;;  %v9300_v9 = vmax.f32 %v9268_v40, 0.0  ;;  %v9269_v0 = vadd.f32 %v15869_v2, %v9129_v32 }
 0x6b1   : > { %9334 = vst.msk [vmem:[#allocation4 + $0x50] sm:$0xff] %vm292_vm3, %v9302_v49  ;;  %v9303_v47 = vmax.f32 %v9271_v4, 0.0 }
 0x6b2   : > { %v9362_v5 = vld [vmem:[#allocation4 + $0x30] ss:$2 sm:$0xff]  ;;  %v9394_v25 = vld [vmem:[#allocation4 + $0x31] ss:$2 sm:$0xff]  ;;  %9332 = vst.msk [vmem:[#allocation4 + $0x40] sm:$0xff] %vm292_vm3, %v9300_v9  ;;  %v9301_v16 = vmax.f32 %v9269_v0, 0.0 }
 0x6b3   : > { %v9422_v57 = vmax.f32 %v9362_v5, %v9394_v25  ;;  %v9360_v51 = vld [vmem:[#allocation4 + $0x20] ss:$2 sm:$0xff]  ;;  %v9392_v7 = vld [vmem:[#allocation4 + $0x21] ss:$2 sm:$0xff]  ;;  %9335 = vst.msk [vmem:[#allocation4 + $0x58] sm:$0xff] %vm292_vm3, %v9303_v47 }
 0x6b4   : > { %v9421_v1 = vmax.f32 %v9360_v51, %v9392_v7  ;;  %9333 = vst.msk [vmem:[#allocation4 + $0x48] sm:$0xff] %vm292_vm3, %v9301_v16  ;;  %v11173_v36 = vpop.f32.mrb[12].mxu1 }
 0x6b5   : > { %v9274_v59 = vadd.f32 %v11173_v36, %v15869_v2  ;;  %v9142_v24 = vpop.f32.mrb[13].mxu1 }
 0x6b6   : > { %v9437_v33 = vmax.f32 %v9421_v1, %v9422_v57  ;;  %v9272_v21 = vadd.f32 %v15869_v2, %v9142_v24  ;;  %v11174_v44 = vpop.f32.mrb[14].mxu1 }
 0x6b7   : > { %v9306_v10 = vmax.f32 %v9274_v59, 0.0  ;;  %v9275_v14 = vadd.f32 %v11174_v44, %v15869_v2  ;;  %v9145_v48 = vpop.f32.mrb[15].mxu1 }
 0x6b8   : > { %9438 = vst.msk [vmem:[%s15891_s27 + $0x8] sm:$0xff] %vm292_vm3, %v9437_v33  ;;  %v9304_v39 = vmax.f32 %v9272_v21, 0.0  ;;  %v9273_v52 = vadd.f32 %v15869_v2, %v9145_v48 }
 0x6b9   : > { %9338 = vst.msk [vmem:[#allocation4 + $0x70] sm:$0xff] %vm292_vm3, %v9306_v10  ;;  %v9307_v37 = vmax.f32 %v9275_v14, 0.0 }
 0x6ba   : > { %v9366_v35 = vld [vmem:[#allocation4 + $0x50] ss:$2 sm:$0xff]  ;;  %v9398_v19 = vld [vmem:[#allocation4 + $0x51] ss:$2 sm:$0xff]  ;;  %9336 = vst.msk [vmem:[#allocation4 + $0x60] sm:$0xff] %vm292_vm3, %v9304_v39  ;;  %v9305_v45 = vmax.f32 %v9273_v52, 0.0 }
 0x6bb   : > { %v9424_v17 = vmax.f32 %v9366_v35, %v9398_v19  ;;  %v9364_v63 = vld [vmem:[#allocation4 + $0x40] ss:$2 sm:$0xff]  ;;  %v9396_v34 = vld [vmem:[#allocation4 + $0x41] ss:$2 sm:$0xff]  ;;  %9339 = vst.msk [vmem:[#allocation4 + $0x78] sm:$0xff] %vm292_vm3, %v9307_v37 }
 0x6bc   : > { %v9423_v3 = vmax.f32 %v9364_v63, %v9396_v34  ;;  %9337 = vst.msk [vmem:[#allocation4 + $0x68] sm:$0xff] %vm292_vm3, %v9305_v45  ;;  %v11177_v62 = vpop.f32.mrb[16].mxu1 }
 0x6bd   : > { %v9278_v11 = vadd.f32 %v11177_v62, %v15869_v2  ;;  %v9158_v29 = vpop.f32.mrb[17].mxu1 }
 0x6be   : > { %v9439_v27 = vmax.f32 %v9423_v3, %v9424_v17  ;;  %v9276_v50 = vadd.f32 %v15869_v2, %v9158_v29  ;;  %v11178_v22 = vpop.f32.mrb[18].mxu1 }
 0x6bf   : > { %v9310_v12 = vmax.f32 %v9278_v11, 0.0  ;;  %v9279_v23 = vadd.f32 %v11178_v22, %v15869_v2  ;;  %v9161_v60 = vpop.f32.mrb[19].mxu1 }
 0x6c0   : > { %9440 = vst.msk [vmem:[%s15891_s27 + $0x10] sm:$0xff] %vm292_vm3, %v9439_v27  ;;  %v9308_v6 = vmax.f32 %v9276_v50, 0.0  ;;  %v9277_v8 = vadd.f32 %v15869_v2, %v9161_v60 }
 0x6c1   : > { %9342 = vst.msk [vmem:[#allocation4 + $0x90] sm:$0xff] %vm292_vm3, %v9310_v12  ;;  %v9311_v18 = vmax.f32 %v9279_v23, 0.0 }
 0x6c2   : > { %v9370_v58 = vld [vmem:[#allocation4 + $0x70] ss:$2 sm:$0xff]  ;;  %v9402_v53 = vld [vmem:[#allocation4 + $0x71] ss:$2 sm:$0xff]  ;;  %9340 = vst.msk [vmem:[#allocation4 + $0x80] sm:$0xff] %vm292_vm3, %v9308_v6  ;;  %v9309_v55 = vmax.f32 %v9277_v8, 0.0 }
 0x6c3   : > { %v9426_v30 = vmax.f32 %v9370_v58, %v9402_v53  ;;  %v9368_v31 = vld [vmem:[#allocation4 + $0x60] ss:$2 sm:$0xff]  ;;  %v9400_v15 = vld [vmem:[#allocation4 + $0x61] ss:$2 sm:$0xff]  ;;  %9343 = vst.msk [vmem:[#allocation4 + $0x98] sm:$0xff] %vm292_vm3, %v9311_v18 }
 0x6c4   : > { %v9425_v56 = vmax.f32 %v9368_v31, %v9400_v15  ;;  %9341 = vst.msk [vmem:[#allocation4 + $0x88] sm:$0xff] %vm292_vm3, %v9309_v55  ;;  %v11181_v43 = vpop.f32.mrb[20].mxu1 }
 0x6c5   : > { %v9282_v13 = vadd.f32 %v11181_v43, %v15869_v2  ;;  %v9174_v38 = vpop.f32.mrb[21].mxu1 }
 0x6c6   : > { %v9441_v61 = vmax.f32 %v9425_v56, %v9426_v30  ;;  %v9280_v20 = vadd.f32 %v15869_v2, %v9174_v38  ;;  %v11182_v41 = vpop.f32.mrb[22].mxu1 }
 0x6c7   : > { %v9314_v26 = vmax.f32 %v9282_v13, 0.0  ;;  %v9283_v28 = vadd.f32 %v11182_v41, %v15869_v2  ;;  %v9177_v42 = vpop.f32.mrb[23].mxu1 }
 0x6c8   : > { %9442 = vst.msk [vmem:[%s15891_s27 + $0x18] sm:$0xff] %vm292_vm3, %v9441_v61  ;;  %v9312_v54 = vmax.f32 %v9280_v20, 0.0  ;;  %v9281_v40 = vadd.f32 %v15869_v2, %v9177_v42 }
 0x6c9   : > { %9346 = vst.msk [vmem:[#allocation4 + $0xb0] sm:$0xff] %vm292_vm3, %v9314_v26  ;;  %v9315_v46 = vmax.f32 %v9283_v28, 0.0 }
 0x6ca   : > { %v9374_v49 = vld [vmem:[#allocation4 + $0x90] ss:$2 sm:$0xff]  ;;  %v9406_v4 = vld [vmem:[#allocation4 + $0x91] ss:$2 sm:$0xff]  ;;  %9344 = vst.msk [vmem:[#allocation4 + $0xa0] sm:$0xff] %vm292_vm3, %v9312_v54  ;;  %v9313_v32 = vmax.f32 %v9281_v40, 0.0 }
 0x6cb   : > { %v9428_v9 = vmax.f32 %v9374_v49, %v9406_v4  ;;  %v9372_v0 = vld [vmem:[#allocation4 + $0x80] ss:$2 sm:$0xff]  ;;  %v9404_v47 = vld [vmem:[#allocation4 + $0x81] ss:$2 sm:$0xff]  ;;  %9347 = vst.msk [vmem:[#allocation4 + $0xb8] sm:$0xff] %vm292_vm3, %v9315_v46 }
 0x6cc   : > { %v9427_v5 = vmax.f32 %v9372_v0, %v9404_v47  ;;  %9345 = vst.msk [vmem:[#allocation4 + $0xa8] sm:$0xff] %vm292_vm3, %v9313_v32  ;;  %v11185_v25 = vpop.f32.mrb[24].mxu1 }
 0x6cd   : > { %v9286_v16 = vadd.f32 %v11185_v25, %v15869_v2  ;;  %v9190_v57 = vpop.f32.mrb[25].mxu1 }
 0x6ce   : > { %v9443_v51 = vmax.f32 %v9427_v5, %v9428_v9  ;;  %v9284_v7 = vadd.f32 %v15869_v2, %v9190_v57  ;;  %v11186_v1 = vpop.f32.mrb[26].mxu1 }
 0x6cf   : > { %v9318_v36 = vmax.f32 %v9286_v16, 0.0  ;;  %v9287_v59 = vadd.f32 %v11186_v1, %v15869_v2  ;;  %v9193_v24 = vpop.f32.mrb[27].mxu1 }
 0x6d0   : > { %9444 = vst.msk [vmem:[%s15891_s27 + $0x20] sm:$0xff] %vm292_vm3, %v9443_v51  ;;  %v9316_v33 = vmax.f32 %v9284_v7, 0.0  ;;  %v9285_v21 = vadd.f32 %v15869_v2, %v9193_v24 }
 0x6d1   : > { %9350 = vst.msk [vmem:[#allocation4 + $0xd0] sm:$0xff] %vm292_vm3, %v9318_v36  ;;  %v9319_v44 = vmax.f32 %v9287_v59, 0.0 }
 0x6d2   : > { %v9378_v10 = vld [vmem:[#allocation4 + $0xb0] ss:$2 sm:$0xff]  ;;  %v9410_v14 = vld [vmem:[#allocation4 + $0xb1] ss:$2 sm:$0xff]  ;;  %9348 = vst.msk [vmem:[#allocation4 + $0xc0] sm:$0xff] %vm292_vm3, %v9316_v33  ;;  %v9317_v48 = vmax.f32 %v9285_v21, 0.0 }
 0x6d3   : > { %v9430_v39 = vmax.f32 %v9378_v10, %v9410_v14  ;;  %v9376_v52 = vld [vmem:[#allocation4 + $0xa0] ss:$2 sm:$0xff]  ;;  %v9408_v37 = vld [vmem:[#allocation4 + $0xa1] ss:$2 sm:$0xff]  ;;  %9351 = vst.msk [vmem:[#allocation4 + $0xd8] sm:$0xff] %vm292_vm3, %v9319_v44 }
 0x6d4   : > { %v9429_v35 = vmax.f32 %v9376_v52, %v9408_v37  ;;  %9349 = vst.msk [vmem:[#allocation4 + $0xc8] sm:$0xff] %vm292_vm3, %v9317_v48  ;;  %v11189_v19 = vpop.f32.mrb[28].mxu1 }
 0x6d5   : > { %v9290_v45 = vadd.f32 %v11189_v19, %v15869_v2  ;;  %v9206_v17 = vpop.f32.mrb[29].mxu1 }
 0x6d6   : > { %v9445_v63 = vmax.f32 %v9429_v35, %v9430_v39  ;;  %v9288_v34 = vadd.f32 %v15869_v2, %v9206_v17  ;;  %v11190_v3 = vpop.f32.mrb[30].mxu1 }
 0x6d7   : > { %v9322_v62 = vmax.f32 %v9290_v45, 0.0  ;;  %v9291_v11 = vadd.f32 %v11190_v3, %v15869_v2  ;;  %v9209_v29 = vpop.f32.mrb[31].mxu1 }
 0x6d8   : > { %9446 = vst.msk [vmem:[%s15891_s27 + $0x28] sm:$0xff] %vm292_vm3, %v9445_v63  ;;  %v9320_v27 = vmax.f32 %v9288_v34, 0.0  ;;  %v9289_v50 = vadd.f32 %v15869_v2, %v9209_v29 }
 0x6d9   : > { %9354 = vst.msk [vmem:[#allocation4 + $0xf0] sm:$0xff] %vm292_vm3, %v9322_v62  ;;  %v9323_v22 = vmax.f32 %v9291_v11, 0.0 }
 0x6da   : > { %v9382_v12 = vld [vmem:[#allocation4 + $0xd0] ss:$2 sm:$0xff]  ;;  %v9414_v23 = vld [vmem:[#allocation4 + $0xd1] ss:$2 sm:$0xff]  ;;  %9352 = vst.msk [vmem:[#allocation4 + $0xe0] sm:$0xff] %vm292_vm3, %v9320_v27  ;;  %v9321_v60 = vmax.f32 %v9289_v50, 0.0 }
 0x6db   : > { %v9432_v6 = vmax.f32 %v9382_v12, %v9414_v23  ;;  %v9380_v8 = vld [vmem:[#allocation4 + $0xc0] ss:$2 sm:$0xff]  ;;  %v9412_v18 = vld [vmem:[#allocation4 + $0xc1] ss:$2 sm:$0xff]  ;;  %9355 = vst.msk [vmem:[#allocation4 + $0xf8] sm:$0xff] %vm292_vm3, %v9323_v22 }
 0x6dc   : > { %v9431_v58 = vmax.f32 %v9380_v8, %v9412_v18  ;;  %9353 = vst.msk [vmem:[#allocation4 + $0xe8] sm:$0xff] %vm292_vm3, %v9321_v60 }
 0x6de   : > { %v9447_v53 = vmax.f32 %v9431_v58, %v9432_v6 }
 0x6e0   : > { %9448 = vst.msk [vmem:[%s15891_s27 + $0x30] sm:$0xff] %vm292_vm3, %v9447_v53 }
 0x6e2   : > { %v9386_v2 = vld [vmem:[#allocation4 + $0xf0] ss:$2 sm:$0xff]  ;;  %v9418_v55 = vld [vmem:[#allocation4 + $0xf1] ss:$2 sm:$0xff] }
 0x6e3   : > { %v9434_v30 = vmax.f32 %v9386_v2, %v9418_v55  ;;  %v9384_v31 = vld [vmem:[#allocation4 + $0xe0] ss:$2 sm:$0xff]  ;;  %v9416_v15 = vld [vmem:[#allocation4 + $0xe1] ss:$2 sm:$0xff] }
 0x6e4   : > { %v9433_v56 = vmax.f32 %v9384_v31, %v9416_v15 }
 0x6e6   : > { %v9449_v43 = vmax.f32 %v9433_v56, %v9434_v30 }
 0x6e8   : > { %9450 = vst.msk [vmem:[%s15891_s27 + $0x38] sm:$0xff] %vm292_vm3, %v9449_v43 }
 0x6e9 PF: > { %s16_s21 = sadd.s32 1, %s11855_s21  }
 0x6ea   : > { %p13_p4 = scmp.ge.s32.totalorder %s16_s21, 4  }
 0x6ec   :  { %15 = sbr.rel (!%p13_p4) target bundleno = 1 (0x1), region = 128 }

</bundles_post_ra>
